<compile_context>
chip_gen: v5e
topology: v5e:2x2
jax: 0.10.0
libtpu: 0.0.40
codegen_flags: <defaults>
</compile_context>

<pallas_src>
import functools
import math

import jax
import jax.numpy as jnp
from jax import lax
from jax.experimental import pallas as pl
from jax.experimental.pallas import tpu as pltpu


# ----------------------------------------------------------------------------
# Pallas kernel: per-batch fused kq/v projections + 2-head attention
# (matmul / softmax / matmul) + output projection + residual.
# ----------------------------------------------------------------------------
def _cross_atten_kernel(x1_ref, x2_ref, x_ref, wkq1_ref, wkq2_ref, bkq_ref,
                        wv_ref, bv_ref, wout_ref, bout_ref, o_ref, *, cdtype):
    f32 = jnp.float32
    x1 = x1_ref[0]                       # (N, C1)  compute dtype
    x2 = x2_ref[0]                       # (N, C2)  compute dtype
    x = x_ref[0]                         # (N, C1)  f32 (exact residual)
    xv = x.astype(cdtype)

    # kq projections.  BN fold, channel_shuffle(groups=2) permutation and the
    # 1/sqrt(m2) score scale are already folded into the stacked weights in the
    # wrapper; stack order along axis 0 is [k1, q1, k2, q2].
    def kq(i):
        return (jnp.dot(x1, wkq1_ref[i], preferred_element_type=f32)
                + jnp.dot(x2, wkq2_ref[i], preferred_element_type=f32)
                + bkq_ref[i])

    k1, q1, k2, q2 = kq(0), kq(1), kq(2), kq(3)

    # v projection, already split per head in the wrapper (no lane slicing).
    def vproj(i):
        return jnp.dot(xv, wv_ref[i], preferred_element_type=f32) + bv_ref[i]

    v1, v2 = vproj(0), vproj(1)

    def head(q, k, v):
        # scores (N, N); the 1/sqrt(m2) scale rides in the q weights.
        s = lax.dot_general(q.astype(cdtype), k.astype(cdtype),
                            (((1,), (1,)), ((), ())),
                            preferred_element_type=f32)
        s = s - jnp.max(s, axis=-1, keepdims=True)
        e = jnp.exp(s)
        l = jnp.sum(e, axis=-1, keepdims=True)
        pv = jnp.dot(e.astype(cdtype), v.astype(cdtype),
                     preferred_element_type=f32)
        # Normalize the (N, m1) PV product instead of the (N, N) probabilities
        # (dropout on the probabilities is identity in eval mode).
        return pv * pl.reciprocal(l, approx=False)

    a1 = head(q1, k1, v1)                # (N, m1)
    a2 = head(q2, k2, v2)                # (N, m1)

    # Output projection (bn_last and the scalar w folded in).  The lane concat
    # of [a1 | a2] is replaced by two dots against the row-split weight.
    vout = (jnp.dot(a1.astype(cdtype), wout_ref[0], preferred_element_type=f32)
            + jnp.dot(a2.astype(cdtype), wout_ref[1], preferred_element_type=f32)
            + bout_ref[...])
    o_ref[0] = (vout + x).astype(o_ref.dtype)


@functools.partial(jax.jit, static_argnames=("compute_dtype",))
def cross_atten_lite_split(x, x1, x2, params, w_scalar,
                           *, compute_dtype=jnp.float32):
    """x, x1: (B, inc1, H, W);  x2: (B, inc2, H, W)  -- NCHW like PyTorch."""
    eps = 1e-5
    B, C1, H, W = x.shape
    C2 = x2.shape[1]
    N = H * W
    m1 = C1 // 4
    m2 = C2 // 4

    # ---- parameter folding (setup glue, plain JAX, fused under jit) ----------
    g1, b1, mu1, var1 = params["bn_x1"]
    g2, b2, mu2, var2 = params["bn_x2"]
    s1 = g1 / jnp.sqrt(var1 + eps); t1 = b1 - mu1 * s1
    s2 = g2 / jnp.sqrt(var2 + eps); t2 = b2 - mu2 * s2
    s12 = jnp.concatenate([s1, s2]); t12 = jnp.concatenate([t1, t2])

    Wkq1, bkq1 = params["kq1"]        # (2*m2, C1), (2*m2,)
    Wkq2, bkq2 = params["kq2"]        # (2*m2, C2), (2*m2,)
    # Concatenated projection, with the channel_shuffle(groups=2) permutation
    # applied to its output columns (static permutation, folded here).
    Wfull = jnp.zeros((C1 + C2, 4 * m2), jnp.float32)
    Wfull = Wfull.at[:C1, :2 * m2].set(Wkq1.T)
    Wfull = Wfull.at[C1:, 2 * m2:].set(Wkq2.T)
    bfull = jnp.concatenate([bkq1, bkq2])
    perm = jnp.array([(j % 2) * (2 * m2) + j // 2 for j in range(4 * m2)],
                     dtype=jnp.int32)
    Wcat = Wfull[:, perm]
    bcat = bfull[perm]
    # Fold bn_x1 / bn_x2 affine into the kq projection.
    Wkq_f = s12[:, None] * Wcat                     # (C1+C2, 4*m2)
    bkq_f = jnp.dot(t12, Wcat, precision=lax.Precision.HIGHEST) + bcat  # (4*m2,)
    # Fold the 1/sqrt(m2) score scale into the q chunks (columns [m2:2m2] and
    # [3m2:4m2]) so the kernel never scales the (N,N) score matrix.
    inv_sqrt = 1.0 / math.sqrt(float(m2))
    qscale = jnp.concatenate(
        [jnp.ones((m2,), jnp.float32), jnp.full((m2,), inv_sqrt, jnp.float32)] * 2)
    Wkq_f = Wkq_f * qscale[None, :]
    bkq_f = bkq_f * qscale

    # Split per chunk ([k1,q1,k2,q2]) and per source (x1 rows / x2 rows) so the
    # kernel does no lane slicing.  (The channel_shuffle interleave leaves some
    # structural zeros inside each tiny (C, m2) slab; removing them would need
    # an in-kernel channel gather, which costs more than the K<=C1 MACs saved.)
    wkq_x1 = Wkq_f[:C1].reshape(C1, 4, m2).transpose(1, 0, 2)   # (4, C1, m2)
    wkq_x2 = Wkq_f[C1:].reshape(C2, 4, m2).transpose(1, 0, 2)   # (4, C2, m2)
    bkq = bkq_f.reshape(4, 1, m2)                               # (4, 1, m2)

    Wv, bv = params["v_conv"]                       # (2*m1, C1), (2*m1,)
    wv = Wv.T.reshape(C1, 2, m1).transpose(1, 0, 2)             # (2, C1, m1)
    bv_s = bv.reshape(2, 1, m1)                                 # (2, 1, m1)

    Wout, bout = params["out_conv"]                 # (C1, 2*m1), (C1,)
    gl, bl, mul, varl = params["bn_last"]
    sl = gl / jnp.sqrt(varl + eps); tl = bl - mul * sl
    # Fold bn_last and the scalar w into the output projection; split rows so
    # the kernel computes a1 @ wout[0] + a2 @ wout[1] (no lane concat).
    Wout_f = (Wout.T * (sl * w_scalar)[None, :]).reshape(2, m1, C1)  # (2, m1, C1)
    bout_f = ((bout * sl + tl) * w_scalar)[None, :]                  # (1, C1)

    # ---- data layout glue ----------------------------------------------------
    cd = compute_dtype
    x1f = x1.transpose(0, 2, 3, 1).reshape(B, N, C1).astype(cd)
    x2f = x2.transpose(0, 2, 3, 1).reshape(B, N, C2).astype(cd)
    xf = x.transpose(0, 2, 3, 1).reshape(B, N, C1)   # f32: residual stays exact
    wkq_x1 = wkq_x1.astype(cd)
    wkq_x2 = wkq_x2.astype(cd)
    wv_c = wv.astype(cd)
    wout_c = Wout_f.astype(cd)

    kernel = functools.partial(_cross_atten_kernel, cdtype=cd)
    out_flat = pl.pallas_call(
        kernel,
        out_shape=jax.ShapeDtypeStruct((B, N, C1), jnp.float32),
        grid_spec=pltpu.PrefetchScalarGridSpec(
            num_scalar_prefetch=0,
            grid=(B,),
            in_specs=[
                pl.BlockSpec((1, N, C1), lambda b: (b, 0, 0)),      # x1f
                pl.BlockSpec((1, N, C2), lambda b: (b, 0, 0)),      # x2f
                pl.BlockSpec((1, N, C1), lambda b: (b, 0, 0)),      # xf (residual)
                pl.BlockSpec((4, C1, m2), lambda b: (0, 0, 0)),     # wkq from x1
                pl.BlockSpec((4, C2, m2), lambda b: (0, 0, 0)),     # wkq from x2
                pl.BlockSpec((4, 1, m2), lambda b: (0, 0, 0)),      # bkq
                pl.BlockSpec((2, C1, m1), lambda b: (0, 0, 0)),     # wv
                pl.BlockSpec((2, 1, m1), lambda b: (0, 0, 0)),      # bv
                pl.BlockSpec((2, m1, C1), lambda b: (0, 0, 0)),     # wout
                pl.BlockSpec((1, C1), lambda b: (0, 0)),            # bout
            ],
            out_specs=pl.BlockSpec((1, N, C1), lambda b: (b, 0, 0)),
        ),
        compiler_params=pltpu.CompilerParams(
            dimension_semantics=("parallel",)),
    )(x1f, x2f, xf, wkq_x1, wkq_x2, bkq, wv_c, bv_s, wout_c, bout_f)

    return out_flat.reshape(B, H, W, C1).transpose(0, 3, 1, 2)


# ----------------------------------------------------------------------------
# Pure-JAX reference mirroring the PyTorch module (eval mode)
# ----------------------------------------------------------------------------
def reference(x, x1, x2, params, w_scalar):
    eps = 1e-5
    B, C1, H, W = x.shape
    C2 = x2.shape[1]
    N = H * W
    m1, m2 = C1 // 4, C2 // 4

    def bn_nchw(t, p):
        g, b, mu, var = p
        return (t - mu[None, :, None, None]) / jnp.sqrt(var + eps)[None, :, None, None] \
            * g[None, :, None, None] + b[None, :, None, None]

    with jax.default_matmul_precision("highest"):
        x1n = bn_nchw(x1, params["bn_x1"])
        x2n = bn_nchw(x2, params["bn_x2"])
        x1f = x1n.transpose(0, 2, 3, 1).reshape(B, N, C1)
        x2f = x2n.transpose(0, 2, 3, 1).reshape(B, N, C2)
        xf = x.transpose(0, 2, 3, 1).reshape(B, N, C1)

        Wkq1, bkq1 = params["kq1"]; Wkq2, bkq2 = params["kq2"]
        kq1 = x1f @ Wkq1.T + bkq1
        kq2 = x2f @ Wkq2.T + bkq2
        kq = jnp.concatenate([kq1, kq2], axis=2)
        C = kq.shape[2]
        kq = kq.reshape(B, N, 2, C // 2).transpose(0, 1, 3, 2).reshape(B, N, C)
        k1, q1, k2, q2 = (kq[..., 0:m2], kq[..., m2:2 * m2],
                          kq[..., 2 * m2:3 * m2], kq[..., 3 * m2:4 * m2])

        Wv, bv = params["v_conv"]
        v = xf @ Wv.T + bv
        v1, v2 = v[..., :m1], v[..., m1:]

        def head(q, k, vv):
            s = jnp.einsum('bnc,bmc->bnm', q, k) / jnp.sqrt(jnp.float32(m2))
            p = jax.nn.softmax(s, axis=-1)
            return jnp.einsum('bnm,bmc->bnc', p, vv)

        a1, a2 = head(q1, k1, v1), head(q2, k2, v2)
        Wout, bout = params["out_conv"]
        vo = jnp.concatenate([a1, a2], axis=-1) @ Wout.T + bout
        vo = vo.reshape(B, H, W, C1).transpose(0, 3, 1, 2)
        vo = bn_nchw(vo, params["bn_last"])
        return w_scalar * vo + x


# ----------------------------------------------------------------------------
def make_params(key, inc1, inc2):
    m1, m2 = inc1 // 4, inc2 // 4
    ks = jax.random.split(key, 16)

    def bn(k, c):
        k1, k2, k3, k4 = jax.random.split(k, 4)
        gamma = 1.0 + 0.1 * jax.random.normal(k1, (c,), jnp.float32)
        beta = 0.1 * jax.random.normal(k2, (c,), jnp.float32)
        mean = 0.1 * jax.random.normal(k3, (c,), jnp.float32)
        var = 1.0 + 0.2 * jnp.abs(jax.random.normal(k4, (c,), jnp.float32))
        return (gamma, beta, mean, var)

    def lin(k, out_f, in_f):
        kw, kb = jax.random.split(k)
        bound = 1.0 / math.sqrt(in_f)
        w = jax.random.uniform(kw, (out_f, in_f), jnp.float32, -bound, bound)
        b = jax.random.uniform(kb, (out_f,), jnp.float32, -bound, bound)
        return (w, b)

    return {
        "bn_x1": bn(ks[0], inc1),
        "bn_x2": bn(ks[1], inc2),
        "kq1": lin(ks[2], 2 * m2, inc1),
        "kq2": lin(ks[3], 2 * m2, inc2),
        "v_conv": lin(ks[4], 2 * m1, inc1),
        "out_conv": lin(ks[5], inc1, 2 * m1),
        "bn_last": bn(ks[6], inc1),
    }


if __name__ == "__main__":
    B, inc1, inc2, H, W = 2, 32, 16, 16, 16
    key = jax.random.PRNGKey(0)
    kx, kx1, kx2, kp = jax.random.split(key, 4)
    x = jax.random.normal(kx, (B, inc1, H, W), jnp.float32)
    x1 = jax.random.normal(kx1, (B, inc1, H, W), jnp.float32)
    x2 = jax.random.normal(kx2, (B, inc2, H, W), jnp.float32)
    params = make_params(kp, inc1, inc2)

    # Faithful module: self.w is initialized to 0 in __init__.
    w_param = 0.0
    out = jax.block_until_ready(cross_atten_lite_split(x, x1, x2, params, w_param))
    ref = reference(x, x1, x2, params, w_param)
    assert jnp.allclose(out, ref, atol=1e-3, rtol=1e-3), \
        float(jnp.max(jnp.abs(out - ref)))

    # Nonzero w so the attention path is actually exercised (f32 path).
    out_nz = jax.block_until_ready(cross_atten_lite_split(x, x1, x2, params, 0.5))
    ref_nz = reference(x, x1, x2, params, 0.5)
    assert jnp.allclose(out_nz, ref_nz, atol=1e-3, rtol=1e-3), \
        float(jnp.max(jnp.abs(out_nz - ref_nz)))

    # bf16 MXU-operand path (v5e/v6e/v7x throughput mode); f32 accumulation,
    # f32 softmax and residual — looser tolerance.
    out_bf = jax.block_until_ready(
        cross_atten_lite_split(x, x1, x2, params, 0.5,
                               compute_dtype=jnp.bfloat16))
    assert jnp.allclose(out_bf, ref_nz, atol=2e-2, rtol=2e-2), \
        float(jnp.max(jnp.abs(out_bf - ref_nz)))

    print("KERNEL_OK")
</pallas_src>

<mosaic_0001>
module attributes {stable_mosaic.version = 11 : i64} {
  func.func @_cross_atten_kernel(%arg0: i32, %arg1: memref<1x256x32xf32, #tpu.memory_space<vmem>>, %arg2: memref<1x256x16xf32, #tpu.memory_space<vmem>>, %arg3: memref<1x256x32xf32, #tpu.memory_space<vmem>>, %arg4: memref<4x32x4xf32, #tpu.memory_space<vmem>>, %arg5: memref<4x16x4xf32, #tpu.memory_space<vmem>>, %arg6: memref<4x1x4xf32, #tpu.memory_space<vmem>>, %arg7: memref<2x32x8xf32, #tpu.memory_space<vmem>>, %arg8: memref<2x1x8xf32, #tpu.memory_space<vmem>>, %arg9: memref<2x8x32xf32, #tpu.memory_space<vmem>>, %arg10: memref<1x32xf32, #tpu.memory_space<vmem>>, %arg11: memref<1x256x32xf32, #tpu.memory_space<vmem>>) attributes {dimension_semantics = [#tpu.dimension_semantics<parallel>], iteration_bounds = array<i64: 2>, scalar_prefetch = 0 : i64, scratch_operands = 0 : i64, tpu.core_type = #tpu.core_type<tc>, window_params = [{transform_indices = @transform_0, window_bounds = array<i64: 1, 256, 32>}, {transform_indices = @transform_1, window_bounds = array<i64: 1, 256, 16>}, {transform_indices = @transform_2, window_bounds = array<i64: 1, 256, 32>}, {pipeline_mode = #tpu.pipeline_mode<synchronous>, transform_indices = @transform_3, window_bounds = array<i64: 4, 32, 4>}, {pipeline_mode = #tpu.pipeline_mode<synchronous>, transform_indices = @transform_4, window_bounds = array<i64: 4, 16, 4>}, {pipeline_mode = #tpu.pipeline_mode<synchronous>, transform_indices = @transform_5, window_bounds = array<i64: 4, 1, 4>}, {pipeline_mode = #tpu.pipeline_mode<synchronous>, transform_indices = @transform_6, window_bounds = array<i64: 2, 32, 8>}, {pipeline_mode = #tpu.pipeline_mode<synchronous>, transform_indices = @transform_7, window_bounds = array<i64: 2, 1, 8>}, {pipeline_mode = #tpu.pipeline_mode<synchronous>, transform_indices = @transform_8, window_bounds = array<i64: 2, 8, 32>}, {pipeline_mode = #tpu.pipeline_mode<synchronous>, transform_indices = @transform_9, window_bounds = array<i64: 1, 32>}, {transform_indices = @transform_10, window_bounds = array<i64: 1, 256, 32>}]} {
    %c0 = arith.constant 0 : index
    %c0_0 = arith.constant 0 : index
    %c0_1 = arith.constant 0 : index
    %0 = vector.load %arg1[%c0, %c0_0, %c0_1] : memref<1x256x32xf32, #tpu.memory_space<vmem>>, vector<1x256x32xf32>
    %1 = vector.shape_cast %0 : vector<1x256x32xf32> to vector<256x32xf32>
    %c0_2 = arith.constant 0 : index
    %c0_3 = arith.constant 0 : index
    %c0_4 = arith.constant 0 : index
    %2 = vector.load %arg2[%c0_2, %c0_3, %c0_4] : memref<1x256x16xf32, #tpu.memory_space<vmem>>, vector<1x256x16xf32>
    %3 = vector.shape_cast %2 : vector<1x256x16xf32> to vector<256x16xf32>
    %c0_5 = arith.constant 0 : index
    %c0_6 = arith.constant 0 : index
    %c0_7 = arith.constant 0 : index
    %4 = vector.load %arg3[%c0_5, %c0_6, %c0_7] : memref<1x256x32xf32, #tpu.memory_space<vmem>>, vector<1x256x32xf32>
    %5 = vector.shape_cast %4 : vector<1x256x32xf32> to vector<256x32xf32>
    %c0_8 = arith.constant 0 : index
    %c0_9 = arith.constant 0 : index
    %c0_10 = arith.constant 0 : index
    %6 = vector.load %arg4[%c0_8, %c0_9, %c0_10] : memref<4x32x4xf32, #tpu.memory_space<vmem>>, vector<1x32x4xf32>
    %7 = vector.shape_cast %6 : vector<1x32x4xf32> to vector<32x4xf32>
    %cst = arith.constant dense<0.000000e+00> : vector<256x4xf32>
    %8 = tpu.matmul %1, %7, %cst {dimension_numbers = #tpu.dot_dimension_numbers<[1], [0], [0], [1], [0, 0, 1, 1], [], []>} : vector<256x32xf32>, vector<32x4xf32>, vector<256x4xf32> -> vector<256x4xf32>
    %c0_11 = arith.constant 0 : index
    %c0_12 = arith.constant 0 : index
    %c0_13 = arith.constant 0 : index
    %9 = vector.load %arg5[%c0_11, %c0_12, %c0_13] : memref<4x16x4xf32, #tpu.memory_space<vmem>>, vector<1x16x4xf32>
    %10 = vector.shape_cast %9 : vector<1x16x4xf32> to vector<16x4xf32>
    %cst_14 = arith.constant dense<0.000000e+00> : vector<256x4xf32>
    %11 = tpu.matmul %3, %10, %cst_14 {dimension_numbers = #tpu.dot_dimension_numbers<[1], [0], [0], [1], [0, 0, 1, 1], [], []>} : vector<256x16xf32>, vector<16x4xf32>, vector<256x4xf32> -> vector<256x4xf32>
    %12 = arith.addf %8, %11 : vector<256x4xf32>
    %c0_15 = arith.constant 0 : index
    %c0_16 = arith.constant 0 : index
    %c0_17 = arith.constant 0 : index
    %13 = vector.load %arg6[%c0_15, %c0_16, %c0_17] : memref<4x1x4xf32, #tpu.memory_space<vmem>>, vector<1x1x4xf32>
    %14 = vector.shape_cast %13 : vector<1x1x4xf32> to vector<1x4xf32>
    %15 = vector.broadcast %14 : vector<1x4xf32> to vector<256x4xf32>
    %16 = arith.addf %12, %15 : vector<256x4xf32>
    %c1 = arith.constant 1 : index
    %c0_18 = arith.constant 0 : index
    %c0_19 = arith.constant 0 : index
    %17 = vector.load %arg4[%c1, %c0_18, %c0_19] : memref<4x32x4xf32, #tpu.memory_space<vmem>>, vector<1x32x4xf32>
    %18 = vector.shape_cast %17 : vector<1x32x4xf32> to vector<32x4xf32>
    %cst_20 = arith.constant dense<0.000000e+00> : vector<256x4xf32>
    %19 = tpu.matmul %1, %18, %cst_20 {dimension_numbers = #tpu.dot_dimension_numbers<[1], [0], [0], [1], [0, 0, 1, 1], [], []>} : vector<256x32xf32>, vector<32x4xf32>, vector<256x4xf32> -> vector<256x4xf32>
    %c1_21 = arith.constant 1 : index
    %c0_22 = arith.constant 0 : index
    %c0_23 = arith.constant 0 : index
    %20 = vector.load %arg5[%c1_21, %c0_22, %c0_23] : memref<4x16x4xf32, #tpu.memory_space<vmem>>, vector<1x16x4xf32>
    %21 = vector.shape_cast %20 : vector<1x16x4xf32> to vector<16x4xf32>
    %cst_24 = arith.constant dense<0.000000e+00> : vector<256x4xf32>
    %22 = tpu.matmul %3, %21, %cst_24 {dimension_numbers = #tpu.dot_dimension_numbers<[1], [0], [0], [1], [0, 0, 1, 1], [], []>} : vector<256x16xf32>, vector<16x4xf32>, vector<256x4xf32> -> vector<256x4xf32>
    %23 = arith.addf %19, %22 : vector<256x4xf32>
    %c1_25 = arith.constant 1 : index
    %c0_26 = arith.constant 0 : index
    %c0_27 = arith.constant 0 : index
    %24 = vector.load %arg6[%c1_25, %c0_26, %c0_27] : memref<4x1x4xf32, #tpu.memory_space<vmem>>, vector<1x1x4xf32>
    %25 = vector.shape_cast %24 : vector<1x1x4xf32> to vector<1x4xf32>
    %26 = vector.broadcast %25 : vector<1x4xf32> to vector<256x4xf32>
    %27 = arith.addf %23, %26 : vector<256x4xf32>
    %c2 = arith.constant 2 : index
    %c0_28 = arith.constant 0 : index
    %c0_29 = arith.constant 0 : index
    %28 = vector.load %arg4[%c2, %c0_28, %c0_29] : memref<4x32x4xf32, #tpu.memory_space<vmem>>, vector<1x32x4xf32>
    %29 = vector.shape_cast %28 : vector<1x32x4xf32> to vector<32x4xf32>
    %cst_30 = arith.constant dense<0.000000e+00> : vector<256x4xf32>
    %30 = tpu.matmul %1, %29, %cst_30 {dimension_numbers = #tpu.dot_dimension_numbers<[1], [0], [0], [1], [0, 0, 1, 1], [], []>} : vector<256x32xf32>, vector<32x4xf32>, vector<256x4xf32> -> vector<256x4xf32>
    %c2_31 = arith.constant 2 : index
    %c0_32 = arith.constant 0 : index
    %c0_33 = arith.constant 0 : index
    %31 = vector.load %arg5[%c2_31, %c0_32, %c0_33] : memref<4x16x4xf32, #tpu.memory_space<vmem>>, vector<1x16x4xf32>
    %32 = vector.shape_cast %31 : vector<1x16x4xf32> to vector<16x4xf32>
    %cst_34 = arith.constant dense<0.000000e+00> : vector<256x4xf32>
    %33 = tpu.matmul %3, %32, %cst_34 {dimension_numbers = #tpu.dot_dimension_numbers<[1], [0], [0], [1], [0, 0, 1, 1], [], []>} : vector<256x16xf32>, vector<16x4xf32>, vector<256x4xf32> -> vector<256x4xf32>
    %34 = arith.addf %30, %33 : vector<256x4xf32>
    %c2_35 = arith.constant 2 : index
    %c0_36 = arith.constant 0 : index
    %c0_37 = arith.constant 0 : index
    %35 = vector.load %arg6[%c2_35, %c0_36, %c0_37] : memref<4x1x4xf32, #tpu.memory_space<vmem>>, vector<1x1x4xf32>
    %36 = vector.shape_cast %35 : vector<1x1x4xf32> to vector<1x4xf32>
    %37 = vector.broadcast %36 : vector<1x4xf32> to vector<256x4xf32>
    %38 = arith.addf %34, %37 : vector<256x4xf32>
    %c3 = arith.constant 3 : index
    %c0_38 = arith.constant 0 : index
    %c0_39 = arith.constant 0 : index
    %39 = vector.load %arg4[%c3, %c0_38, %c0_39] : memref<4x32x4xf32, #tpu.memory_space<vmem>>, vector<1x32x4xf32>
    %40 = vector.shape_cast %39 : vector<1x32x4xf32> to vector<32x4xf32>
    %cst_40 = arith.constant dense<0.000000e+00> : vector<256x4xf32>
    %41 = tpu.matmul %1, %40, %cst_40 {dimension_numbers = #tpu.dot_dimension_numbers<[1], [0], [0], [1], [0, 0, 1, 1], [], []>} : vector<256x32xf32>, vector<32x4xf32>, vector<256x4xf32> -> vector<256x4xf32>
    %c3_41 = arith.constant 3 : index
    %c0_42 = arith.constant 0 : index
    %c0_43 = arith.constant 0 : index
    %42 = vector.load %arg5[%c3_41, %c0_42, %c0_43] : memref<4x16x4xf32, #tpu.memory_space<vmem>>, vector<1x16x4xf32>
    %43 = vector.shape_cast %42 : vector<1x16x4xf32> to vector<16x4xf32>
    %cst_44 = arith.constant dense<0.000000e+00> : vector<256x4xf32>
    %44 = tpu.matmul %3, %43, %cst_44 {dimension_numbers = #tpu.dot_dimension_numbers<[1], [0], [0], [1], [0, 0, 1, 1], [], []>} : vector<256x16xf32>, vector<16x4xf32>, vector<256x4xf32> -> vector<256x4xf32>
    %45 = arith.addf %41, %44 : vector<256x4xf32>
    %c3_45 = arith.constant 3 : index
    %c0_46 = arith.constant 0 : index
    %c0_47 = arith.constant 0 : index
    %46 = vector.load %arg6[%c3_45, %c0_46, %c0_47] : memref<4x1x4xf32, #tpu.memory_space<vmem>>, vector<1x1x4xf32>
    %47 = vector.shape_cast %46 : vector<1x1x4xf32> to vector<1x4xf32>
    %48 = vector.broadcast %47 : vector<1x4xf32> to vector<256x4xf32>
    %49 = arith.addf %45, %48 : vector<256x4xf32>
    %c0_48 = arith.constant 0 : index
    %c0_49 = arith.constant 0 : index
    %c0_50 = arith.constant 0 : index
    %50 = vector.load %arg7[%c0_48, %c0_49, %c0_50] : memref<2x32x8xf32, #tpu.memory_space<vmem>>, vector<1x32x8xf32>
    %51 = vector.shape_cast %50 : vector<1x32x8xf32> to vector<32x8xf32>
    %cst_51 = arith.constant dense<0.000000e+00> : vector<256x8xf32>
    %52 = tpu.matmul %5, %51, %cst_51 {dimension_numbers = #tpu.dot_dimension_numbers<[1], [0], [0], [1], [0, 0, 1, 1], [], []>} : vector<256x32xf32>, vector<32x8xf32>, vector<256x8xf32> -> vector<256x8xf32>
    %c0_52 = arith.constant 0 : index
    %c0_53 = arith.constant 0 : index
    %c0_54 = arith.constant 0 : index
    %53 = vector.load %arg8[%c0_52, %c0_53, %c0_54] : memref<2x1x8xf32, #tpu.memory_space<vmem>>, vector<1x1x8xf32>
    %54 = vector.shape_cast %53 : vector<1x1x8xf32> to vector<1x8xf32>
    %55 = vector.broadcast %54 : vector<1x8xf32> to vector<256x8xf32>
    %56 = arith.addf %52, %55 : vector<256x8xf32>
    %c1_55 = arith.constant 1 : index
    %c0_56 = arith.constant 0 : index
    %c0_57 = arith.constant 0 : index
    %57 = vector.load %arg7[%c1_55, %c0_56, %c0_57] : memref<2x32x8xf32, #tpu.memory_space<vmem>>, vector<1x32x8xf32>
    %58 = vector.shape_cast %57 : vector<1x32x8xf32> to vector<32x8xf32>
    %cst_58 = arith.constant dense<0.000000e+00> : vector<256x8xf32>
    %59 = tpu.matmul %5, %58, %cst_58 {dimension_numbers = #tpu.dot_dimension_numbers<[1], [0], [0], [1], [0, 0, 1, 1], [], []>} : vector<256x32xf32>, vector<32x8xf32>, vector<256x8xf32> -> vector<256x8xf32>
    %c1_59 = arith.constant 1 : index
    %c0_60 = arith.constant 0 : index
    %c0_61 = arith.constant 0 : index
    %60 = vector.load %arg8[%c1_59, %c0_60, %c0_61] : memref<2x1x8xf32, #tpu.memory_space<vmem>>, vector<1x1x8xf32>
    %61 = vector.shape_cast %60 : vector<1x1x8xf32> to vector<1x8xf32>
    %62 = vector.broadcast %61 : vector<1x8xf32> to vector<256x8xf32>
    %63 = arith.addf %59, %62 : vector<256x8xf32>
    %cst_62 = arith.constant dense<0.000000e+00> : vector<256x256xf32>
    %64 = tpu.matmul %27, %16, %cst_62 {dimension_numbers = #tpu.dot_dimension_numbers<[1], [1], [0], [0], [0, 0, 1, 0], [], []>} : vector<256x4xf32>, vector<256x4xf32>, vector<256x256xf32> -> vector<256x256xf32>
    %cst_63 = arith.constant dense<0xFF800000> : vector<256xf32>
    %65 = vector.multi_reduction <maximumf>, %64, %cst_63 [1] : vector<256x256xf32> to vector<256xf32>
    %66 = vector.shape_cast %65 : vector<256xf32> to vector<256x1xf32>
    %67 = vector.broadcast %66 : vector<256x1xf32> to vector<256x256xf32>
    %68 = arith.subf %64, %67 : vector<256x256xf32>
    %69 = math.exp %68 : vector<256x256xf32>
    %cst_64 = arith.constant dense<0.000000e+00> : vector<256xf32>
    %70 = vector.multi_reduction <add>, %69, %cst_64 [1] : vector<256x256xf32> to vector<256xf32>
    %71 = vector.shape_cast %70 : vector<256xf32> to vector<256x1xf32>
    %cst_65 = arith.constant dense<0.000000e+00> : vector<256x8xf32>
    %72 = tpu.matmul %69, %56, %cst_65 {dimension_numbers = #tpu.dot_dimension_numbers<[1], [0], [0], [1], [0, 0, 1, 1], [], []>} : vector<256x256xf32>, vector<256x8xf32>, vector<256x8xf32> -> vector<256x8xf32>
    %73 = tpu.reciprocal %71 : vector<256x1xf32> -> vector<256x1xf32>
    %74 = vector.broadcast %73 : vector<256x1xf32> to vector<256x8xf32>
    %75 = arith.mulf %72, %74 : vector<256x8xf32>
    %cst_66 = arith.constant dense<0.000000e+00> : vector<256x256xf32>
    %76 = tpu.matmul %49, %38, %cst_66 {dimension_numbers = #tpu.dot_dimension_numbers<[1], [1], [0], [0], [0, 0, 1, 0], [], []>} : vector<256x4xf32>, vector<256x4xf32>, vector<256x256xf32> -> vector<256x256xf32>
    %cst_67 = arith.constant dense<0xFF800000> : vector<256xf32>
    %77 = vector.multi_reduction <maximumf>, %76, %cst_67 [1] : vector<256x256xf32> to vector<256xf32>
    %78 = vector.shape_cast %77 : vector<256xf32> to vector<256x1xf32>
    %79 = vector.broadcast %78 : vector<256x1xf32> to vector<256x256xf32>
    %80 = arith.subf %76, %79 : vector<256x256xf32>
    %81 = math.exp %80 : vector<256x256xf32>
    %cst_68 = arith.constant dense<0.000000e+00> : vector<256xf32>
    %82 = vector.multi_reduction <add>, %81, %cst_68 [1] : vector<256x256xf32> to vector<256xf32>
    %83 = vector.shape_cast %82 : vector<256xf32> to vector<256x1xf32>
    %cst_69 = arith.constant dense<0.000000e+00> : vector<256x8xf32>
    %84 = tpu.matmul %81, %63, %cst_69 {dimension_numbers = #tpu.dot_dimension_numbers<[1], [0], [0], [1], [0, 0, 1, 1], [], []>} : vector<256x256xf32>, vector<256x8xf32>, vector<256x8xf32> -> vector<256x8xf32>
    %85 = tpu.reciprocal %83 : vector<256x1xf32> -> vector<256x1xf32>
    %86 = vector.broadcast %85 : vector<256x1xf32> to vector<256x8xf32>
    %87 = arith.mulf %84, %86 : vector<256x8xf32>
    %c0_70 = arith.constant 0 : index
    %c0_71 = arith.constant 0 : index
    %c0_72 = arith.constant 0 : index
    %88 = vector.load %arg9[%c0_70, %c0_71, %c0_72] : memref<2x8x32xf32, #tpu.memory_space<vmem>>, vector<1x8x32xf32>
    %89 = vector.shape_cast %88 : vector<1x8x32xf32> to vector<8x32xf32>
    %cst_73 = arith.constant dense<0.000000e+00> : vector<256x32xf32>
    %90 = tpu.matmul %75, %89, %cst_73 {dimension_numbers = #tpu.dot_dimension_numbers<[1], [0], [0], [1], [0, 0, 1, 1], [], []>} : vector<256x8xf32>, vector<8x32xf32>, vector<256x32xf32> -> vector<256x32xf32>
    %c1_74 = arith.constant 1 : index
    %c0_75 = arith.constant 0 : index
    %c0_76 = arith.constant 0 : index
    %91 = vector.load %arg9[%c1_74, %c0_75, %c0_76] : memref<2x8x32xf32, #tpu.memory_space<vmem>>, vector<1x8x32xf32>
    %92 = vector.shape_cast %91 : vector<1x8x32xf32> to vector<8x32xf32>
    %cst_77 = arith.constant dense<0.000000e+00> : vector<256x32xf32>
    %93 = tpu.matmul %87, %92, %cst_77 {dimension_numbers = #tpu.dot_dimension_numbers<[1], [0], [0], [1], [0, 0, 1, 1], [], []>} : vector<256x8xf32>, vector<8x32xf32>, vector<256x32xf32> -> vector<256x32xf32>
    %94 = arith.addf %90, %93 : vector<256x32xf32>
    %c0_78 = arith.constant 0 : index
    %c0_79 = arith.constant 0 : index
    %95 = vector.load %arg10[%c0_78, %c0_79] : memref<1x32xf32, #tpu.memory_space<vmem>>, vector<1x32xf32>
    %96 = vector.broadcast %95 : vector<1x32xf32> to vector<256x32xf32>
    %97 = arith.addf %94, %96 : vector<256x32xf32>
    %98 = arith.addf %97, %5 : vector<256x32xf32>
    %c0_80 = arith.constant 0 : index
    %c0_81 = arith.constant 0 : index
    %c0_82 = arith.constant 0 : index
    %99 = vector.load %arg11[%c0_80, %c0_81, %c0_82] : memref<1x256x32xf32, #tpu.memory_space<vmem>>, vector<1x256x32xf32>
    %100 = vector.shape_cast %99 : vector<1x256x32xf32> to vector<256x32xf32>
    %101 = vector.shape_cast %98 : vector<256x32xf32> to vector<1x256x32xf32>
    tpu.vector_store %arg11[%c0_80, %c0_81, %c0_82], %101 {strides = array<i32>} : memref<1x256x32xf32, #tpu.memory_space<vmem>>, vector<1x256x32xf32>,
    return
  }
  func.func @transform_0(%arg0: i32) -> (i32, i32, i32) {
    %c0_i32 = arith.constant 0 : i32
    %c0_i32_0 = arith.constant 0 : i32
    %c0_i32_1 = arith.constant 0 : i32
    return %arg0, %c0_i32, %c0_i32_0 : i32, i32, i32
  }
  func.func @transform_1(%arg0: i32) -> (i32, i32, i32) {
    %c0_i32 = arith.constant 0 : i32
    %c0_i32_0 = arith.constant 0 : i32
    %c0_i32_1 = arith.constant 0 : i32
    return %arg0, %c0_i32, %c0_i32_0 : i32, i32, i32
  }
  func.func @transform_2(%arg0: i32) -> (i32, i32, i32) {
    %c0_i32 = arith.constant 0 : i32
    %c0_i32_0 = arith.constant 0 : i32
    %c0_i32_1 = arith.constant 0 : i32
    return %arg0, %c0_i32, %c0_i32_0 : i32, i32, i32
  }
  func.func @transform_3(%arg0: i32) -> (i32, i32, i32) {
    %c0_i32 = arith.constant 0 : i32
    %c0_i32_0 = arith.constant 0 : i32
    %c0_i32_1 = arith.constant 0 : i32
    %c0_i32_2 = arith.constant 0 : i32
    return %c0_i32, %c0_i32_0, %c0_i32_1 : i32, i32, i32
  }
  func.func @transform_4(%arg0: i32) -> (i32, i32, i32) {
    %c0_i32 = arith.constant 0 : i32
    %c0_i32_0 = arith.constant 0 : i32
    %c0_i32_1 = arith.constant 0 : i32
    %c0_i32_2 = arith.constant 0 : i32
    return %c0_i32, %c0_i32_0, %c0_i32_1 : i32, i32, i32
  }
  func.func @transform_5(%arg0: i32) -> (i32, i32, i32) {
    %c0_i32 = arith.constant 0 : i32
    %c0_i32_0 = arith.constant 0 : i32
    %c0_i32_1 = arith.constant 0 : i32
    %c0_i32_2 = arith.constant 0 : i32
    return %c0_i32, %c0_i32_0, %c0_i32_1 : i32, i32, i32
  }
  func.func @transform_6(%arg0: i32) -> (i32, i32, i32) {
    %c0_i32 = arith.constant 0 : i32
    %c0_i32_0 = arith.constant 0 : i32
    %c0_i32_1 = arith.constant 0 : i32
    %c0_i32_2 = arith.constant 0 : i32
    return %c0_i32, %c0_i32_0, %c0_i32_1 : i32, i32, i32
  }
  func.func @transform_7(%arg0: i32) -> (i32, i32, i32) {
    %c0_i32 = arith.constant 0 : i32
    %c0_i32_0 = arith.constant 0 : i32
    %c0_i32_1 = arith.constant 0 : i32
    %c0_i32_2 = arith.constant 0 : i32
    return %c0_i32, %c0_i32_0, %c0_i32_1 : i32, i32, i32
  }
  func.func @transform_8(%arg0: i32) -> (i32, i32, i32) {
    %c0_i32 = arith.constant 0 : i32
    %c0_i32_0 = arith.constant 0 : i32
    %c0_i32_1 = arith.constant 0 : i32
    %c0_i32_2 = arith.constant 0 : i32
    return %c0_i32, %c0_i32_0, %c0_i32_1 : i32, i32, i32
  }
  func.func @transform_9(%arg0: i32) -> (i32, i32) {
    %c0_i32 = arith.constant 0 : i32
    %c0_i32_0 = arith.constant 0 : i32
    %c0_i32_1 = arith.constant 0 : i32
    return %c0_i32, %c0_i32_0 : i32, i32
  }
  func.func @transform_10(%arg0: i32) -> (i32, i32, i32) {
    %c0_i32 = arith.constant 0 : i32
    %c0_i32_0 = arith.constant 0 : i32
    %c0_i32_1 = arith.constant 0 : i32
    return %arg0, %c0_i32, %c0_i32_0 : i32, i32, i32
  }
}

</mosaic_0001>

<bundles_post_ra>
// kernel: cross_atten_lite_split.1
= control target key start
LH: loop header
LB: loop body
LE: loop exit
PB: predicated region body
PF: predicated region fallthrough
CT: control target
= control target key end

     0   :  { %s11722_s0 = inlined_call_operand.vmem [shape: f32[2,256,32], index: 0, kind: input, shape index: {}]   ;;  %s11723_s1 = inlined_call_operand.vmem [shape: f32[2,256,16], index: 1, kind: input, shape index: {}]   ;;  %s11724_s2 = inlined_call_operand.vmem [shape: f32[2,256,32], index: 2, kind: input, shape index: {}]   ;;  %s11725_s3 = inlined_call_operand.vmem [shape: f32[4,32,4], index: 3, kind: input, shape index: {}]   ;;  %s11726_s4 = inlined_call_operand.vmem [shape: f32[4,16,4], index: 4, kind: input, shape index: {}]   ;;  %s11727_s5 = inlined_call_operand.vmem [shape: f32[4,1,4], index: 5, kind: input, shape index: {}]   ;;  %s11728_s6 = inlined_call_operand.vmem [shape: f32[2,32,8], index: 6, kind: input, shape index: {}]   ;;  %s11729_s7 = inlined_call_operand.vmem [shape: f32[2,1,8], index: 7, kind: input, shape index: {}]   ;;  %s11730_s8 = inlined_call_operand.vmem [shape: f32[2,8,32], index: 8, kind: input, shape index: {}]   ;;  %s11731_s9 = inlined_call_operand.vmem [shape: f32[1,32], index: 9, kind: input, shape index: {}]   ;;  %s11732_s10 = inlined_call_operand.hbm [shape: f32[2,256,32], index: 10, kind: output, shape index: {}]  }
   0x1   :  { %11951 = sst [smem:[#allocation79_spill]] %s11722_s0 }
   0x2   :  { %15 = vsyncpa [#allocation3], 0 }
   0x3   :  { %17 = vsyncpa [#allocation3 + $0x1], 0  ;;  %s6959_s13 = smov 0   ;;  %s6961_s14 = smov 0  }
   0x4   :  { %s6963_s15 = smov 0   ;;  %s6965_s16 = smov 0  }
   0x5 LB: > { %s6980_s17 = sadd.s32 4294967295, %s6900_s16   ;;  %s5750_s18 = sadd.s32 4294967294, %s6900_s16   ;;  %s6900_s16 = sphi %s6965_s16, %s12528_s16   ;;  %s6896_s15 = sphi %s6963_s15, %s12527_s15   ;;  %s6892_s14 = sphi %s6961_s14, %s12526_s14   ;;  %s6888_s13 = sphi %s6959_s13, %s12525_s13  }
   0x6   : > { %s6984_s19 = sadd.s32 1, %s6900_s16   ;;  %s255_s20 = sadd.s32 1, %s6896_s15 }
   0x7   : > { %s252_s21 = ssub.s32 %s6900_s16, %s6984_s19  ;;  %p265_p0 = scmp.ne.s32.totalorder %s6896_s15, %s6892_s14 }
   0x8   : > { %p253_p1 = scmp.eq.s32.totalorder %s252_s21, 0  ;;  %p266_p2 = scmp.eq.s32.totalorder %s6980_s17, 1 }
   0x9   : > { %p271_p3 = scmp.ne.s32.totalorder %s6892_s14, %s6888_s13  ;;  %p272_p4 = scmp.eq.s32.totalorder %s5750_s18, 1 }
   0xa   : > { %s6995_s22 = scalar_select %p253_p1, %s6896_s15, %s255_s20  }
   0xb   : > { %p6997_p5 = por %p266_p2, %p265_p0  ;;  %p7001_p6 = por %p272_p4, %p271_p3 }
   0xc   : > { %p5753_p7 = scmp.ge.s32.totalorder %s6900_s16, 1  ;;  %p335_p8 = scmp.lt.s32.totalorder %s6900_s16, 3 }
   0xe   : > { %p336_p9 = pnand %p5753_p7, %p335_p8 }
  0x10   : > { %339 = sbr.rel (%p336_p9) target bundleno = 1724 (0x6bc), region = 60 }
  0x15   : > { %v497_v0 = vld [vmem:[%s11725_s3 + $0x18] sm:$0xff]  ;;  %v496_v2 = vld [vmem:[%s11725_s3 + $0x10] sm:$0xff]  ;;  %p383_p10 = scmp.lt.s32.totalorder %s6980_s17, 1  ;;  %v499_v4 = vld [vmem:[%s11726_s4 + $0x8] sm:$0xff]  ;;  %vm500_vm0 = vcmask 130048   ;;  %s11954_s0 = sld [smem:[#allocation79_spill]] }
  0x16   : > { %v5828_v1 = vld [vmem:[%s11725_s3 + $0x38] sm:$0xff]  ;;  %819 = vmatpush.msra.mxu1 %v497_v0  ;;  %v5827_v3 = vld [vmem:[%s11725_s3 + $0x30] sm:$0xff]  ;;  %611 = vmatpush.msra.mxu0 %v499_v4  ;;  %v495_v6 = vld [vmem:[%s11725_s3 + $0x8] sm:$0xff]  ;;  %vm710_vm1 = vcmask 261120   ;;  %vm2109_vm2 = vcmask 31744   ;;  %vm5129_vm7 = vcmask 64512  }
  0x17   : > { %1089 = vmatpush.msra.mxu3 %v5828_v1  ;;  %v5830_v5 = vld [vmem:[%s11726_s4 + $0x18] sm:$0xff]  ;;  %v5826_v7 = vld [vmem:[%s11725_s3 + $0x28] sm:$0xff]  ;;  %v498_v8 = vld [vmem:[%s11726_s4] sm:$0xff]  ;;  %s384_s12 = scalar_select %p383_p10, %s6980_s17, 1 }
  0x18   : > { %978 = vmatpush.msra.mxu2 %v5830_v5  ;;  %820 = vmatpush.msra.mxu1 %v496_v2  ;;  %v5829_v9 = vld [vmem:[%s11726_s4 + $0x10] sm:$0xff]  ;;  %v494_v10 = vld [vmem:[%s11725_s3] sm:$0xff]  ;;  %s380_s29 = sand.u32 1, %s6892_s14   ;;  %s6858_s27 = scalar_lea.hbm %s11732_s10, 512 }
  0x19   : > { %1090 = vmatpush.msra.mxu3 %v5827_v3  ;;  %612 = vmatpush.msra.mxu0 %v498_v8  ;;  %s7042_s26 = sshll.u32 %s384_s12, 8  ;;  %v5825_v11 = vld [vmem:[%s11725_s3 + $0x20] sm:$0xff]  ;;  %s5754_s12 = sshll.u32 %s380_s29, 8 }
  0x1a   : > { %979 = vmatpush.msra.mxu2 %v5829_v9  ;;  %821 = vmatpush.msra.mxu1 %v495_v6  ;;  %s7051_s11 = scalar_lea.vmem %s11723_s1, %s7042_s26  ;;  %s8166_s21 = scalar_lea.vmem %s11724_s2, %s7042_s26 }
  0x1b   : > { %1091 = vmatpush.msra.mxu3 %v5826_v7  ;;  %v7054_v12 = vld [vmem:[%s7051_s11] sm:$0xff]  ;;  %s7060_s20 = scalar_lea.vmem %s11954_s0, %s7042_s26  ;;  %v7074_v14 = vld [vmem:[%s7051_s11 + $0x8] sm:$0xff]  ;;  %v7088_v16 = vld [vmem:[%s7051_s11 + $0x10] sm:$0xff]  ;;  %s11339_s25 = scalar_lea.vmem [#allocation2], %s5754_s12 }
  0x1c   : > { %5761 = vmatmul.msk.f32.vlgmr.msra.gmra.mxu0 %vm500_vm0, %v7054_v12  ;;  %822 = vmatpush.msra.mxu1 %v494_v10  ;;  %v7065_v13 = vld [vmem:[%s7060_s20] sm:$0xff]  ;;  %v7077_v15 = vld [vmem:[%s7060_s20 + $0x8] sm:$0xff]  ;;  %v7091_v17 = vld [vmem:[%s7060_s20 + $0x10] sm:$0xff]  ;;  %s5661_s28 = sshll.u32 %s11339_s25, 4  ;;  %s5662_s28 = int_to_ptr.vmem [resolvable:$true] %s5661_s28 }
  0x1d   : > { %5831 = vmatmul.msk.f32.vlgmr.msra.gmra.mxu2 %vm500_vm0, %v7054_v12  ;;  %1092 = vmatpush.msra.mxu3 %v5825_v11  ;;  %v7102_v18 = vld [vmem:[%s7051_s11 + $0x18] sm:$0xff]  ;;  %v7116_v20 = vld [vmem:[%s7051_s11 + $0x20] sm:$0xff]  ;;  %v7130_v22 = vld [vmem:[%s7051_s11 + $0x28] sm:$0xff] }
  0x1e   : > { %5793 = vmatmul.msk.f32.vlgmr.msra.gmra.mxu1 %vm710_vm1, %v7065_v13  ;;  %5863 = vmatmul.msk.f32.vlgmr.msra.gmra.mxu3 %vm710_vm1, %v7065_v13  ;;  %v7105_v19 = vld [vmem:[%s7060_s20 + $0x18] sm:$0xff]  ;;  %v7119_v21 = vld [vmem:[%s7060_s20 + $0x20] sm:$0xff]  ;;  %v7133_v23 = vld [vmem:[%s7060_s20 + $0x28] sm:$0xff] }
  0x1f   : > { %v7144_v24 = vld [vmem:[%s7051_s11 + $0x30] sm:$0xff]  ;;  %v7158_v26 = vld [vmem:[%s7051_s11 + $0x38] sm:$0xff]  ;;  %v7172_v28 = vld [vmem:[%s7051_s11 + $0x40] sm:$0xff] }
  0x20   : > { %v7147_v25 = vld [vmem:[%s7060_s20 + $0x30] sm:$0xff]  ;;  %v7161_v27 = vld [vmem:[%s7060_s20 + $0x38] sm:$0xff]  ;;  %v7175_v29 = vld [vmem:[%s7060_s20 + $0x40] sm:$0xff] }
  0x21   : > { %v7186_v30 = vld [vmem:[%s7051_s11 + $0x48] sm:$0xff]  ;;  %v7200_v32 = vld [vmem:[%s7051_s11 + $0x50] sm:$0xff]  ;;  %v7214_v34 = vld [vmem:[%s7051_s11 + $0x58] sm:$0xff] }
  0x22   : > { %v7189_v31 = vld [vmem:[%s7060_s20 + $0x48] sm:$0xff]  ;;  %v7203_v33 = vld [vmem:[%s7060_s20 + $0x50] sm:$0xff]  ;;  %v7217_v35 = vld [vmem:[%s7060_s20 + $0x58] sm:$0xff] }
  0x23   : > { %11955 = vst [vmem:[#allocation5_spill] sm:$0xff] %v7217_v35  ;;  %v7228_v36 = vld [vmem:[%s7051_s11 + $0x60] sm:$0xff]  ;;  %v7242_v38 = vld [vmem:[%s7051_s11 + $0x68] sm:$0xff]  ;;  %v7256_v40 = vld [vmem:[%s7051_s11 + $0x70] sm:$0xff] }
  0x24   : > { %5762 = vmatmul.msk.f32.gmra.mxu0 %vm500_vm0, %v7074_v14  ;;  %11956 = vst [vmem:[#allocation6_spill] sm:$0xff] %v7228_v36  ;;  %v7231_v37 = vld [vmem:[%s7060_s20 + $0x60] sm:$0xff]  ;;  %v7245_v39 = vld [vmem:[%s7060_s20 + $0x68] sm:$0xff]  ;;  %v7259_v41 = vld [vmem:[%s7060_s20 + $0x70] sm:$0xff] }
  0x25   : > { %5832 = vmatmul.msk.f32.gmra.mxu2 %vm500_vm0, %v7074_v14  ;;  %11957 = vst [vmem:[#allocation7_spill] sm:$0xff] %v7231_v37  ;;  %v7270_v42 = vld [vmem:[%s7051_s11 + $0x78] sm:$0xff]  ;;  %v7286_v45 = vld [vmem:[%s7051_s11 + $0x80] sm:$0xff]  ;;  %v7304_v51 = vld [vmem:[%s7051_s11 + $0x88] sm:$0xff] }
  0x26   : > { %5794 = vmatmul.msk.f32.gmra.mxu1 %vm710_vm1, %v7077_v15  ;;  %5864 = vmatmul.msk.f32.gmra.mxu3 %vm710_vm1, %v7077_v15  ;;  %11958 = vst [vmem:[#allocation8_spill] sm:$0xff] %v7242_v38  ;;  %v7273_v43 = vld [vmem:[%s7060_s20 + $0x78] sm:$0xff]  ;;  %v7291_v47 = vld [vmem:[%s7060_s20 + $0x80] sm:$0xff]  ;;  %v7311_v54 = vld [vmem:[%s7060_s20 + $0x88] sm:$0xff] }
  0x27   : > { %11959 = vst [vmem:[#allocation9_spill] sm:$0xff] %v7245_v39  ;;  %v7324_v58 = vld [vmem:[%s7051_s11 + $0x90] sm:$0xff]  ;;  %v7344_v1 = vld [vmem:[%s7051_s11 + $0x98] sm:$0xff]  ;;  %v7364_v8 = vld [vmem:[%s7051_s11 + $0xa0] sm:$0xff] }
  0x28   : > { %11960 = vst [vmem:[#allocation10_spill] sm:$0xff] %v7256_v40  ;;  %v7331_v61 = vld [vmem:[%s7060_s20 + $0x90] sm:$0xff]  ;;  %v7351_v4 = vld [vmem:[%s7060_s20 + $0x98] sm:$0xff]  ;;  %v7371_v11 = vld [vmem:[%s7060_s20 + $0xa0] sm:$0xff] }
  0x29   : > { %11961 = vst [vmem:[#allocation11_spill] sm:$0xff] %v7259_v41 }
  0x2a   : > { %11962 = vst [vmem:[#allocation12_spill] sm:$0xff] %v7270_v42 }
  0x2b   : > { %11963 = vst [vmem:[#allocation13_spill] sm:$0xff] %v7273_v43 }
  0x2c   : > { %5763 = vmatmul.msk.f32.gmra.mxu0 %vm500_vm0, %v7088_v16  ;;  %11964 = vst [vmem:[#allocation14_spill] sm:$0xff] %v7286_v45 }
  0x2d   : > { %5833 = vmatmul.msk.f32.gmra.mxu2 %vm500_vm0, %v7088_v16  ;;  %11965 = vst [vmem:[#allocation15_spill] sm:$0xff] %v7291_v47 }
  0x2e   : > { %5795 = vmatmul.msk.f32.gmra.mxu1 %vm710_vm1, %v7091_v17  ;;  %5865 = vmatmul.msk.f32.gmra.mxu3 %vm710_vm1, %v7091_v17  ;;  %11966 = vst [vmem:[#allocation16_spill] sm:$0xff] %v7304_v51 }
  0x2f   : > { %11968 = vst [vmem:[#allocation18_spill] sm:$0xff] %v7311_v54 }
  0x30   : > { %11969 = vst [vmem:[#allocation19_spill] sm:$0xff] %v7324_v58 }
  0x31   : > { %11971 = vst [vmem:[#allocation21_spill] sm:$0xff] %v7331_v61 }
  0x32   : > { %11972 = vst [vmem:[#allocation22_spill] sm:$0xff] %v7344_v1 }
  0x33   : > { %11974 = vst [vmem:[#allocation24_spill] sm:$0xff] %v7351_v4 }
  0x34   : > { %5764 = vmatmul.msk.f32.gmra.mxu0 %vm500_vm0, %v7102_v18  ;;  %11975 = vst [vmem:[#allocation25_spill] sm:$0xff] %v7364_v8 }
  0x35   : > { %5834 = vmatmul.msk.f32.gmra.mxu2 %vm500_vm0, %v7102_v18  ;;  %11977 = vst [vmem:[#allocation27_spill] sm:$0xff] %v7371_v11 }
  0x36   : > { %5796 = vmatmul.msk.f32.gmra.mxu1 %vm710_vm1, %v7105_v19  ;;  %5866 = vmatmul.msk.f32.gmra.mxu3 %vm710_vm1, %v7105_v19 }
  0x3c   : > { %5765 = vmatmul.msk.f32.gmra.mxu0 %vm500_vm0, %v7116_v20 }
  0x3d   : > { %5835 = vmatmul.msk.f32.gmra.mxu2 %vm500_vm0, %v7116_v20 }
  0x3e   : > { %5797 = vmatmul.msk.f32.gmra.mxu1 %vm710_vm1, %v7119_v21  ;;  %5867 = vmatmul.msk.f32.gmra.mxu3 %vm710_vm1, %v7119_v21 }
  0x44   : > { %5766 = vmatmul.msk.f32.gmra.mxu0 %vm500_vm0, %v7130_v22 }
  0x45   : > { %5836 = vmatmul.msk.f32.gmra.mxu2 %vm500_vm0, %v7130_v22 }
  0x46   : > { %5798 = vmatmul.msk.f32.gmra.mxu1 %vm710_vm1, %v7133_v23  ;;  %5868 = vmatmul.msk.f32.gmra.mxu3 %vm710_vm1, %v7133_v23 }
  0x4c   : > { %5767 = vmatmul.msk.f32.gmra.mxu0 %vm500_vm0, %v7144_v24 }
  0x4d   : > { %5837 = vmatmul.msk.f32.gmra.mxu2 %vm500_vm0, %v7144_v24 }
  0x4e   : > { %5799 = vmatmul.msk.f32.gmra.mxu1 %vm710_vm1, %v7147_v25  ;;  %5869 = vmatmul.msk.f32.gmra.mxu3 %vm710_vm1, %v7147_v25 }
  0x54   : > { %5768 = vmatmul.msk.f32.gmra.mxu0 %vm500_vm0, %v7158_v26 }
  0x55   : > { %5838 = vmatmul.msk.f32.gmra.mxu2 %vm500_vm0, %v7158_v26 }
  0x56   : > { %5800 = vmatmul.msk.f32.gmra.mxu1 %vm710_vm1, %v7161_v27  ;;  %5870 = vmatmul.msk.f32.gmra.mxu3 %vm710_vm1, %v7161_v27 }
  0x5c   : > { %5769 = vmatmul.msk.f32.gmra.mxu0 %vm500_vm0, %v7172_v28 }
  0x5d   : > { %5839 = vmatmul.msk.f32.gmra.mxu2 %vm500_vm0, %v7172_v28 }
  0x5e   : > { %5801 = vmatmul.msk.f32.gmra.mxu1 %vm710_vm1, %v7175_v29  ;;  %5871 = vmatmul.msk.f32.gmra.mxu3 %vm710_vm1, %v7175_v29 }
  0x64   : > { %5770 = vmatmul.msk.f32.gmra.mxu0 %vm500_vm0, %v7186_v30 }
  0x65   : > { %5840 = vmatmul.msk.f32.gmra.mxu2 %vm500_vm0, %v7186_v30 }
  0x66   : > { %5802 = vmatmul.msk.f32.gmra.mxu1 %vm710_vm1, %v7189_v31  ;;  %5872 = vmatmul.msk.f32.gmra.mxu3 %vm710_vm1, %v7189_v31 }
  0x6c   : > { %5771 = vmatmul.msk.f32.gmra.mxu0 %vm500_vm0, %v7200_v32 }
  0x6d   : > { %5841 = vmatmul.msk.f32.gmra.mxu2 %vm500_vm0, %v7200_v32 }
  0x6e   : > { %5803 = vmatmul.msk.f32.gmra.mxu1 %vm710_vm1, %v7203_v33  ;;  %5873 = vmatmul.msk.f32.gmra.mxu3 %vm710_vm1, %v7203_v33 }
  0x74   : > { %5772 = vmatmul.msk.f32.gmra.mxu0 %vm500_vm0, %v7214_v34 }
  0x75   : > { %5842 = vmatmul.msk.f32.gmra.mxu2 %vm500_vm0, %v7214_v34 }
  0x76   : > { %5804 = vmatmul.msk.f32.gmra.mxu1 %vm710_vm1, %v7217_v35  ;;  %5874 = vmatmul.msk.f32.gmra.mxu3 %vm710_vm1, %v7217_v35 }
  0x7c   : > { %5773 = vmatmul.msk.f32.gmra.mxu0 %vm500_vm0, %v7228_v36 }
  0x7d   : > { %5843 = vmatmul.msk.f32.gmra.mxu2 %vm500_vm0, %v7228_v36 }
  0x7e   : > { %5805 = vmatmul.msk.f32.gmra.mxu1 %vm710_vm1, %v7231_v37  ;;  %5875 = vmatmul.msk.f32.gmra.mxu3 %vm710_vm1, %v7231_v37  ;;  %v7615_v37 = vld [vmem:[%s7060_s20 + $0xf8] sm:$0xff] }
  0x84   : > { %5774 = vmatmul.msk.f32.gmra.mxu0 %vm500_vm0, %v7242_v38 }
  0x85   : > { %5844 = vmatmul.msk.f32.gmra.mxu2 %vm500_vm0, %v7242_v38 }
  0x86   : > { %5806 = vmatmul.msk.f32.gmra.mxu1 %vm710_vm1, %v7245_v39  ;;  %5876 = vmatmul.msk.f32.gmra.mxu3 %vm710_vm1, %v7245_v39 }
  0x8c   : > { %5775 = vmatmul.msk.f32.gmra.mxu0 %vm500_vm0, %v7256_v40 }
  0x8d   : > { %5845 = vmatmul.msk.f32.gmra.mxu2 %vm500_vm0, %v7256_v40 }
  0x8e   : > { %5807 = vmatmul.msk.f32.gmra.mxu1 %vm710_vm1, %v7259_v41  ;;  %5877 = vmatmul.msk.f32.gmra.mxu3 %vm710_vm1, %v7259_v41  ;;  %v7558_v41 = vld [vmem:[%s7060_s20 + $0xe0] sm:$0xff] }
  0x8f   : > { %12001 = vst [vmem:[#allocation51_spill] sm:$0xff] %v7558_v41 }
  0x94   : > { %5776 = vmatmul.msk.f32.gmra.mxu0 %vm500_vm0, %v7270_v42 }
  0x95   : > { %5846 = vmatmul.msk.f32.gmra.mxu2 %vm500_vm0, %v7270_v42 }
  0x96   : > { %5808 = vmatmul.msk.f32.gmra.mxu1 %vm710_vm1, %v7273_v43  ;;  %5878 = vmatmul.msk.f32.gmra.mxu3 %vm710_vm1, %v7273_v43  ;;  %v7545_v43 = vld [vmem:[%s7051_s11 + $0xe0] sm:$0xff] }
  0x97   : > { %11999 = vst [vmem:[#allocation49_spill] sm:$0xff] %v7545_v43 }
  0x99   : > { %v7283_v44 = vpop.f32.mrf.mxu0 }
  0x9b   : > { %v7288_v46 = vpop.f32.mrf.mxu1 }
  0x9c   : > { %5777 = vmatmul.msk.f32.gmra.mxu0 %vm500_vm0, %v7286_v45 }
  0x9d   : > { %5847 = vmatmul.msk.f32.gmra.mxu2 %vm500_vm0, %v7286_v45 }
  0x9e   : > { %5809 = vmatmul.msk.f32.gmra.mxu1 %vm710_vm1, %v7291_v47  ;;  %5879 = vmatmul.msk.f32.gmra.mxu3 %vm710_vm1, %v7291_v47  ;;  %v7514_v47 = vld [vmem:[%s7060_s20 + $0xd8] sm:$0xff] }
  0x9f   : > { %11998 = vst [vmem:[#allocation48_spill] sm:$0xff] %v7514_v47 }
  0xa0   : > { %v981_v48 = vpop.f32.mrf.mxu2 }
  0xa1   : > { %v1094_v49 = vpop.f32.mrf.mxu3  ;;  %v7301_v50 = vpop.f32.mrf.mxu0 }
  0xa2   : > { %v7306_v52 = vadd.f32 %v1094_v49, %v981_v48 }
  0xa3   : > { %v7308_v53 = vpop.f32.mrf.mxu1 }
  0xa4   : > { %11967 = vst [vmem:[#allocation17_spill] sm:$0xff] %v7306_v52  ;;  %5778 = vmatmul.msk.f32.gmra.mxu0 %vm500_vm0, %v7304_v51 }
  0xa5   : > { %5848 = vmatmul.msk.f32.gmra.mxu2 %vm500_vm0, %v7304_v51 }
  0xa6   : > { %5810 = vmatmul.msk.f32.gmra.mxu1 %vm710_vm1, %v7311_v54  ;;  %5880 = vmatmul.msk.f32.gmra.mxu3 %vm710_vm1, %v7311_v54  ;;  %v7494_v54 = vld [vmem:[%s7060_s20 + $0xd0] sm:$0xff] }
  0xa7   : > { %11995 = vst [vmem:[#allocation45_spill] sm:$0xff] %v7494_v54 }
  0xa8   : > { %v984_v55 = vpop.f32.mrf.mxu2 }
  0xa9   : > { %v1097_v56 = vpop.f32.mrf.mxu3  ;;  %v7321_v57 = vpop.f32.mrf.mxu0 }
  0xaa   : > { %v7326_v59 = vadd.f32 %v1097_v56, %v984_v55  ;;  %v7384_v56 = vld [vmem:[%s7051_s11 + $0xa8] sm:$0xff] }
  0xab   : > { %v7328_v60 = vpop.f32.mrf.mxu1  ;;  %11978 = vst [vmem:[#allocation28_spill] sm:$0xff] %v7384_v56 }
  0xac   : > { %11970 = vst [vmem:[#allocation20_spill] sm:$0xff] %v7326_v59  ;;  %5779 = vmatmul.msk.f32.gmra.mxu0 %vm500_vm0, %v7324_v58  ;;  %v7411_v59 = vld [vmem:[%s7060_s20 + $0xb0] sm:$0xff] }
  0xad   : > { %5849 = vmatmul.msk.f32.gmra.mxu2 %vm500_vm0, %v7324_v58  ;;  %11983 = vst [vmem:[#allocation33_spill] sm:$0xff] %v7411_v59 }
  0xae   : > { %5811 = vmatmul.msk.f32.gmra.mxu1 %vm710_vm1, %v7331_v61  ;;  %5881 = vmatmul.msk.f32.gmra.mxu3 %vm710_vm1, %v7331_v61  ;;  %v7474_v61 = vld [vmem:[%s7060_s20 + $0xc8] sm:$0xff] }
  0xaf   : > { %11992 = vst [vmem:[#allocation42_spill] sm:$0xff] %v7474_v61 }
  0xb0   : > { %v987_v62 = vpop.f32.mrf.mxu2 }
  0xb1   : > { %v1100_v63 = vpop.f32.mrf.mxu3  ;;  %v7341_v0 = vpop.f32.mrf.mxu0 }
  0xb2   : > { %v7346_v2 = vadd.f32 %v1100_v63, %v987_v62 }
  0xb3   : > { %v7348_v3 = vpop.f32.mrf.mxu1 }
  0xb4   : > { %11973 = vst [vmem:[#allocation23_spill] sm:$0xff] %v7346_v2  ;;  %5780 = vmatmul.msk.f32.gmra.mxu0 %vm500_vm0, %v7344_v1 }
  0xb5   : > { %5850 = vmatmul.msk.f32.gmra.mxu2 %vm500_vm0, %v7344_v1 }
  0xb6   : > { %5812 = vmatmul.msk.f32.gmra.mxu1 %vm710_vm1, %v7351_v4  ;;  %5882 = vmatmul.msk.f32.gmra.mxu3 %vm710_vm1, %v7351_v4  ;;  %v7451_v4 = vld [vmem:[%s7060_s20 + $0xc0] sm:$0xff] }
  0xb7   : > { %11989 = vst [vmem:[#allocation39_spill] sm:$0xff] %v7451_v4 }
  0xb8   : > { %v990_v5 = vpop.f32.mrf.mxu2 }
  0xb9   : > { %v1103_v6 = vpop.f32.mrf.mxu3  ;;  %v7361_v7 = vpop.f32.mrf.mxu0 }
  0xba   : > { %v7366_v9 = vadd.f32 %v1103_v6, %v990_v5  ;;  %v7391_v5 = vld [vmem:[%s7060_s20 + $0xa8] sm:$0xff] }
  0xbb   : > { %v7368_v10 = vpop.f32.mrf.mxu1  ;;  %11980 = vst [vmem:[#allocation30_spill] sm:$0xff] %v7391_v5 }
  0xbc   : > { %11976 = vst [vmem:[#allocation26_spill] sm:$0xff] %v7366_v9  ;;  %5781 = vmatmul.msk.f32.gmra.mxu0 %vm500_vm0, %v7364_v8 }
  0xbd   : > { %5851 = vmatmul.msk.f32.gmra.mxu2 %vm500_vm0, %v7364_v8 }
  0xbe   : > { %5813 = vmatmul.msk.f32.gmra.mxu1 %vm710_vm1, %v7371_v11  ;;  %5883 = vmatmul.msk.f32.gmra.mxu3 %vm710_vm1, %v7371_v11  ;;  %v7431_v11 = vld [vmem:[%s7060_s20 + $0xb8] sm:$0xff] }
  0xbf   : > { %11986 = vst [vmem:[#allocation36_spill] sm:$0xff] %v7431_v11 }
  0xc0   : > { %v993_v48 = vpop.f32.mrf.mxu2 }
  0xc1   : > { %v1106_v49 = vpop.f32.mrf.mxu3  ;;  %v7381_v55 = vpop.f32.mrf.mxu0 }
  0xc2   : > { %v7386_v62 = vadd.f32 %v1106_v49, %v993_v48 }
  0xc3   : > { %v7388_v63 = vpop.f32.mrf.mxu1 }
  0xc4   : > { %11979 = vst [vmem:[#allocation29_spill] sm:$0xff] %v7386_v62  ;;  %5782 = vmatmul.msk.f32.gmra.mxu0 %vm500_vm0, %v7384_v56  ;;  %v7404_v62 = vld [vmem:[%s7051_s11 + $0xb0] sm:$0xff] }
  0xc5   : > { %5852 = vmatmul.msk.f32.gmra.mxu2 %vm500_vm0, %v7384_v56  ;;  %11981 = vst [vmem:[#allocation31_spill] sm:$0xff] %v7404_v62 }
  0xc6   : > { %5814 = vmatmul.msk.f32.gmra.mxu1 %vm710_vm1, %v7391_v5  ;;  %5884 = vmatmul.msk.f32.gmra.mxu3 %vm710_vm1, %v7391_v5 }
  0xc8   : > { %v996_v6 = vpop.f32.mrf.mxu2 }
  0xc9   : > { %v1109_v48 = vpop.f32.mrf.mxu3  ;;  %v7401_v49 = vpop.f32.mrf.mxu0 }
  0xca   : > { %v7406_v9 = vadd.f32 %v1109_v48, %v996_v6 }
  0xcb   : > { %v7408_v2 = vpop.f32.mrf.mxu1 }
  0xcc   : > { %11982 = vst [vmem:[#allocation32_spill] sm:$0xff] %v7406_v9  ;;  %5783 = vmatmul.msk.f32.gmra.mxu0 %vm500_vm0, %v7404_v62  ;;  %v7424_v9 = vld [vmem:[%s7051_s11 + $0xb8] sm:$0xff] }
  0xcd   : > { %5853 = vmatmul.msk.f32.gmra.mxu2 %vm500_vm0, %v7404_v62  ;;  %11984 = vst [vmem:[#allocation34_spill] sm:$0xff] %v7424_v9 }
  0xce   : > { %5815 = vmatmul.msk.f32.gmra.mxu1 %vm710_vm1, %v7411_v59  ;;  %5885 = vmatmul.msk.f32.gmra.mxu3 %vm710_vm1, %v7411_v59 }
  0xd0   : > { %v999_v52 = vpop.f32.mrf.mxu2 }
  0xd1   : > { %v1112_v6 = vpop.f32.mrf.mxu3  ;;  %v7421_v48 = vpop.f32.mrf.mxu0 }
  0xd2   : > { %v7426_v5 = vadd.f32 %v1112_v6, %v999_v52 }
  0xd3   : > { %v7428_v56 = vpop.f32.mrf.mxu1 }
  0xd4   : > { %11985 = vst [vmem:[#allocation35_spill] sm:$0xff] %v7426_v5  ;;  %5784 = vmatmul.msk.f32.gmra.mxu0 %vm500_vm0, %v7424_v9  ;;  %v7444_v5 = vld [vmem:[%s7051_s11 + $0xc0] sm:$0xff] }
  0xd5   : > { %5854 = vmatmul.msk.f32.gmra.mxu2 %vm500_vm0, %v7424_v9  ;;  %11987 = vst [vmem:[#allocation37_spill] sm:$0xff] %v7444_v5  ;;  %v7467_v9 = vld [vmem:[%s7051_s11 + $0xc8] sm:$0xff] }
  0xd6   : > { %5816 = vmatmul.msk.f32.gmra.mxu1 %vm710_vm1, %v7431_v11  ;;  %5886 = vmatmul.msk.f32.gmra.mxu3 %vm710_vm1, %v7431_v11  ;;  %11990 = vst [vmem:[#allocation40_spill] sm:$0xff] %v7467_v9 }
  0xd8   : > { %v1002_v59 = vpop.f32.mrf.mxu2 }
  0xd9   : > { %v1115_v52 = vpop.f32.mrf.mxu3  ;;  %v7441_v6 = vpop.f32.mrf.mxu0 }
  0xda   : > { %v7446_v62 = vadd.f32 %v1115_v52, %v1002_v59  ;;  %v5901_v59 = vld [vmem:[%s11726_s4 + $0x28] sm:$0xff] }
  0xdb   : > { %v7448_v8 = vpop.f32.mrf.mxu1  ;;  %1249 = vmatpush.msrb.mxu0 %v5901_v59 }
  0xdc   : > { %11988 = vst [vmem:[#allocation38_spill] sm:$0xff] %v7446_v62  ;;  %5785 = vmatmul.msk.f32.gmra.mxu0 %vm500_vm0, %v7444_v5 }
  0xdd   : > { %5855 = vmatmul.msk.f32.gmra.mxu2 %vm500_vm0, %v7444_v5 }
  0xde   : > { %5817 = vmatmul.msk.f32.gmra.mxu1 %vm710_vm1, %v7451_v4  ;;  %5887 = vmatmul.msk.f32.gmra.mxu3 %vm710_vm1, %v7451_v4 }
  0xe0   : > { %v1005_v52 = vpop.f32.mrf.mxu2 }
  0xe1   : > { %v1118_v62 = vpop.f32.mrf.mxu3  ;;  %v7464_v11 = vpop.f32.mrf.mxu0 }
  0xe2   : > { %v7469_v5 = vadd.f32 %v1118_v62, %v1005_v52 }
  0xe3   : > { %v7471_v1 = vpop.f32.mrf.mxu1 }
  0xe4   : > { %11991 = vst [vmem:[#allocation41_spill] sm:$0xff] %v7469_v5  ;;  %5786 = vmatmul.msk.f32.gmra.mxu0 %vm500_vm0, %v7467_v9  ;;  %v7487_v5 = vld [vmem:[%s7051_s11 + $0xd0] sm:$0xff] }
  0xe5   : > { %5856 = vmatmul.msk.f32.gmra.mxu2 %vm500_vm0, %v7467_v9  ;;  %11993 = vst [vmem:[#allocation43_spill] sm:$0xff] %v7487_v5 }
  0xe6   : > { %5818 = vmatmul.msk.f32.gmra.mxu1 %vm710_vm1, %v7474_v61  ;;  %5888 = vmatmul.msk.f32.gmra.mxu3 %vm710_vm1, %v7474_v61 }
  0xe8   : > { %v1008_v59 = vpop.f32.mrf.mxu2 }
  0xe9   : > { %v1121_v62 = vpop.f32.mrf.mxu3  ;;  %v7484_v52 = vpop.f32.mrf.mxu0 }
  0xea   : > { %v7489_v4 = vadd.f32 %v1121_v62, %v1008_v59  ;;  %v7507_v62 = vld [vmem:[%s7051_s11 + $0xd8] sm:$0xff] }
  0xeb   : > { %v7491_v58 = vpop.f32.mrf.mxu1  ;;  %11996 = vst [vmem:[#allocation46_spill] sm:$0xff] %v7507_v62 }
  0xec   : > { %11994 = vst [vmem:[#allocation44_spill] sm:$0xff] %v7489_v4  ;;  %5787 = vmatmul.msk.f32.gmra.mxu0 %vm500_vm0, %v7487_v5 }
  0xed   : > { %5857 = vmatmul.msk.f32.gmra.mxu2 %vm500_vm0, %v7487_v5  ;;  %v5972_v5 = vld [vmem:[%s11726_s4 + $0x38] sm:$0xff] }
  0xee   : > { %5819 = vmatmul.msk.f32.gmra.mxu1 %vm710_vm1, %v7494_v54  ;;  %5889 = vmatmul.msk.f32.gmra.mxu3 %vm710_vm1, %v7494_v54 }
  0xef   : > { %1520 = vmatpush.msrb.mxu1 %v5972_v5  ;;  %v5898_v5 = vld [vmem:[%s11725_s3 + $0x50] sm:$0xff] }
  0xf0   : > { %v1011_v61 = vpop.f32.mrf.mxu2 }
  0xf1   : > { %v1124_v9 = vpop.f32.mrf.mxu3  ;;  %v7504_v59 = vpop.f32.mrf.mxu0 }
  0xf2   : > { %v7509_v4 = vadd.f32 %v1124_v9, %v1011_v61  ;;  %v5899_v61 = vld [vmem:[%s11725_s3 + $0x58] sm:$0xff]  ;;  %v5971_v9 = vld [vmem:[%s11726_s4 + $0x30] sm:$0xff] }
  0xf3   : > { %v7511_v51 = vpop.f32.mrf.mxu1  ;;  %1360 = vmatpush.msrb.mxu2 %v5899_v61  ;;  %1521 = vmatpush.msrb.mxu1 %v5971_v9  ;;  %v5897_v61 = vld [vmem:[%s11725_s3 + $0x48] sm:$0xff] }
  0xf4   : > { %11997 = vst [vmem:[#allocation47_spill] sm:$0xff] %v7509_v4  ;;  %5788 = vmatmul.msk.f32.gmra.mxu0 %vm500_vm0, %v7507_v62  ;;  %v5970_v4 = vld [vmem:[%s11725_s3 + $0x78] sm:$0xff] }
  0xf5   : > { %5858 = vmatmul.msk.f32.gmra.mxu2 %vm500_vm0, %v7507_v62  ;;  %1631 = vmatpush.msrb.mxu3 %v5970_v4  ;;  %v5968_v4 = vld [vmem:[%s11725_s3 + $0x68] sm:$0xff] }
  0xf6   : > { %5820 = vmatmul.msk.f32.gmra.mxu1 %vm710_vm1, %v7514_v47  ;;  %5890 = vmatmul.msk.f32.gmra.mxu3 %vm710_vm1, %v7514_v47  ;;  %v5969_v47 = vld [vmem:[%s11725_s3 + $0x70] sm:$0xff] }
  0xf7   : > { %1361 = vmatpush.msrb.mxu2 %v5898_v5  ;;  %1632 = vmatpush.msrb.mxu3 %v5969_v47  ;;  %v5900_v5 = vld [vmem:[%s11726_s4 + $0x20] sm:$0xff] }
  0xf8   : > { %v1014_v62 = vpop.f32.mrf.mxu2  ;;  %v5896_v47 = vld [vmem:[%s11725_s3 + $0x40] sm:$0xff]  ;;  %1250 = vmatpush.msrb.mxu0 %v5900_v5 }
  0xf9   : > { %v1127_v54 = vpop.f32.mrf.mxu3  ;;  %v7542_v45 = vpop.f32.mrf.mxu0  ;;  %1362 = vmatpush.msrb.mxu2 %v5897_v61  ;;  %1633 = vmatpush.msrb.mxu3 %v5968_v4 }
  0xfa   : > { %v7550_v9 = vadd.f32 %v1127_v54, %v1014_v62  ;;  %v5967_v54 = vld [vmem:[%s11725_s3 + $0x60] sm:$0xff] }
  0xfb   : > { %v7555_v42 = vpop.f32.mrf.mxu1  ;;  %1363 = vmatpush.msrb.mxu2 %v5896_v47  ;;  %1634 = vmatpush.msrb.mxu3 %v5967_v54 }
  0xfc   : > { %12000 = vst [vmem:[#allocation50_spill] sm:$0xff] %v7550_v9  ;;  %5789 = vmatmul.msk.f32.gmra.mxu0 %vm500_vm0, %v7545_v43  ;;  %v7578_v9 = vld [vmem:[%s7051_s11 + $0xe8] sm:$0xff] }
  0xfd   : > { %5859 = vmatmul.msk.f32.gmra.mxu2 %vm500_vm0, %v7545_v43  ;;  %12002 = vst [vmem:[#allocation52_spill] sm:$0xff] %v7578_v9  ;;  %v7583_v43 = vld [vmem:[%s7060_s20 + $0xe8] sm:$0xff] }
  0xfe   : > { %5821 = vmatmul.msk.f32.gmra.mxu1 %vm710_vm1, %v7558_v41  ;;  %5891 = vmatmul.msk.f32.gmra.mxu3 %vm710_vm1, %v7558_v41  ;;  %12004 = vst [vmem:[#allocation54_spill] sm:$0xff] %v7583_v43  ;;  %v7599_v41 = vld [vmem:[%s7060_s20 + $0xf0] sm:$0xff] }
  0xff   : > { %12007 = vst [vmem:[#allocation57_spill] sm:$0xff] %v7599_v41 }
 0x100   : > { %v1017_v62 = vpop.f32.mrf.mxu2 }
 0x101   : > { %v1130_v61 = vpop.f32.mrf.mxu3  ;;  %v653_v4 = vpop.f32.mrf.mxu0 }
 0x102   : > { %v7580_v40 = vadd.f32 %v1130_v61, %v1017_v62  ;;  %v7594_v62 = vld [vmem:[%s7051_s11 + $0xf0] sm:$0xff] }
 0x103   : > { %v863_v39 = vpop.f32.mrf.mxu1  ;;  %12005 = vst [vmem:[#allocation55_spill] sm:$0xff] %v7594_v62 }
 0x104   : > { %12003 = vst [vmem:[#allocation53_spill] sm:$0xff] %v7580_v40  ;;  %5790 = vmatmul.msk.f32.gmra.mxu0 %vm500_vm0, %v7578_v9 }
 0x105   : > { %5860 = vmatmul.msk.f32.gmra.mxu2 %vm500_vm0, %v7578_v9 }
 0x106   : > { %5822 = vmatmul.msk.f32.gmra.mxu1 %vm710_vm1, %v7583_v43  ;;  %5892 = vmatmul.msk.f32.gmra.mxu3 %vm710_vm1, %v7583_v43 }
 0x108   : > { %v1020_v5 = vpop.f32.mrf.mxu2 }
 0x109   : > { %v1133_v47 = vpop.f32.mrf.mxu3  ;;  %v656_v54 = vpop.f32.mrf.mxu0 }
 0x10a   : > { %v7596_v61 = vadd.f32 %v1133_v47, %v1020_v5  ;;  %v7610_v5 = vld [vmem:[%s7051_s11 + $0xf8] sm:$0xff]  ;;  %s6372_s11 = sshll.u32 %s6980_s17, 8  ;;  %s5649_s17 = scalar_lea.sflag [#allocation3], %s380_s29 }
 0x10b   : > { %v866_v40 = vpop.f32.mrf.mxu1  ;;  %12008 = vst [vmem:[#allocation58_spill] sm:$0xff] %v7610_v5  ;;  %s5660_s26 = scalar_lea.hbm %s11732_s10, %s6372_s11 }
 0x10c   : > { %12006 = vst [vmem:[#allocation56_spill] sm:$0xff] %v7596_v61  ;;  %5791 = vmatmul.msk.f32.gmra.mxu0 %vm500_vm0, %v7594_v62  ;;  %s5663_s30 = sshll.u32 %s5660_s26, 4  ;;  %s5664_s30 = int_to_ptr.hbm [resolvable:$true] %s5663_s30 }
 0x10d   : > { %5861 = vmatmul.msk.f32.gmra.mxu2 %vm500_vm0, %v7594_v62  ;;  %v7620_v62 = vld [vmem:[%s11727_s5] ss:$0 sm:$0xff]  ;;  %s6852_s18 = sshra.s32 %s5664_s30, 4  ;;  %s6853_s18 = int_to_ptr.hbm [resolvable:$true] %s6852_s18 }
 0x10e   : > { %5823 = vmatmul.msk.f32.gmra.mxu1 %vm710_vm1, %v7599_v41  ;;  %5893 = vmatmul.msk.f32.gmra.mxu3 %vm710_vm1, %v7599_v41  ;;  %v867_v41 = vadd.f32 %v866_v40, %v656_v54  ;;  %s6854_s12 = scalar_lea.hbm %s6853_s18, 256  ;;  %p6859_p0 = scmp.lt.s32.totalorder %s6853_s18, %s11732_s10 }
 0x10f   : > { %p6855_p11 = scmp.ne.s32.totalorder %s6853_s18, %s6854_s12  ;;  %p6860_p1 = scmp.lt.s32.totalorder %s6858_s27, %s6854_s12 }
 0x110   : > { %v1023_v43 = vpop.f32.mrf.mxu2  ;;  %v938_v35 = vadd.f32 %v7620_v62, %v867_v41 }
 0x111   : > { %v1136_v9 = vpop.f32.mrf.mxu3  ;;  %v659_v38 = vpop.f32.mrf.mxu0  ;;  %p6856_p12 = pnand %p6855_p11, %p6997_p5  ;;  %p6861_p2 = por %p6860_p1, %p6859_p0 }
 0x112   : > { %v7612_v47 = vadd.f32 %v1136_v9, %v1023_v43 }
 0x113   : > { %v869_v61 = vpop.f32.mrf.mxu1  ;;  %p6857_p13 = pneg %p6856_p12 }
 0x114   : > { %12009 = vst [vmem:[#allocation59_spill] sm:$0xff] %v7612_v47  ;;  %v870_v36 = vadd.f32 %v869_v61, %v659_v38  ;;  %5792 = vmatmul.msk.f32.gmra.mxu0 %vm500_vm0, %v7610_v5  ;;  %v864_v47 = vadd.f32 %v863_v39, %v653_v4  ;;  %v858_v4 = vadd.f32 %v7511_v51, %v7504_v59 }
 0x115   : > { %5862 = vmatmul.msk.f32.gmra.mxu2 %vm500_vm0, %v7610_v5  ;;  %p6862_p3 = pnand %p6861_p2, %p6857_p13 }
 0x116   : > { %v939_v43 = vadd.f32 %v7620_v62, %v870_v36  ;;  %5824 = vmatmul.msk.f32.gmra.mxu1 %vm710_vm1, %v7615_v37  ;;  %5894 = vmatmul.msk.f32.gmra.mxu3 %vm710_vm1, %v7615_v37  ;;  %v861_v36 = vadd.f32 %v7555_v42, %v7542_v45  ;;  %v937_v54 = vadd.f32 %v7620_v62, %v864_v47 }
 0x118   : > { %v1026_v9 = vpop.f32.mrf.mxu2  ;;  %6107 = vmatpush.xpose.msk.msra.mxu1 %vm2109_vm2, %v939_v43  ;;  %v936_v43 = vadd.f32 %v7620_v62, %v861_v36 }
 0x119   : > { %v1139_v38 = vpop.f32.mrf.mxu3  ;;  %v7632_v61 = vpop.f32.mrf.mxu0 }
 0x11a   : > { %v7635_v5 = vadd.f32 %v1139_v38, %v1026_v9  ;;  %v852_v9 = vadd.f32 %v7471_v1, %v7464_v11 }
 0x11b   : > { %v7637_v40 = vpop.f32.mrf.mxu1 }
 0x11c   : > { %6108 = vmatpush.xpose.msk.msra.mxu1 %vm2109_vm2, %v938_v35  ;;  %5902 = vmatmul.msk.f32.vlgmr.msrb.gmra.mxu0 %vm500_vm0, %v7054_v12 }
 0x11d   : > { %5934 = vmatmul.msk.f32.vlgmr.msrb.gmra.mxu2 %vm710_vm1, %v7065_v13 }
 0x11e   : > { %5973 = vmatmul.msk.f32.vlgmr.msrb.gmra.mxu1 %vm500_vm0, %v7054_v12  ;;  %6005 = vmatmul.msk.f32.vlgmr.msrb.gmra.mxu3 %vm710_vm1, %v7065_v13  ;;  %v855_v12 = vadd.f32 %v7491_v58, %v7484_v52  ;;  %v935_v13 = vadd.f32 %v7620_v62, %v858_v4  ;;  %v840_v4 = vadd.f32 %v7388_v63, %v7381_v55 }
 0x120   : > { %v1029_v39 = vpop.f32.mrf.mxu2  ;;  %6109 = vmatpush.xpose.msk.msra.mxu1 %vm2109_vm2, %v937_v54  ;;  %v934_v38 = vadd.f32 %v7620_v62, %v855_v12  ;;  %v846_v54 = vadd.f32 %v7428_v56, %v7421_v48 }
 0x121   : > { %v1142_v35 = vpop.f32.mrf.mxu3  ;;  %v7652_v41 = vpop.f32.mrf.mxu0 }
 0x122   : > { %v7657_v42 = vadd.f32 %v1142_v35, %v1029_v39 }
 0x123   : > { %v7659_v45 = vpop.f32.mrf.mxu1 }
 0x124   : > { %6110 = vmatpush.xpose.msk.msra.mxu1 %vm2109_vm2, %v936_v43  ;;  %5903 = vmatmul.msk.f32.gmra.mxu0 %vm500_vm0, %v7074_v14 }
 0x125   : > { %5935 = vmatmul.msk.f32.gmra.mxu2 %vm710_vm1, %v7077_v15 }
 0x126   : > { %5974 = vmatmul.msk.f32.gmra.mxu1 %vm500_vm0, %v7074_v14  ;;  %6006 = vmatmul.msk.f32.gmra.mxu3 %vm710_vm1, %v7077_v15  ;;  %v849_v14 = vadd.f32 %v7448_v8, %v7441_v6  ;;  %v933_v15 = vadd.f32 %v7620_v62, %v852_v9  ;;  %v828_v9 = vadd.f32 %v7308_v53, %v7301_v50 }
 0x128   : > { %v1032_v51 = vpop.f32.mrf.mxu2  ;;  %6111 = vmatpush.xpose.msk.msra.mxu1 %vm2109_vm2, %v935_v13  ;;  %v932_v39 = vadd.f32 %v7620_v62, %v849_v14  ;;  %v834_v13 = vadd.f32 %v7348_v3, %v7341_v0 }
 0x129   : > { %v1145_v59 = vpop.f32.mrf.mxu3  ;;  %v7674_v47 = vpop.f32.mrf.mxu0 }
 0x12a   : > { %v7679_v58 = vadd.f32 %v1145_v59, %v1032_v51 }
 0x12b   : > { %v7681_v52 = vpop.f32.mrf.mxu1 }
 0x12c   : > { %6112 = vmatpush.xpose.msk.msra.mxu1 %vm2109_vm2, %v934_v38  ;;  %5904 = vmatmul.msk.f32.gmra.mxu0 %vm500_vm0, %v7088_v16 }
 0x12d   : > { %5936 = vmatmul.msk.f32.gmra.mxu2 %vm710_vm1, %v7091_v17 }
 0x12e   : > { %5975 = vmatmul.msk.f32.gmra.mxu1 %vm500_vm0, %v7088_v16  ;;  %6007 = vmatmul.msk.f32.gmra.mxu3 %vm710_vm1, %v7091_v17  ;;  %v843_v16 = vadd.f32 %v7408_v2, %v7401_v49  ;;  %v931_v17 = vadd.f32 %v7620_v62, %v846_v54 }
 0x130   : > { %v1035_v1 = vpop.f32.mrf.mxu2  ;;  %6113 = vmatpush.xpose.msk.msra.mxu1 %vm2109_vm2, %v933_v15  ;;  %v930_v43 = vadd.f32 %v7620_v62, %v843_v16 }
 0x131   : > { %v1148_v11 = vpop.f32.mrf.mxu3  ;;  %v7696_v36 = vpop.f32.mrf.mxu0 }
 0x132   : > { %v7701_v8 = vadd.f32 %v1148_v11, %v1035_v1 }
 0x133   : > { %v7703_v6 = vpop.f32.mrf.mxu1 }
 0x134   : > { %6114 = vmatpush.xpose.msk.msra.mxu1 %vm2109_vm2, %v932_v39  ;;  %5905 = vmatmul.msk.f32.gmra.mxu0 %vm500_vm0, %v7102_v18 }
 0x135   : > { %5937 = vmatmul.msk.f32.gmra.mxu2 %vm710_vm1, %v7105_v19 }
 0x136   : > { %5976 = vmatmul.msk.f32.gmra.mxu1 %vm500_vm0, %v7102_v18  ;;  %6008 = vmatmul.msk.f32.gmra.mxu3 %vm710_vm1, %v7105_v19  ;;  %v837_v18 = vadd.f32 %v7368_v10, %v7361_v7  ;;  %v929_v19 = vadd.f32 %v7620_v62, %v840_v4 }
 0x138   : > { %v1038_v56 = vpop.f32.mrf.mxu2  ;;  %6115 = vmatpush.xpose.msk.msra.mxu1 %vm2109_vm2, %v931_v17  ;;  %v928_v51 = vadd.f32 %v7620_v62, %v837_v18 }
 0x139   : > { %v1151_v48 = vpop.f32.mrf.mxu3  ;;  %v7718_v35 = vpop.f32.mrf.mxu0 }
 0x13a   : > { %v7723_v2 = vadd.f32 %v1151_v48, %v1038_v56 }
 0x13b   : > { %v7725_v49 = vpop.f32.mrf.mxu1 }
 0x13c   : > { %6116 = vmatpush.xpose.msk.msra.mxu1 %vm2109_vm2, %v930_v43  ;;  %5906 = vmatmul.msk.f32.gmra.mxu0 %vm500_vm0, %v7116_v20 }
 0x13d   : > { %5938 = vmatmul.msk.f32.gmra.mxu2 %vm710_vm1, %v7119_v21 }
 0x13e   : > { %5977 = vmatmul.msk.f32.gmra.mxu1 %vm500_vm0, %v7116_v20  ;;  %6009 = vmatmul.msk.f32.gmra.mxu3 %vm710_vm1, %v7119_v21  ;;  %v831_v20 = vadd.f32 %v7328_v60, %v7321_v57  ;;  %v927_v21 = vadd.f32 %v7620_v62, %v834_v13 }
 0x140   : > { %v1041_v55 = vpop.f32.mrf.mxu2  ;;  %6117 = vmatpush.xpose.msk.msra.mxu1 %vm2109_vm2, %v929_v19  ;;  %v926_v38 = vadd.f32 %v7620_v62, %v831_v20  ;;  %v12011_v20 = vld [vmem:[#allocation6_spill] sm:$0xff] }
 0x141   : > { %v1154_v63 = vpop.f32.mrf.mxu3  ;;  %v7740_v12 = vpop.f32.mrf.mxu0 }
 0x142   : > { %v7745_v7 = vadd.f32 %v1154_v63, %v1041_v55  ;;  %v12010_v55 = vld [vmem:[#allocation5_spill] sm:$0xff] }
 0x143   : > { %v7747_v10 = vpop.f32.mrf.mxu1 }
 0x144   : > { %6118 = vmatpush.xpose.msk.msra.mxu1 %vm2109_vm2, %v928_v51  ;;  %5907 = vmatmul.msk.f32.gmra.mxu0 %vm500_vm0, %v7130_v22 }
 0x145   : > { %5939 = vmatmul.msk.f32.gmra.mxu2 %vm710_vm1, %v7133_v23 }
 0x146   : > { %5978 = vmatmul.msk.f32.gmra.mxu1 %vm500_vm0, %v7130_v22  ;;  %6010 = vmatmul.msk.f32.gmra.mxu3 %vm710_vm1, %v7133_v23  ;;  %v825_v22 = vadd.f32 %v7288_v46, %v7283_v44  ;;  %v925_v23 = vadd.f32 %v7620_v62, %v828_v9 }
 0x148   : > { %v1044_v0 = vpop.f32.mrf.mxu2  ;;  %6119 = vmatpush.xpose.msk.msra.mxu1 %vm2109_vm2, %v927_v21  ;;  %v924_v15 = vadd.f32 %v7620_v62, %v825_v22  ;;  %v12012_v21 = vld [vmem:[#allocation7_spill] sm:$0xff]  ;;  %v12013_v22 = vld [vmem:[#allocation8_spill] sm:$0xff] }
 0x149   : > { %v1157_v3 = vpop.f32.mrf.mxu3  ;;  %v7762_v59 = vpop.f32.mrf.mxu0 }
 0x14a   : > { %v7767_v57 = vadd.f32 %v1157_v3, %v1044_v0 }
 0x14b   : > { %v7769_v60 = vpop.f32.mrf.mxu1 }
 0x14c   : > { %6120 = vmatpush.xpose.msk.msra.mxu1 %vm2109_vm2, %v926_v38  ;;  %5908 = vmatmul.msk.f32.gmra.mxu0 %vm500_vm0, %v7144_v24 }
 0x14d   : > { %5940 = vmatmul.msk.f32.gmra.mxu2 %vm710_vm1, %v7147_v25 }
 0x14e   : > { %5979 = vmatmul.msk.f32.gmra.mxu1 %vm500_vm0, %v7144_v24  ;;  %6011 = vmatmul.msk.f32.gmra.mxu3 %vm710_vm1, %v7147_v25 }
 0x150   : > { %v1047_v50 = vpop.f32.mrf.mxu2  ;;  %6121 = vmatpush.xpose.msk.msra.mxu1 %vm2109_vm2, %v925_v23  ;;  %v12014_v23 = vld [vmem:[#allocation9_spill] sm:$0xff] }
 0x151   : > { %v1160_v53 = vpop.f32.mrf.mxu3  ;;  %v7784_v14 = vpop.f32.mrf.mxu0 }
 0x152   : > { %v7787_v1 = vadd.f32 %v1160_v53, %v1047_v50 }
 0x153   : > { %v7789_v11 = vpop.f32.mrf.mxu1 }
 0x154   : > { %6122 = vmatpush.xpose.msk.msra.mxu1 %vm2109_vm2, %v924_v15  ;;  %5909 = vmatmul.msk.f32.gmra.mxu0 %vm500_vm0, %v7158_v26 }
 0x155   : > { %5941 = vmatmul.msk.f32.gmra.mxu2 %vm710_vm1, %v7161_v27 }
 0x156   : > { %5980 = vmatmul.msk.f32.gmra.mxu1 %vm500_vm0, %v7158_v26  ;;  %6012 = vmatmul.msk.f32.gmra.mxu3 %vm710_vm1, %v7161_v27 }
 0x158   : > { %v1050_v24 = vpop.f32.mrf.mxu2 }
 0x159   : > { %v1163_v25 = vpop.f32.mrf.mxu3  ;;  %v7800_v44 = vpop.f32.mrf.mxu0 }
 0x15a   : > { %v7802_v46 = vadd.f32 %v1163_v25, %v1050_v24 }
 0x15b   : > { %v7804_v54 = vpop.f32.mrf.mxu1 }
 0x15c   : > { %5910 = vmatmul.msk.f32.gmra.mxu0 %vm500_vm0, %v7172_v28 }
 0x15d   : > { %5942 = vmatmul.msk.f32.gmra.mxu2 %vm710_vm1, %v7175_v29 }
 0x15e   : > { %5981 = vmatmul.msk.f32.gmra.mxu1 %vm500_vm0, %v7172_v28  ;;  %6013 = vmatmul.msk.f32.gmra.mxu3 %vm710_vm1, %v7175_v29 }
 0x160   : > { %v1053_v26 = vpop.f32.mrf.mxu2 }
 0x161   : > { %v1166_v27 = vpop.f32.mrf.mxu3  ;;  %v7814_v39 = vpop.f32.mrf.mxu0 }
 0x162   : > { %v7816_v16 = vadd.f32 %v1166_v27, %v1053_v26  ;;  %v12015_v26 = vld [vmem:[#allocation10_spill] sm:$0xff]  ;;  %v12016_v27 = vld [vmem:[#allocation11_spill] sm:$0xff] }
 0x163   : > { %v7818_v17 = vpop.f32.mrf.mxu1 }
 0x164   : > { %5911 = vmatmul.msk.f32.gmra.mxu0 %vm500_vm0, %v7186_v30 }
 0x165   : > { %5943 = vmatmul.msk.f32.gmra.mxu2 %vm710_vm1, %v7189_v31 }
 0x166   : > { %5982 = vmatmul.msk.f32.gmra.mxu1 %vm500_vm0, %v7186_v30  ;;  %6014 = vmatmul.msk.f32.gmra.mxu3 %vm710_vm1, %v7189_v31 }
 0x168   : > { %v1056_v28 = vpop.f32.mrf.mxu2 }
 0x169   : > { %v1169_v29 = vpop.f32.mrf.mxu3  ;;  %v7828_v56 = vpop.f32.mrf.mxu0 }
 0x16a   : > { %v7830_v48 = vadd.f32 %v1169_v29, %v1056_v28 }
 0x16b   : > { %v7832_v4 = vpop.f32.mrf.mxu1 }
 0x16c   : > { %5912 = vmatmul.msk.f32.gmra.mxu0 %vm500_vm0, %v7200_v32 }
 0x16d   : > { %5944 = vmatmul.msk.f32.gmra.mxu2 %vm710_vm1, %v7203_v33 }
 0x16e   : > { %5983 = vmatmul.msk.f32.gmra.mxu1 %vm500_vm0, %v7200_v32  ;;  %6015 = vmatmul.msk.f32.gmra.mxu3 %vm710_vm1, %v7203_v33 }
 0x170   : > { %v1059_v30 = vpop.f32.mrf.mxu2 }
 0x171   : > { %v1172_v31 = vpop.f32.mrf.mxu3  ;;  %v7842_v43 = vpop.f32.mrf.mxu0 }
 0x172   : > { %v7844_v18 = vadd.f32 %v1172_v31, %v1059_v30 }
 0x173   : > { %v7846_v19 = vpop.f32.mrf.mxu1 }
 0x174   : > { %5913 = vmatmul.msk.f32.gmra.mxu0 %vm500_vm0, %v7214_v34 }
 0x175   : > { %5945 = vmatmul.msk.f32.gmra.mxu2 %vm710_vm1, %v12010_v55 }
 0x176   : > { %5984 = vmatmul.msk.f32.gmra.mxu1 %vm500_vm0, %v7214_v34  ;;  %6016 = vmatmul.msk.f32.gmra.mxu3 %vm710_vm1, %v12010_v55 }
 0x178   : > { %v1062_v32 = vpop.f32.mrf.mxu2 }
 0x179   : > { %v1175_v33 = vpop.f32.mrf.mxu3  ;;  %v698_v63 = vpop.f32.mrf.mxu0 }
 0x17a   : > { %v7856_v13 = vadd.f32 %v1175_v33, %v1062_v32  ;;  %v12017_v33 = vld [vmem:[#allocation12_spill] sm:$0xff] }
 0x17b   : > { %v908_v51 = vpop.f32.mrf.mxu1 }
 0x17c   : > { %5914 = vmatmul.msk.f32.gmra.mxu0 %vm500_vm0, %v12011_v20 }
 0x17d   : > { %5946 = vmatmul.msk.f32.gmra.mxu2 %vm710_vm1, %v12012_v21 }
 0x17e   : > { %5985 = vmatmul.msk.f32.gmra.mxu1 %vm500_vm0, %v12011_v20  ;;  %6017 = vmatmul.msk.f32.gmra.mxu3 %vm710_vm1, %v12012_v21  ;;  %v12018_v20 = vld [vmem:[#allocation13_spill] sm:$0xff] }
 0x180   : > { %v1065_v34 = vpop.f32.mrf.mxu2 }
 0x181   : > { %v1178_v0 = vpop.f32.mrf.mxu3  ;;  %v701_v3 = vpop.f32.mrf.mxu0 }
 0x182   : > { %v7866_v9 = vadd.f32 %v1178_v0, %v1065_v34 }
 0x183   : > { %v911_v38 = vpop.f32.mrf.mxu1 }
 0x184   : > { %5915 = vmatmul.msk.f32.gmra.mxu0 %vm500_vm0, %v12013_v22 }
 0x185   : > { %5947 = vmatmul.msk.f32.gmra.mxu2 %vm710_vm1, %v12014_v23 }
 0x186   : > { %5986 = vmatmul.msk.f32.gmra.mxu1 %vm500_vm0, %v12013_v22  ;;  %6018 = vmatmul.msk.f32.gmra.mxu3 %vm710_vm1, %v12014_v23 }
 0x188   : > { %v1068_v50 = vpop.f32.mrf.mxu2 }
 0x189   : > { %v1181_v53 = vpop.f32.mrf.mxu3  ;;  %v704_v15 = vpop.f32.mrf.mxu0 }
 0x18a   : > { %v7876_v24 = vadd.f32 %v1181_v53, %v1068_v50  ;;  %v912_v50 = vadd.f32 %v911_v38, %v701_v3 }
 0x18b   : > { %v914_v25 = vpop.f32.mrf.mxu1 }
 0x18c   : > { %5916 = vmatmul.msk.f32.gmra.mxu0 %vm500_vm0, %v12015_v26  ;;  %v915_v21 = vadd.f32 %v914_v25, %v704_v15  ;;  %v12019_v15 = vld [vmem:[#allocation14_spill] sm:$0xff]  ;;  %v12020_v25 = vld [vmem:[#allocation15_spill] sm:$0xff] }
 0x18d   : > { %5948 = vmatmul.msk.f32.gmra.mxu2 %vm710_vm1, %v12016_v27 }
 0x18e   : > { %5987 = vmatmul.msk.f32.gmra.mxu1 %vm500_vm0, %v12015_v26  ;;  %6019 = vmatmul.msk.f32.gmra.mxu3 %vm710_vm1, %v12016_v27  ;;  %v954_v53 = vadd.f32 %v7620_v62, %v915_v21  ;;  %v12022_v21 = vld [vmem:[#allocation18_spill] sm:$0xff] }
 0x190   : > { %v1071_v28 = vpop.f32.mrf.mxu2 }
 0x191   : > { %v1184_v29 = vpop.f32.mrf.mxu3  ;;  %v707_v30 = vpop.f32.mrf.mxu0 }
 0x192   : > { %v7886_v31 = vadd.f32 %v1184_v29, %v1071_v28  ;;  %v909_v28 = vadd.f32 %v908_v51, %v698_v63  ;;  %v953_v29 = vadd.f32 %v7620_v62, %v912_v50  ;;  %v900_v50 = vadd.f32 %v7818_v17, %v7814_v39 }
 0x193   : > { %v917_v55 = vpop.f32.mrf.mxu1 }
 0x194   : > { %v918_v32 = vadd.f32 %v917_v55, %v707_v30  ;;  %5917 = vmatmul.msk.f32.gmra.mxu0 %vm500_vm0, %v12017_v33  ;;  %v952_v63 = vadd.f32 %v7620_v62, %v909_v28  ;;  %v949_v28 = vadd.f32 %v7620_v62, %v900_v50  ;;  %v885_v50 = vadd.f32 %v7725_v49, %v7718_v35 }
 0x195   : > { %5949 = vmatmul.msk.f32.gmra.mxu2 %vm710_vm1, %v12018_v20 }
 0x196   : > { %v955_v34 = vadd.f32 %v7620_v62, %v918_v32  ;;  %5988 = vmatmul.msk.f32.gmra.mxu1 %vm500_vm0, %v12017_v33  ;;  %6020 = vmatmul.msk.f32.gmra.mxu3 %vm710_vm1, %v12018_v20  ;;  %v906_v32 = vadd.f32 %v7846_v19, %v7842_v43  ;;  %v12021_v20 = vld [vmem:[#allocation16_spill] sm:$0xff]  ;;  %v944_v35 = vadd.f32 %v7620_v62, %v885_v50 }
 0x198   : > { %v1074_v0 = vpop.f32.mrf.mxu2  ;;  %6155 = vmatpush.xpose.msk.msra.mxu3 %vm2109_vm2, %v955_v34  ;;  %v903_v34 = vadd.f32 %v7832_v4, %v7828_v56 }
 0x199   : > { %v1187_v22 = vpop.f32.mrf.mxu3  ;;  %v1252_v23 = vpop.f32.mrf.mxu0 }
 0x19a   : > { %v7899_v26 = vadd.f32 %v1187_v22, %v1074_v0  ;;  %v951_v0 = vadd.f32 %v7620_v62, %v906_v32  ;;  %v950_v56 = vadd.f32 %v7620_v62, %v903_v34  ;;  %v12025_v32 = vld [vmem:[#allocation22_spill] sm:$0xff] }
 0x19b   : > { %v1523_v27 = vpop.f32.mrf.mxu1 }
 0x19c   : > { %6156 = vmatpush.xpose.msk.msra.mxu3 %vm2109_vm2, %v954_v53  ;;  %5918 = vmatmul.msk.f32.gmra.mxu0 %vm500_vm0, %v12019_v15 }
 0x19d   : > { %5950 = vmatmul.msk.f32.gmra.mxu2 %vm710_vm1, %v12020_v25 }
 0x19e   : > { %5989 = vmatmul.msk.f32.gmra.mxu1 %vm500_vm0, %v12019_v15  ;;  %6021 = vmatmul.msk.f32.gmra.mxu3 %vm710_vm1, %v12020_v25  ;;  %v12024_v15 = vld [vmem:[#allocation21_spill] sm:$0xff]  ;;  %v897_v25 = vadd.f32 %v7804_v54, %v7800_v44 }
 0x1a0   : > { %v1365_v3 = vpop.f32.mrf.mxu2  ;;  %6157 = vmatpush.xpose.msk.msra.mxu3 %vm2109_vm2, %v953_v29  ;;  %v948_v44 = vadd.f32 %v7620_v62, %v897_v25 }
 0x1a1   : > { %v7912_v38 = vadd.f32 %v1365_v3, %v1252_v23  ;;  %v1636_v30 = vpop.f32.mrf.mxu3  ;;  %v1255_v55 = vpop.f32.mrf.mxu0 }
 0x1a2   : > { %v7917_v51 = vadd.f32 %v1636_v30, %v1523_v27  ;;  %v12023_v27 = vld [vmem:[#allocation19_spill] sm:$0xff]  ;;  %v894_v30 = vadd.f32 %v7789_v11, %v7784_v14 }
 0x1a3   : > { %v1526_v33 = vpop.f32.mrf.mxu1 }
 0x1a4   : > { %6158 = vmatpush.xpose.msk.msra.mxu3 %vm2109_vm2, %v952_v63  ;;  %5919 = vmatmul.msk.f32.gmra.mxu0 %vm500_vm0, %v12021_v20  ;;  %v12026_v63 = vld [vmem:[#allocation24_spill] sm:$0xff] }
 0x1a5   : > { %5951 = vmatmul.msk.f32.gmra.mxu2 %vm710_vm1, %v12022_v21 }
 0x1a6   : > { %5990 = vmatmul.msk.f32.gmra.mxu1 %vm500_vm0, %v12021_v20  ;;  %6022 = vmatmul.msk.f32.gmra.mxu3 %vm710_vm1, %v12022_v21  ;;  %v947_v20 = vadd.f32 %v7620_v62, %v894_v30 }
 0x1a8   : > { %v1368_v43 = vpop.f32.mrf.mxu2  ;;  %6159 = vmatpush.xpose.msk.msra.mxu3 %vm2109_vm2, %v951_v0  ;;  %v888_v0 = vadd.f32 %v7747_v10, %v7740_v12 }
 0x1a9   : > { %v7932_v19 = vadd.f32 %v1368_v43, %v1255_v55  ;;  %v1639_v22 = vpop.f32.mrf.mxu3  ;;  %v1258_v23 = vpop.f32.mrf.mxu0 }
 0x1aa   : > { %v7937_v4 = vadd.f32 %v1639_v22, %v1526_v33  ;;  %v891_v33 = vadd.f32 %v7769_v60, %v7762_v59  ;;  %v12027_v22 = vld [vmem:[#allocation25_spill] sm:$0xff] }
 0x1ab   : > { %v1529_v53 = vpop.f32.mrf.mxu1 }
 0x1ac   : > { %6160 = vmatpush.xpose.msk.msra.mxu3 %vm2109_vm2, %v950_v56  ;;  %5920 = vmatmul.msk.f32.gmra.mxu0 %vm500_vm0, %v12023_v27  ;;  %v946_v59 = vadd.f32 %v7620_v62, %v891_v33  ;;  %v945_v56 = vadd.f32 %v7620_v62, %v888_v0  ;;  %v12032_v33 = vld [vmem:[#allocation33_spill] sm:$0xff] }
 0x1ad   : > { %5952 = vmatmul.msk.f32.gmra.mxu2 %vm710_vm1, %v12024_v15 }
 0x1ae   : > { %5991 = vmatmul.msk.f32.gmra.mxu1 %vm500_vm0, %v12023_v27  ;;  %6023 = vmatmul.msk.f32.gmra.mxu3 %vm710_vm1, %v12024_v15  ;;  %v882_v15 = vadd.f32 %v7703_v6, %v7696_v36 }
 0x1b0   : > { %v1371_v39 = vpop.f32.mrf.mxu2  ;;  %6161 = vmatpush.xpose.msk.msra.mxu3 %vm2109_vm2, %v949_v28  ;;  %v12029_v28 = vld [vmem:[#allocation28_spill] sm:$0xff] }
 0x1b1   : > { %v7952_v17 = vadd.f32 %v1371_v39, %v1258_v23  ;;  %v1642_v29 = vpop.f32.mrf.mxu3  ;;  %v1261_v3 = vpop.f32.mrf.mxu0  ;;  %v12028_v23 = vld [vmem:[#allocation27_spill] sm:$0xff]  ;;  %v12030_v39 = vld [vmem:[#allocation30_spill] sm:$0xff] }
 0x1b2   : > { %v7957_v54 = vadd.f32 %v1642_v29, %v1529_v53  ;;  %v879_v29 = vadd.f32 %v7681_v52, %v7674_v47 }
 0x1b3   : > { %v1532_v55 = vpop.f32.mrf.mxu1 }
 0x1b4   : > { %6162 = vmatpush.xpose.msk.msra.mxu3 %vm2109_vm2, %v948_v44  ;;  %5921 = vmatmul.msk.f32.gmra.mxu0 %vm500_vm0, %v12025_v32  ;;  %v942_v47 = vadd.f32 %v7620_v62, %v879_v29 }
 0x1b5   : > { %5953 = vmatmul.msk.f32.gmra.mxu2 %vm710_vm1, %v12026_v63 }
 0x1b6   : > { %5992 = vmatmul.msk.f32.gmra.mxu1 %vm500_vm0, %v12025_v32  ;;  %6024 = vmatmul.msk.f32.gmra.mxu3 %vm710_vm1, %v12026_v63  ;;  %v12031_v63 = vld [vmem:[#allocation31_spill] sm:$0xff] }
 0x1b8   : > { %v1374_v14 = vpop.f32.mrf.mxu2  ;;  %6163 = vmatpush.xpose.msk.msra.mxu3 %vm2109_vm2, %v947_v20  ;;  %v873_v20 = vadd.f32 %v7637_v40, %v7632_v61  ;;  %v12033_v40 = vld [vmem:[#allocation34_spill] sm:$0xff] }
 0x1b9   : > { %v7972_v11 = vadd.f32 %v1374_v14, %v1261_v3  ;;  %v1645_v21 = vpop.f32.mrf.mxu3  ;;  %v1264_v34 = vpop.f32.mrf.mxu0  ;;  %v943_v3 = vadd.f32 %v7620_v62, %v882_v15  ;;  %v1772_v15 = vld [vmem:[%s11728_s6 + $0x18] sm:$0xff] }
 0x1ba   : > { %v7977_v60 = vadd.f32 %v1645_v21, %v1532_v55  ;;  %v876_v55 = vadd.f32 %v7659_v45, %v7652_v41  ;;  %v940_v0 = vadd.f32 %v7620_v62, %v873_v20  ;;  %1885 = vmatpush.msra.mxu0 %v1772_v15  ;;  %v12039_v20 = vld [vmem:[#allocation43_spill] sm:$0xff] }
 0x1bb   : > { %v1535_v43 = vpop.f32.mrf.mxu1 }
 0x1bc   : > { %6164 = vmatpush.xpose.msk.msra.mxu3 %vm2109_vm2, %v946_v59  ;;  %5922 = vmatmul.msk.f32.gmra.mxu0 %vm500_vm0, %v12027_v22  ;;  %v941_v14 = vadd.f32 %v7620_v62, %v876_v55 }
 0x1bd   : > { %5954 = vmatmul.msk.f32.gmra.mxu2 %vm710_vm1, %v12028_v23 }
 0x1be   : > { %5993 = vmatmul.msk.f32.gmra.mxu1 %vm500_vm0, %v12027_v22  ;;  %6025 = vmatmul.msk.f32.gmra.mxu3 %vm710_vm1, %v12028_v23 }
 0x1c0   : > { %v1377_v12 = vpop.f32.mrf.mxu2  ;;  %6165 = vmatpush.xpose.msk.msra.mxu3 %vm2109_vm2, %v945_v56 }
 0x1c1   : > { %v7992_v10 = vadd.f32 %v1377_v12, %v1264_v34  ;;  %v1648_v53 = vpop.f32.mrf.mxu3  ;;  %v1267_v27 = vpop.f32.mrf.mxu0 }
 0x1c2   : > { %v7997_v49 = vadd.f32 %v1648_v53, %v1535_v43  ;;  %v12034_v43 = vld [vmem:[#allocation36_spill] sm:$0xff]  ;;  %v12035_v53 = vld [vmem:[#allocation37_spill] sm:$0xff] }
 0x1c3   : > { %v1538_v25 = vpop.f32.mrf.mxu1 }
 0x1c4   : > { %6166 = vmatpush.xpose.msk.msra.mxu3 %vm2109_vm2, %v944_v35  ;;  %5923 = vmatmul.msk.f32.gmra.mxu0 %vm500_vm0, %v12029_v28 }
 0x1c5   : > { %5955 = vmatmul.msk.f32.gmra.mxu2 %vm710_vm1, %v12030_v39 }
 0x1c6   : > { %5994 = vmatmul.msk.f32.gmra.mxu1 %vm500_vm0, %v12029_v28  ;;  %6026 = vmatmul.msk.f32.gmra.mxu3 %vm710_vm1, %v12030_v39 }
 0x1c8   : > { %v1380_v36 = vpop.f32.mrf.mxu2  ;;  %6167 = vmatpush.xpose.msk.msra.mxu3 %vm2109_vm2, %v943_v3 }
 0x1c9   : > { %v8012_v6 = vadd.f32 %v1380_v36, %v1267_v27  ;;  %v1651_v30 = vpop.f32.mrf.mxu3  ;;  %v1270_v44 = vpop.f32.mrf.mxu0  ;;  %v12036_v27 = vld [vmem:[#allocation39_spill] sm:$0xff]  ;;  %v12037_v36 = vld [vmem:[#allocation40_spill] sm:$0xff] }
 0x1ca   : > { %v8017_v52 = vadd.f32 %v1651_v30, %v1538_v25  ;;  %v12038_v30 = vld [vmem:[#allocation42_spill] sm:$0xff] }
 0x1cb   : > { %v1541_v32 = vpop.f32.mrf.mxu1 }
 0x1cc   : > { %6168 = vmatpush.xpose.msk.msra.mxu3 %vm2109_vm2, %v942_v47  ;;  %5924 = vmatmul.msk.f32.gmra.mxu0 %vm500_vm0, %v12031_v63 }
 0x1cd   : > { %5956 = vmatmul.msk.f32.gmra.mxu2 %vm710_vm1, %v12032_v33 }
 0x1ce   : > { %5995 = vmatmul.msk.f32.gmra.mxu1 %vm500_vm0, %v12031_v63  ;;  %6027 = vmatmul.msk.f32.gmra.mxu3 %vm710_vm1, %v12032_v33 }
 0x1d0   : > { %v1383_v41 = vpop.f32.mrf.mxu2  ;;  %6169 = vmatpush.xpose.msk.msra.mxu3 %vm2109_vm2, %v941_v14  ;;  %v12040_v14 = vld [vmem:[#allocation45_spill] sm:$0xff] }
 0x1d1   : > { %v8032_v45 = vadd.f32 %v1383_v41, %v1270_v44  ;;  %v1654_v21 = vpop.f32.mrf.mxu3  ;;  %v1273_v34 = vpop.f32.mrf.mxu0 }
 0x1d2   : > { %v8035_v59 = vadd.f32 %v1654_v21, %v1541_v32 }
 0x1d3   : > { %v1544_v61 = vpop.f32.mrf.mxu1 }
 0x1d4   : > { %6170 = vmatpush.xpose.msk.msra.mxu3 %vm2109_vm2, %v940_v0  ;;  %5925 = vmatmul.msk.f32.gmra.mxu0 %vm500_vm0, %v12033_v40 }
 0x1d5   : > { %5957 = vmatmul.msk.f32.gmra.mxu2 %vm710_vm1, %v12034_v43 }
 0x1d6   : > { %5996 = vmatmul.msk.f32.gmra.mxu1 %vm500_vm0, %v12033_v40  ;;  %6028 = vmatmul.msk.f32.gmra.mxu3 %vm710_vm1, %v12034_v43  ;;  %v12041_v40 = vld [vmem:[#allocation46_spill] sm:$0xff]  ;;  %v12042_v43 = vld [vmem:[#allocation48_spill] sm:$0xff] }
 0x1d8   : > { %v1386_v22 = vpop.f32.mrf.mxu2 }
 0x1d9   : > { %v8046_v23 = vadd.f32 %v1386_v22, %v1273_v34  ;;  %v1657_v62 = vpop.f32.mrf.mxu3  ;;  %v1276_v50 = vpop.f32.mrf.mxu0  ;;  %v1771_v22 = vld [vmem:[%s11728_s6 + $0x10] sm:$0xff] }
 0x1da   : > { %v8048_v56 = vadd.f32 %v1657_v62, %v1544_v61  ;;  %1886 = vmatpush.msra.mxu0 %v1771_v22  ;;  %v12049_v22 = vld [vmem:[#allocation55_spill] sm:$0xff] }
 0x1db   : > { %v1547_v12 = vpop.f32.mrf.mxu1 }
 0x1dc   : > { %5926 = vmatmul.msk.f32.gmra.mxu0 %vm500_vm0, %v12035_v53 }
 0x1dd   : > { %5958 = vmatmul.msk.f32.gmra.mxu2 %vm710_vm1, %v12036_v27 }
 0x1de   : > { %5997 = vmatmul.msk.f32.gmra.mxu1 %vm500_vm0, %v12035_v53  ;;  %6029 = vmatmul.msk.f32.gmra.mxu3 %vm710_vm1, %v12036_v27  ;;  %v1770_v53 = vld [vmem:[%s11728_s6 + $0x8] sm:$0xff] }
 0x1df   : > { %1887 = vmatpush.msra.mxu0 %v1770_v53  ;;  %v6073_v53 = vld [vmem:[%s11728_s6 + $0x38] sm:$0xff] }
 0x1e0   : > { %v1389_v35 = vpop.f32.mrf.mxu2  ;;  %2008 = vmatpush.msra.mxu2 %v6073_v53 }
 0x1e1   : > { %v8061_v25 = vadd.f32 %v1389_v35, %v1276_v50  ;;  %v1660_v28 = vpop.f32.mrf.mxu3  ;;  %v1279_v39 = vpop.f32.mrf.mxu0  ;;  %v1769_v35 = vld [vmem:[%s11728_s6] sm:$0xff] }
 0x1e2   : > { %v8063_v29 = vadd.f32 %v1660_v28, %v1547_v12  ;;  %v12043_v28 = vld [vmem:[#allocation49_spill] sm:$0xff]  ;;  %1888 = vmatpush.msra.mxu0 %v1769_v35  ;;  %v6072_v35 = vld [vmem:[%s11728_s6 + $0x30] sm:$0xff] }
 0x1e3   : > { %v1550_v3 = vpop.f32.mrf.mxu1  ;;  %2009 = vmatpush.msra.mxu2 %v6072_v35 }
 0x1e4   : > { %5927 = vmatmul.msk.f32.gmra.mxu0 %vm500_vm0, %v12037_v36 }
 0x1e5   : > { %5959 = vmatmul.msk.f32.gmra.mxu2 %vm710_vm1, %v12038_v30 }
 0x1e6   : > { %5998 = vmatmul.msk.f32.gmra.mxu1 %vm500_vm0, %v12037_v36  ;;  %6030 = vmatmul.msk.f32.gmra.mxu3 %vm710_vm1, %v12038_v30 }
 0x1e8   : > { %v1392_v44 = vpop.f32.mrf.mxu2 }
 0x1e9   : > { %v8073_v55 = vadd.f32 %v1392_v44, %v1279_v39  ;;  %v1663_v47 = vpop.f32.mrf.mxu3  ;;  %v8075_v32 = vpop.f32.mrf.mxu0  ;;  %v12044_v39 = vld [vmem:[#allocation51_spill] sm:$0xff] }
 0x1ea   : > { %v8077_v63 = vadd.f32 %v1663_v47, %v1550_v3 }
 0x1eb   : > { %v1553_v33 = vpop.f32.mrf.mxu1 }
 0x1ec   : > { %5928 = vmatmul.msk.f32.gmra.mxu0 %vm500_vm0, %v12039_v20 }
 0x1ed   : > { %5960 = vmatmul.msk.f32.gmra.mxu2 %vm710_vm1, %v12040_v14 }
 0x1ee   : > { %5999 = vmatmul.msk.f32.gmra.mxu1 %vm500_vm0, %v12039_v20  ;;  %6031 = vmatmul.msk.f32.gmra.mxu3 %vm710_vm1, %v12040_v14  ;;  %v12047_v20 = vld [vmem:[#allocation54_spill] sm:$0xff] }
 0x1f0   : > { %v8087_v41 = vpop.f32.mrf.mxu2 }
 0x1f1   : > { %v1666_v21 = vpop.f32.mrf.mxu3  ;;  %v8089_v34 = vpop.f32.mrf.mxu0 }
 0x1f2   : > { %v8091_v0 = vadd.f32 %v1666_v21, %v1553_v33  ;;  %v12046_v33 = vld [vmem:[#allocation52_spill] sm:$0xff] }
 0x1f3   : > { %v1556_v61 = vpop.f32.mrf.mxu1 }
 0x1f4   : > { %5929 = vmatmul.msk.f32.gmra.mxu0 %vm500_vm0, %v12041_v40 }
 0x1f5   : > { %5961 = vmatmul.msk.f32.gmra.mxu2 %vm710_vm1, %v12042_v43 }
 0x1f6   : > { %6000 = vmatmul.msk.f32.gmra.mxu1 %vm500_vm0, %v12041_v40  ;;  %6032 = vmatmul.msk.f32.gmra.mxu3 %vm710_vm1, %v12042_v43 }
 0x1f8   : > { %v8104_v62 = vpop.f32.mrf.mxu2 }
 0x1f9   : > { %v1669_v50 = vpop.f32.mrf.mxu3  ;;  %v8106_v12 = vpop.f32.mrf.mxu0 }
 0x1fa   : > { %v8111_v27 = vadd.f32 %v1669_v50, %v1556_v61  ;;  %v12050_v50 = vld [vmem:[#allocation57_spill] sm:$0xff] }
 0x1fb   : > { %v1559_v15 = vpop.f32.mrf.mxu1 }
 0x1fc   : > { %5930 = vmatmul.msk.f32.gmra.mxu0 %vm500_vm0, %v12043_v28 }
 0x1fd   : > { %5962 = vmatmul.msk.f32.gmra.mxu2 %vm710_vm1, %v12044_v39 }
 0x1fe   : > { %6001 = vmatmul.msk.f32.gmra.mxu1 %vm500_vm0, %v12043_v28  ;;  %6033 = vmatmul.msk.f32.gmra.mxu3 %vm710_vm1, %v12044_v39 }
 0x200   : > { %v1401_v3 = vpop.f32.mrf.mxu2 }
 0x201   : > { %v1672_v36 = vpop.f32.mrf.mxu3  ;;  %v1291_v30 = vpop.f32.mrf.mxu0 }
 0x202   : > { %v8124_v44 = vadd.f32 %v1672_v36, %v1559_v15 }
 0x203   : > { %v1562_v47 = vpop.f32.mrf.mxu1 }
 0x204   : > { %12045 = vst [vmem:[#allocation5_spill] sm:$0xff] %v8124_v44  ;;  %5931 = vmatmul.msk.f32.gmra.mxu0 %vm500_vm0, %v12046_v33 }
 0x205   : > { %5963 = vmatmul.msk.f32.gmra.mxu2 %vm710_vm1, %v12047_v20 }
 0x206   : > { %6002 = vmatmul.msk.f32.gmra.mxu1 %vm500_vm0, %v12046_v33  ;;  %6034 = vmatmul.msk.f32.gmra.mxu3 %vm710_vm1, %v12047_v20  ;;  %v12052_v20 = vld [vmem:[#allocation58_spill] sm:$0xff] }
 0x208   : > { %v1404_v14 = vpop.f32.mrf.mxu2 }
 0x209   : > { %v1675_v21 = vpop.f32.mrf.mxu3  ;;  %v1294_v61 = vpop.f32.mrf.mxu0 }
 0x20a   : > { %v8134_v40 = vadd.f32 %v1675_v21, %v1562_v47  ;;  %v6071_v47 = vld [vmem:[%s11728_s6 + $0x28] sm:$0xff]  ;;  %v6070_v21 = vld [vmem:[%s11728_s6 + $0x20] sm:$0xff] }
 0x20b   : > { %v1565_v43 = vpop.f32.mrf.mxu1  ;;  %2010 = vmatpush.msra.mxu2 %v6071_v47  ;;  %v462_v47 = vld [vmem:[%s8166_s21] sm:$0xff] }
 0x20c   : > { %12048 = vst [vmem:[#allocation6_spill] sm:$0xff] %v8134_v40  ;;  %5932 = vmatmul.msk.f32.gmra.mxu0 %vm500_vm0, %v12049_v22  ;;  %v12054_v40 = vld [vmem:[#allocation17_spill] sm:$0xff] }
 0x20d   : > { %5964 = vmatmul.msk.f32.gmra.mxu2 %vm710_vm1, %v12050_v50 }
 0x20e   : > { %6003 = vmatmul.msk.f32.gmra.mxu1 %vm500_vm0, %v12049_v22  ;;  %6035 = vmatmul.msk.f32.gmra.mxu3 %vm710_vm1, %v12050_v50  ;;  %v8180_v50 = vld [vmem:[%s11727_s5 + $0x2] ss:$0 sm:$0xff] }
 0x20f   : > { %2011 = vmatpush.msra.mxu2 %v6070_v21 }
 0x210   : > { %v1407_v15 = vpop.f32.mrf.mxu2 }
 0x211   : > { %v1678_v28 = vpop.f32.mrf.mxu3  ;;  %v1297_v39 = vpop.f32.mrf.mxu0 }
 0x212   : > { %v8150_v36 = vadd.f32 %v1678_v28, %v1565_v43  ;;  %v8175_v43 = vld [vmem:[%s11727_s5 + $0x1] ss:$0 sm:$0xff] }
 0x213   : > { %v1568_v33 = vpop.f32.mrf.mxu1  ;;  %v1195_v44 = vadd.f32 %v8175_v43, %v12054_v40 }
 0x214   : > { %12051 = vst [vmem:[#allocation7_spill] sm:$0xff] %v8150_v36  ;;  %5933 = vmatmul.msk.f32.gmra.mxu0 %vm500_vm0, %v12052_v20  ;;  %v1408_v36 = vadd.f32 %v1407_v15, %v1294_v61 }
 0x215   : > { %5965 = vmatmul.msk.f32.gmra.mxu2 %vm710_vm1, %v7615_v37 }
 0x216   : > { %6004 = vmatmul.msk.f32.gmra.mxu1 %vm500_vm0, %v12052_v20  ;;  %6036 = vmatmul.msk.f32.gmra.mxu3 %vm710_vm1, %v7615_v37  ;;  %v1480_v61 = vadd.f32 %v8180_v50, %v1408_v36 }
 0x218   : > { %v1410_v22 = vpop.f32.mrf.mxu2 }
 0x219   : > { %v1411_v53 = vadd.f32 %v1410_v22, %v1297_v39  ;;  %v1681_v35 = vpop.f32.mrf.mxu3  ;;  %v1300_v28 = vpop.f32.mrf.mxu0  ;;  %v1405_v39 = vadd.f32 %v1404_v14, %v1291_v30 }
 0x21a   : > { %v8183_v20 = vadd.f32 %v1681_v35, %v1568_v33 }
 0x21b   : > { %v1481_v37 = vadd.f32 %v8180_v50, %v1411_v53  ;;  %v1571_v21 = vpop.f32.mrf.mxu1  ;;  %v463_v53 = vld [vmem:[%s8166_s21 + $0x8] sm:$0xff] }
 0x21c   : > { %12053 = vst [vmem:[#allocation8_spill] sm:$0xff] %v8183_v20  ;;  %6038 = vmatmul.msk.f32.vlgmr.msra.gmra.mxu0 %vm710_vm1, %v462_v47 }
 0x21d   : > { %6203 = vmatpush.xpose.msk.msrb.mxu1 %vm2109_vm2, %v1481_v37  ;;  %6075 = vmatmul.msk.f32.vlgmr.msra.gmra.mxu2 %vm710_vm1, %v462_v47  ;;  %v1402_v37 = vadd.f32 %v1401_v3, %v8106_v12  ;;  %v1479_v47 = vadd.f32 %v8180_v50, %v1405_v39  ;;  %v1399_v12 = vadd.f32 %v8104_v62, %v8089_v34  ;;  %v464_v39 = vld [vmem:[%s8166_s21 + $0x10] sm:$0xff] }
 0x21e   : > { %6123 = vmatmul.msk.f32.vlgmr.msra.gmra.mxu1 %vm2109_vm2, %v1195_v44  ;;  %6171 = vmatmul.msk.f32.vlgmr.msra.gmra.mxu3 %vm2109_vm2, %v1195_v44  ;;  %v12056_v44 = vld [vmem:[#allocation20_spill] sm:$0xff]  ;;  %v12058_v34 = vld [vmem:[#allocation23_spill] sm:$0xff] }
 0x21f   : > { %v1196_v30 = vadd.f32 %v8175_v43, %v12056_v44  ;;  %v1478_v3 = vadd.f32 %v8180_v50, %v1402_v37  ;;  %v1197_v62 = vadd.f32 %v8175_v43, %v12058_v34  ;;  %v1473_v34 = vadd.f32 %v8180_v50, %v8046_v23 }
 0x220   : > { %v1413_v15 = vpop.f32.mrf.mxu2 }
 0x221   : > { %v8194_v33 = vadd.f32 %v1413_v15, %v1300_v28  ;;  %v1684_v22 = vpop.f32.mrf.mxu3  ;;  %6204 = vmatpush.xpose.msk.msrb.mxu1 %vm2109_vm2, %v1480_v61  ;;  %v1303_v40 = vpop.f32.mrf.mxu0  ;;  %v1396_v15 = vadd.f32 %v8087_v41, %v8075_v32 }
 0x222   : > { %v8198_v35 = vadd.f32 %v1684_v22, %v1571_v21  ;;  %v1477_v22 = vadd.f32 %v8180_v50, %v1399_v12 }
 0x223   : > { %v1574_v20 = vpop.f32.mrf.mxu1 }
 0x224   : > { %12055 = vst [vmem:[#allocation9_spill] sm:$0xff] %v8198_v35  ;;  %6039 = vmatmul.msk.f32.gmra.mxu0 %vm710_vm1, %v463_v53  ;;  %v492_v35 = vld [vmem:[%s8166_s21 + $0xf0] sm:$0xff] }
 0x225   : > { %6205 = vmatpush.xpose.msk.msrb.mxu1 %vm2109_vm2, %v1479_v47  ;;  %6076 = vmatmul.msk.f32.gmra.mxu2 %vm710_vm1, %v463_v53  ;;  %v465_v47 = vld [vmem:[%s8166_s21 + $0x18] sm:$0xff] }
 0x226   : > { %6124 = vmatmul.msk.f32.gmra.mxu1 %vm2109_vm2, %v1196_v30  ;;  %6172 = vmatmul.msk.f32.gmra.mxu3 %vm2109_vm2, %v1196_v30  ;;  %v1475_v30 = vadd.f32 %v8180_v50, %v8073_v55 }
 0x228   : > { %v1416_v14 = vpop.f32.mrf.mxu2 }
 0x229   : > { %v8212_v36 = vadd.f32 %v1416_v14, %v1303_v40  ;;  %v1687_v28 = vpop.f32.mrf.mxu3  ;;  %6206 = vmatpush.xpose.msk.msrb.mxu1 %vm2109_vm2, %v1478_v3  ;;  %v1306_v21 = vpop.f32.mrf.mxu0  ;;  %v12060_v3 = vld [vmem:[#allocation26_spill] sm:$0xff] }
 0x22a   : > { %v8216_v61 = vadd.f32 %v1687_v28, %v1574_v20  ;;  %v1476_v20 = vadd.f32 %v8180_v50, %v1396_v15  ;;  %v1198_v14 = vadd.f32 %v8175_v43, %v12060_v3  ;;  %v1474_v28 = vadd.f32 %v8180_v50, %v8061_v25 }
 0x22b   : > { %v1577_v53 = vpop.f32.mrf.mxu1  ;;  %v1472_v25 = vadd.f32 %v8180_v50, %v8032_v45  ;;  %v1471_v3 = vadd.f32 %v8180_v50, %v8012_v6  ;;  %v1470_v45 = vadd.f32 %v8180_v50, %v7992_v10  ;;  %v1468_v10 = vadd.f32 %v8180_v50, %v7952_v17 }
 0x22c   : > { %12057 = vst [vmem:[#allocation10_spill] sm:$0xff] %v8216_v61  ;;  %6040 = vmatmul.msk.f32.gmra.mxu0 %vm710_vm1, %v464_v39  ;;  %v1466_v17 = vadd.f32 %v8180_v50, %v7912_v38  ;;  %v478_v61 = vld [vmem:[%s8166_s21 + $0x80] sm:$0xff] }
 0x22d   : > { %6207 = vmatpush.xpose.msk.msrb.mxu1 %vm2109_vm2, %v1477_v22  ;;  %6077 = vmatmul.msk.f32.gmra.mxu2 %vm710_vm1, %v464_v39  ;;  %v466_v22 = vld [vmem:[%s8166_s21 + $0x20] sm:$0xff] }
 0x22e   : > { %6125 = vmatmul.msk.f32.gmra.mxu1 %vm2109_vm2, %v1197_v62  ;;  %6173 = vmatmul.msk.f32.gmra.mxu3 %vm2109_vm2, %v1197_v62 }
 0x230   : > { %v1419_v40 = vpop.f32.mrf.mxu2 }
 0x231   : > { %v8229_v32 = vadd.f32 %v1419_v40, %v1306_v21  ;;  %v1690_v41 = vpop.f32.mrf.mxu3  ;;  %6208 = vmatpush.xpose.msk.msrb.mxu1 %vm2109_vm2, %v1476_v20  ;;  %v1309_v37 = vpop.f32.mrf.mxu0  ;;  %v12062_v20 = vld [vmem:[#allocation29_spill] sm:$0xff] }
 0x232   : > { %v8233_v44 = vadd.f32 %v1690_v41, %v1577_v53  ;;  %v1199_v40 = vadd.f32 %v8175_v43, %v12062_v20  ;;  %v1469_v20 = vadd.f32 %v8180_v50, %v7972_v11 }
 0x233   : > { %v1580_v12 = vpop.f32.mrf.mxu1 }
 0x234   : > { %12059 = vst [vmem:[#allocation11_spill] sm:$0xff] %v8233_v44  ;;  %6041 = vmatmul.msk.f32.gmra.mxu0 %vm710_vm1, %v465_v47 }
 0x235   : > { %6209 = vmatpush.xpose.msk.msrb.mxu1 %vm2109_vm2, %v1475_v30  ;;  %6078 = vmatmul.msk.f32.gmra.mxu2 %vm710_vm1, %v465_v47  ;;  %v467_v30 = vld [vmem:[%s8166_s21 + $0x28] sm:$0xff] }
 0x236   : > { %6126 = vmatmul.msk.f32.gmra.mxu1 %vm2109_vm2, %v1198_v14  ;;  %6174 = vmatmul.msk.f32.gmra.mxu3 %vm2109_vm2, %v1198_v14 }
 0x238   : > { %v1422_v21 = vpop.f32.mrf.mxu2 }
 0x239   : > { %v8246_v39 = vadd.f32 %v1422_v21, %v1309_v37  ;;  %v1693_v55 = vpop.f32.mrf.mxu3  ;;  %6210 = vmatpush.xpose.msk.msrb.mxu1 %vm2109_vm2, %v1474_v28  ;;  %v1312_v15 = vpop.f32.mrf.mxu0  ;;  %v12064_v28 = vld [vmem:[#allocation32_spill] sm:$0xff] }
 0x23a   : > { %v8250_v53 = vadd.f32 %v1693_v55, %v1580_v12  ;;  %v1200_v21 = vadd.f32 %v8175_v43, %v12064_v28  ;;  %v1467_v28 = vadd.f32 %v8180_v50, %v7932_v19 }
 0x23b   : > { %v1583_v62 = vpop.f32.mrf.mxu1 }
 0x23c   : > { %12061 = vst [vmem:[#allocation12_spill] sm:$0xff] %v8250_v53  ;;  %6042 = vmatmul.msk.f32.gmra.mxu0 %vm710_vm1, %v466_v22  ;;  %v477_v53 = vld [vmem:[%s8166_s21 + $0x78] sm:$0xff] }
 0x23d   : > { %6211 = vmatpush.xpose.msk.msrb.mxu1 %vm2109_vm2, %v1473_v34  ;;  %6079 = vmatmul.msk.f32.gmra.mxu2 %vm710_vm1, %v466_v22  ;;  %v468_v34 = vld [vmem:[%s8166_s21 + $0x30] sm:$0xff] }
 0x23e   : > { %6127 = vmatmul.msk.f32.gmra.mxu1 %vm2109_vm2, %v1199_v40  ;;  %6175 = vmatmul.msk.f32.gmra.mxu3 %vm2109_vm2, %v1199_v40 }
 0x240   : > { %v1425_v41 = vpop.f32.mrf.mxu2 }
 0x241   : > { %v8263_v37 = vadd.f32 %v1425_v41, %v1312_v15  ;;  %v1696_v23 = vpop.f32.mrf.mxu3  ;;  %6212 = vmatpush.xpose.msk.msrb.mxu1 %vm2109_vm2, %v1472_v25  ;;  %v1315_v47 = vpop.f32.mrf.mxu0  ;;  %v12066_v25 = vld [vmem:[#allocation35_spill] sm:$0xff] }
 0x242   : > { %v8267_v12 = vadd.f32 %v1696_v23, %v1583_v62  ;;  %v1201_v41 = vadd.f32 %v8175_v43, %v12066_v25 }
 0x243   : > { %v1586_v14 = vpop.f32.mrf.mxu1 }
 0x244   : > { %12063 = vst [vmem:[#allocation13_spill] sm:$0xff] %v8267_v12  ;;  %6043 = vmatmul.msk.f32.gmra.mxu0 %vm710_vm1, %v467_v30 }
 0x245   : > { %6213 = vmatpush.xpose.msk.msrb.mxu1 %vm2109_vm2, %v1471_v3  ;;  %6080 = vmatmul.msk.f32.gmra.mxu2 %vm710_vm1, %v467_v30  ;;  %v469_v3 = vld [vmem:[%s8166_s21 + $0x38] sm:$0xff] }
 0x246   : > { %6128 = vmatmul.msk.f32.gmra.mxu1 %vm2109_vm2, %v1200_v21  ;;  %6176 = vmatmul.msk.f32.gmra.mxu3 %vm2109_vm2, %v1200_v21 }
 0x248   : > { %v1428_v55 = vpop.f32.mrf.mxu2 }
 0x249   : > { %v8280_v15 = vadd.f32 %v1428_v55, %v1315_v47  ;;  %v1699_v6 = vpop.f32.mrf.mxu3  ;;  %6214 = vmatpush.xpose.msk.msrb.mxu1 %vm2109_vm2, %v1470_v45  ;;  %v1318_v22 = vpop.f32.mrf.mxu0  ;;  %v12068_v45 = vld [vmem:[#allocation38_spill] sm:$0xff] }
 0x24a   : > { %v8284_v62 = vadd.f32 %v1699_v6, %v1586_v14  ;;  %v1202_v55 = vadd.f32 %v8175_v43, %v12068_v45  ;;  %v12072_v45 = vld [vmem:[#allocation44_spill] sm:$0xff] }
 0x24b   : > { %v1589_v40 = vpop.f32.mrf.mxu1 }
 0x24c   : > { %12065 = vst [vmem:[#allocation14_spill] sm:$0xff] %v8284_v62  ;;  %6044 = vmatmul.msk.f32.gmra.mxu0 %vm710_vm1, %v468_v34  ;;  %v476_v62 = vld [vmem:[%s8166_s21 + $0x70] sm:$0xff] }
 0x24d   : > { %6215 = vmatpush.xpose.msk.msrb.mxu1 %vm2109_vm2, %v1469_v20  ;;  %6081 = vmatmul.msk.f32.gmra.mxu2 %vm710_vm1, %v468_v34  ;;  %v470_v20 = vld [vmem:[%s8166_s21 + $0x40] sm:$0xff] }
 0x24e   : > { %6129 = vmatmul.msk.f32.gmra.mxu1 %vm2109_vm2, %v1201_v41  ;;  %6177 = vmatmul.msk.f32.gmra.mxu3 %vm2109_vm2, %v1201_v41  ;;  %v12070_v41 = vld [vmem:[#allocation41_spill] sm:$0xff] }
 0x250   : > { %v1431_v23 = vpop.f32.mrf.mxu2 }
 0x251   : > { %v8297_v47 = vadd.f32 %v1431_v23, %v1318_v22  ;;  %v1702_v11 = vpop.f32.mrf.mxu3  ;;  %6216 = vmatpush.xpose.msk.msrb.mxu1 %vm2109_vm2, %v1468_v10  ;;  %v1321_v30 = vpop.f32.mrf.mxu0  ;;  %v1203_v10 = vadd.f32 %v8175_v43, %v12070_v41 }
 0x252   : > { %v8301_v14 = vadd.f32 %v1702_v11, %v1589_v40 }
 0x253   : > { %v1592_v21 = vpop.f32.mrf.mxu1 }
 0x254   : > { %12067 = vst [vmem:[#allocation15_spill] sm:$0xff] %v8301_v14  ;;  %6045 = vmatmul.msk.f32.gmra.mxu0 %vm710_vm1, %v469_v3 }
 0x255   : > { %6217 = vmatpush.xpose.msk.msrb.mxu1 %vm2109_vm2, %v1467_v28  ;;  %6082 = vmatmul.msk.f32.gmra.mxu2 %vm710_vm1, %v469_v3  ;;  %v471_v3 = vld [vmem:[%s8166_s21 + $0x48] sm:$0xff] }
 0x256   : > { %6130 = vmatmul.msk.f32.gmra.mxu1 %vm2109_vm2, %v1202_v55  ;;  %6178 = vmatmul.msk.f32.gmra.mxu3 %vm2109_vm2, %v1202_v55  ;;  %v1204_v55 = vadd.f32 %v8175_v43, %v12072_v45 }
 0x258   : > { %v1434_v6 = vpop.f32.mrf.mxu2 }
 0x259   : > { %v8314_v22 = vadd.f32 %v1434_v6, %v1321_v30  ;;  %v1705_v19 = vpop.f32.mrf.mxu3  ;;  %6218 = vmatpush.xpose.msk.msrb.mxu1 %vm2109_vm2, %v1466_v17  ;;  %v1324_v34 = vpop.f32.mrf.mxu0 }
 0x25a   : > { %v8318_v40 = vadd.f32 %v1705_v19, %v1592_v21 }
 0x25b   : > { %v1595_v25 = vpop.f32.mrf.mxu1 }
 0x25c   : > { %12069 = vst [vmem:[#allocation16_spill] sm:$0xff] %v8318_v40  ;;  %6046 = vmatmul.msk.f32.gmra.mxu0 %vm710_vm1, %v470_v20  ;;  %v475_v40 = vld [vmem:[%s8166_s21 + $0x68] sm:$0xff] }
 0x25d   : > { %6083 = vmatmul.msk.f32.gmra.mxu2 %vm710_vm1, %v470_v20  ;;  %v472_v20 = vld [vmem:[%s8166_s21 + $0x50] sm:$0xff] }
 0x25e   : > { %6131 = vmatmul.msk.f32.gmra.mxu1 %vm2109_vm2, %v1203_v10  ;;  %6179 = vmatmul.msk.f32.gmra.mxu3 %vm2109_vm2, %v1203_v10  ;;  %v12074_v10 = vld [vmem:[#allocation47_spill] sm:$0xff] }
 0x260   : > { %v1437_v38 = vpop.f32.mrf.mxu2 }
 0x261   : > { %v8326_v23 = vadd.f32 %v1437_v38, %v1324_v34  ;;  %v1708_v11 = vpop.f32.mrf.mxu3  ;;  %v1327_v30 = vpop.f32.mrf.mxu0  ;;  %v1205_v38 = vadd.f32 %v8175_v43, %v12074_v10 }
 0x262   : > { %v8329_v28 = vadd.f32 %v1708_v11, %v1595_v25 }
 0x263   : > { %v1598_v21 = vpop.f32.mrf.mxu1 }
 0x264   : > { %12071 = vst [vmem:[#allocation18_spill] sm:$0xff] %v8329_v28  ;;  %6047 = vmatmul.msk.f32.gmra.mxu0 %vm710_vm1, %v471_v3 }
 0x265   : > { %6084 = vmatmul.msk.f32.gmra.mxu2 %vm710_vm1, %v471_v3 }
 0x266   : > { %6132 = vmatmul.msk.f32.gmra.mxu1 %vm2109_vm2, %v1204_v55  ;;  %6180 = vmatmul.msk.f32.gmra.mxu3 %vm2109_vm2, %v1204_v55 }
 0x268   : > { %v1440_v17 = vpop.f32.mrf.mxu2 }
 0x269   : > { %v8337_v6 = vadd.f32 %v1440_v17, %v1327_v30  ;;  %v1711_v19 = vpop.f32.mrf.mxu3  ;;  %v8339_v34 = vpop.f32.mrf.mxu0  ;;  %v12076_v17 = vld [vmem:[#allocation50_spill] sm:$0xff] }
 0x26a   : > { %v8342_v25 = vadd.f32 %v1711_v19, %v1598_v21  ;;  %v473_v21 = vld [vmem:[%s8166_s21 + $0x58] sm:$0xff]  ;;  %v1206_v19 = vadd.f32 %v8175_v43, %v12076_v17 }
 0x26b   : > { %v1601_v41 = vpop.f32.mrf.mxu1 }
 0x26c   : > { %12073 = vst [vmem:[#allocation19_spill] sm:$0xff] %v8342_v25  ;;  %6048 = vmatmul.msk.f32.gmra.mxu0 %vm710_vm1, %v472_v20  ;;  %v12078_v25 = vld [vmem:[#allocation53_spill] sm:$0xff] }
 0x26d   : > { %6085 = vmatmul.msk.f32.gmra.mxu2 %vm710_vm1, %v472_v20  ;;  %v1207_v17 = vadd.f32 %v8175_v43, %v12078_v25 }
 0x26e   : > { %6133 = vmatmul.msk.f32.gmra.mxu1 %vm2109_vm2, %v1205_v38  ;;  %6181 = vmatmul.msk.f32.gmra.mxu3 %vm2109_vm2, %v1205_v38 }
 0x270   : > { %v8350_v11 = vpop.f32.mrf.mxu2 }
 0x271   : > { %v1714_v30 = vpop.f32.mrf.mxu3  ;;  %v8352_v3 = vpop.f32.mrf.mxu0 }
 0x272   : > { %v8355_v45 = vadd.f32 %v1714_v30, %v1601_v41  ;;  %v474_v41 = vld [vmem:[%s8166_s21 + $0x60] sm:$0xff] }
 0x273   : > { %v1604_v55 = vpop.f32.mrf.mxu1 }
 0x274   : > { %12075 = vst [vmem:[#allocation21_spill] sm:$0xff] %v8355_v45  ;;  %6049 = vmatmul.msk.f32.gmra.mxu0 %vm710_vm1, %v473_v21 }
 0x275   : > { %6086 = vmatmul.msk.f32.gmra.mxu2 %vm710_vm1, %v473_v21 }
 0x276   : > { %6134 = vmatmul.msk.f32.gmra.mxu1 %vm2109_vm2, %v1206_v19  ;;  %6182 = vmatmul.msk.f32.gmra.mxu3 %vm2109_vm2, %v1206_v19 }
 0x278   : > { %v8363_v20 = vpop.f32.mrf.mxu2 }
 0x279   : > { %v1717_v10 = vpop.f32.mrf.mxu3  ;;  %v8365_v38 = vpop.f32.mrf.mxu0 }
 0x27a   : > { %v8368_v30 = vadd.f32 %v1717_v10, %v1604_v55  ;;  %v12080_v10 = vld [vmem:[#allocation56_spill] sm:$0xff] }
 0x27b   : > { %v1607_v45 = vpop.f32.mrf.mxu1 }
 0x27c   : > { %12077 = vst [vmem:[#allocation22_spill] sm:$0xff] %v8368_v30  ;;  %6050 = vmatmul.msk.f32.gmra.mxu0 %vm710_vm1, %v474_v41  ;;  %v1208_v30 = vadd.f32 %v8175_v43, %v12080_v10 }
 0x27d   : > { %6087 = vmatmul.msk.f32.gmra.mxu2 %vm710_vm1, %v474_v41 }
 0x27e   : > { %6135 = vmatmul.msk.f32.gmra.mxu1 %vm2109_vm2, %v1207_v17  ;;  %6183 = vmatmul.msk.f32.gmra.mxu3 %vm2109_vm2, %v1207_v17 }
 0x280   : > { %v1449_v21 = vpop.f32.mrf.mxu2 }
 0x281   : > { %v1720_v19 = vpop.f32.mrf.mxu3  ;;  %v1339_v28 = vpop.f32.mrf.mxu0 }
 0x282   : > { %v8377_v14 = vadd.f32 %v1720_v19, %v1607_v45  ;;  %v12082_v19 = vld [vmem:[#allocation59_spill] sm:$0xff] }
 0x283   : > { %v1610_v55 = vpop.f32.mrf.mxu1 }
 0x284   : > { %12079 = vst [vmem:[#allocation24_spill] sm:$0xff] %v8377_v14  ;;  %6051 = vmatmul.msk.f32.gmra.mxu0 %vm710_vm1, %v475_v40  ;;  %v1209_v14 = vadd.f32 %v8175_v43, %v12082_v19 }
 0x285   : > { %6088 = vmatmul.msk.f32.gmra.mxu2 %vm710_vm1, %v475_v40 }
 0x286   : > { %6136 = vmatmul.msk.f32.gmra.mxu1 %vm2109_vm2, %v1208_v30  ;;  %6184 = vmatmul.msk.f32.gmra.mxu3 %vm2109_vm2, %v1208_v30 }
 0x288   : > { %v1452_v25 = vpop.f32.mrf.mxu2 }
 0x289   : > { %v1723_v41 = vpop.f32.mrf.mxu3  ;;  %v1342_v17 = vpop.f32.mrf.mxu0 }
 0x28a   : > { %v8386_v12 = vadd.f32 %v1723_v41, %v1610_v55  ;;  %v1210_v41 = vadd.f32 %v8175_v43, %v7635_v5 }
 0x28b   : > { %v1613_v45 = vpop.f32.mrf.mxu1 }
 0x28c   : > { %12081 = vst [vmem:[#allocation25_spill] sm:$0xff] %v8386_v12  ;;  %6052 = vmatmul.msk.f32.gmra.mxu0 %vm710_vm1, %v476_v62 }
 0x28d   : > { %6089 = vmatmul.msk.f32.gmra.mxu2 %vm710_vm1, %v476_v62 }
 0x28e   : > { %6137 = vmatmul.msk.f32.gmra.mxu1 %vm2109_vm2, %v1209_v14  ;;  %6185 = vmatmul.msk.f32.gmra.mxu3 %vm2109_vm2, %v1209_v14 }
 0x290   : > { %v1455_v40 = vpop.f32.mrf.mxu2 }
 0x291   : > { %v1726_v30 = vpop.f32.mrf.mxu3  ;;  %v1345_v10 = vpop.f32.mrf.mxu0 }
 0x292   : > { %v8395_v44 = vadd.f32 %v1726_v30, %v1613_v45  ;;  %v1456_v30 = vadd.f32 %v1455_v40, %v1342_v17 }
 0x293   : > { %v1616_v55 = vpop.f32.mrf.mxu1 }
 0x294   : > { %12083 = vst [vmem:[#allocation27_spill] sm:$0xff] %v8395_v44  ;;  %6053 = vmatmul.msk.f32.gmra.mxu0 %vm710_vm1, %v477_v53  ;;  %v1496_v17 = vadd.f32 %v8180_v50, %v1456_v30 }
 0x295   : > { %6090 = vmatmul.msk.f32.gmra.mxu2 %vm710_vm1, %v477_v53  ;;  %v1211_v53 = vadd.f32 %v8175_v43, %v7657_v42 }
 0x296   : > { %6138 = vmatmul.msk.f32.gmra.mxu1 %vm2109_vm2, %v1210_v41  ;;  %6186 = vmatmul.msk.f32.gmra.mxu3 %vm2109_vm2, %v1210_v41  ;;  %v479_v41 = vld [vmem:[%s8166_s21 + $0x88] sm:$0xff] }
 0x298   : > { %v1458_v62 = vpop.f32.mrf.mxu2 }
 0x299   : > { %v1459_v14 = vadd.f32 %v1458_v62, %v1345_v10  ;;  %v1729_v19 = vpop.f32.mrf.mxu3  ;;  %v8403_v12 = vpop.f32.mrf.mxu0  ;;  %v1453_v10 = vadd.f32 %v1452_v25, %v1339_v28  ;;  %v1212_v25 = vadd.f32 %v8175_v43, %v7679_v58 }
 0x29a   : > { %v8406_v45 = vadd.f32 %v1729_v19, %v1616_v55 }
 0x29b   : > { %v1497_v5 = vadd.f32 %v8180_v50, %v1459_v14  ;;  %v8409_v44 = vpop.f32.mrf.mxu1  ;;  %v1495_v14 = vadd.f32 %v8180_v50, %v1453_v10  ;;  %v1444_v10 = vadd.f32 %v8350_v11, %v8339_v34 }
 0x29c   : > { %12084 = vst [vmem:[#allocation28_spill] sm:$0xff] %v8406_v45  ;;  %6054 = vmatmul.msk.f32.gmra.mxu0 %vm710_vm1, %v478_v61 }
 0x29d   : > { %6251 = vmatpush.xpose.msk.msrb.mxu3 %vm2109_vm2, %v1497_v5  ;;  %6091 = vmatmul.msk.f32.gmra.mxu2 %vm710_vm1, %v478_v61  ;;  %v1450_v61 = vadd.f32 %v1449_v21, %v8365_v38  ;;  %v1447_v38 = vadd.f32 %v8363_v20, %v8352_v3  ;;  %v480_v5 = vld [vmem:[%s8166_s21 + $0x90] sm:$0xff]  ;;  %v1492_v34 = vadd.f32 %v8180_v50, %v1444_v10 }
 0x29e   : > { %6139 = vmatmul.msk.f32.gmra.mxu1 %vm2109_vm2, %v1211_v53  ;;  %6187 = vmatmul.msk.f32.gmra.mxu3 %vm2109_vm2, %v1211_v53 }
 0x29f   : > { %v1494_v21 = vadd.f32 %v8180_v50, %v1450_v61  ;;  %v1493_v3 = vadd.f32 %v8180_v50, %v1447_v38  ;;  %v1214_v38 = vadd.f32 %v8175_v43, %v7723_v2 }
 0x2a0   : > { %v8419_v40 = vpop.f32.mrf.mxu2 }
 0x2a1   : > { %v8421_v55 = vpop.f32.mrf.mxu3  ;;  %6252 = vmatpush.xpose.msk.msrb.mxu3 %vm2109_vm2, %v1496_v17  ;;  %v8424_v42 = vpop.f32.mrf.mxu0  ;;  %v1213_v17 = vadd.f32 %v8175_v43, %v7701_v8 }
 0x2a2   : > { %12085 = vst [vmem:[#allocation30_spill] sm:$0xff] %v8421_v55  ;;  %v2528_v62 = vmax.f32 %v8409_v44, %v8421_v55 }
 0x2a3   : > { %v8431_v28 = vpop.f32.mrf.mxu1 }
 0x2a4   : > { %2529 = vmax.xlane.f32.xlu0 %v2528_v62  ;;  %6055 = vmatmul.msk.f32.gmra.mxu0 %vm710_vm1, %v479_v41  ;;  %v481_v62 = vld [vmem:[%s8166_s21 + $0x98] sm:$0xff] }
 0x2a5   : > { %6253 = vmatpush.xpose.msk.msrb.mxu3 %vm2109_vm2, %v1495_v14  ;;  %6092 = vmatmul.msk.f32.gmra.mxu2 %vm710_vm1, %v479_v41  ;;  %v1491_v14 = vadd.f32 %v8180_v50, %v8337_v6 }
 0x2a6   : > { %6140 = vmatmul.msk.f32.gmra.mxu1 %vm2109_vm2, %v1212_v25  ;;  %6188 = vmatmul.msk.f32.gmra.mxu3 %vm2109_vm2, %v1212_v25 }
 0x2a8   : > { %v8443_v19 = vpop.f32.mrf.mxu2 }
 0x2a9   : > { %v8445_v30 = vpop.f32.mrf.mxu3  ;;  %6254 = vmatpush.xpose.msk.msrb.mxu3 %vm2109_vm2, %v1494_v21  ;;  %v8448_v58 = vpop.f32.mrf.mxu0  ;;  %v1490_v21 = vadd.f32 %v8180_v50, %v8326_v23  ;;  %v1215_v23 = vadd.f32 %v8175_v43, %v7745_v7 }
 0x2aa   : > { %12086 = vst [vmem:[#allocation31_spill] sm:$0xff] %v8445_v30  ;;  %v2531_v53 = vmax.f32 %v8431_v28, %v8445_v30  ;;  %v491_v30 = vld [vmem:[%s8166_s21 + $0xe8] sm:$0xff] }
 0x2ab   : > { %v8456_v20 = vpop.f32.mrf.mxu1 }
 0x2ac   : > { %2532 = vmax.xlane.f32.xlu0 %v2531_v53  ;;  %6056 = vmatmul.msk.f32.gmra.mxu0 %vm710_vm1, %v480_v5  ;;  %v482_v53 = vld [vmem:[%s8166_s21 + $0xa0] sm:$0xff] }
 0x2ad   : > { %6255 = vmatpush.xpose.msk.msrb.mxu3 %vm2109_vm2, %v1493_v3  ;;  %6093 = vmatmul.msk.f32.gmra.mxu2 %vm710_vm1, %v480_v5  ;;  %v1489_v3 = vadd.f32 %v8180_v50, %v8314_v22 }
 0x2ae   : > { %6141 = vmatmul.msk.f32.gmra.mxu1 %vm2109_vm2, %v1213_v17  ;;  %6189 = vmatmul.msk.f32.gmra.mxu3 %vm2109_vm2, %v1213_v17 }
 0x2b0   : > { %v8466_v11 = vpop.f32.mrf.mxu2 }
 0x2b1   : > { %v8468_v41 = vpop.f32.mrf.mxu3  ;;  %6256 = vmatpush.xpose.msk.msrb.mxu3 %vm2109_vm2, %v1492_v34  ;;  %v8471_v8 = vpop.f32.mrf.mxu0  ;;  %v1488_v34 = vadd.f32 %v8180_v50, %v8297_v47  ;;  %v1216_v47 = vadd.f32 %v8175_v43, %v7767_v57 }
 0x2b2   : > { %12087 = vst [vmem:[#allocation33_spill] sm:$0xff] %v8468_v41  ;;  %v2534_v61 = vmax.f32 %v8456_v20, %v8468_v41 }
 0x2b3   : > { %v8478_v25 = vpop.f32.mrf.mxu1 }
 0x2b4   : > { %2535 = vmax.xlane.f32.xlu1 %v2534_v61  ;;  %6057 = vmatmul.msk.f32.gmra.mxu0 %vm710_vm1, %v481_v62  ;;  %v483_v61 = vld [vmem:[%s8166_s21 + $0xa8] sm:$0xff] }
 0x2b5   : > { %6257 = vmatpush.xpose.msk.msrb.mxu3 %vm2109_vm2, %v1491_v14  ;;  %6094 = vmatmul.msk.f32.gmra.mxu2 %vm710_vm1, %v481_v62 }
 0x2b6   : > { %6142 = vmatmul.msk.f32.gmra.mxu1 %vm2109_vm2, %v1214_v38  ;;  %6190 = vmatmul.msk.f32.gmra.mxu3 %vm2109_vm2, %v1214_v38  ;;  %v1487_v38 = vadd.f32 %v8180_v50, %v8280_v15 }
 0x2b8   : > { %v8489_v6 = vpop.f32.mrf.mxu2 }
 0x2b9   : > { %v8491_v5 = vpop.f32.mrf.mxu3  ;;  %6258 = vmatpush.xpose.msk.msrb.mxu3 %vm2109_vm2, %v1490_v21  ;;  %v8494_v2 = vpop.f32.mrf.mxu0 }
 0x2ba   : > { %12088 = vst [vmem:[#allocation34_spill] sm:$0xff] %v8491_v5  ;;  %v2537_v10 = vmax.f32 %v8478_v25, %v8491_v5  ;;  %v490_v5 = vld [vmem:[%s8166_s21 + $0xe0] sm:$0xff] }
 0x2bb   : > { %v8501_v17 = vpop.f32.mrf.mxu1 }
 0x2bc   : > { %2538 = vmax.xlane.f32.xlu1 %v2537_v10  ;;  %6058 = vmatmul.msk.f32.gmra.mxu0 %vm710_vm1, %v482_v53 }
 0x2bd   : > { %6259 = vmatpush.xpose.msk.msrb.mxu3 %vm2109_vm2, %v1489_v3  ;;  %6095 = vmatmul.msk.f32.gmra.mxu2 %vm710_vm1, %v482_v53  ;;  %v1486_v53 = vadd.f32 %v8180_v50, %v8263_v37  ;;  %v484_v3 = vld [vmem:[%s8166_s21 + $0xb0] sm:$0xff]  ;;  %v1217_v37 = vadd.f32 %v8175_v43, %v7787_v1 }
 0x2be   : > { %6143 = vmatmul.msk.f32.gmra.mxu1 %vm2109_vm2, %v1215_v23  ;;  %6191 = vmatmul.msk.f32.gmra.mxu3 %vm2109_vm2, %v1215_v23 }
 0x2c0   : > { %v8512_v22 = vpop.f32.mrf.mxu2 }
 0x2c1   : > { %v8514_v62 = vpop.f32.mrf.mxu3  ;;  %6260 = vmatpush.xpose.msk.msrb.mxu3 %vm2109_vm2, %v1488_v34  ;;  %v8517_v7 = vpop.f32.mrf.mxu0  ;;  %v1485_v34 = vadd.f32 %v8180_v50, %v8246_v39 }
 0x2c2   : > { %12089 = vst [vmem:[#allocation36_spill] sm:$0xff] %v8514_v62  ;;  %v2540_v14 = vmax.f32 %v8501_v17, %v8514_v62 }
 0x2c3   : > { %v8524_v21 = vpop.f32.mrf.mxu1 }
 0x2c4   : > { %2541 = vmax.xlane.f32.xlu2 %v2540_v14  ;;  %6059 = vmatmul.msk.f32.gmra.mxu0 %vm710_vm1, %v483_v61  ;;  %v1484_v14 = vadd.f32 %v8180_v50, %v8229_v32  ;;  %v1218_v32 = vadd.f32 %v8175_v43, %v7802_v46 }
 0x2c5   : > { %6261 = vmatpush.xpose.msk.msrb.mxu3 %vm2109_vm2, %v1487_v38  ;;  %6096 = vmatmul.msk.f32.gmra.mxu2 %vm710_vm1, %v483_v61 }
 0x2c6   : > { %6144 = vmatmul.msk.f32.gmra.mxu1 %vm2109_vm2, %v1216_v47  ;;  %6192 = vmatmul.msk.f32.gmra.mxu3 %vm2109_vm2, %v1216_v47  ;;  %v485_v47 = vld [vmem:[%s8166_s21 + $0xb8] sm:$0xff] }
 0x2c8   : > { %v8535_v15 = vpop.f32.mrf.mxu2 }
 0x2c9   : > { %v8537_v10 = vpop.f32.mrf.mxu3  ;;  %6262 = vmatpush.xpose.msk.msrb.mxu3 %vm2109_vm2, %v1486_v53  ;;  %v8540_v57 = vpop.f32.mrf.mxu0 }
 0x2ca   : > { %12090 = vst [vmem:[#allocation37_spill] sm:$0xff] %v8537_v10  ;;  %v2543_v23 = vmax.f32 %v8524_v21, %v8537_v10  ;;  %v489_v10 = vld [vmem:[%s8166_s21 + $0xd8] sm:$0xff] }
 0x2cb   : > { %v8547_v61 = vpop.f32.mrf.mxu1 }
 0x2cc   : > { %2544 = vmax.xlane.f32.xlu2 %v2543_v23  ;;  %6060 = vmatmul.msk.f32.gmra.mxu0 %vm710_vm1, %v484_v3 }
 0x2cd   : > { %6263 = vmatpush.xpose.msk.msrb.mxu3 %vm2109_vm2, %v1485_v34  ;;  %6097 = vmatmul.msk.f32.gmra.mxu2 %vm710_vm1, %v484_v3  ;;  %v1483_v3 = vadd.f32 %v8180_v50, %v8212_v36  ;;  %v1482_v34 = vadd.f32 %v8180_v50, %v8194_v33 }
 0x2ce   : > { %6145 = vmatmul.msk.f32.gmra.mxu1 %vm2109_vm2, %v1217_v37  ;;  %6193 = vmatmul.msk.f32.gmra.mxu3 %vm2109_vm2, %v1217_v37 }
 0x2d0   : > { %v8558_v39 = vpop.f32.mrf.mxu2 }
 0x2d1   : > { %v8560_v38 = vpop.f32.mrf.mxu3  ;;  %6264 = vmatpush.xpose.msk.msrb.mxu3 %vm2109_vm2, %v1484_v14  ;;  %v8563_v1 = vpop.f32.mrf.mxu0  ;;  %v486_v14 = vld [vmem:[%s8166_s21 + $0xc0] sm:$0xff] }
 0x2d2   : > { %12091 = vst [vmem:[#allocation39_spill] sm:$0xff] %v8560_v38  ;;  %v2546_v53 = vmax.f32 %v8547_v61, %v8560_v38 }
 0x2d3   : > { %v8570_v23 = vpop.f32.mrf.mxu1 }
 0x2d4   : > { %2547 = vmax.xlane.f32.xlu0 %v2546_v53  ;;  %6061 = vmatmul.msk.f32.gmra.mxu0 %vm710_vm1, %v485_v47 }
 0x2d5   : > { %6265 = vmatpush.xpose.msk.msrb.mxu3 %vm2109_vm2, %v1483_v3  ;;  %6098 = vmatmul.msk.f32.gmra.mxu2 %vm710_vm1, %v485_v47  ;;  %v1219_v3 = vadd.f32 %v8175_v43, %v7816_v16 }
 0x2d6   : > { %6146 = vmatmul.msk.f32.gmra.mxu1 %vm2109_vm2, %v1218_v32  ;;  %6194 = vmatmul.msk.f32.gmra.mxu3 %vm2109_vm2, %v1218_v32 }
 0x2d8   : > { %v8581_v36 = vpop.f32.mrf.mxu2 }
 0x2d9   : > { %v8583_v37 = vpop.f32.mrf.mxu3  ;;  %6266 = vmatpush.xpose.msk.msrb.mxu3 %vm2109_vm2, %v1482_v34  ;;  %v8586_v46 = vpop.f32.mrf.mxu0  ;;  %v487_v34 = vld [vmem:[%s8166_s21 + $0xc8] sm:$0xff] }
 0x2da   : > { %12092 = vst [vmem:[#allocation40_spill] sm:$0xff] %v8583_v37  ;;  %v2549_v47 = vmax.f32 %v8570_v23, %v8583_v37  ;;  %v488_v37 = vld [vmem:[%s8166_s21 + $0xd0] sm:$0xff] }
 0x2db   : > { %v8591_v53 = vpop.f32.mrf.mxu1 }
 0x2dc   : > { %2550 = vmax.xlane.f32.xlu1 %v2549_v47  ;;  %6062 = vmatmul.msk.f32.gmra.mxu0 %vm710_vm1, %v486_v14 }
 0x2dd   : > { %6099 = vmatmul.msk.f32.gmra.mxu2 %vm710_vm1, %v486_v14  ;;  %v1220_v14 = vadd.f32 %v8175_v43, %v7830_v48 }
 0x2de   : > { %6147 = vmatmul.msk.f32.gmra.mxu1 %vm2109_vm2, %v1219_v3  ;;  %6195 = vmatmul.msk.f32.gmra.mxu3 %vm2109_vm2, %v1219_v3 }
 0x2e0   : > { %v8599_v50 = vpop.f32.mrf.mxu2 }
 0x2e1   : > { %v8601_v33 = vpop.f32.mrf.mxu3  ;;  %v8603_v32 = vpop.f32.mrf.mxu0 }
 0x2e2   : > { %12093 = vst [vmem:[#allocation42_spill] sm:$0xff] %v8601_v33  ;;  %v2552_v16 = vmax.f32 %v8591_v53, %v8601_v33 }
 0x2e3   : > { %v8608_v47 = vpop.f32.mrf.mxu1 }
 0x2e4   : > { %2553 = vmax.xlane.f32.xlu2 %v2552_v16  ;;  %6063 = vmatmul.msk.f32.gmra.mxu0 %vm710_vm1, %v487_v34 }
 0x2e5   : > { %6100 = vmatmul.msk.f32.gmra.mxu2 %vm710_vm1, %v487_v34  ;;  %v1221_v34 = vadd.f32 %v8175_v43, %v7844_v18 }
 0x2e6   : > { %6148 = vmatmul.msk.f32.gmra.mxu1 %vm2109_vm2, %v1220_v14  ;;  %6196 = vmatmul.msk.f32.gmra.mxu3 %vm2109_vm2, %v1220_v14 }
 0x2e8   : > { %v8616_v3 = vpop.f32.mrf.mxu2 }
 0x2e9   : > { %v8618_v45 = vpop.f32.mrf.mxu3  ;;  %v8620_v33 = vpop.f32.mrf.mxu0 }
 0x2ea   : > { %12094 = vst [vmem:[#allocation43_spill] sm:$0xff] %v8618_v45  ;;  %v2555_v48 = vmax.f32 %v8608_v47, %v8618_v45 }
 0x2eb   : > { %v8625_v16 = vpop.f32.mrf.mxu1 }
 0x2ec   : > { %12095 = vst [vmem:[#allocation45_spill] sm:$0xff] %v8625_v16  ;;  %2556 = vmax.xlane.f32.xlu0 %v2555_v48  ;;  %6064 = vmatmul.msk.f32.gmra.mxu0 %vm710_vm1, %v488_v37 }
 0x2ed   : > { %6101 = vmatmul.msk.f32.gmra.mxu2 %vm710_vm1, %v488_v37  ;;  %v1222_v37 = vadd.f32 %v8175_v43, %v7856_v13 }
 0x2ee   : > { %6149 = vmatmul.msk.f32.gmra.mxu1 %vm2109_vm2, %v1221_v34  ;;  %6197 = vmatmul.msk.f32.gmra.mxu3 %vm2109_vm2, %v1221_v34 }
 0x2f0   : > { %v8633_v14 = vpop.f32.mrf.mxu2 }
 0x2f1   : > { %v8635_v38 = vpop.f32.mrf.mxu3  ;;  %v8637_v45 = vpop.f32.mrf.mxu0 }
 0x2f2   : > { %12096 = vst [vmem:[#allocation46_spill] sm:$0xff] %v8635_v38  ;;  %v2558_v18 = vmax.f32 %v8625_v16, %v8635_v38 }
 0x2f3   : > { %v8642_v48 = vpop.f32.mrf.mxu1 }
 0x2f4   : > { %12097 = vst [vmem:[#allocation48_spill] sm:$0xff] %v8642_v48  ;;  %2559 = vmax.xlane.f32.xlu1 %v2558_v18  ;;  %6065 = vmatmul.msk.f32.gmra.mxu0 %vm710_vm1, %v489_v10  ;;  %v1223_v18 = vadd.f32 %v8175_v43, %v7866_v9 }
 0x2f5   : > { %6102 = vmatmul.msk.f32.gmra.mxu2 %vm710_vm1, %v489_v10 }
 0x2f6   : > { %6150 = vmatmul.msk.f32.gmra.mxu1 %vm2109_vm2, %v1222_v37  ;;  %6198 = vmatmul.msk.f32.gmra.mxu3 %vm2109_vm2, %v1222_v37 }
 0x2f8   : > { %v8650_v34 = vpop.f32.mrf.mxu2 }
 0x2f9   : > { %v8652_v62 = vpop.f32.mrf.mxu3  ;;  %v1926_v38 = vpop.f32.mrf.mxu0 }
 0x2fa   : > { %12098 = vst [vmem:[#allocation49_spill] sm:$0xff] %v8652_v62  ;;  %v2561_v41 = vmax.f32 %v8642_v48, %v8652_v62 }
 0x2fb   : > { %v8657_v13 = vpop.f32.mrf.mxu1 }
 0x2fc   : > { %12099 = vst [vmem:[#allocation51_spill] sm:$0xff] %v8657_v13  ;;  %2562 = vmax.xlane.f32.xlu2 %v2561_v41  ;;  %6066 = vmatmul.msk.f32.gmra.mxu0 %vm710_vm1, %v490_v5  ;;  %v1224_v41 = vadd.f32 %v8175_v43, %v7876_v24 }
 0x2fd   : > { %6103 = vmatmul.msk.f32.gmra.mxu2 %vm710_vm1, %v490_v5 }
 0x2fe   : > { %6151 = vmatmul.msk.f32.gmra.mxu1 %vm2109_vm2, %v1223_v18  ;;  %6199 = vmatmul.msk.f32.gmra.mxu3 %vm2109_vm2, %v1223_v18 }
 0x300   : > { %v8665_v10 = vpop.f32.mrf.mxu2 }
 0x301   : > { %v8667_v37 = vpop.f32.mrf.mxu3  ;;  %v1929_v62 = vpop.f32.mrf.mxu0 }
 0x302   : > { %12100 = vst [vmem:[#allocation52_spill] sm:$0xff] %v8667_v37  ;;  %v2564_v55 = vmax.f32 %v8657_v13, %v8667_v37 }
 0x303   : > { %v8672_v9 = vpop.f32.mrf.mxu1 }
 0x304   : > { %12101 = vst [vmem:[#allocation54_spill] sm:$0xff] %v8672_v9  ;;  %2565 = vmax.xlane.f32.xlu0 %v2564_v55  ;;  %6067 = vmatmul.msk.f32.gmra.mxu0 %vm710_vm1, %v491_v30  ;;  %v1225_v55 = vadd.f32 %v8175_v43, %v7886_v31  ;;  %v493_v31 = vld [vmem:[%s8166_s21 + $0xf8] sm:$0xff] }
 0x305   : > { %6104 = vmatmul.msk.f32.gmra.mxu2 %vm710_vm1, %v491_v30  ;;  %v8698_v30 = vld [vmem:[%s11729_s7] ss:$0 sm:$0xff] }
 0x306   : > { %6152 = vmatmul.msk.f32.gmra.mxu1 %vm2109_vm2, %v1224_v41  ;;  %6200 = vmatmul.msk.f32.gmra.mxu3 %vm2109_vm2, %v1224_v41 }
 0x308   : > { %v8680_v5 = vpop.f32.mrf.mxu2 }
 0x309   : > { %v8682_v18 = vpop.f32.mrf.mxu3  ;;  %v1932_v37 = vpop.f32.mrf.mxu0 }
 0x30a   : > { %12102 = vst [vmem:[#allocation55_spill] sm:$0xff] %v8682_v18  ;;  %v2567_v13 = vmax.f32 %v8672_v9, %v8682_v18  ;;  %v1933_v16 = vadd.f32 %v8698_v30, %v1932_v37 }
 0x30b   : > { %v8687_v24 = vpop.f32.mrf.mxu1 }
 0x30c   : > { %2568 = vmax.xlane.f32.xlu1 %v2567_v13  ;;  %6068 = vmatmul.msk.f32.gmra.mxu0 %vm710_vm1, %v492_v35 }
 0x30d   : > { %6105 = vmatmul.msk.f32.gmra.mxu2 %vm710_vm1, %v492_v35 }
 0x30e   : > { %6153 = vmatmul.msk.f32.gmra.mxu1 %vm2109_vm2, %v1225_v55  ;;  %6201 = vmatmul.msk.f32.gmra.mxu3 %vm2109_vm2, %v1225_v55  ;;  %v1226_v55 = vadd.f32 %v8175_v43, %v7899_v26  ;;  %v1927_v43 = vadd.f32 %v8698_v30, %v1926_v38  ;;  %v1921_v38 = vadd.f32 %v8698_v30, %v8620_v33 }
 0x310   : > { %v8700_v41 = vpop.f32.mrf.mxu2 }
 0x311   : > { %v8702_v18 = vpop.f32.mrf.mxu3  ;;  %v1935_v9 = vpop.f32.mrf.mxu0 }
 0x312   : > { %12103 = vst [vmem:[#allocation57_spill] sm:$0xff] %v8702_v18  ;;  %v1936_v13 = vadd.f32 %v8698_v30, %v1935_v9  ;;  %v2570_v35 = vmax.f32 %v8687_v24, %v8702_v18  ;;  %v1930_v9 = vadd.f32 %v8698_v30, %v1929_v62  ;;  %v8721_v18 = vld [vmem:[%s11727_s5 + $0x3] ss:$0 sm:$0xff]  ;;  %v1924_v62 = vadd.f32 %v8698_v30, %v8637_v45 }
 0x313   : > { %v8708_v48 = vpop.f32.mrf.mxu1 }
 0x314   : > { %2571 = vmax.xlane.f32.xlu2 %v2570_v35  ;;  %6069 = vmatmul.msk.f32.gmra.mxu0 %vm710_vm1, %v493_v31  ;;  %v1737_v35 = vadd.f32 %v8721_v18, %v7917_v51  ;;  %v1915_v51 = vadd.f32 %v8698_v30, %v8586_v46  ;;  %v1909_v46 = vadd.f32 %v8698_v30, %v8540_v57 }
 0x315   : > { %2912 = vmatpush.msrb.mxu0 %v1936_v13  ;;  %6106 = vmatmul.msk.f32.gmra.mxu2 %vm710_vm1, %v493_v31 }
 0x316   : > { %6154 = vmatmul.msk.f32.gmra.mxu1 %vm2109_vm2, %v1226_v55  ;;  %6202 = vmatmul.msk.f32.gmra.mxu3 %vm2109_vm2, %v1226_v55  ;;  %v1918_v55 = vadd.f32 %v8698_v30, %v8603_v32 }
 0x317   : > { %2913 = vmatpush.msrb.mxu0 %v1933_v16  ;;  %v8744_v45 = vpop.xlane.xlu0 %2529 }
 0x318   : > { %v8723_v26 = vpop.f32.mrf.mxu2 }
 0x319   : > { %v8726_v37 = vpop.f32.mrf.mxu3  ;;  %2914 = vmatpush.msrb.mxu0 %v1930_v9  ;;  %v8728_v31 = vpop.f32.mrf.mxu0 }
 0x31a   : > { %12104 = vst [vmem:[#allocation58_spill] sm:$0xff] %v8726_v37  ;;  %v2573_v13 = vmax.f32 %v8708_v48, %v8726_v37 }
 0x31b   : > { %v8734_v16 = vpop.f32.mrf.mxu1  ;;  %2915 = vmatpush.msrb.mxu0 %v1927_v43 }
 0x31c   : > { %2574 = vmax.xlane.f32.xlu0 %v2573_v13 }
 0x31d   : > { %2916 = vmatpush.msrb.mxu0 %v1924_v62  ;;  %v1912_v62 = vadd.f32 %v8698_v30, %v8563_v1  ;;  %v1906_v1 = vadd.f32 %v8698_v30, %v8517_v7  ;;  %v1900_v7 = vadd.f32 %v8698_v30, %v8471_v8 }
 0x31e   : > { %6219 = vmatmul.msk.f32.vlgmr.msrb.gmra.mxu1 %vm2109_vm2, %v1737_v35  ;;  %6267 = vmatmul.msk.f32.vlgmr.msrb.gmra.mxu3 %vm2109_vm2, %v1737_v35  ;;  %v1738_v35 = vadd.f32 %v8721_v18, %v7937_v4  ;;  %v1903_v4 = vadd.f32 %v8698_v30, %v8494_v2  ;;  %v1739_v2 = vadd.f32 %v8721_v18, %v7957_v54 }
 0x31f   : > { %2917 = vmatpush.msrb.mxu0 %v1921_v38  ;;  %v2624_v38 = vsub.f32 %v8409_v44, %v8744_v45  ;;  %v8778_v44 = vpop.xlane.xlu0 %2532  ;;  %v1894_v54 = vadd.f32 %v8698_v30, %v8424_v42 }
 0x320   : > { %v8746_v9 = vpop.f32.mrf.mxu2 }
 0x321   : > { %v8750_v43 = vpop.f32.mrf.mxu3  ;;  %2918 = vmatpush.msrb.mxu0 %v1918_v55  ;;  %v8752_v33 = vpop.f32.mrf.mxu0 }
 0x322   : > { %12105 = vst [vmem:[#allocation17_spill] sm:$0xff] %v8750_v43  ;;  %v2576_v13 = vmax.f32 %v8734_v16, %v8750_v43 }
 0x323   : > { %v8758_v32 = vpop.f32.mrf.mxu1  ;;  %2919 = vmatpush.msrb.mxu0 %v1915_v51  ;;  %v2688_v51 = vmul.f32 1.442695, %v2624_v38  ;;  %v8793_v38 = vld [vmem:[%s11729_s7 + $0x1] ss:$0 sm:$0xff] }
 0x324   : > { %2577 = vmax.xlane.f32.xlu1 %v2576_v13 }
 0x325   : > { %2920 = vmatpush.msrb.mxu0 %v1912_v62  ;;  %6421 = vpow2.f32 %v2688_v51 }
 0x326   : > { %6220 = vmatmul.msk.f32.gmra.mxu1 %vm2109_vm2, %v1738_v35  ;;  %6268 = vmatmul.msk.f32.gmra.mxu3 %vm2109_vm2, %v1738_v35 }
 0x327   : > { %2921 = vmatpush.msrb.mxu0 %v1909_v46  ;;  %v1897_v46 = vadd.f32 %v8698_v30, %v8448_v58  ;;  %v8801_v8 = vpop.xlane.xlu1 %2535 }
 0x328   : > { %v8770_v55 = vpop.f32.mrf.mxu2 }
 0x329   : > { %v8774_v13 = vpop.f32.mrf.mxu3  ;;  %2922 = vmatpush.msrb.mxu0 %v1906_v1  ;;  %v8776_v57 = vpop.f32.mrf.mxu0  ;;  %v2626_v1 = vsub.f32 %v8431_v28, %v8778_v44 }
 0x32a   : > { %12106 = vst [vmem:[#allocation20_spill] sm:$0xff] %v8774_v13  ;;  %v2579_v62 = vmax.f32 %v8758_v32, %v8774_v13 }
 0x32b   : > { %v8784_v35 = vpop.f32.mrf.mxu1  ;;  %2923 = vmatpush.msrb.mxu0 %v1903_v4  ;;  %v1891_v4 = vadd.f32 %v8698_v30, %v8403_v12  ;;  %v2692_v51 = vmul.f32 1.442695, %v2626_v1  ;;  %v2056_v12 = vadd.f32 %v8793_v38, %v8700_v41  ;;  %v1740_v1 = vadd.f32 %v8721_v18, %v7977_v60 }
 0x32c   : > { %2580 = vmax.xlane.f32.xlu2 %v2579_v62  ;;  %v2050_v41 = vadd.f32 %v8793_v38, %v8665_v10 }
 0x32d   : > { %2924 = vmatpush.msrb.mxu0 %v1900_v7  ;;  %v2059_v7 = vadd.f32 %v8793_v38, %v8723_v26  ;;  %6423 = vpow2.f32 %v2692_v51  ;;  %v2628_v26 = vsub.f32 %v8456_v20, %v8801_v8  ;;  %v2047_v20 = vadd.f32 %v8793_v38, %v8650_v34 }
 0x32e   : > { %6221 = vmatmul.msk.f32.gmra.mxu1 %vm2109_vm2, %v1739_v2  ;;  %6269 = vmatmul.msk.f32.gmra.mxu3 %vm2109_vm2, %v1739_v2  ;;  %v8815_v2 = vpop.eup %6421 }
 0x32f   : > { %2925 = vmatpush.msrb.mxu0 %v1897_v46  ;;  %12108 = vst [vmem:[#allocation26_spill] sm:$0xff] %v8815_v2 }
 0x330   : > { %v8803_v58 = vpop.f32.mrf.mxu2 }
 0x331   : > { %v8807_v62 = vpop.f32.mrf.mxu3  ;;  %2926 = vmatpush.msrb.mxu0 %v1894_v54  ;;  %v8809_v28 = vpop.f32.mrf.mxu0  ;;  %v2053_v54 = vadd.f32 %v8793_v38, %v8680_v5 }
 0x332   : > { %12107 = vst [vmem:[#allocation23_spill] sm:$0xff] %v8807_v62  ;;  %v2582_v42 = vmax.f32 %v8784_v35, %v8807_v62  ;;  %v8840_v5 = vpop.xlane.xlu1 %2538 }
 0x333   : > { %v8817_v46 = vpop.f32.mrf.mxu1  ;;  %2927 = vmatpush.msrb.mxu0 %v1891_v4  ;;  %v2696_v4 = vmul.f32 1.442695, %v2628_v26  ;;  %v1741_v26 = vadd.f32 %v8721_v18, %v7997_v49  ;;  %v2630_v34 = vsub.f32 %v8478_v25, %v8840_v5  ;;  %v2035_v25 = vadd.f32 %v8793_v38, %v8581_v36 }
 0x334   : > { %2928 = vmatmul.f32.vlgmr.msrb.gmra.mxu0 %v8815_v2  ;;  %2583 = vmax.xlane.f32.xlu0 %v2582_v42  ;;  %v2029_v36 = vadd.f32 %v8793_v38, %v8535_v15 }
 0x335   : > { %4420 = vmatpush.msra.mxu0 %v2059_v7  ;;  %6425 = vpow2.f32 %v2696_v4  ;;  %v2700_v4 = vmul.f32 1.442695, %v2630_v34  ;;  %v1742_v34 = vadd.f32 %v8721_v18, %v8017_v52  ;;  %v2023_v52 = vadd.f32 %v8793_v38, %v8489_v6 }
 0x336   : > { %6222 = vmatmul.msk.f32.gmra.mxu1 %vm2109_vm2, %v1740_v1  ;;  %6270 = vmatmul.msk.f32.gmra.mxu3 %vm2109_vm2, %v1740_v1  ;;  %v8844_v1 = vpop.eup %6423  ;;  %v1743_v6 = vadd.f32 %v8721_v18, %v8035_v59  ;;  %v2014_v59 = vadd.f32 %v8793_v38, %v8419_v40 }
 0x337   : > { %4421 = vmatpush.msra.mxu0 %v2056_v12  ;;  %12110 = vst [vmem:[#allocation32_spill] sm:$0xff] %v8844_v1  ;;  %v2044_v12 = vadd.f32 %v8793_v38, %v8633_v14  ;;  %v2038_v14 = vadd.f32 %v8793_v38, %v8599_v50  ;;  %v8861_v49 = vpop.xlane.xlu2 %2541  ;;  %v2032_v50 = vadd.f32 %v8793_v38, %v8558_v39  ;;  %6427 = vpow2.f32 %v2700_v4 }
 0x338   : > { %v8832_v60 = vpop.f32.mrf.mxu2  ;;  %v2026_v39 = vadd.f32 %v8793_v38, %v8512_v22 }
 0x339   : > { %v8834_v42 = vpop.f32.mrf.mxu3  ;;  %v8836_v51 = vpop.f32.mrf.mxu0  ;;  %4422 = vmatpush.msra.mxu0 %v2053_v54  ;;  %v2041_v54 = vadd.f32 %v8793_v38, %v8616_v3 }
 0x33a   : > { %12109 = vst [vmem:[#allocation29_spill] sm:$0xff] %v8834_v42  ;;  %v2585_v7 = vmax.f32 %v8817_v46, %v8834_v42 }
 0x33b   : > { %v8846_v10 = vpop.f32.mrf.mxu1  ;;  %4423 = vmatpush.msra.mxu0 %v2050_v41 }
 0x33c   : > { %2931 = vmatmul.f32.gmra.mxu0 %v8844_v1  ;;  %2586 = vmax.xlane.f32.xlu1 %v2585_v7 }
 0x33d   : > { %4424 = vmatpush.msra.mxu0 %v2047_v20 }
 0x33e   : > { %6223 = vmatmul.msk.f32.gmra.mxu1 %vm2109_vm2, %v1741_v26  ;;  %6271 = vmatmul.msk.f32.gmra.mxu3 %vm2109_vm2, %v1741_v26  ;;  %v8873_v26 = vpop.eup %6425 }
 0x33f   : > { %4425 = vmatpush.msra.mxu0 %v2044_v12  ;;  %12112 = vst [vmem:[#allocation38_spill] sm:$0xff] %v8873_v26  ;;  %v8896_v4 = vpop.xlane.xlu2 %2544 }
 0x340   : > { %v8863_v41 = vpop.f32.mrf.mxu2 }
 0x341   : > { %v8867_v7 = vpop.f32.mrf.mxu3  ;;  %v8869_v3 = vpop.f32.mrf.mxu0  ;;  %4426 = vmatpush.msra.mxu0 %v2041_v54  ;;  %v2632_v54 = vsub.f32 %v8501_v17, %v8861_v49 }
 0x342   : > { %12111 = vst [vmem:[#allocation35_spill] sm:$0xff] %v8867_v7  ;;  %v2588_v20 = vmax.f32 %v8846_v10, %v8867_v7 }
 0x343   : > { %v8877_v12 = vpop.f32.mrf.mxu1  ;;  %4427 = vmatpush.msra.mxu0 %v2038_v14  ;;  %v2704_v14 = vmul.f32 1.442695, %v2632_v54  ;;  %v2017_v54 = vadd.f32 %v8793_v38, %v8443_v19  ;;  %v1744_v19 = vadd.f32 %v8721_v18, %v8048_v56 }
 0x344   : > { %2934 = vmatmul.f32.gmra.mxu0 %v8873_v26  ;;  %2589 = vmax.xlane.f32.xlu2 %v2588_v20 }
 0x345   : > { %4428 = vmatpush.msra.mxu0 %v2035_v25  ;;  %6429 = vpow2.f32 %v2704_v14 }
 0x346   : > { %6224 = vmatmul.msk.f32.gmra.mxu1 %vm2109_vm2, %v1742_v34  ;;  %6272 = vmatmul.msk.f32.gmra.mxu3 %vm2109_vm2, %v1742_v34  ;;  %v8902_v34 = vpop.eup %6427 }
 0x347   : > { %4429 = vmatpush.msra.mxu0 %v2032_v50  ;;  %12114 = vst [vmem:[#allocation44_spill] sm:$0xff] %v8902_v34  ;;  %v2020_v50 = vadd.f32 %v8793_v38, %v8466_v11  ;;  %v8923_v14 = vpop.xlane.xlu0 %2547 }
 0x348   : > { %v8900_v25 = vpop.f32.mrf.mxu2 }
 0x349   : > { %v8892_v20 = vpop.f32.mrf.mxu3  ;;  %v8894_v15 = vpop.f32.mrf.mxu0  ;;  %4430 = vmatpush.msra.mxu0 %v2029_v36  ;;  %v2634_v36 = vsub.f32 %v8524_v21, %v8896_v4 }
 0x34a   : > { %12113 = vst [vmem:[#allocation41_spill] sm:$0xff] %v8892_v20  ;;  %v2591_v17 = vmax.f32 %v8877_v12, %v8892_v20 }
 0x34b   : > { %v8904_v22 = vpop.f32.mrf.mxu1  ;;  %4431 = vmatpush.msra.mxu0 %v2026_v39  ;;  %v2708_v39 = vmul.f32 1.442695, %v2634_v36 }
 0x34c   : > { %2937 = vmatmul.f32.gmra.mxu0 %v8902_v34  ;;  %2592 = vmax.xlane.f32.xlu0 %v2591_v17 }
 0x34d   : > { %4432 = vmatpush.msra.mxu0 %v2023_v52  ;;  %v8927_v52 = vpop.eup %6429  ;;  %6431 = vpow2.f32 %v2708_v39 }
 0x34e   : > { %6225 = vmatmul.msk.f32.gmra.mxu1 %vm2109_vm2, %v1743_v6  ;;  %6273 = vmatmul.msk.f32.gmra.mxu3 %vm2109_vm2, %v1743_v6  ;;  %12116 = vst [vmem:[#allocation50_spill] sm:$0xff] %v8927_v52 }
 0x34f   : > { %4433 = vmatpush.msra.mxu0 %v2020_v50  ;;  %v2636_v50 = vsub.f32 %v8547_v61, %v8923_v14  ;;  %v1745_v61 = vadd.f32 %v8721_v18, %v8063_v29 }
 0x350   : > { %v8934_v40 = vpop.f32.mrf.mxu2 }
 0x351   : > { %v8919_v17 = vpop.f32.mrf.mxu3  ;;  %v8921_v11 = vpop.f32.mrf.mxu0  ;;  %4434 = vmatpush.msra.mxu0 %v2017_v54  ;;  %v2712_v36 = vmul.f32 1.442695, %v2636_v50 }
 0x352   : > { %12115 = vst [vmem:[#allocation47_spill] sm:$0xff] %v8919_v17  ;;  %v2594_v21 = vmax.f32 %v8904_v22, %v8919_v17  ;;  %v8944_v17 = vpop.xlane.xlu1 %2550 }
 0x353   : > { %v8929_v6 = vpop.f32.mrf.mxu1  ;;  %4435 = vmatpush.msra.mxu0 %v2014_v59  ;;  %6433 = vpow2.f32 %v2712_v36 }
 0x354   : > { %2940 = vmatmul.f32.gmra.mxu0 %v8927_v52  ;;  %2595 = vmax.xlane.f32.xlu1 %v2594_v21  ;;  %v8948_v21 = vpop.eup %6431 }
 0x355   : > { %12118 = vst [vmem:[#allocation56_spill] sm:$0xff] %v8948_v21 }
 0x356   : > { %6226 = vmatmul.msk.f32.gmra.mxu1 %vm2109_vm2, %v1744_v19  ;;  %6274 = vmatmul.msk.f32.gmra.mxu3 %vm2109_vm2, %v1744_v19  ;;  %v2638_v19 = vsub.f32 %v8570_v23, %v8944_v17  ;;  %v1746_v23 = vadd.f32 %v8721_v18, %v8077_v63 }
 0x357   : > { %v8965_v42 = vpop.xlane.xlu2 %2553 }
 0x358   : > { %v8959_v50 = vpop.f32.mrf.mxu2 }
 0x359   : > { %v8940_v54 = vpop.f32.mrf.mxu3  ;;  %v8942_v59 = vpop.f32.mrf.mxu0 }
 0x35a   : > { %12117 = vst [vmem:[#allocation53_spill] sm:$0xff] %v8940_v54  ;;  %v2597_v56 = vmax.f32 %v8929_v6, %v8940_v54  ;;  %v2716_v54 = vmul.f32 1.442695, %v2638_v19  ;;  %v8969_v36 = vpop.eup %6433 }
 0x35b   : > { %v8950_v39 = vpop.f32.mrf.mxu1  ;;  %12120 = vst [vmem:[#allocation60_spill] sm:$0xff] %v8969_v36 }
 0x35c   : > { %2943 = vmatmul.f32.gmra.mxu0 %v8948_v21  ;;  %2598 = vmax.xlane.f32.xlu2 %v2597_v56  ;;  %6435 = vpow2.f32 %v2716_v54 }
 0x35e   : > { %6227 = vmatmul.msk.f32.gmra.mxu1 %vm2109_vm2, %v1745_v61  ;;  %6275 = vmatmul.msk.f32.gmra.mxu3 %vm2109_vm2, %v1745_v61  ;;  %v2640_v61 = vsub.f32 %v8591_v53, %v8965_v42  ;;  %v1747_v53 = vadd.f32 %v8721_v18, %v8091_v0 }
 0x35f   : > { %v8986_v52 = vpop.xlane.xlu0 %2556 }
 0x360   : > { %v8980_v19 = vpop.f32.mrf.mxu2  ;;  %12123 = vst [vmem:[#allocation63_spill] sm:$0xff] %v8986_v52 }
 0x361   : > { %v8961_v20 = vpop.f32.mrf.mxu3  ;;  %v8963_v7 = vpop.f32.mrf.mxu0 }
 0x362   : > { %12119 = vst [vmem:[#allocation59_spill] sm:$0xff] %v8961_v20  ;;  %v2600_v29 = vmax.f32 %v8950_v39, %v8961_v20  ;;  %v2720_v20 = vmul.f32 1.442695, %v2640_v61  ;;  %v8990_v54 = vpop.eup %6435 }
 0x363   : > { %v8971_v56 = vpop.f32.mrf.mxu1  ;;  %12124 = vst [vmem:[#allocation64_spill] sm:$0xff] %v8990_v54 }
 0x364   : > { %12121 = vst [vmem:[#allocation61_spill] sm:$0xff] %v8971_v56  ;;  %2946 = vmatmul.f32.gmra.mxu0 %v8969_v36  ;;  %2601 = vmax.xlane.f32.xlu0 %v2600_v29  ;;  %6437 = vpow2.f32 %v2720_v20 }
 0x366   : > { %6228 = vmatmul.msk.f32.gmra.mxu1 %vm2109_vm2, %v1746_v23  ;;  %6276 = vmatmul.msk.f32.gmra.mxu3 %vm2109_vm2, %v1746_v23  ;;  %v2642_v23 = vsub.f32 %v8608_v47, %v8986_v52  ;;  %v1748_v47 = vadd.f32 %v8721_v18, %v8111_v27 }
 0x367   : > { %v9005_v13 = vpop.xlane.xlu1 %2559 }
 0x368   : > { %v2724_v61 = vmul.f32 1.442695, %v2642_v23  ;;  %12127 = vst [vmem:[#allocation67_spill] sm:$0xff] %v9005_v13 }
 0x369   : > { %v8982_v21 = vpop.f32.mrf.mxu3  ;;  %v8984_v62 = vpop.f32.mrf.mxu0 }
 0x36a   : > { %12122 = vst [vmem:[#allocation62_spill] sm:$0xff] %v8982_v21  ;;  %v2603_v63 = vmax.f32 %v8971_v56, %v8982_v21  ;;  %v9011_v20 = vpop.eup %6437  ;;  %6439 = vpow2.f32 %v2724_v61  ;;  %v12135_v61 = vld [vmem:[#allocation5_spill] sm:$0xff] }
 0x36b   : > { %v8992_v29 = vpop.f32.mrf.mxu1  ;;  %12128 = vst [vmem:[#allocation68_spill] sm:$0xff] %v9011_v20 }
 0x36c   : > { %12125 = vst [vmem:[#allocation65_spill] sm:$0xff] %v8992_v29  ;;  %2949 = vmatmul.f32.gmra.mxu0 %v8990_v54  ;;  %2604 = vmax.xlane.f32.xlu1 %v2603_v63  ;;  %v9009_v54 = vpop.f32.mrf.mxu2 }
 0x36e   : > { %6229 = vmatmul.msk.f32.gmra.mxu1 %vm2109_vm2, %v1747_v53  ;;  %6277 = vmatmul.msk.f32.gmra.mxu3 %vm2109_vm2, %v1747_v53  ;;  %v12130_v53 = vld [vmem:[#allocation45_spill] sm:$0xff] }
 0x36f   : > { %v2644_v23 = vsub.f32 %v12130_v53, %v9005_v13  ;;  %v9024_v26 = vpop.xlane.xlu2 %2562  ;;  %v1749_v53 = vadd.f32 %v8721_v18, %v12135_v61 }
 0x370   : > { %12132 = vst [vmem:[#allocation70_spill] sm:$0xff] %v9024_v26  ;;  %v9028_v1 = vpop.eup %6439 }
 0x371   : > { %v9001_v21 = vpop.f32.mrf.mxu3  ;;  %v9003_v36 = vpop.f32.mrf.mxu0  ;;  %12133 = vst [vmem:[#allocation71_spill] sm:$0xff] %v9028_v1 }
 0x372   : > { %12126 = vst [vmem:[#allocation66_spill] sm:$0xff] %v9001_v21  ;;  %v2606_v0 = vmax.f32 %v8992_v29, %v9001_v21  ;;  %v2728_v21 = vmul.f32 1.442695, %v2644_v23  ;;  %v12136_v23 = vld [vmem:[#allocation48_spill] sm:$0xff] }
 0x373   : > { %v9013_v63 = vpop.f32.mrf.mxu1 }
 0x374   : > { %12129 = vst [vmem:[#allocation69_spill] sm:$0xff] %v9013_v63  ;;  %2952 = vmatmul.f32.gmra.mxu0 %v9011_v20  ;;  %2607 = vmax.xlane.f32.xlu2 %v2606_v0  ;;  %6441 = vpow2.f32 %v2728_v21  ;;  %v2646_v20 = vsub.f32 %v12136_v23, %v9024_v26  ;;  %v12141_v21 = vld [vmem:[#allocation6_spill] sm:$0xff] }
 0x375   : > { %v1750_v23 = vadd.f32 %v8721_v18, %v12141_v21 }
 0x376   : > { %6230 = vmatmul.msk.f32.gmra.mxu1 %vm2109_vm2, %v1748_v47  ;;  %6278 = vmatmul.msk.f32.gmra.mxu3 %vm2109_vm2, %v1748_v47  ;;  %v9035_v47 = vpop.f32.mrf.mxu2 }
 0x379   : > { %v9022_v34 = vpop.f32.mrf.mxu3  ;;  %v1974_v43 = vpop.f32.mrf.mxu0 }
 0x37a   : > { %12131 = vst [vmem:[#allocation45_spill] sm:$0xff] %v9022_v34  ;;  %v2609_v27 = vmax.f32 %v9013_v63, %v9022_v34  ;;  %v2732_v34 = vmul.f32 1.442695, %v2646_v20  ;;  %v9043_v63 = vpop.xlane.xlu0 %2565  ;;  %v12142_v20 = vld [vmem:[#allocation51_spill] sm:$0xff] }
 0x37b   : > { %v9030_v0 = vpop.f32.mrf.mxu1  ;;  %12138 = vst [vmem:[#allocation48_spill] sm:$0xff] %v9043_v63 }
 0x37c   : > { %12134 = vst [vmem:[#allocation72_spill] sm:$0xff] %v9030_v0  ;;  %2955 = vmatmul.f32.gmra.mxu0 %v9028_v1  ;;  %2610 = vmax.xlane.f32.xlu0 %v2609_v27  ;;  %v9047_v27 = vpop.eup %6441  ;;  %6443 = vpow2.f32 %v2732_v34 }
 0x37d   : > { %12139 = vst [vmem:[#allocation73_spill] sm:$0xff] %v9047_v27 }
 0x37e   : > { %6231 = vmatmul.msk.f32.gmra.mxu1 %vm2109_vm2, %v1749_v53  ;;  %6279 = vmatmul.msk.f32.gmra.mxu3 %vm2109_vm2, %v1749_v53  ;;  %v2648_v53 = vsub.f32 %v12142_v20, %v9043_v63  ;;  %v9058_v26 = vpop.f32.mrf.mxu2  ;;  %v12147_v20 = vld [vmem:[#allocation7_spill] sm:$0xff] }
 0x37f   : > { %v9062_v13 = vpop.xlane.xlu1 %2568 }
 0x380   : > { %12144 = vst [vmem:[#allocation51_spill] sm:$0xff] %v9062_v13 }
 0x381   : > { %v9041_v37 = vpop.f32.mrf.mxu3  ;;  %v1977_v2 = vpop.f32.mrf.mxu0 }
 0x382   : > { %12137 = vst [vmem:[#allocation5_spill] sm:$0xff] %v9041_v37  ;;  %v2612_v61 = vmax.f32 %v9030_v0, %v9041_v37  ;;  %v2736_v37 = vmul.f32 1.442695, %v2648_v53 }
 0x383   : > { %v9049_v1 = vpop.f32.mrf.mxu1 }
 0x384   : > { %12140 = vst [vmem:[#allocation74_spill] sm:$0xff] %v9049_v1  ;;  %2958 = vmatmul.f32.gmra.mxu0 %v9047_v27  ;;  %2613 = vmax.xlane.f32.xlu1 %v2612_v61  ;;  %v9066_v61 = vpop.eup %6443  ;;  %v1751_v27 = vadd.f32 %v8721_v18, %v12147_v20  ;;  %6445 = vpow2.f32 %v2736_v37 }
 0x385   : > { %12145 = vst [vmem:[#allocation75_spill] sm:$0xff] %v9066_v61 }
 0x386   : > { %6232 = vmatmul.msk.f32.gmra.mxu1 %vm2109_vm2, %v1750_v23  ;;  %6280 = vmatmul.msk.f32.gmra.mxu3 %vm2109_vm2, %v1750_v23  ;;  %v12148_v23 = vld [vmem:[#allocation54_spill] sm:$0xff]  ;;  %v9077_v63 = vpop.f32.mrf.mxu2 }
 0x387   : > { %v2650_v53 = vsub.f32 %v12148_v23, %v9062_v13  ;;  %v9081_v52 = vpop.xlane.xlu2 %2571 }
 0x389   : > { %v9060_v0 = vpop.f32.mrf.mxu3  ;;  %v1980_v29 = vpop.f32.mrf.mxu0 }
 0x38a   : > { %12143 = vst [vmem:[#allocation6_spill] sm:$0xff] %v9060_v0  ;;  %v2615_v21 = vmax.f32 %v9049_v1, %v9060_v0  ;;  %v2740_v0 = vmul.f32 1.442695, %v2650_v53  ;;  %v2652_v53 = vsub.f32 %v8687_v24, %v9081_v52  ;;  %v1981_v13 = vadd.f32 %v8698_v30, %v1980_v29 }
 0x38b   : > { %v9068_v34 = vpop.f32.mrf.mxu1 }
 0x38c   : > { %12146 = vst [vmem:[#allocation76_spill] sm:$0xff] %v9068_v34  ;;  %2961 = vmatmul.f32.gmra.mxu0 %v9066_v61  ;;  %2616 = vmax.xlane.f32.xlu2 %v2615_v21  ;;  %v9086_v21 = vpop.eup %6445  ;;  %v12151_v61 = vld [vmem:[#allocation8_spill] sm:$0xff]  ;;  %6447 = vpow2.f32 %v2740_v0 }
 0x38d   : > { %12150 = vst [vmem:[#allocation54_spill] sm:$0xff] %v9086_v21 }
 0x38e   : > { %6233 = vmatmul.msk.f32.gmra.mxu1 %vm2109_vm2, %v1751_v27  ;;  %6281 = vmatmul.msk.f32.gmra.mxu3 %vm2109_vm2, %v1751_v27  ;;  %v1752_v27 = vadd.f32 %v8721_v18, %v12151_v61  ;;  %v2744_v61 = vmul.f32 1.442695, %v2652_v53  ;;  %v9106_v29 = vpop.f32.mrf.mxu2 }
 0x38f   : > { %v9102_v0 = vpop.xlane.xlu0 %2574 }
 0x390   : > { %6449 = vpow2.f32 %v2744_v61  ;;  %v2654_v53 = vsub.f32 %v8708_v48, %v9102_v0 }
 0x391   : > { %v9079_v1 = vpop.f32.mrf.mxu3  ;;  %v1983_v56 = vpop.f32.mrf.mxu0 }
 0x392   : > { %12149 = vst [vmem:[#allocation7_spill] sm:$0xff] %v9079_v1  ;;  %v1984_v20 = vadd.f32 %v8698_v30, %v1983_v56  ;;  %v2618_v37 = vmax.f32 %v9068_v34, %v9079_v1  ;;  %v1978_v56 = vadd.f32 %v8698_v30, %v1977_v2  ;;  %v1975_v1 = vadd.f32 %v8698_v30, %v1974_v43  ;;  %v12154_v43 = vld [vmem:[#allocation9_spill] sm:$0xff] }
 0x393   : > { %v9088_v23 = vpop.f32.mrf.mxu1  ;;  %v1753_v2 = vadd.f32 %v8721_v18, %v12154_v43  ;;  %v12156_v43 = vld [vmem:[#allocation10_spill] sm:$0xff] }
 0x394   : > { %2964 = vmatmul.f32.gmra.mxu0 %v9086_v21  ;;  %2619 = vmax.xlane.f32.xlu0 %v2618_v37  ;;  %v1972_v37 = vadd.f32 %v8698_v30, %v9003_v36  ;;  %v1963_v36 = vadd.f32 %v8698_v30, %v8942_v59  ;;  %v1754_v59 = vadd.f32 %v8721_v18, %v12156_v43 }
 0x395   : > { %3025 = vmatpush.msrb.mxu2 %v1984_v20  ;;  %v9108_v20 = vpop.eup %6447 }
 0x396   : > { %6234 = vmatmul.msk.f32.gmra.mxu1 %vm2109_vm2, %v1752_v27  ;;  %6282 = vmatmul.msk.f32.gmra.mxu3 %vm2109_vm2, %v1752_v27  ;;  %12153 = vst [vmem:[#allocation77_spill] sm:$0xff] %v9108_v20  ;;  %v1969_v27 = vadd.f32 %v8698_v30, %v8984_v62  ;;  %v9133_v61 = vpop.eup %6449 }
 0x397   : > { %3026 = vmatpush.msrb.mxu2 %v1981_v13  ;;  %v9129_v62 = vpop.xlane.xlu1 %2577  ;;  %12155 = vst [vmem:[#allocation9_spill] sm:$0xff] %v9133_v61 }
 0x399   : > { %v9100_v34 = vpop.f32.mrf.mxu3  ;;  %3027 = vmatpush.msrb.mxu2 %v1978_v56  ;;  %v2748_v56 = vmul.f32 1.442695, %v2654_v53  ;;  %v2103_v53 = vpop.f32.mrf.mxu2 }
 0x39a   : > { %12152 = vst [vmem:[#allocation8_spill] sm:$0xff] %v9100_v34  ;;  %v2621_v24 = vmax.f32 %v9088_v23, %v9100_v34 }
 0x39b   : > { %3028 = vmatpush.msrb.mxu2 %v1975_v1  ;;  %v9112_v13 = vpop.f32.mrf.mxu1  ;;  %v1966_v1 = vadd.f32 %v8698_v30, %v8963_v7  ;;  %6451 = vpow2.f32 %v2748_v56 }
 0x39c   : > { %2967 = vmatmul.f32.gmra.mxu0 %v9108_v20  ;;  %2622 = vmax.xlane.f32.xlu1 %v2621_v24 }
 0x39d   : > { %3029 = vmatpush.msrb.mxu2 %v1972_v37  ;;  %v1960_v37 = vadd.f32 %v8698_v30, %v8921_v11  ;;  %v2656_v11 = vsub.f32 %v8734_v16, %v9129_v62 }
 0x39e   : > { %6235 = vmatmul.msk.f32.gmra.mxu1 %vm2109_vm2, %v1753_v2  ;;  %6283 = vmatmul.msk.f32.gmra.mxu3 %vm2109_vm2, %v1753_v2  ;;  %v12157_v2 = vld [vmem:[#allocation30_spill] sm:$0xff] }
 0x39f   : > { %3030 = vmatpush.msrb.mxu2 %v1969_v27  ;;  %v2625_v27 = vsub.f32 %v12157_v2, %v8744_v45  ;;  %v2752_v43 = vmul.f32 1.442695, %v2656_v11  ;;  %v9156_v56 = vpop.xlane.xlu2 %2580  ;;  %v12159_v2 = vld [vmem:[#allocation11_spill] sm:$0xff]  ;;  %v1945_v11 = vadd.f32 %v8698_v30, %v8776_v57 }
 0x3a1   : > { %3031 = vmatpush.msrb.mxu2 %v1966_v1  ;;  %v9127_v24 = vpop.f32.mrf.mxu3  ;;  %v1957_v1 = vadd.f32 %v8698_v30, %v8894_v15  ;;  %v2690_v45 = vmul.f32 1.442695, %v2625_v27  ;;  %v12160_v27 = vld [vmem:[#allocation31_spill] sm:$0xff] }
 0x3a2   : > { %v4036_v48 = vmax.f32 %v9112_v13, %v9127_v24 }
 0x3a3   : > { %3032 = vmatpush.msrb.mxu2 %v1963_v36  ;;  %v9137_v7 = vpop.f32.mrf.mxu1  ;;  %v1954_v36 = vadd.f32 %v8698_v30, %v8869_v3  ;;  %6453 = vpow2.f32 %v2690_v45  ;;  %v1942_v45 = vadd.f32 %v8698_v30, %v8752_v33 }
 0x3a4   : > { %2970 = vmatmul.f32.gmra.mxu0 %v9133_v61  ;;  %4037 = vmax.xlane.f32.xlu2 %v4036_v48  ;;  %v1951_v48 = vadd.f32 %v8698_v30, %v8836_v51  ;;  %v1755_v51 = vadd.f32 %v8721_v18, %v12159_v2  ;;  %6455 = vpow2.f32 %v2752_v43 }
 0x3a5   : > { %3033 = vmatpush.msrb.mxu2 %v1960_v37  ;;  %v9160_v37 = vpop.eup %6451 }
 0x3a6   : > { %6236 = vmatmul.msk.f32.gmra.mxu1 %vm2109_vm2, %v1754_v59  ;;  %6284 = vmatmul.msk.f32.gmra.mxu3 %vm2109_vm2, %v1754_v59  ;;  %12158 = vst [vmem:[#allocation10_spill] sm:$0xff] %v9160_v37  ;;  %v1948_v59 = vadd.f32 %v8698_v30, %v8809_v28  ;;  %v2658_v28 = vsub.f32 %v8758_v32, %v9156_v56 }
 0x3a7   : > { %3034 = vmatpush.msrb.mxu2 %v1957_v1  ;;  %v2627_v1 = vsub.f32 %v12160_v27, %v8778_v44  ;;  %v9188_v2 = vpop.xlane.xlu0 %2583 }
 0x3a9   : > { %3035 = vmatpush.msrb.mxu2 %v1954_v36  ;;  %v9154_v15 = vpop.f32.mrf.mxu3  ;;  %v2106_v36 = vpop.f32.mrf.mxu2  ;;  %v2694_v44 = vmul.f32 1.442695, %v2627_v1 }
 0x3aa   : > { %v4039_v16 = vmax.f32 %v9137_v7, %v9154_v15  ;;  %v2107_v32 = vadd.f32 %v8793_v38, %v2106_v36  ;;  %v2660_v36 = vsub.f32 %v8784_v35, %v9188_v2  ;;  %v2095_v35 = vadd.f32 %v8793_v38, %v9058_v26  ;;  %v12168_v26 = vld [vmem:[#allocation34_spill] sm:$0xff] }
 0x3ab   : > { %3036 = vmatpush.msrb.mxu2 %v1951_v48  ;;  %v9164_v3 = vpop.f32.mrf.mxu1  ;;  %v1939_v48 = vadd.f32 %v8698_v30, %v8728_v31  ;;  %v2104_v30 = vadd.f32 %v8793_v38, %v2103_v53  ;;  %v12163_v31 = vld [vmem:[#allocation12_spill] sm:$0xff]  ;;  %6457 = vpow2.f32 %v2694_v44 }
 0x3ac   : > { %2973 = vmatmul.f32.gmra.mxu0 %v9160_v37  ;;  %4040 = vmax.xlane.f32.xlu0 %v4039_v16  ;;  %v2756_v16 = vmul.f32 1.442695, %v2658_v28  ;;  %v1756_v1 = vadd.f32 %v8721_v18, %v12163_v31  ;;  %v2760_v44 = vmul.f32 1.442695, %v2660_v36  ;;  %v12211_v37 = vld [vmem:[#allocation69_spill] sm:$0xff] }
 0x3ad   : > { %3037 = vmatpush.msrb.mxu2 %v1948_v59  ;;  %v9186_v59 = vpop.eup %6453 }
 0x3ae   : > { %6237 = vmatmul.msk.f32.gmra.mxu1 %vm2109_vm2, %v1755_v51  ;;  %6285 = vmatmul.msk.f32.gmra.mxu3 %vm2109_vm2, %v1755_v51  ;;  %v9192_v51 = vpop.eup %6455  ;;  %6459 = vpow2.f32 %v2756_v16 }
 0x3af   : > { %3038 = vmatpush.msrb.mxu2 %v1945_v11  ;;  %12162 = vst [vmem:[#allocation11_spill] sm:$0xff] %v9192_v51  ;;  %v12164_v11 = vld [vmem:[#allocation33_spill] sm:$0xff] }
 0x3b0   : > { %v2629_v28 = vsub.f32 %v12164_v11, %v8801_v8  ;;  %v2098_v8 = vadd.f32 %v8793_v38, %v9077_v63 }
 0x3b1   : > { %v9181_v57 = vpop.f32.mrf.mxu0  ;;  %3039 = vmatpush.msrb.mxu2 %v1942_v45  ;;  %v9183_v43 = vpop.f32.mrf.mxu3  ;;  %v2101_v45 = vadd.f32 %v8793_v38, %v9106_v29 }
 0x3b2   : > { %12161 = vst [vmem:[#allocation30_spill] sm:$0xff] %v9181_v57  ;;  %v4042_v33 = vmax.f32 %v9164_v3, %v9183_v43  ;;  %v2698_v53 = vmul.f32 1.442695, %v2629_v28  ;;  %v9217_v29 = vpop.eup %6457  ;;  %v2631_v28 = vsub.f32 %v12168_v26, %v8840_v5  ;;  %v2086_v5 = vadd.f32 %v8793_v38, %v8980_v19  ;;  %v12172_v26 = vld [vmem:[#allocation36_spill] sm:$0xff] }
 0x3b3   : > { %3040 = vmatpush.msrb.mxu2 %v1939_v48  ;;  %v9194_v27 = vpop.f32.mrf.mxu1  ;;  %v2080_v19 = vadd.f32 %v8793_v38, %v8934_v40 }
 0x3b4   : > { %2976 = vmatmul.f32.gmra.mxu0 %v9192_v51  ;;  %3041 = vmatmul.f32.vlgmr.msrb.gmra.mxu2 %v9186_v59  ;;  %v9223_v31 = vpop.eup %6459  ;;  %6461 = vpow2.f32 %v2698_v53  ;;  %v2083_v53 = vadd.f32 %v8793_v38, %v8959_v50  ;;  %v12171_v50 = vld [vmem:[#allocation14_spill] sm:$0xff] }
 0x3b5   : > { %4043 = vmax.xlane.f32.xlu1 %v4042_v33  ;;  %4533 = vmatpush.msra.mxu2 %v2107_v32  ;;  %v9219_v32 = vpop.xlane.xlu1 %2586  ;;  %12166 = vst [vmem:[#allocation12_spill] sm:$0xff] %v9223_v31  ;;  %6463 = vpow2.f32 %v2760_v44 }
 0x3b6   : > { %6238 = vmatmul.msk.f32.gmra.mxu1 %vm2109_vm2, %v1756_v1  ;;  %6286 = vmatmul.msk.f32.gmra.mxu3 %vm2109_vm2, %v1756_v1  ;;  %v12167_v1 = vld [vmem:[#allocation13_spill] sm:$0xff]  ;;  %v2662_v36 = vsub.f32 %v8817_v46, %v9219_v32 }
 0x3b7   : > { %4534 = vmatpush.msra.mxu2 %v2104_v30  ;;  %v2092_v30 = vadd.f32 %v8793_v38, %v9035_v47  ;;  %v1757_v11 = vadd.f32 %v8721_v18, %v12167_v1  ;;  %v2089_v47 = vadd.f32 %v8793_v38, %v9009_v54 }
 0x3b9   : > { %v9211_v48 = vpop.f32.mrf.mxu0  ;;  %v9213_v16 = vpop.f32.mrf.mxu3  ;;  %4535 = vmatpush.msra.mxu2 %v2101_v45  ;;  %v2702_v45 = vmul.f32 1.442695, %v2631_v28  ;;  %v2633_v28 = vsub.f32 %v12172_v26, %v8861_v49  ;;  %v2074_v49 = vadd.f32 %v8793_v38, %v8863_v41 }
 0x3ba   : > { %12165 = vst [vmem:[#allocation31_spill] sm:$0xff] %v9211_v48  ;;  %v4045_v33 = vmax.f32 %v9194_v27, %v9213_v16  ;;  %v9249_v54 = vpop.eup %6461  ;;  %v12202_v48 = vld [vmem:[#allocation65_spill] sm:$0xff] }
 0x3bb   : > { %v9225_v63 = vpop.f32.mrf.mxu1  ;;  %4536 = vmatpush.msra.mxu2 %v2098_v8  ;;  %v2764_v8 = vmul.f32 1.442695, %v2662_v36  ;;  %v9255_v1 = vpop.eup %6463  ;;  %6465 = vpow2.f32 %v2702_v45  ;;  %v2077_v36 = vadd.f32 %v8793_v38, %v8900_v25 }
 0x3bc   : > { %2979 = vmatmul.f32.gmra.mxu0 %v9223_v31  ;;  %3044 = vmatmul.f32.gmra.mxu2 %v9217_v29  ;;  %12170 = vst [vmem:[#allocation13_spill] sm:$0xff] %v9255_v1 }
 0x3bd   : > { %4046 = vmax.xlane.f32.xlu2 %v4045_v33  ;;  %4537 = vmatpush.msra.mxu2 %v2095_v35  ;;  %v9251_v35 = vpop.xlane.xlu2 %2589  ;;  %6467 = vpow2.f32 %v2764_v8 }
 0x3be   : > { %6239 = vmatmul.msk.f32.gmra.mxu1 %vm2109_vm2, %v1757_v11  ;;  %6287 = vmatmul.msk.f32.gmra.mxu3 %vm2109_vm2, %v1757_v11  ;;  %v1758_v11 = vadd.f32 %v8721_v18, %v12171_v50  ;;  %v2664_v40 = vsub.f32 %v8846_v10, %v9251_v35 }
 0x3bf   : > { %4538 = vmatpush.msra.mxu2 %v2092_v30 }
 0x3c0   : > { %v2768_v45 = vmul.f32 1.442695, %v2664_v40 }
 0x3c1   : > { %v9245_v44 = vpop.f32.mrf.mxu0  ;;  %v9247_v46 = vpop.f32.mrf.mxu3  ;;  %4539 = vmatpush.msra.mxu2 %v2089_v47  ;;  %v2706_v47 = vmul.f32 1.442695, %v2633_v28  ;;  %v2068_v28 = vadd.f32 %v8793_v38, %v8803_v58 }
 0x3c2   : > { %12169 = vst [vmem:[#allocation33_spill] sm:$0xff] %v9245_v44  ;;  %v4048_v33 = vmax.f32 %v9225_v63, %v9247_v46  ;;  %v9281_v10 = vpop.eup %6465 }
 0x3c3   : > { %v9259_v30 = vpop.f32.mrf.mxu1  ;;  %4540 = vmatpush.msra.mxu2 %v2086_v5  ;;  %v2071_v5 = vadd.f32 %v8793_v38, %v8832_v60  ;;  %v9287_v50 = vpop.eup %6467  ;;  %6469 = vpow2.f32 %v2706_v47 }
 0x3c4   : > { %2982 = vmatmul.f32.gmra.mxu0 %v9255_v1  ;;  %3047 = vmatmul.f32.gmra.mxu2 %v9249_v54  ;;  %12174 = vst [vmem:[#allocation14_spill] sm:$0xff] %v9287_v50  ;;  %6471 = vpow2.f32 %v2768_v45 }
 0x3c5   : > { %4049 = vmax.xlane.f32.xlu0 %v4048_v33  ;;  %4541 = vmatpush.msra.mxu2 %v2083_v53  ;;  %v9283_v53 = vpop.xlane.xlu0 %2592 }
 0x3c6   : > { %6240 = vmatmul.msk.f32.gmra.mxu1 %vm2109_vm2, %v1758_v11  ;;  %6288 = vmatmul.msk.f32.gmra.mxu3 %vm2109_vm2, %v1758_v11  ;;  %v12176_v11 = vld [vmem:[#allocation37_spill] sm:$0xff] }
 0x3c7   : > { %4542 = vmatpush.msra.mxu2 %v2080_v19  ;;  %v12175_v19 = vld [vmem:[#allocation15_spill] sm:$0xff]  ;;  %v2635_v26 = vsub.f32 %v12176_v11, %v8896_v4  ;;  %v2065_v4 = vadd.f32 %v8793_v38, %v8770_v55 }
 0x3c8   : > { %v1759_v60 = vadd.f32 %v8721_v18, %v12175_v19 }
 0x3c9   : > { %v9277_v25 = vpop.f32.mrf.mxu0  ;;  %v9279_v8 = vpop.f32.mrf.mxu3  ;;  %4543 = vmatpush.msra.mxu2 %v2077_v36  ;;  %v2666_v36 = vsub.f32 %v8877_v12, %v9283_v53  ;;  %v2710_v40 = vmul.f32 1.442695, %v2635_v26 }
 0x3ca   : > { %12173 = vst [vmem:[#allocation34_spill] sm:$0xff] %v9277_v25  ;;  %v4051_v33 = vmax.f32 %v9259_v30, %v9279_v8  ;;  %v9311_v12 = vpop.eup %6469  ;;  %v12194_v25 = vld [vmem:[#allocation61_spill] sm:$0xff] }
 0x3cb   : > { %v9289_v41 = vpop.f32.mrf.mxu1  ;;  %4544 = vmatpush.msra.mxu2 %v2074_v49  ;;  %v2062_v49 = vadd.f32 %v8793_v38, %v8746_v9  ;;  %v2772_v47 = vmul.f32 1.442695, %v2666_v36  ;;  %v9317_v19 = vpop.eup %6471  ;;  %6473 = vpow2.f32 %v2710_v40  ;;  %v12180_v38 = vld [vmem:[#allocation39_spill] sm:$0xff] }
 0x3cc   : > { %2985 = vmatmul.f32.gmra.mxu0 %v9287_v50  ;;  %3050 = vmatmul.f32.gmra.mxu2 %v9281_v10  ;;  %12178 = vst [vmem:[#allocation15_spill] sm:$0xff] %v9317_v19  ;;  %v2637_v11 = vsub.f32 %v12180_v38, %v8923_v14  ;;  %v12184_v38 = vld [vmem:[#allocation40_spill] sm:$0xff] }
 0x3cd   : > { %4052 = vmax.xlane.f32.xlu1 %v4051_v33  ;;  %4545 = vmatpush.msra.mxu2 %v2071_v5  ;;  %v9313_v5 = vpop.xlane.xlu1 %2595  ;;  %6475 = vpow2.f32 %v2772_v47 }
 0x3ce   : > { %6241 = vmatmul.msk.f32.gmra.mxu1 %vm2109_vm2, %v1759_v60  ;;  %6289 = vmatmul.msk.f32.gmra.mxu3 %vm2109_vm2, %v1759_v60  ;;  %v12179_v60 = vld [vmem:[#allocation16_spill] sm:$0xff]  ;;  %v2668_v26 = vsub.f32 %v8904_v22, %v9313_v5 }
 0x3cf   : > { %4546 = vmatpush.msra.mxu2 %v2068_v28  ;;  %v1760_v9 = vadd.f32 %v8721_v18, %v12179_v60  ;;  %v2714_v28 = vmul.f32 1.442695, %v2637_v11  ;;  %v2639_v11 = vsub.f32 %v12184_v38, %v8944_v17 }
 0x3d0   : > { %v2776_v36 = vmul.f32 1.442695, %v2668_v26 }
 0x3d1   : > { %v9307_v58 = vpop.f32.mrf.mxu0  ;;  %v9309_v45 = vpop.f32.mrf.mxu3  ;;  %4547 = vmatpush.msra.mxu2 %v2065_v4  ;;  %6477 = vpow2.f32 %v2714_v28 }
 0x3d2   : > { %12177 = vst [vmem:[#allocation36_spill] sm:$0xff] %v9307_v58  ;;  %v4054_v33 = vmax.f32 %v9289_v41, %v9309_v45  ;;  %v9335_v14 = vpop.eup %6473  ;;  %6479 = vpow2.f32 %v2776_v36 }
 0x3d3   : > { %v9319_v55 = vpop.f32.mrf.mxu1  ;;  %4548 = vmatpush.msra.mxu2 %v2062_v49  ;;  %v9337_v49 = vpop.xlane.xlu2 %2598 }
 0x3d4   : > { %2988 = vmatmul.f32.gmra.mxu0 %v9317_v19  ;;  %3053 = vmatmul.f32.gmra.mxu2 %v9311_v12  ;;  %v9341_v60 = vpop.eup %6475  ;;  %v2670_v26 = vsub.f32 %v8929_v6, %v9337_v49 }
 0x3d5   : > { %4055 = vmax.xlane.f32.xlu2 %v4054_v33  ;;  %12182 = vst [vmem:[#allocation16_spill] sm:$0xff] %v9341_v60  ;;  %v12183_v33 = vld [vmem:[#allocation18_spill] sm:$0xff] }
 0x3d6   : > { %6242 = vmatmul.msk.f32.gmra.mxu1 %vm2109_vm2, %v1760_v9  ;;  %6290 = vmatmul.msk.f32.gmra.mxu3 %vm2109_vm2, %v1760_v9  ;;  %v1761_v9 = vadd.f32 %v8721_v18, %v12183_v33  ;;  %v2780_v19 = vmul.f32 1.442695, %v2670_v26  ;;  %v12188_v26 = vld [vmem:[#allocation42_spill] sm:$0xff] }
 0x3d7   : > { %v9357_v28 = vpop.eup %6477  ;;  %v9359_v17 = vpop.xlane.xlu0 %2601 }
 0x3d8   : > { %v9363_v36 = vpop.eup %6479 }
 0x3d9   : > { %v9331_v4 = vpop.f32.mrf.mxu0  ;;  %v9333_v40 = vpop.f32.mrf.mxu3  ;;  %12185 = vst [vmem:[#allocation39_spill] sm:$0xff] %v9363_v36 }
 0x3da   : > { %12181 = vst [vmem:[#allocation37_spill] sm:$0xff] %v9331_v4  ;;  %v4057_v47 = vmax.f32 %v9319_v55, %v9333_v40  ;;  %v2718_v4 = vmul.f32 1.442695, %v2639_v11 }
 0x3db   : > { %v9343_v22 = vpop.f32.mrf.mxu1 }
 0x3dc   : > { %2991 = vmatmul.f32.gmra.mxu0 %v9341_v60  ;;  %3056 = vmatmul.f32.gmra.mxu2 %v9335_v14  ;;  %6481 = vpow2.f32 %v2718_v4  ;;  %v2641_v60 = vsub.f32 %v12188_v26, %v8965_v42 }
 0x3dd   : > { %4058 = vmax.xlane.f32.xlu0 %v4057_v47  ;;  %v9372_v47 = vld [vmem:[%s11727_s5 + $0x3] ss:$0 sm:$0xff]  ;;  %6483 = vpow2.f32 %v2780_v19 }
 0x3de   : > { %6243 = vmatmul.msk.f32.gmra.mxu1 %vm2109_vm2, %v1761_v9  ;;  %6291 = vmatmul.msk.f32.gmra.mxu3 %vm2109_vm2, %v1761_v9  ;;  %v12187_v9 = vld [vmem:[#allocation19_spill] sm:$0xff]  ;;  %v2722_v58 = vmul.f32 1.442695, %v2641_v60 }
 0x3df   : > { %v1762_v11 = vadd.f32 %v9372_v47, %v12187_v9  ;;  %v9388_v42 = vpop.xlane.xlu1 %2604  ;;  %v12193_v60 = vld [vmem:[#allocation43_spill] sm:$0xff] }
 0x3e0   : > { %12189 = vst [vmem:[#allocation40_spill] sm:$0xff] %v9388_v42  ;;  %6485 = vpow2.f32 %v2722_v58  ;;  %v2674_v1 = vsub.f32 %v12194_v25, %v9388_v42  ;;  %v12233_v42 = vld [vmem:[#allocation28_spill] sm:$0xff] }
 0x3e1   : > { %v9355_v18 = vpop.f32.mrf.mxu3  ;;  %v9365_v38 = vpop.f32.mrf.mxu0 }
 0x3e2   : > { %v4060_v33 = vmax.f32 %v9343_v22, %v9355_v18  ;;  %12186 = vst [vmem:[#allocation18_spill] sm:$0xff] %v9365_v38  ;;  %v2672_v38 = vsub.f32 %v8950_v39, %v9359_v17  ;;  %v9386_v4 = vpop.eup %6481  ;;  %v12191_v39 = vld [vmem:[#allocation21_spill] sm:$0xff]  ;;  %v2788_v58 = vmul.f32 1.442695, %v2674_v1 }
 0x3e3   : > { %v9367_v6 = vpop.f32.mrf.mxu1  ;;  %v9392_v19 = vpop.eup %6483 }
 0x3e4   : > { %2994 = vmatmul.f32.gmra.mxu0 %v9363_v36  ;;  %3059 = vmatmul.f32.gmra.mxu2 %v9357_v28  ;;  %v2784_v50 = vmul.f32 1.442695, %v2672_v38  ;;  %12190 = vst [vmem:[#allocation19_spill] sm:$0xff] %v9392_v19 }
 0x3e5   : > { %4061 = vmax.xlane.f32.xlu1 %v4060_v33  ;;  %v1763_v33 = vadd.f32 %v9372_v47, %v12191_v39 }
 0x3e6   : > { %6244 = vmatmul.msk.f32.gmra.mxu1 %vm2109_vm2, %v1762_v11  ;;  %6292 = vmatmul.msk.f32.gmra.mxu3 %vm2109_vm2, %v1762_v11  ;;  %v12192_v11 = vld [vmem:[#allocation63_spill] sm:$0xff]  ;;  %6487 = vpow2.f32 %v2784_v50 }
 0x3e7   : > { %v2643_v38 = vsub.f32 %v12193_v60, %v12192_v11  ;;  %v9410_v11 = vpop.eup %6485  ;;  %v9412_v60 = vpop.xlane.xlu2 %2607 }
 0x3e8   : > { %12196 = vst [vmem:[#allocation21_spill] sm:$0xff] %v9412_v60  ;;  %v2676_v34 = vsub.f32 %v12202_v48, %v9412_v60 }
 0x3e9   : > { %v9384_v9 = vpop.f32.mrf.mxu3  ;;  %v9404_v44 = vpop.f32.mrf.mxu0  ;;  %v2726_v39 = vmul.f32 1.442695, %v2643_v38  ;;  %v12201_v38 = vld [vmem:[#allocation46_spill] sm:$0xff] }
 0x3ea   : > { %v4063_v26 = vmax.f32 %v9367_v6, %v9384_v9  ;;  %12195 = vst [vmem:[#allocation42_spill] sm:$0xff] %v9404_v44 }
 0x3eb   : > { %v9394_v36 = vpop.f32.mrf.mxu1  ;;  %6489 = vpow2.f32 %v2726_v39  ;;  %v2792_v39 = vmul.f32 1.442695, %v2676_v34 }
 0x3ec   : > { %2997 = vmatmul.f32.gmra.mxu0 %v9392_v19  ;;  %3062 = vmatmul.f32.gmra.mxu2 %v9386_v4  ;;  %v9416_v19 = vpop.eup %6487  ;;  %6491 = vpow2.f32 %v2788_v58 }
 0x3ed   : > { %4064 = vmax.xlane.f32.xlu2 %v4063_v26  ;;  %12197 = vst [vmem:[#allocation63_spill] sm:$0xff] %v9416_v19  ;;  %v12199_v26 = vld [vmem:[#allocation22_spill] sm:$0xff] }
 0x3ee   : > { %6245 = vmatmul.msk.f32.gmra.mxu1 %vm2109_vm2, %v1763_v33  ;;  %6293 = vmatmul.msk.f32.gmra.mxu3 %vm2109_vm2, %v1763_v33  ;;  %v1764_v44 = vadd.f32 %v9372_v47, %v12199_v26  ;;  %v12200_v33 = vld [vmem:[#allocation67_spill] sm:$0xff] }
 0x3ef   : > { %v2645_v1 = vsub.f32 %v12201_v38, %v12200_v33  ;;  %v9436_v38 = vpop.xlane.xlu0 %2610 }
 0x3f0   : > { %12205 = vst [vmem:[#allocation67_spill] sm:$0xff] %v9436_v38  ;;  %v2678_v61 = vsub.f32 %v12211_v37, %v9436_v38  ;;  %v12220_v38 = vld [vmem:[#allocation72_spill] sm:$0xff] }
 0x3f1   : > { %v9408_v31 = vpop.f32.mrf.mxu3  ;;  %v9430_v57 = vpop.f32.mrf.mxu0  ;;  %v2730_v26 = vmul.f32 1.442695, %v2645_v1  ;;  %v12210_v1 = vld [vmem:[#allocation49_spill] sm:$0xff] }
 0x3f2   : > { %v4066_v50 = vmax.f32 %v9394_v36, %v9408_v31  ;;  %12203 = vst [vmem:[#allocation61_spill] sm:$0xff] %v9430_v57  ;;  %v9434_v33 = vpop.eup %6489  ;;  %v12209_v57 = vld [vmem:[#allocation70_spill] sm:$0xff]  ;;  %v2796_v60 = vmul.f32 1.442695, %v2678_v61  ;;  %v12218_v61 = vld [vmem:[#allocation48_spill] sm:$0xff] }
 0x3f3   : > { %v9418_v25 = vpop.f32.mrf.mxu1  ;;  %6493 = vpow2.f32 %v2730_v26  ;;  %v2647_v34 = vsub.f32 %v12210_v1, %v12209_v57 }
 0x3f4   : > { %12198 = vst [vmem:[#allocation43_spill] sm:$0xff] %v9418_v25  ;;  %3000 = vmatmul.f32.gmra.mxu0 %v9416_v19  ;;  %3065 = vmatmul.f32.gmra.mxu2 %v9410_v11  ;;  %v9440_v19 = vpop.eup %6491  ;;  %6495 = vpow2.f32 %v2792_v39 }
 0x3f5   : > { %4067 = vmax.xlane.f32.xlu0 %v4066_v50  ;;  %12206 = vst [vmem:[#allocation46_spill] sm:$0xff] %v9440_v19  ;;  %v12208_v50 = vld [vmem:[#allocation24_spill] sm:$0xff]  ;;  %v2734_v20 = vmul.f32 1.442695, %v2647_v34 }
 0x3f6   : > { %6246 = vmatmul.msk.f32.gmra.mxu1 %vm2109_vm2, %v1764_v44  ;;  %6294 = vmatmul.msk.f32.gmra.mxu3 %vm2109_vm2, %v1764_v44  ;;  %v1765_v44 = vadd.f32 %v9372_v47, %v12208_v50  ;;  %v12219_v34 = vld [vmem:[#allocation52_spill] sm:$0xff] }
 0x3f7   : > { %v9460_v1 = vpop.xlane.xlu1 %2613  ;;  %6497 = vpow2.f32 %v2734_v20 }
 0x3f8   : > { %12214 = vst [vmem:[#allocation49_spill] sm:$0xff] %v9460_v1  ;;  %6499 = vpow2.f32 %v2796_v60  ;;  %v2680_v21 = vsub.f32 %v12220_v38, %v9460_v1 }
 0x3f9   : > { %v9432_v51 = vpop.f32.mrf.mxu3  ;;  %v9454_v50 = vpop.f32.mrf.mxu0 }
 0x3fa   : > { %12204 = vst [vmem:[#allocation22_spill] sm:$0xff] %v9432_v51  ;;  %v4069_v58 = vmax.f32 %v9418_v25, %v9432_v51  ;;  %v9458_v57 = vpop.eup %6493 }
 0x3fb   : > { %v9442_v48 = vpop.f32.mrf.mxu1  ;;  %12212 = vst [vmem:[#allocation24_spill] sm:$0xff] %v9454_v50  ;;  %v2649_v50 = vsub.f32 %v12219_v34, %v12218_v61 }
 0x3fc   : > { %12207 = vst [vmem:[#allocation65_spill] sm:$0xff] %v9442_v48  ;;  %3003 = vmatmul.f32.gmra.mxu0 %v9440_v19  ;;  %3068 = vmatmul.f32.gmra.mxu2 %v9434_v33  ;;  %v9464_v19 = vpop.eup %6495 }
 0x3fd   : > { %4070 = vmax.xlane.f32.xlu1 %v4069_v58  ;;  %12215 = vst [vmem:[#allocation69_spill] sm:$0xff] %v9464_v19  ;;  %v12217_v58 = vld [vmem:[#allocation25_spill] sm:$0xff]  ;;  %v9480_v20 = vpop.eup %6497 }
 0x3fe   : > { %6247 = vmatmul.msk.f32.gmra.mxu1 %vm2109_vm2, %v1765_v44  ;;  %6295 = vmatmul.msk.f32.gmra.mxu3 %vm2109_vm2, %v1765_v44  ;;  %v1766_v44 = vadd.f32 %v9372_v47, %v12217_v58  ;;  %v9486_v60 = vpop.eup %6499 }
 0x3ff   : > { %v9482_v61 = vpop.xlane.xlu2 %2616  ;;  %12223 = vst [vmem:[#allocation52_spill] sm:$0xff] %v9486_v60 }
 0x400   : > { %12222 = vst [vmem:[#allocation48_spill] sm:$0xff] %v9482_v61 }
 0x401   : > { %v9456_v26 = vpop.f32.mrf.mxu3 }
 0x402   : > { %12213 = vst [vmem:[#allocation70_spill] sm:$0xff] %v9456_v26  ;;  %v4072_v39 = vmax.f32 %v9442_v48, %v9456_v26  ;;  %v2738_v26 = vmul.f32 1.442695, %v2649_v50  ;;  %v2800_v48 = vmul.f32 1.442695, %v2680_v21  ;;  %v12226_v21 = vld [vmem:[#allocation51_spill] sm:$0xff] }
 0x403   : > { %v9466_v37 = vpop.f32.mrf.mxu1  ;;  %v12227_v50 = vld [vmem:[#allocation55_spill] sm:$0xff] }
 0x404   : > { %12216 = vst [vmem:[#allocation78_spill] sm:$0xff] %v9466_v37  ;;  %3006 = vmatmul.f32.gmra.mxu0 %v9464_v19  ;;  %3071 = vmatmul.f32.gmra.mxu2 %v9458_v57  ;;  %v9488_v19 = vpop.f32.mrf.mxu0  ;;  %6501 = vpow2.f32 %v2738_v26  ;;  %v2651_v1 = vsub.f32 %v12227_v50, %v12226_v21  ;;  %v12229_v26 = vld [vmem:[#allocation57_spill] sm:$0xff] }
 0x405   : > { %4073 = vmax.xlane.f32.xlu2 %v4072_v39  ;;  %12224 = vst [vmem:[#allocation72_spill] sm:$0xff] %v9488_v19  ;;  %v12225_v39 = vld [vmem:[#allocation27_spill] sm:$0xff]  ;;  %6503 = vpow2.f32 %v2800_v48 }
 0x406   : > { %6248 = vmatmul.msk.f32.gmra.mxu1 %vm2109_vm2, %v1766_v44  ;;  %6296 = vmatmul.msk.f32.gmra.mxu3 %vm2109_vm2, %v1766_v44  ;;  %v1767_v44 = vadd.f32 %v9372_v47, %v12225_v39  ;;  %v2742_v19 = vmul.f32 1.442695, %v2651_v1  ;;  %v2653_v39 = vsub.f32 %v12229_v26, %v9081_v52  ;;  %v12232_v1 = vld [vmem:[#allocation26_spill] sm:$0xff]  ;;  %v1768_v52 = vadd.f32 %v9372_v47, %v12233_v42 }
 0x407   : > { %v9502_v51 = vpop.xlane.xlu0 %2619  ;;  %v2816_v25 = vadd.f32 %v9186_v59, %v12232_v1 }
 0x408   : > { %6505 = vpow2.f32 %v2742_v19 }
 0x409   : > { %v9478_v58 = vpop.f32.mrf.mxu3 }
 0x40a   : > { %12221 = vst [vmem:[#allocation25_spill] sm:$0xff] %v9478_v58  ;;  %v4075_v34 = vmax.f32 %v9466_v37, %v9478_v58  ;;  %v12228_v58 = vld [vmem:[#allocation74_spill] sm:$0xff] }
 0x40b   : > { %v9490_v38 = vpop.f32.mrf.mxu1  ;;  %v2682_v37 = vsub.f32 %v12228_v58, %v9482_v61 }
 0x40c   : > { %3009 = vmatmul.f32.gmra.mxu0 %v9486_v60  ;;  %3074 = vmatmul.f32.gmra.mxu2 %v9480_v20  ;;  %v9508_v60 = vpop.eup %6501  ;;  %v9524_v26 = vpop.f32.mrf.mxu0 }
 0x40d   : > { %4076 = vmax.xlane.f32.xlu0 %v4075_v34  ;;  %v2804_v21 = vmul.f32 1.442695, %v2682_v37  ;;  %v9512_v58 = vpop.eup %6503  ;;  %v12231_v34 = vld [vmem:[#allocation76_spill] sm:$0xff]  ;;  %v2746_v37 = vmul.f32 1.442695, %v2653_v39  ;;  %12234 = vst [vmem:[#allocation51_spill] sm:$0xff] %v9524_v26 }
 0x40e   : > { %6249 = vmatmul.msk.f32.gmra.mxu1 %vm2109_vm2, %v1767_v44  ;;  %6297 = vmatmul.msk.f32.gmra.mxu3 %vm2109_vm2, %v1767_v44  ;;  %12230 = vst [vmem:[#allocation27_spill] sm:$0xff] %v9512_v58  ;;  %v2684_v61 = vsub.f32 %v12231_v34, %v9502_v51  ;;  %v9534_v39 = vpop.eup %6505 }
 0x40f   : > { %6507 = vpow2.f32 %v2804_v21  ;;  %v9528_v1 = vpop.xlane.xlu1 %2622 }
 0x410   : > { %v2808_v34 = vmul.f32 1.442695, %v2684_v61  ;;  %6509 = vpow2.f32 %v2746_v37  ;;  %v12237_v37 = vld [vmem:[#allocation32_spill] sm:$0xff] }
 0x411   : > { %v9506_v50 = vpop.f32.mrf.mxu3 }
 0x412   : > { %v4078_v48 = vmax.f32 %v9490_v38, %v9506_v50  ;;  %6511 = vpow2.f32 %v2808_v34 }
 0x413   : > { %v9516_v44 = vpop.f32.mrf.mxu1 }
 0x414   : > { %3012 = vmatmul.f32.gmra.mxu0 %v9512_v58  ;;  %3077 = vmatmul.f32.gmra.mxu2 %v9508_v60 }
 0x415   : > { %2817 = vadd.xlane.f32.xlu0 %v2816_v25  ;;  %4079 = vmax.xlane.f32.xlu1 %v4078_v48  ;;  %v12235_v25 = vld [vmem:[#allocation58_spill] sm:$0xff] }
 0x416   : > { %6250 = vmatmul.msk.f32.gmra.mxu1 %vm2109_vm2, %v1768_v52  ;;  %6298 = vmatmul.msk.f32.gmra.mxu3 %vm2109_vm2, %v1768_v52  ;;  %v2655_v21 = vsub.f32 %v12235_v25, %v9102_v0  ;;  %v9540_v52 = vpop.eup %6507 }
 0x417   : > { %v4038_v59 = vpop.xlane.xlu2 %4037  ;;  %12236 = vst [vmem:[#allocation55_spill] sm:$0xff] %v9540_v52 }
 0x418   : > { %v4132_v47 = vsub.f32 %v9112_v13, %v4038_v59  ;;  %v4133_v42 = vsub.f32 %v9127_v24, %v4038_v59  ;;  %v2686_v13 = vsub.f32 %v9088_v23, %v9528_v1  ;;  %v2819_v59 = vadd.f32 %v9217_v29, %v12237_v37 }
 0x419   : > { %v9532_v19 = vpop.f32.mrf.mxu3  ;;  %v2750_v0 = vmul.f32 1.442695, %v2655_v21 }
 0x41a   : > { %v4196_v48 = vmul.f32 1.442695, %v4132_v47  ;;  %v4198_v58 = vmul.f32 1.442695, %v4133_v42  ;;  %v4081_v61 = vmax.f32 %v9516_v44, %v9532_v19  ;;  %v9550_v47 = vpop.eup %6509  ;;  %v2812_v34 = vmul.f32 1.442695, %v2686_v13  ;;  %v9552_v42 = vpop.f32.mrf.mxu0 }
 0x41b   : > { %v9544_v24 = vpop.f32.mrf.mxu1  ;;  %12238 = vst [vmem:[#allocation74_spill] sm:$0xff] %v9552_v42  ;;  %v9556_v29 = vpop.eup %6511 }
 0x41c   : > { %6513 = vpow2.f32 %v4196_v48  ;;  %3015 = vmatmul.f32.gmra.mxu0 %v9540_v52  ;;  %3080 = vmatmul.f32.gmra.mxu2 %v9534_v39  ;;  %12239 = vst [vmem:[#allocation57_spill] sm:$0xff] %v9556_v29  ;;  %v12241_v52 = vld [vmem:[#allocation38_spill] sm:$0xff] }
 0x41d   : > { %6515 = vpow2.f32 %v4198_v58  ;;  %2820 = vadd.xlane.f32.xlu0 %v2819_v59  ;;  %4082 = vmax.xlane.f32.xlu2 %v4081_v61 }
 0x41e   : > { %6517 = vpow2.f32 %v2750_v0 }
 0x41f   : > { %v4041_v23 = vpop.xlane.xlu0 %4040  ;;  %6519 = vpow2.f32 %v2812_v34 }
 0x420   : > { %v4134_v25 = vsub.f32 %v9137_v7, %v4041_v23  ;;  %v4135_v26 = vsub.f32 %v9154_v15, %v4041_v23  ;;  %v2822_v7 = vadd.f32 %v9249_v54, %v12241_v52  ;;  %v12242_v15 = vld [vmem:[#allocation17_spill] sm:$0xff] }
 0x421   : > { %v9558_v48 = vpop.f32.mrf.mxu3  ;;  %v2657_v23 = vsub.f32 %v12242_v15, %v9129_v62 }
 0x422   : > { %v6514_v37 = vpop.eup %6513  ;;  %v4200_v58 = vmul.f32 1.442695, %v4134_v25  ;;  %v4202_v59 = vmul.f32 1.442695, %v4135_v26  ;;  %v4084_v21 = vmax.f32 %v9544_v24, %v9558_v48  ;;  %v9577_v54 = vpop.f32.mrf.mxu0 }
 0x423   : > { %v9562_v61 = vpop.eup %6515  ;;  %v9564_v13 = vpop.f32.mrf.mxu1  ;;  %v2754_v34 = vmul.f32 1.442695, %v2657_v23  ;;  %12244 = vst [vmem:[#allocation28_spill] sm:$0xff] %v9577_v54 }
 0x424   : > { %12240 = vst [vmem:[#allocation76_spill] sm:$0xff] %v9562_v61  ;;  %6521 = vpow2.f32 %v4200_v58  ;;  %3018 = vmatmul.f32.gmra.mxu0 %v9556_v29  ;;  %3083 = vmatmul.f32.gmra.mxu2 %v9550_v47  ;;  %v4324_v26 = vadd.f32 %v9562_v61, %v6514_v37  ;;  %v9573_v0 = vpop.eup %6517  ;;  %v12245_v29 = vld [vmem:[#allocation44_spill] sm:$0xff] }
 0x425   : > { %6523 = vpow2.f32 %v4202_v59  ;;  %2823 = vadd.xlane.f32.xlu0 %v2822_v7  ;;  %4085 = vmax.xlane.f32.xlu1 %v4084_v21  ;;  %v9575_v42 = vpop.eup %6519  ;;  %v2825_v61 = vadd.f32 %v9281_v10, %v12245_v29 }
 0x426   : > { %4325 = vadd.xlane.f32.xlu2 %v4324_v26  ;;  %12243 = vst [vmem:[#allocation26_spill] sm:$0xff] %v9575_v42  ;;  %6525 = vpow2.f32 %v2754_v34 }
 0x428   : > { %v4044_v25 = vpop.xlane.xlu1 %4043 }
 0x429   : > { %v4136_v62 = vsub.f32 %v9164_v3, %v4044_v25  ;;  %v4137_v52 = vsub.f32 %v9183_v43, %v4044_v25  ;;  %v9581_v58 = vpop.f32.mrf.mxu3  ;;  %v12246_v3 = vld [vmem:[#allocation20_spill] sm:$0xff] }
 0x42a   : > { %v6522_v15 = vpop.eup %6521  ;;  %v4087_v59 = vmax.f32 %v9564_v13, %v9581_v58  ;;  %v2659_v54 = vsub.f32 %v12246_v3, %v9156_v56 }
 0x42b   : > { %v9585_v21 = vpop.eup %6523  ;;  %v4204_v7 = vmul.f32 1.442695, %v4136_v62  ;;  %v4206_v26 = vmul.f32 1.442695, %v4137_v52  ;;  %v9587_v23 = vpop.f32.mrf.mxu1 }
 0x42c   : > { %3086 = vmatmul.f32.gmra.mxu2 %v9573_v0  ;;  %3021 = vmatmul.f32.gmra.mxu0 %v9575_v42  ;;  %v4327_v43 = vadd.f32 %v9585_v21, %v6522_v15  ;;  %v2758_v25 = vmul.f32 1.442695, %v2659_v54  ;;  %v9600_v56 = vpop.eup %6525  ;;  %v9604_v42 = vpop.f32.mrf.mxu0  ;;  %v12248_v54 = vld [vmem:[#allocation50_spill] sm:$0xff] }
 0x42d   : > { %6527 = vpow2.f32 %v4204_v7  ;;  %2826 = vadd.xlane.f32.xlu0 %v2825_v61  ;;  %4088 = vmax.xlane.f32.xlu1 %v4087_v59  ;;  %12247 = vst [vmem:[#allocation58_spill] sm:$0xff] %v9604_v42 }
 0x42e   : > { %6529 = vpow2.f32 %v4206_v26  ;;  %4328 = vadd.xlane.f32.xlu2 %v4327_v43  ;;  %v2828_v26 = vadd.f32 %v9311_v12, %v12248_v54 }
 0x42f   : > { %6531 = vpow2.f32 %v2758_v25 }
 0x430   : > { %v4047_v62 = vpop.xlane.xlu2 %4046 }
 0x431   : > { %v4138_v52 = vsub.f32 %v9194_v27, %v4047_v62  ;;  %v4139_v10 = vsub.f32 %v9213_v16, %v4047_v62  ;;  %v9598_v29 = vpop.f32.mrf.mxu3  ;;  %v12249_v16 = vld [vmem:[#allocation23_spill] sm:$0xff] }
 0x432   : > { %v4090_v34 = vmax.f32 %v9587_v23, %v9598_v29  ;;  %v2661_v43 = vsub.f32 %v12249_v16, %v9188_v2  ;;  %v12250_v16 = vld [vmem:[#allocation56_spill] sm:$0xff] }
 0x433   : > { %v6528_v3 = vpop.eup %6527  ;;  %v4208_v61 = vmul.f32 1.442695, %v4138_v52  ;;  %v4210_v59 = vmul.f32 1.442695, %v4139_v10  ;;  %v9606_v7 = vpop.f32.mrf.mxu1 }
 0x434   : > { %v9610_v27 = vpop.eup %6529  ;;  %3089 = vmatmul.f32.gmra.mxu2 %v9600_v56  ;;  %4436 = vmatmul.f32.vlgmr.msra.gmra.mxu0 %v6514_v37  ;;  %v2762_v10 = vmul.f32 1.442695, %v2661_v43  ;;  %v2831_v43 = vadd.f32 %v9335_v14, %v12250_v16 }
 0x435   : > { %6533 = vpow2.f32 %v4208_v61  ;;  %2829 = vadd.xlane.f32.xlu0 %v2828_v26  ;;  %4091 = vmax.xlane.f32.xlu1 %v4090_v34  ;;  %v4330_v62 = vadd.f32 %v9610_v27, %v6528_v3  ;;  %v9622_v2 = vpop.eup %6531 }
 0x436   : > { %6535 = vpow2.f32 %v4210_v59 }
 0x437   : > { %4331 = vadd.xlane.f32.xlu2 %v4330_v62  ;;  %v9616_v52 = vpop.f32.mrf.mxu2  ;;  %6537 = vpow2.f32 %v2762_v10 }
 0x438   : > { %v4050_v12 = vpop.xlane.xlu0 %4049 }
 0x439   : > { %v4140_v54 = vsub.f32 %v9225_v63, %v4050_v12  ;;  %v4141_v25 = vsub.f32 %v9247_v46, %v4050_v12  ;;  %v9620_v42 = vpop.f32.mrf.mxu3  ;;  %v12252_v63 = vld [vmem:[#allocation29_spill] sm:$0xff]  ;;  %v9635_v12 = vpop.f32.mrf.mxu0 }
 0x43a   : > { %v4093_v37 = vmax.f32 %v9606_v7, %v9620_v42  ;;  %v2663_v46 = vsub.f32 %v12252_v63, %v9219_v32  ;;  %12253 = vst [vmem:[#allocation38_spill] sm:$0xff] %v9635_v12 }
 0x43b   : > { %v6534_v34 = vpop.eup %6533  ;;  %v4212_v61 = vmul.f32 1.442695, %v4140_v54  ;;  %v4214_v26 = vmul.f32 1.442695, %v4141_v25  ;;  %v9626_v59 = vpop.f32.mrf.mxu1 }
 0x43c   : > { %v9630_v62 = vpop.eup %6535  ;;  %3092 = vmatmul.f32.gmra.mxu2 %v9622_v2  ;;  %4439 = vmatmul.f32.gmra.mxu0 %v6522_v15  ;;  %v2766_v14 = vmul.f32 1.442695, %v2663_v46 }
 0x43d   : > { %12251 = vst [vmem:[#allocation32_spill] sm:$0xff] %v9630_v62  ;;  %6539 = vpow2.f32 %v4212_v61  ;;  %2832 = vadd.xlane.f32.xlu0 %v2831_v43  ;;  %4094 = vmax.xlane.f32.xlu1 %v4093_v37  ;;  %v4333_v54 = vadd.f32 %v9630_v62, %v6534_v34  ;;  %v9644_v15 = vpop.eup %6537 }
 0x43e   : > { %6541 = vpow2.f32 %v4214_v26 }
 0x43f   : > { %4334 = vadd.xlane.f32.xlu2 %v4333_v54  ;;  %v9638_v25 = vpop.f32.mrf.mxu2  ;;  %v12254_v54 = vld [vmem:[#allocation60_spill] sm:$0xff]  ;;  %6543 = vpow2.f32 %v2766_v14 }
 0x440   : > { %v4053_v16 = vpop.xlane.xlu1 %4052  ;;  %v2834_v46 = vadd.f32 %v9357_v28, %v12254_v54 }
 0x441   : > { %v4142_v10 = vsub.f32 %v9259_v30, %v4053_v16  ;;  %v4143_v32 = vsub.f32 %v9279_v8, %v4053_v16  ;;  %v9642_v63 = vpop.f32.mrf.mxu3  ;;  %v12256_v30 = vld [vmem:[#allocation35_spill] sm:$0xff] }
 0x442   : > { %v4096_v61 = vmax.f32 %v9626_v59, %v9642_v63  ;;  %v2665_v8 = vsub.f32 %v12256_v30, %v9251_v35 }
 0x443   : > { %v6540_v37 = vpop.eup %6539  ;;  %v4216_v43 = vmul.f32 1.442695, %v4142_v10  ;;  %v4218_v12 = vmul.f32 1.442695, %v4143_v32  ;;  %v9648_v26 = vpop.f32.mrf.mxu1 }
 0x444   : > { %v9652_v62 = vpop.eup %6541  ;;  %3095 = vmatmul.f32.gmra.mxu2 %v9644_v15  ;;  %4442 = vmatmul.f32.gmra.mxu0 %v6528_v3  ;;  %v9658_v10 = vpop.f32.mrf.mxu0  ;;  %v2770_v28 = vmul.f32 1.442695, %v2665_v8 }
 0x445   : > { %12255 = vst [vmem:[#allocation17_spill] sm:$0xff] %v9652_v62  ;;  %6545 = vpow2.f32 %v4216_v43  ;;  %2835 = vadd.xlane.f32.xlu0 %v2834_v46  ;;  %4097 = vmax.xlane.f32.xlu1 %v4096_v61  ;;  %v4336_v16 = vadd.f32 %v9652_v62, %v6540_v37  ;;  %v9666_v3 = vpop.eup %6543 }
 0x446   : > { %6547 = vpow2.f32 %v4218_v12  ;;  %12257 = vst [vmem:[#allocation44_spill] sm:$0xff] %v9658_v10 }
 0x447   : > { %4337 = vadd.xlane.f32.xlu2 %v4336_v16  ;;  %v9660_v32 = vpop.f32.mrf.mxu2  ;;  %v12258_v16 = vld [vmem:[#allocation64_spill] sm:$0xff]  ;;  %6549 = vpow2.f32 %v2770_v28 }
 0x448   : > { %v4056_v54 = vpop.xlane.xlu2 %4055  ;;  %v2837_v8 = vadd.f32 %v9386_v4, %v12258_v16 }
 0x449   : > { %v4144_v14 = vsub.f32 %v9289_v41, %v4056_v54  ;;  %v4145_v35 = vsub.f32 %v9309_v45, %v4056_v54  ;;  %v9664_v30 = vpop.f32.mrf.mxu3  ;;  %v12260_v41 = vld [vmem:[#allocation41_spill] sm:$0xff] }
 0x44a   : > { %v4099_v61 = vmax.f32 %v9648_v26, %v9664_v30  ;;  %v2667_v45 = vsub.f32 %v12260_v41, %v9283_v53 }
 0x44b   : > { %v6546_v43 = vpop.eup %6545  ;;  %v4220_v12 = vmul.f32 1.442695, %v4144_v14  ;;  %v4222_v46 = vmul.f32 1.442695, %v4145_v35  ;;  %v9670_v10 = vpop.f32.mrf.mxu1 }
 0x44c   : > { %v9674_v62 = vpop.eup %6547  ;;  %3098 = vmatmul.f32.gmra.mxu2 %v9666_v3  ;;  %4445 = vmatmul.f32.gmra.mxu0 %v6534_v34  ;;  %v2774_v35 = vmul.f32 1.442695, %v2667_v45  ;;  %v9682_v16 = vpop.f32.mrf.mxu0  ;;  %v12263_v45 = vld [vmem:[#allocation68_spill] sm:$0xff] }
 0x44d   : > { %12259 = vst [vmem:[#allocation20_spill] sm:$0xff] %v9674_v62  ;;  %6551 = vpow2.f32 %v4220_v12  ;;  %2838 = vadd.xlane.f32.xlu0 %v2837_v8  ;;  %4100 = vmax.xlane.f32.xlu1 %v4099_v61  ;;  %v4339_v54 = vadd.f32 %v9674_v62, %v6546_v43  ;;  %v9688_v34 = vpop.eup %6549  ;;  %v2840_v62 = vadd.f32 %v9410_v11, %v12263_v45 }
 0x44e   : > { %6553 = vpow2.f32 %v4222_v46  ;;  %12261 = vst [vmem:[#allocation50_spill] sm:$0xff] %v9682_v16 }
 0x44f   : > { %4340 = vadd.xlane.f32.xlu2 %v4339_v54  ;;  %v9680_v14 = vpop.f32.mrf.mxu2  ;;  %6555 = vpow2.f32 %v2774_v35 }
 0x450   : > { %v4059_v4 = vpop.xlane.xlu0 %4058 }
 0x451   : > { %v4146_v28 = vsub.f32 %v9319_v55, %v4059_v4  ;;  %v4147_v53 = vsub.f32 %v9333_v40, %v4059_v4  ;;  %v9686_v41 = vpop.f32.mrf.mxu3  ;;  %v12265_v55 = vld [vmem:[#allocation47_spill] sm:$0xff] }
 0x452   : > { %12262 = vst [vmem:[#allocation23_spill] sm:$0xff] %v9686_v41  ;;  %v4102_v61 = vmax.f32 %v9670_v10, %v9686_v41  ;;  %v2669_v40 = vsub.f32 %v12265_v55, %v9313_v5 }
 0x453   : > { %v6552_v12 = vpop.eup %6551  ;;  %v4224_v46 = vmul.f32 1.442695, %v4146_v28  ;;  %v4226_v8 = vmul.f32 1.442695, %v4147_v53  ;;  %v9692_v54 = vpop.f32.mrf.mxu1 }
 0x454   : > { %v9696_v16 = vpop.eup %6553  ;;  %3101 = vmatmul.f32.gmra.mxu2 %v9688_v34  ;;  %4448 = vmatmul.f32.gmra.mxu0 %v6540_v37  ;;  %v2778_v53 = vmul.f32 1.442695, %v2669_v40  ;;  %v12267_v40 = vld [vmem:[#allocation71_spill] sm:$0xff] }
 0x455   : > { %12264 = vst [vmem:[#allocation56_spill] sm:$0xff] %v9696_v16  ;;  %6557 = vpow2.f32 %v4224_v46  ;;  %2841 = vadd.xlane.f32.xlu0 %v2840_v62  ;;  %4103 = vmax.xlane.f32.xlu1 %v4102_v61  ;;  %v4342_v4 = vadd.f32 %v9696_v16, %v6552_v12  ;;  %v9708_v5 = vpop.eup %6555  ;;  %v9712_v61 = vpop.f32.mrf.mxu0 }
 0x456   : > { %6559 = vpow2.f32 %v4226_v8  ;;  %12266 = vst [vmem:[#allocation29_spill] sm:$0xff] %v9712_v61 }
 0x457   : > { %4343 = vadd.xlane.f32.xlu2 %v4342_v4  ;;  %v9702_v28 = vpop.f32.mrf.mxu2  ;;  %v2843_v4 = vadd.f32 %v9434_v33, %v12267_v40  ;;  %6561 = vpow2.f32 %v2778_v53 }
 0x458   : > { %v4062_v11 = vpop.xlane.xlu1 %4061 }
 0x459   : > { %v4148_v45 = vsub.f32 %v9343_v22, %v4062_v11  ;;  %v4149_v35 = vsub.f32 %v9355_v18, %v4062_v11  ;;  %v9706_v41 = vpop.f32.mrf.mxu3  ;;  %v12269_v18 = vld [vmem:[#allocation53_spill] sm:$0xff] }
 0x45a   : > { %v4105_v62 = vmax.f32 %v9692_v54, %v9706_v41  ;;  %v2671_v11 = vsub.f32 %v12269_v18, %v9337_v49  ;;  %v12272_v18 = vld [vmem:[#allocation73_spill] sm:$0xff] }
 0x45b   : > { %v6558_v37 = vpop.eup %6557  ;;  %v4228_v46 = vmul.f32 1.442695, %v4148_v45  ;;  %v4230_v8 = vmul.f32 1.442695, %v4149_v35  ;;  %v9714_v55 = vpop.f32.mrf.mxu1 }
 0x45c   : > { %v9718_v22 = vpop.eup %6559  ;;  %3104 = vmatmul.f32.gmra.mxu2 %v9708_v5  ;;  %4451 = vmatmul.f32.gmra.mxu0 %v6546_v43  ;;  %v2782_v61 = vmul.f32 1.442695, %v2671_v11  ;;  %v2846_v11 = vadd.f32 %v9458_v57, %v12272_v18 }
 0x45d   : > { %12268 = vst [vmem:[#allocation60_spill] sm:$0xff] %v9718_v22  ;;  %6563 = vpow2.f32 %v4228_v46  ;;  %2844 = vadd.xlane.f32.xlu0 %v2843_v4  ;;  %4106 = vmax.xlane.f32.xlu1 %v4105_v62  ;;  %v4345_v45 = vadd.f32 %v9718_v22, %v6558_v37  ;;  %v9730_v49 = vpop.eup %6561 }
 0x45e   : > { %6565 = vpow2.f32 %v4230_v8 }
 0x45f   : > { %4346 = vadd.xlane.f32.xlu2 %v4345_v45  ;;  %v9724_v35 = vpop.f32.mrf.mxu2  ;;  %6567 = vpow2.f32 %v2782_v61 }
 0x460   : > { %v4065_v33 = vpop.xlane.xlu2 %4064 }
 0x461   : > { %v4150_v40 = vsub.f32 %v9367_v6, %v4065_v33  ;;  %v4151_v53 = vsub.f32 %v9384_v9, %v4065_v33  ;;  %v9728_v16 = vpop.f32.mrf.mxu3  ;;  %v12274_v6 = vld [vmem:[#allocation59_spill] sm:$0xff]  ;;  %v9743_v33 = vpop.f32.mrf.mxu0 }
 0x462   : > { %12270 = vst [vmem:[#allocation35_spill] sm:$0xff] %v9728_v16  ;;  %v4108_v43 = vmax.f32 %v9714_v55, %v9728_v16  ;;  %v2673_v9 = vsub.f32 %v12274_v6, %v9359_v17  ;;  %v12294_v16 = vld [vmem:[#allocation70_spill] sm:$0xff] }
 0x463   : > { %v6564_v62 = vpop.eup %6563  ;;  %v4232_v46 = vmul.f32 1.442695, %v4150_v40  ;;  %v4234_v4 = vmul.f32 1.442695, %v4151_v53  ;;  %v9734_v8 = vpop.f32.mrf.mxu1  ;;  %12275 = vst [vmem:[#allocation68_spill] sm:$0xff] %v9743_v33 }
 0x464   : > { %12271 = vst [vmem:[#allocation64_spill] sm:$0xff] %v9734_v8  ;;  %v9738_v45 = vpop.eup %6565  ;;  %3107 = vmatmul.f32.gmra.mxu2 %v9730_v49  ;;  %4454 = vmatmul.f32.gmra.mxu0 %v6552_v12  ;;  %v2786_v57 = vmul.f32 1.442695, %v2673_v9 }
 0x465   : > { %12273 = vst [vmem:[#allocation41_spill] sm:$0xff] %v9738_v45  ;;  %6569 = vpow2.f32 %v4232_v46  ;;  %2847 = vadd.xlane.f32.xlu0 %v2846_v11  ;;  %4109 = vmax.xlane.f32.xlu1 %v4108_v43  ;;  %v4348_v40 = vadd.f32 %v9738_v45, %v6564_v62  ;;  %v9752_v12 = vpop.eup %6567 }
 0x466   : > { %6571 = vpow2.f32 %v4234_v4 }
 0x467   : > { %4349 = vadd.xlane.f32.xlu2 %v4348_v40  ;;  %v9746_v53 = vpop.f32.mrf.mxu2  ;;  %v12278_v40 = vld [vmem:[#allocation75_spill] sm:$0xff]  ;;  %6573 = vpow2.f32 %v2786_v57 }
 0x468   : > { %v4068_v18 = vpop.xlane.xlu0 %4067  ;;  %v2849_v9 = vadd.f32 %v9480_v20, %v12278_v40  ;;  %v12283_v57 = vld [vmem:[#allocation43_spill] sm:$0xff] }
 0x469   : > { %v4152_v61 = vsub.f32 %v9394_v36, %v4068_v18  ;;  %v4153_v17 = vsub.f32 %v9408_v31, %v4068_v18  ;;  %v9750_v6 = vpop.f32.mrf.mxu3  ;;  %v12280_v36 = vld [vmem:[#allocation40_spill] sm:$0xff]  ;;  %v12281_v31 = vld [vmem:[#allocation62_spill] sm:$0xff] }
 0x46a   : > { %12276 = vst [vmem:[#allocation47_spill] sm:$0xff] %v9750_v6  ;;  %v4111_v46 = vmax.f32 %v9734_v8, %v9750_v6  ;;  %v2675_v18 = vsub.f32 %v12281_v31, %v12280_v36  ;;  %v12284_v8 = vld [vmem:[#allocation22_spill] sm:$0xff] }
 0x46b   : > { %v6570_v43 = vpop.eup %6569  ;;  %v4236_v11 = vmul.f32 1.442695, %v4152_v61  ;;  %v4238_v33 = vmul.f32 1.442695, %v4153_v17  ;;  %v9756_v4 = vpop.f32.mrf.mxu1 }
 0x46c   : > { %12277 = vst [vmem:[#allocation71_spill] sm:$0xff] %v9756_v4  ;;  %v9760_v45 = vpop.eup %6571  ;;  %3110 = vmatmul.f32.gmra.mxu2 %v9752_v12  ;;  %4457 = vmatmul.f32.gmra.mxu0 %v6558_v37  ;;  %v9766_v17 = vpop.f32.mrf.mxu0  ;;  %v2790_v20 = vmul.f32 1.442695, %v2675_v18 }
 0x46d   : > { %12279 = vst [vmem:[#allocation53_spill] sm:$0xff] %v9760_v45  ;;  %6575 = vpow2.f32 %v4236_v11  ;;  %2850 = vadd.xlane.f32.xlu0 %v2849_v9  ;;  %4112 = vmax.xlane.f32.xlu1 %v4111_v46  ;;  %v4351_v61 = vadd.f32 %v9760_v45, %v6570_v43  ;;  %v9774_v37 = vpop.eup %6573 }
 0x46e   : > { %6577 = vpow2.f32 %v4238_v33  ;;  %12282 = vst [vmem:[#allocation73_spill] sm:$0xff] %v9766_v17 }
 0x46f   : > { %4352 = vadd.xlane.f32.xlu2 %v4351_v61  ;;  %v9768_v22 = vpop.f32.mrf.mxu2  ;;  %12286 = vst [vmem:[#allocation75_spill] sm:$0xff] %v9774_v37  ;;  %v12288_v61 = vld [vmem:[#allocation54_spill] sm:$0xff]  ;;  %6579 = vpow2.f32 %v2790_v20  ;;  %v12293_v20 = vld [vmem:[#allocation65_spill] sm:$0xff] }
 0x470   : > { %v4071_v40 = vpop.xlane.xlu1 %4070  ;;  %v2852_v18 = vadd.f32 %v9508_v60, %v12288_v61 }
 0x471   : > { %v4154_v6 = vsub.f32 %v12283_v57, %v4071_v40  ;;  %v4155_v36 = vsub.f32 %v12284_v8, %v4071_v40  ;;  %v9772_v31 = vpop.f32.mrf.mxu3  ;;  %v12290_v57 = vld [vmem:[#allocation21_spill] sm:$0xff]  ;;  %v12291_v8 = vld [vmem:[#allocation66_spill] sm:$0xff] }
 0x472   : > { %12285 = vst [vmem:[#allocation59_spill] sm:$0xff] %v9772_v31  ;;  %v4114_v46 = vmax.f32 %v9756_v4, %v9772_v31  ;;  %v2677_v40 = vsub.f32 %v12291_v8, %v12290_v57 }
 0x473   : > { %v6576_v11 = vpop.eup %6575  ;;  %v4240_v33 = vmul.f32 1.442695, %v4154_v6  ;;  %v4242_v9 = vmul.f32 1.442695, %v4155_v36  ;;  %v9778_v17 = vpop.f32.mrf.mxu1 }
 0x474   : > { %12287 = vst [vmem:[#allocation40_spill] sm:$0xff] %v9778_v17  ;;  %v9782_v45 = vpop.eup %6577  ;;  %3113 = vmatmul.f32.gmra.mxu2 %v9774_v37  ;;  %4460 = vmatmul.f32.gmra.mxu0 %v6564_v62  ;;  %v2794_v31 = vmul.f32 1.442695, %v2677_v40  ;;  %v9790_v61 = vpop.f32.mrf.mxu0 }
 0x475   : > { %12289 = vst [vmem:[#allocation62_spill] sm:$0xff] %v9782_v45  ;;  %6581 = vpow2.f32 %v4240_v33  ;;  %2853 = vadd.xlane.f32.xlu0 %v2852_v18  ;;  %4115 = vmax.xlane.f32.xlu1 %v4114_v46  ;;  %v4354_v6 = vadd.f32 %v9782_v45, %v6576_v11  ;;  %v9796_v62 = vpop.eup %6579 }
 0x476   : > { %6583 = vpow2.f32 %v4242_v9  ;;  %12292 = vst [vmem:[#allocation43_spill] sm:$0xff] %v9790_v61  ;;  %v12298_v61 = vld [vmem:[#allocation67_spill] sm:$0xff] }
 0x477   : > { %4355 = vadd.xlane.f32.xlu2 %v4354_v6  ;;  %v9788_v36 = vpop.f32.mrf.mxu2  ;;  %v12296_v6 = vld [vmem:[#allocation77_spill] sm:$0xff]  ;;  %6585 = vpow2.f32 %v2794_v31 }
 0x478   : > { %v4074_v60 = vpop.xlane.xlu2 %4073  ;;  %v2855_v40 = vadd.f32 %v9534_v39, %v12296_v6  ;;  %v12302_v6 = vld [vmem:[#allocation25_spill] sm:$0xff] }
 0x479   : > { %v4156_v4 = vsub.f32 %v12293_v20, %v4074_v60  ;;  %v4157_v57 = vsub.f32 %v12294_v16, %v4074_v60  ;;  %v9794_v8 = vpop.f32.mrf.mxu3  ;;  %v12299_v20 = vld [vmem:[#allocation45_spill] sm:$0xff] }
 0x47a   : > { %12295 = vst [vmem:[#allocation22_spill] sm:$0xff] %v9794_v8  ;;  %v4117_v46 = vmax.f32 %v9778_v17, %v9794_v8  ;;  %v2679_v37 = vsub.f32 %v12299_v20, %v12298_v61  ;;  %v5126_v16 = vld [vmem:[%s11730_s8] sm:$0xff] }
 0x47b   : > { %v6582_v33 = vpop.eup %6581  ;;  %v4244_v9 = vmul.f32 1.442695, %v4156_v4  ;;  %v4246_v18 = vmul.f32 1.442695, %v4157_v57  ;;  %v9810_v60 = vpop.f32.mrf.mxu1  ;;  %5450 = vmatpush.msra.mxu3 %v5126_v16  ;;  %v12301_v57 = vld [vmem:[#allocation78_spill] sm:$0xff] }
 0x47c   : > { %v9802_v45 = vpop.eup %6583  ;;  %3116 = vmatmul.f32.gmra.mxu2 %v9796_v62  ;;  %4463 = vmatmul.f32.gmra.mxu0 %v6570_v43  ;;  %12300 = vst [vmem:[#allocation21_spill] sm:$0xff] %v9810_v60  ;;  %v2798_v31 = vmul.f32 1.442695, %v2679_v37 }
 0x47d   : > { %12297 = vst [vmem:[#allocation54_spill] sm:$0xff] %v9802_v45  ;;  %6587 = vpow2.f32 %v4244_v9  ;;  %2856 = vadd.xlane.f32.xlu0 %v2855_v40  ;;  %4118 = vmax.xlane.f32.xlu1 %v4117_v46  ;;  %v4357_v39 = vadd.f32 %v9802_v45, %v6582_v33  ;;  %v9819_v9 = vpop.eup %6585  ;;  %v12306_v45 = vld [vmem:[#allocation9_spill] sm:$0xff] }
 0x47e   : > { %6589 = vpow2.f32 %v4246_v18  ;;  %12304 = vst [vmem:[#allocation65_spill] sm:$0xff] %v9819_v9  ;;  %v9825_v18 = vpop.f32.mrf.mxu0  ;;  %v2858_v37 = vadd.f32 %v9550_v47, %v12306_v45 }
 0x47f   : > { %4358 = vadd.xlane.f32.xlu2 %v4357_v39  ;;  %v9813_v4 = vpop.f32.mrf.mxu2  ;;  %12305 = vst [vmem:[#allocation70_spill] sm:$0xff] %v9825_v18  ;;  %6591 = vpow2.f32 %v2798_v31 }
 0x480   : > { %v4077_v61 = vpop.xlane.xlu0 %4076 }
 0x481   : > { %v4158_v43 = vsub.f32 %v12301_v57, %v4077_v61  ;;  %v4159_v20 = vsub.f32 %v12302_v6, %v4077_v61  ;;  %v9817_v8 = vpop.f32.mrf.mxu3  ;;  %v12308_v61 = vld [vmem:[#allocation49_spill] sm:$0xff] }
 0x482   : > { %12303 = vst [vmem:[#allocation66_spill] sm:$0xff] %v9817_v8  ;;  %v4120_v46 = vmax.f32 %v9810_v60, %v9817_v8  ;;  %v12309_v57 = vld [vmem:[#allocation5_spill] sm:$0xff]  ;;  %v12315_v60 = vld [vmem:[#allocation48_spill] sm:$0xff] }
 0x483   : > { %v9823_v40 = vpop.eup %6587  ;;  %v4248_v16 = vmul.f32 1.442695, %v4158_v43  ;;  %v4250_v39 = vmul.f32 1.442695, %v4159_v20  ;;  %v2681_v6 = vsub.f32 %v12309_v57, %v12308_v61  ;;  %v9836_v43 = vpop.f32.mrf.mxu1  ;;  %v12313_v61 = vld [vmem:[#allocation10_spill] sm:$0xff] }
 0x484   : > { %v9829_v17 = vpop.eup %6589  ;;  %3119 = vmatmul.f32.gmra.mxu2 %v9819_v9  ;;  %4466 = vmatmul.f32.gmra.mxu0 %v6576_v11  ;;  %12310 = vst [vmem:[#allocation67_spill] sm:$0xff] %v9836_v43  ;;  %v2861_v57 = vadd.f32 %v9573_v0, %v12313_v61 }
 0x485   : > { %12307 = vst [vmem:[#allocation77_spill] sm:$0xff] %v9829_v17  ;;  %6593 = vpow2.f32 %v4248_v16  ;;  %2859 = vadd.xlane.f32.xlu0 %v2858_v37  ;;  %4121 = vmax.xlane.f32.xlu1 %v4120_v46  ;;  %v4360_v18 = vadd.f32 %v9829_v17, %v9823_v40  ;;  %v2802_v20 = vmul.f32 1.442695, %v2681_v6  ;;  %v9845_v16 = vpop.eup %6591 }
 0x486   : > { %6595 = vpow2.f32 %v4250_v39  ;;  %12312 = vst [vmem:[#allocation78_spill] sm:$0xff] %v9845_v16 }
 0x487   : > { %4361 = vadd.xlane.f32.xlu2 %v4360_v18  ;;  %v9838_v47 = vpop.f32.mrf.mxu2 }
 0x488   : > { %v9840_v45 = vpop.xlane.xlu0 %2817  ;;  %v4080_v31 = vpop.xlane.xlu1 %4079 }
 0x489   : > { %6597 = vrcp.f32 %v9840_v45  ;;  %v9843_v11 = vpop.f32.mrf.mxu3  ;;  %v4160_v46 = vsub.f32 %v9490_v38, %v4080_v31  ;;  %v4161_v37 = vsub.f32 %v9506_v50, %v4080_v31  ;;  %v12316_v38 = vld [vmem:[#allocation6_spill] sm:$0xff]  ;;  %v9860_v50 = vpop.f32.mrf.mxu0  ;;  %vm3143_vm4 = vweird.f32 %v9840_v45 }
 0x48a   : > { %12311 = vst [vmem:[#allocation45_spill] sm:$0xff] %v9843_v11  ;;  %v4123_v39 = vmax.f32 %v9836_v43, %v9843_v11  ;;  %6599 = vpow2.f32 %v2802_v20  ;;  %v2683_v9 = vsub.f32 %v12316_v38, %v12315_v60 }
 0x48b   : > { %v9851_v18 = vpop.eup %6593  ;;  %v4252_v6 = vmul.f32 1.442695, %v4160_v46  ;;  %v4254_v8 = vmul.f32 1.442695, %v4161_v37  ;;  %12317 = vst [vmem:[#allocation9_spill] sm:$0xff] %v9860_v50  ;;  %v9869_v60 = vpop.f32.mrf.mxu1 }
 0x48c   : > { %v9855_v17 = vpop.eup %6595  ;;  %3122 = vmatmul.f32.gmra.mxu2 %v9845_v16  ;;  %4469 = vmatmul.f32.gmra.mxu0 %v6582_v33  ;;  %v2806_v61 = vmul.f32 1.442695, %v2683_v9  ;;  %12318 = vst [vmem:[#allocation49_spill] sm:$0xff] %v9869_v60  ;;  %v3147_v50 = vand.u32 2147483647, %v9840_v45  ;;  %v3149_v9 = vand.u32 2147483648, %v9840_v45 }
 0x48d   : > { %12314 = vst [vmem:[#allocation25_spill] sm:$0xff] %v9855_v17  ;;  %2862 = vadd.xlane.f32.xlu0 %v2861_v57  ;;  %4124 = vmax.xlane.f32.xlu1 %v4123_v39  ;;  %v4363_v31 = vadd.f32 %v9855_v17, %v9851_v18  ;;  %6601 = vpow2.f32 %v4252_v6  ;;  %v12320_v17 = vld [vmem:[#allocation11_spill] sm:$0xff] }
 0x48e   : > { %6603 = vpow2.f32 %v4254_v8  ;;  %v2864_v11 = vadd.f32 %v9600_v56, %v12320_v17  ;;  %vm3148_vm6 = vcmp.eq.f32.partialorder %v3147_v50, 8.507059e+37 }
 0x48f   : > { %v6598_v0 = vpop.eup %6597  ;;  %4364 = vadd.xlane.f32.xlu2 %v4363_v31  ;;  %v9864_v46 = vpop.f32.mrf.mxu2 }
 0x490   : > { %v3139_v37 = vmul.f32 %v6598_v0, %v9840_v45  ;;  %v9867_v33 = vpop.xlane.xlu0 %2820  ;;  %v4083_v20 = vpop.xlane.xlu2 %4082  ;;  %vm3144_vm3 = vweird.f32 %v6598_v0 }
 0x491   : > { %6605 = vrcp.f32 %v9867_v33  ;;  %v9872_v39 = vpop.f32.mrf.mxu3  ;;  %v4162_v6 = vsub.f32 %v9516_v44, %v4083_v20  ;;  %v4163_v8 = vsub.f32 %v9532_v19, %v4083_v20  ;;  %v9878_v31 = vpop.eup %6599  ;;  %v12322_v20 = vld [vmem:[#allocation7_spill] sm:$0xff]  ;;  %vm3145_vm5 = vmor %vm3143_vm4, %vm3144_vm3  ;;  %vm3157_vm9 = vweird.f32 %v9867_v33 }
 0x492   : > { %12319 = vst [vmem:[#allocation5_spill] sm:$0xff] %v9872_v39  ;;  %v3140_v57 = vsub.f32 1.0, %v3139_v37  ;;  %v4126_v38 = vmax.f32 %v9869_v60, %v9872_v39  ;;  %6607 = vpow2.f32 %v2806_v61  ;;  %v2685_v39 = vsub.f32 %v12322_v20, %v9502_v51  ;;  %v12324_v51 = vld [vmem:[#allocation30_spill] sm:$0xff] }
 0x493   : > { %v9884_v43 = vpop.eup %6601  ;;  %v4256_v37 = vmul.f32 1.442695, %v4162_v6  ;;  %v4258_v44 = vmul.f32 1.442695, %v4163_v8 }
 0x494   : > { %v3141_v16 = vmul.f32 %v6598_v0, %v3140_v57  ;;  %3125 = vmatmul.f32.gmra.mxu2 %v9878_v31  ;;  %4472 = vmatmul.f32.gmra.mxu0 %v9823_v40  ;;  %v9888_v19 = vpop.eup %6603  ;;  %v9897_v57 = vpop.f32.mrf.mxu0  ;;  %v3150_v40 = vor.u32 1.1754944e-38, %v3149_v9 }
 0x495   : > { %12321 = vst [vmem:[#allocation10_spill] sm:$0xff] %v9888_v19  ;;  %2865 = vadd.xlane.f32.xlu0 %v2864_v11  ;;  %4127 = vmax.xlane.f32.xlu1 %v4126_v38  ;;  %6609 = vpow2.f32 %v4256_v37  ;;  %v4366_v56 = vadd.f32 %v9888_v19, %v9884_v43  ;;  %v3043_v11 = vadd.f32 %v9616_v52, %v12324_v51  ;;  %v2810_v38 = vmul.f32 1.442695, %v2685_v39 }
 0x496   : > { %v3142_v60 = vadd.f32 %v6598_v0, %v3141_v16  ;;  %12323 = vst [vmem:[#allocation48_spill] sm:$0xff] %v9897_v57  ;;  %6611 = vpow2.f32 %v4258_v44  ;;  %v12333_v57 = vld [vmem:[#allocation31_spill] sm:$0xff] }
 0x497   : > { %v9895_v17 = vpop.eup %6605  ;;  %v9900_v61 = vpop.f32.mrf.mxu2  ;;  %4367 = vadd.xlane.f32.xlu2 %v4366_v56 }
 0x498   : > { %v3146_v16 = vsel %vm3145_vm5, %v6598_v0, %v3142_v60  ;;  %v3153_v45 = vmul.f32 %v9895_v17, %v9867_v33  ;;  %v9906_v6 = vpop.xlane.xlu0 %2823  ;;  %v4086_v8 = vpop.xlane.xlu1 %4085  ;;  %vm3158_vm8 = vweird.f32 %v9895_v17 }
 0x499   : > { %v3151_v37 = vsel %vm3148_vm6, %v3150_v40, %v3146_v16  ;;  %6613 = vrcp.f32 %v9906_v6  ;;  %v9909_v9 = vpop.xlane.xlu2 %4325  ;;  %v4164_v52 = vsub.f32 %v9544_v24, %v4086_v8  ;;  %v9912_v0 = vpop.f32.mrf.mxu3  ;;  %v4165_v60 = vsub.f32 %v9558_v48, %v4086_v8  ;;  %v12328_v24 = vld [vmem:[#allocation8_spill] sm:$0xff]  ;;  %vm9950_vm10 = vmor %vm3157_vm9, %vm3158_vm8 }
 0x49a   : > { %12325 = vst [vmem:[#allocation6_spill] sm:$0xff] %v9909_v9  ;;  %v3586_v44 = vmul.f32 %v3151_v37, %v3043_v11  ;;  %v3154_v20 = vsub.f32 1.0, %v3153_v45  ;;  %v9914_v50 = vpop.eup %6607  ;;  %v9920_v40 = vpop.f32.mrf.mxu1  ;;  %6615 = vpow2.f32 %v2810_v38  ;;  %v2687_v16 = vsub.f32 %v12328_v24, %v9528_v1 }
 0x49b   : > { %12326 = vst [vmem:[#allocation11_spill] sm:$0xff] %v9912_v0  ;;  %v9917_v56 = vpop.eup %6609  ;;  %v4260_v51 = vmul.f32 1.442695, %v4164_v52  ;;  %v4262_v45 = vmul.f32 1.442695, %v4165_v60  ;;  %v4129_v48 = vmax.f32 %v9920_v40, %v9912_v0  ;;  %v3163_v38 = vand.u32 2147483648, %v9867_v33 }
 0x49c   : > { %v3155_v39 = vmul.f32 %v9895_v17, %v3154_v20  ;;  %6332 = vmatmul.msk.f32.vlgmr.msra.gmra.mxu3 %vm5129_vm7, %v3586_v44  ;;  %3128 = vmatmul.f32.gmra.mxu2 %v9914_v50  ;;  %v9924_v11 = vpop.eup %6611  ;;  %vm3171_vm13 = vweird.f32 %v9906_v6 }
 0x49d   : > { %12327 = vst [vmem:[#allocation7_spill] sm:$0xff] %v9924_v11  ;;  %4475 = vmatmul.f32.gmra.mxu0 %v9851_v18  ;;  %6617 = vpow2.f32 %v4260_v51  ;;  %v4369_v37 = vadd.f32 %v9924_v11, %v9917_v56  ;;  %4130 = vmax.xlane.f32.xlu1 %v4129_v48  ;;  %v3161_v18 = vand.u32 2147483647, %v9867_v33  ;;  %v9946_v51 = vpop.f32.mrf.mxu0  ;;  %v3046_v11 = vadd.f32 %v9638_v25, %v12333_v57 }
 0x49e   : > { %v3156_v8 = vadd.f32 %v9895_v17, %v3155_v39  ;;  %6619 = vpow2.f32 %v4262_v45  ;;  %v2814_v39 = vmul.f32 1.442695, %v2687_v16  ;;  %12329 = vst [vmem:[#allocation30_spill] sm:$0xff] %v9946_v51  ;;  %v3164_v19 = vor.u32 1.1754944e-38, %v3163_v38 }
 0x49f   : > { %v9935_v44 = vpop.eup %6613  ;;  %v9938_v1 = vpop.f32.mrf.mxu2  ;;  %4370 = vadd.xlane.f32.xlu2 %v4369_v37  ;;  %vm3162_vm11 = vcmp.eq.f32.partialorder %v3161_v18, 8.507059e+37  ;;  %v3177_v18 = vand.u32 2147483648, %v9906_v6 }
 0x4a0   : > { %v3167_v20 = vmul.f32 %v9935_v44, %v9906_v6  ;;  %v9944_v52 = vpop.xlane.xlu0 %2826  ;;  %v4089_v60 = vpop.xlane.xlu1 %4088  ;;  %v3160_v16 = vsel %vm9950_vm10, %v9895_v17, %v3156_v8  ;;  %v12334_v17 = vld [vmem:[#allocation12_spill] sm:$0xff]  ;;  %vm3172_vm12 = vweird.f32 %v9935_v44 }
 0x4a1   : > { %6621 = vrcp.f32 %v9944_v52  ;;  %v9955_v45 = vpop.xlane.xlu2 %4328  ;;  %v4166_v48 = vsub.f32 %v9564_v13, %v4089_v60  ;;  %v4167_v37 = vsub.f32 %v9581_v58, %v4089_v60  ;;  %v9962_v51 = vpop.eup %6615  ;;  %v3165_v58 = vsel %vm3162_vm11, %v3164_v19, %v3160_v16  ;;  %vm9993_vm14 = vmor %vm3171_vm13, %vm3172_vm12  ;;  %v12337_v16 = vld [vmem:[#allocation33_spill] sm:$0xff] }
 0x4a2   : > { %12332 = vst [vmem:[#allocation8_spill] sm:$0xff] %v9955_v45  ;;  %v3168_v33 = vsub.f32 1.0, %v3167_v20  ;;  %6623 = vpow2.f32 %v2814_v39  ;;  %v2867_v8 = vadd.f32 %v9622_v2, %v12334_v17  ;;  %v3587_v57 = vmul.f32 %v3165_v58, %v3046_v11 }
 0x4a3   : > { %v9966_v9 = vpop.eup %6617  ;;  %v4264_v20 = vmul.f32 1.442695, %v4166_v48  ;;  %v4266_v0 = vmul.f32 1.442695, %v4167_v37  ;;  %v3175_v2 = vand.u32 2147483647, %v9906_v6  ;;  %vm3185_vm2 = vweird.f32 %v9944_v52 }
 0x4a4   : > { %v3169_v45 = vmul.f32 %v9935_v44, %v3168_v33  ;;  %3131 = vmatmul.f32.gmra.mxu2 %v9962_v51  ;;  %v9970_v13 = vpop.eup %6619  ;;  %6333 = vmatmul.msk.f32.gmra.mxu3 %vm5129_vm7, %v3587_v57  ;;  %v3178_v17 = vor.u32 1.1754944e-38, %v3177_v18 }
 0x4a5   : > { %4478 = vmatmul.f32.gmra.mxu0 %v9884_v43  ;;  %6625 = vpow2.f32 %v4264_v20  ;;  %v4372_v60 = vadd.f32 %v9970_v13, %v9966_v9  ;;  %v3049_v20 = vadd.f32 %v9660_v32, %v12337_v16  ;;  %v10009_v58 = vpop.f32.mrf.mxu0  ;;  %vm3176_vm15 = vcmp.eq.f32.partialorder %v3175_v2, 8.507059e+37 }
 0x4a6   : > { %v3170_v25 = vadd.f32 %v9935_v44, %v3169_v45  ;;  %6627 = vpow2.f32 %v4266_v0  ;;  %12338 = vst [vmem:[#allocation31_spill] sm:$0xff] %v10009_v58  ;;  %v3191_v2 = vand.u32 2147483648, %v9944_v52 }
 0x4a7   : > { %v9977_v38 = vpop.eup %6621  ;;  %v9982_v19 = vpop.f32.mrf.mxu2  ;;  %2868 = vadd.xlane.f32.xlu2 %v2867_v8  ;;  %4373 = vadd.xlane.f32.xlu1 %v4372_v60 }
 0x4a8   : > { %v3181_v43 = vmul.f32 %v9977_v38, %v9944_v52  ;;  %v9989_v11 = vpop.xlane.xlu0 %2829  ;;  %v4092_v39 = vpop.xlane.xlu1 %4091  ;;  %v3174_v48 = vsel %vm9993_vm14, %v9935_v44, %v3170_v25  ;;  %vm3186_vm0 = vweird.f32 %v9977_v38 }
 0x4a9   : > { %6629 = vrcp.f32 %v9989_v11  ;;  %v4168_v6 = vsub.f32 %v9587_v23, %v4092_v39  ;;  %v4169_v45 = vsub.f32 %v9598_v29, %v4092_v39  ;;  %v10005_v37 = vpop.eup %6623  ;;  %v3179_v44 = vsel %vm3176_vm15, %v3178_v17, %v3174_v48  ;;  %vm10038_vm3 = vmor %vm3185_vm2, %vm3186_vm0 }
 0x4aa   : > { %v3182_v24 = vsub.f32 1.0, %v3181_v43  ;;  %v10000_v33 = vpop.xlane.xlu2 %4331  ;;  %v3588_v32 = vmul.f32 %v3179_v44, %v3049_v20  ;;  %v12339_v43 = vld [vmem:[#allocation13_spill] sm:$0xff]  ;;  %v3192_v44 = vor.u32 1.1754944e-38, %v3191_v2  ;;  %v3205_v2 = vand.u32 2147483648, %v9989_v11 }
 0x4ab   : > { %v10011_v8 = vpop.eup %6625  ;;  %v4268_v29 = vmul.f32 1.442695, %v4168_v6  ;;  %v4270_v57 = vmul.f32 1.442695, %v4169_v45  ;;  %v2870_v39 = vadd.f32 %v9644_v15, %v12339_v43  ;;  %vm3199_vm6 = vweird.f32 %v9989_v11 }
 0x4ac   : > { %v3183_v23 = vmul.f32 %v9977_v38, %v3182_v24  ;;  %3134 = vmatmul.f32.gmra.mxu2 %v10005_v37  ;;  %v10015_v60 = vpop.eup %6627  ;;  %6334 = vmatmul.msk.f32.gmra.mxu3 %vm5129_vm7, %v3588_v32 }
 0x4ad   : > { %4481 = vmatmul.f32.gmra.mxu0 %v9917_v56  ;;  %6631 = vpow2.f32 %v4268_v29  ;;  %v4375_v0 = vadd.f32 %v10015_v60, %v10011_v8  ;;  %v3189_v56 = vand.u32 2147483647, %v9944_v52  ;;  %v12342_v29 = vld [vmem:[#allocation34_spill] sm:$0xff] }
 0x4ae   : > { %v3184_v25 = vadd.f32 %v9977_v38, %v3183_v23  ;;  %6633 = vpow2.f32 %v4270_v57  ;;  %v3052_v57 = vadd.f32 %v9680_v14, %v12342_v29 }
 0x4af   : > { %v10020_v18 = vpop.eup %6629  ;;  %v10027_v24 = vpop.f32.mrf.mxu2  ;;  %2871 = vadd.xlane.f32.xlu1 %v2870_v39  ;;  %4376 = vadd.xlane.f32.xlu0 %v4375_v0  ;;  %vm3190_vm4 = vcmp.eq.f32.partialorder %v3189_v56, 8.507059e+37  ;;  %v12345_v56 = vld [vmem:[#allocation14_spill] sm:$0xff] }
 0x4b0   : > { %v3195_v6 = vmul.f32 %v10020_v18, %v9989_v11  ;;  %v10034_v45 = vpop.xlane.xlu0 %2832  ;;  %v4095_v48 = vpop.xlane.xlu1 %4094  ;;  %v3188_v23 = vsel %vm10038_vm3, %v9977_v38, %v3184_v25  ;;  %vm3200_vm5 = vweird.f32 %v10020_v18  ;;  %v2873_v15 = vadd.f32 %v9666_v3, %v12345_v56 }
 0x4b1   : > { %6635 = vrcp.f32 %v10034_v45  ;;  %v4170_v52 = vsub.f32 %v9606_v7, %v4095_v48  ;;  %v4171_v20 = vsub.f32 %v9620_v42, %v4095_v48  ;;  %v12343_v7 = vld [vmem:[#allocation76_spill] sm:$0xff]  ;;  %v3193_v48 = vsel %vm3190_vm4, %v3192_v44, %v3188_v23  ;;  %vm10081_vm8 = vmor %vm3199_vm6, %vm3200_vm5 }
 0x4b2   : > { %v3196_v16 = vsub.f32 1.0, %v3195_v6  ;;  %v10045_v17 = vpop.xlane.xlu2 %4334  ;;  %v10058_v6 = vpop.f32.mrf.mxu0  ;;  %v3589_v14 = vmul.f32 %v3193_v48, %v3052_v57  ;;  %v3206_v48 = vor.u32 1.1754944e-38, %v3205_v2  ;;  %vm3213_vm11 = vweird.f32 %v10034_v45 }
 0x4b3   : > { %v10052_v32 = vpop.eup %6631  ;;  %v4272_v39 = vmul.f32 1.442695, %v4170_v52  ;;  %v4274_v0 = vmul.f32 1.442695, %v4171_v20  ;;  %12344 = vst [vmem:[#allocation12_spill] sm:$0xff] %v10058_v6 }
 0x4b4   : > { %v3197_v43 = vmul.f32 %v10020_v18, %v3196_v16  ;;  %4549 = vmatmul.f32.vlgmr.msra.gmra.mxu2 %v12343_v7  ;;  %v10056_v42 = vpop.eup %6633  ;;  %6335 = vmatmul.msk.f32.gmra.mxu3 %vm5129_vm7, %v3589_v14  ;;  %v3217_v3 = vand.u32 2147483647, %v10034_v45 }
 0x4b5   : > { %4484 = vmatmul.f32.gmra.mxu0 %v9966_v9  ;;  %6637 = vpow2.f32 %v4272_v39  ;;  %v4378_v16 = vadd.f32 %v10056_v42, %v10052_v32  ;;  %v3203_v9 = vand.u32 2147483647, %v9989_v11 }
 0x4b6   : > { %v3198_v38 = vadd.f32 %v10020_v18, %v3197_v43  ;;  %6639 = vpow2.f32 %v4274_v0  ;;  %v12348_v0 = vld [vmem:[#allocation36_spill] sm:$0xff]  ;;  %vm3218_vm13 = vcmp.eq.f32.partialorder %v3217_v3, 8.507059e+37 }
 0x4b7   : > { %v10063_v25 = vpop.eup %6635  ;;  %v10070_v52 = vpop.f32.mrf.mxu2  ;;  %2874 = vadd.xlane.f32.xlu0 %v2873_v15  ;;  %4379 = vadd.xlane.f32.xlu2 %v4378_v16  ;;  %v3055_v7 = vadd.f32 %v9702_v28, %v12348_v0  ;;  %vm3204_vm9 = vcmp.eq.f32.partialorder %v3203_v9, 8.507059e+37  ;;  %v3219_v9 = vand.u32 2147483648, %v10034_v45 }
 0x4b8   : > { %v3209_v20 = vmul.f32 %v10063_v25, %v10034_v45  ;;  %v10077_v23 = vpop.xlane.xlu0 %2835  ;;  %v4098_v29 = vpop.xlane.xlu1 %4097  ;;  %v3202_v39 = vsel %vm10081_vm8, %v10020_v18, %v3198_v38  ;;  %vm3214_vm10 = vweird.f32 %v10063_v25 }
 0x4b9   : > { %6641 = vrcp.f32 %v10077_v23  ;;  %v4172_v11 = vsub.f32 %v9626_v59, %v4098_v29  ;;  %v4173_v44 = vsub.f32 %v9642_v63, %v4098_v29  ;;  %v3207_v63 = vsel %vm3204_vm9, %v3206_v48, %v3202_v39  ;;  %vm10124_vm12 = vmor %vm3213_vm11, %vm3214_vm10 }
 0x4ba   : > { %v3210_v57 = vsub.f32 1.0, %v3209_v20  ;;  %v10088_v43 = vpop.xlane.xlu2 %4337  ;;  %v3590_v28 = vmul.f32 %v3207_v63, %v3055_v7  ;;  %v10106_v2 = vpop.f32.mrf.mxu0  ;;  %v12350_v20 = vld [vmem:[#allocation15_spill] sm:$0xff]  ;;  %vm3227_vm15 = vweird.f32 %v10077_v23 }
 0x4bb   : > { %v10095_v14 = vpop.eup %6637  ;;  %v4276_v15 = vmul.f32 1.442695, %v4172_v11  ;;  %v4278_v16 = vmul.f32 1.442695, %v4173_v44  ;;  %12349 = vst [vmem:[#allocation33_spill] sm:$0xff] %v10106_v2 }
 0x4bc   : > { %v3211_v56 = vmul.f32 %v10063_v25, %v3210_v57  ;;  %4552 = vmatmul.f32.gmra.mxu2 %v9585_v21  ;;  %v10099_v59 = vpop.eup %6639  ;;  %v2876_v21 = vadd.f32 %v9688_v34, %v12350_v20  ;;  %6336 = vmatmul.msk.f32.gmra.mxu3 %vm5129_vm7, %v3590_v28 }
 0x4bd   : > { %4487 = vmatmul.f32.gmra.mxu0 %v10011_v8  ;;  %6643 = vpow2.f32 %v4276_v15  ;;  %v4381_v29 = vadd.f32 %v10099_v59, %v10095_v14 }
 0x4be   : > { %v3212_v18 = vadd.f32 %v10063_v25, %v3211_v56  ;;  %6645 = vpow2.f32 %v4278_v16  ;;  %v12353_v56 = vld [vmem:[#allocation37_spill] sm:$0xff]  ;;  %v3220_v16 = vor.u32 1.1754944e-38, %v3219_v9  ;;  %v3233_v9 = vand.u32 2147483648, %v10077_v23 }
 0x4bf   : > { %v10104_v38 = vpop.eup %6641  ;;  %v10113_v8 = vpop.f32.mrf.mxu2  ;;  %2877 = vadd.xlane.f32.xlu2 %v2876_v21  ;;  %4382 = vadd.xlane.f32.xlu1 %v4381_v29  ;;  %v3058_v15 = vadd.f32 %v9724_v35, %v12353_v56  ;;  %v12354_v29 = vld [vmem:[#allocation16_spill] sm:$0xff] }
 0x4c0   : > { %v3223_v57 = vmul.f32 %v10104_v38, %v10077_v23  ;;  %v10120_v11 = vpop.xlane.xlu0 %2838  ;;  %v4101_v44 = vpop.xlane.xlu1 %4100  ;;  %v3216_v48 = vsel %vm10124_vm12, %v10063_v25, %v3212_v18  ;;  %vm3228_vm14 = vweird.f32 %v10104_v38  ;;  %v2879_v3 = vadd.f32 %v9708_v5, %v12354_v29 }
 0x4c1   : > { %6647 = vrcp.f32 %v10120_v11  ;;  %v4174_v45 = vsub.f32 %v9648_v26, %v4101_v44  ;;  %v4175_v0 = vsub.f32 %v9664_v30, %v4101_v44  ;;  %v3221_v30 = vsel %vm3218_vm13, %v3220_v16, %v3216_v48  ;;  %vm10167_vm0 = vmor %vm3227_vm15, %vm3228_vm14  ;;  %v12358_v48 = vld [vmem:[#allocation23_spill] sm:$0xff] }
 0x4c2   : > { %v3224_v39 = vsub.f32 1.0, %v3223_v57  ;;  %v10131_v7 = vpop.xlane.xlu2 %4340  ;;  %v3591_v35 = vmul.f32 %v3221_v30, %v3058_v15  ;;  %vm3241_vm4 = vweird.f32 %v10120_v11 }
 0x4c3   : > { %v10138_v63 = vpop.eup %6643  ;;  %v4280_v20 = vmul.f32 1.442695, %v4174_v45  ;;  %v4282_v21 = vmul.f32 1.442695, %v4175_v0  ;;  %v10163_v45 = vpop.f32.mrf.mxu0 }
 0x4c4   : > { %v3225_v28 = vmul.f32 %v10104_v38, %v3224_v39  ;;  %4555 = vmatmul.f32.gmra.mxu2 %v9610_v27  ;;  %v10142_v26 = vpop.eup %6645  ;;  %6337 = vmatmul.msk.f32.gmra.mxu3 %vm5129_vm7, %v3591_v35  ;;  %12355 = vst [vmem:[#allocation13_spill] sm:$0xff] %v10163_v45 }
 0x4c5   : > { %4490 = vmatmul.f32.gmra.mxu0 %v10052_v32  ;;  %6649 = vpow2.f32 %v4280_v20  ;;  %v4384_v27 = vadd.f32 %v10142_v26, %v10138_v63  ;;  %v3231_v32 = vand.u32 2147483647, %v10077_v23 }
 0x4c6   : > { %v3226_v25 = vadd.f32 %v10104_v38, %v3225_v28  ;;  %6651 = vpow2.f32 %v4282_v21  ;;  %v12359_v28 = vld [vmem:[#allocation18_spill] sm:$0xff]  ;;  %v3234_v21 = vor.u32 1.1754944e-38, %v3233_v9  ;;  %v3247_v9 = vand.u32 2147483648, %v10120_v11 }
 0x4c7   : > { %v10147_v18 = vpop.eup %6647  ;;  %v10154_v57 = vpop.f32.mrf.mxu2  ;;  %2880 = vadd.xlane.f32.xlu1 %v2879_v3  ;;  %4385 = vadd.xlane.f32.xlu0 %v4384_v27  ;;  %v3061_v20 = vadd.f32 %v9746_v53, %v12359_v28  ;;  %vm3232_vm2 = vcmp.eq.f32.partialorder %v3231_v32, 8.507059e+37  ;;  %v12361_v32 = vld [vmem:[#allocation39_spill] sm:$0xff] }
 0x4c8   : > { %v3237_v44 = vmul.f32 %v10147_v18, %v10120_v11  ;;  %v10161_v34 = vpop.xlane.xlu0 %2841  ;;  %v4104_v39 = vpop.xlane.xlu1 %4103  ;;  %v3230_v16 = vsel %vm10167_vm0, %v10104_v38, %v3226_v25  ;;  %vm3242_vm3 = vweird.f32 %v10147_v18 }
 0x4c9   : > { %6653 = vrcp.f32 %v10161_v34  ;;  %v4176_v0 = vsub.f32 %v9670_v10, %v4104_v39  ;;  %v4177_v56 = vsub.f32 %v12358_v48, %v4104_v39  ;;  %v12360_v10 = vld [vmem:[#allocation32_spill] sm:$0xff]  ;;  %v2882_v39 = vadd.f32 %v9730_v49, %v12361_v32  ;;  %vm10208_vm5 = vmor %vm3241_vm4, %vm3242_vm3 }
 0x4ca   : > { %v3238_v23 = vsub.f32 1.0, %v3237_v44  ;;  %v10174_v15 = vpop.xlane.xlu2 %4343  ;;  %v3235_v44 = vsel %vm3232_vm2, %v3234_v21, %v3230_v16  ;;  %vm3255_vm9 = vweird.f32 %v10161_v34 }
 0x4cb   : > { %v10181_v30 = vpop.eup %6649  ;;  %v4284_v29 = vmul.f32 1.442695, %v4176_v0  ;;  %v4286_v3 = vmul.f32 1.442695, %v4177_v56  ;;  %v3592_v53 = vmul.f32 %v3235_v44, %v3061_v20 }
 0x4cc   : > { %v3239_v35 = vmul.f32 %v10147_v18, %v3238_v23  ;;  %4558 = vmatmul.f32.gmra.mxu2 %v12360_v10  ;;  %v10185_v27 = vpop.eup %6651  ;;  %v3248_v10 = vor.u32 1.1754944e-38, %v3247_v9  ;;  %v3261_v9 = vand.u32 2147483648, %v10161_v34 }
 0x4cd   : > { %4493 = vmatmul.f32.gmra.mxu0 %v10095_v14  ;;  %6655 = vpow2.f32 %v4284_v29  ;;  %v4387_v5 = vadd.f32 %v10185_v27, %v10181_v30  ;;  %v3245_v14 = vand.u32 2147483647, %v10120_v11  ;;  %6338 = vmatmul.msk.f32.gmra.mxu3 %vm5129_vm7, %v3592_v53 }
 0x4ce   : > { %v3240_v38 = vadd.f32 %v10147_v18, %v3239_v35  ;;  %6657 = vpow2.f32 %v4286_v3  ;;  %v12364_v35 = vld [vmem:[#allocation42_spill] sm:$0xff]  ;;  %v10222_v3 = vpop.f32.mrf.mxu0 }
 0x4cf   : > { %v10190_v25 = vpop.eup %6653  ;;  %v10197_v23 = vpop.f32.mrf.mxu2  ;;  %2883 = vadd.xlane.f32.xlu0 %v2882_v39  ;;  %4388 = vadd.xlane.f32.xlu2 %v4387_v5  ;;  %v3064_v29 = vadd.f32 %v9768_v22, %v12364_v35  ;;  %12365 = vst [vmem:[#allocation34_spill] sm:$0xff] %v10222_v3  ;;  %vm3246_vm6 = vcmp.eq.f32.partialorder %v3245_v14, 8.507059e+37  ;;  %v12367_v14 = vld [vmem:[#allocation19_spill] sm:$0xff] }
 0x4d0   : > { %v3251_v0 = vmul.f32 %v10190_v25, %v10161_v34  ;;  %v10204_v48 = vpop.xlane.xlu0 %2844  ;;  %v4107_v56 = vpop.xlane.xlu1 %4106  ;;  %v3244_v21 = vsel %vm10208_vm5, %v10147_v18, %v3240_v38  ;;  %vm3256_vm8 = vweird.f32 %v10190_v25  ;;  %v12370_v35 = vld [vmem:[#allocation35_spill] sm:$0xff] }
 0x4d1   : > { %6659 = vrcp.f32 %v10204_v48  ;;  %v4178_v11 = vsub.f32 %v9692_v54, %v4107_v56  ;;  %v4179_v28 = vsub.f32 %v9706_v41, %v4107_v56  ;;  %v12366_v41 = vld [vmem:[#allocation17_spill] sm:$0xff]  ;;  %v3249_v5 = vsel %vm3246_vm6, %v3248_v10, %v3244_v21  ;;  %vm10251_vm10 = vmor %vm3255_vm9, %vm3256_vm8 }
 0x4d2   : > { %v3252_v16 = vsub.f32 1.0, %v3251_v0  ;;  %v10215_v20 = vpop.xlane.xlu2 %4346  ;;  %v3593_v22 = vmul.f32 %v3249_v5, %v3064_v29  ;;  %v2885_v0 = vadd.f32 %v9752_v12, %v12367_v14  ;;  %v12375_v12 = vld [vmem:[#allocation75_spill] sm:$0xff]  ;;  %vm3269_vm13 = vweird.f32 %v10204_v48 }
 0x4d3   : > { %v10224_v44 = vpop.eup %6655  ;;  %v4288_v54 = vmul.f32 1.442695, %v4178_v11  ;;  %v4290_v32 = vmul.f32 1.442695, %v4179_v28 }
 0x4d4   : > { %v3253_v53 = vmul.f32 %v10190_v25, %v3252_v16  ;;  %4561 = vmatmul.f32.gmra.mxu2 %v12366_v41  ;;  %v10228_v39 = vpop.eup %6657  ;;  %v3262_v41 = vor.u32 1.1754944e-38, %v3261_v9  ;;  %v3275_v9 = vand.u32 2147483648, %v10204_v48 }
 0x4d5   : > { %4496 = vmatmul.f32.gmra.mxu0 %v10138_v63  ;;  %6661 = vpow2.f32 %v4288_v54  ;;  %v4390_v56 = vadd.f32 %v10228_v39, %v10224_v44  ;;  %v3259_v63 = vand.u32 2147483647, %v10161_v34  ;;  %6339 = vmatmul.msk.f32.gmra.mxu3 %vm5129_vm7, %v3593_v22  ;;  %v12371_v54 = vld [vmem:[#allocation61_spill] sm:$0xff] }
 0x4d6   : > { %v3254_v18 = vadd.f32 %v10190_v25, %v3253_v53  ;;  %6663 = vpow2.f32 %v4290_v32  ;;  %v3067_v32 = vadd.f32 %v9788_v36, %v12371_v54 }
 0x4d7   : > { %v10233_v38 = vpop.eup %6659  ;;  %v10240_v49 = vpop.f32.mrf.mxu2  ;;  %2886 = vadd.xlane.f32.xlu2 %v2885_v0  ;;  %4391 = vadd.xlane.f32.xlu1 %v4390_v56  ;;  %vm3260_vm11 = vcmp.eq.f32.partialorder %v3259_v63, 8.507059e+37  ;;  %v12374_v63 = vld [vmem:[#allocation63_spill] sm:$0xff] }
 0x4d8   : > { %v3265_v16 = vmul.f32 %v10233_v38, %v10204_v48  ;;  %v10247_v11 = vpop.xlane.xlu0 %2847  ;;  %v4110_v28 = vpop.xlane.xlu1 %4109  ;;  %v3258_v53 = vsel %vm10251_vm10, %v10190_v25, %v3254_v18  ;;  %vm3270_vm12 = vweird.f32 %v10233_v38 }
 0x4d9   : > { %6665 = vrcp.f32 %v10247_v11  ;;  %v4180_v34 = vsub.f32 %v9714_v55, %v4110_v28  ;;  %v4181_v29 = vsub.f32 %v12370_v35, %v4110_v28  ;;  %v12372_v55 = vld [vmem:[#allocation20_spill] sm:$0xff]  ;;  %v3263_v28 = vsel %vm3260_vm11, %v3262_v41, %v3258_v53  ;;  %vm10294_vm14 = vmor %vm3269_vm13, %vm3270_vm12 }
 0x4da   : > { %v3266_v21 = vsub.f32 1.0, %v3265_v16  ;;  %v10258_v10 = vpop.xlane.xlu2 %4349  ;;  %v10271_v16 = vpop.f32.mrf.mxu0  ;;  %v3594_v36 = vmul.f32 %v3263_v28, %v3067_v32  ;;  %v12383_v32 = vld [vmem:[#allocation46_spill] sm:$0xff]  ;;  %vm3283_vm2 = vweird.f32 %v10247_v11 }
 0x4db   : > { %v10265_v5 = vpop.eup %6661  ;;  %v4292_v14 = vmul.f32 1.442695, %v4180_v34  ;;  %v4294_v0 = vmul.f32 1.442695, %v4181_v29  ;;  %12373 = vst [vmem:[#allocation76_spill] sm:$0xff] %v10271_v16 }
 0x4dc   : > { %v3267_v22 = vmul.f32 %v10233_v38, %v3266_v21  ;;  %4564 = vmatmul.f32.gmra.mxu2 %v12372_v55  ;;  %v10269_v56 = vpop.eup %6663  ;;  %v2888_v21 = vadd.f32 %v12375_v12, %v12374_v63  ;;  %v3276_v12 = vor.u32 1.1754944e-38, %v3275_v9 }
 0x4dd   : > { %4499 = vmatmul.f32.gmra.mxu0 %v10181_v30  ;;  %6667 = vpow2.f32 %v4292_v14  ;;  %v4393_v34 = vadd.f32 %v10269_v56, %v10265_v5  ;;  %v3273_v30 = vand.u32 2147483647, %v10204_v48  ;;  %6340 = vmatmul.msk.f32.gmra.mxu3 %vm5129_vm7, %v3594_v36  ;;  %v12378_v48 = vld [vmem:[#allocation64_spill] sm:$0xff]  ;;  %v12379_v14 = vld [vmem:[#allocation47_spill] sm:$0xff] }
 0x4de   : > { %v3268_v25 = vadd.f32 %v10233_v38, %v3267_v22  ;;  %6669 = vpow2.f32 %v4294_v0  ;;  %v12380_v36 = vld [vmem:[#allocation24_spill] sm:$0xff] }
 0x4df   : > { %v10276_v18 = vpop.eup %6665  ;;  %v10283_v35 = vpop.f32.mrf.mxu2  ;;  %2889 = vadd.xlane.f32.xlu1 %v2888_v21  ;;  %4394 = vadd.xlane.f32.xlu0 %v4393_v34  ;;  %v3070_v63 = vadd.f32 %v9813_v4, %v12380_v36  ;;  %vm3274_vm15 = vcmp.eq.f32.partialorder %v3273_v30, 8.507059e+37  ;;  %v3289_v30 = vand.u32 2147483648, %v10247_v11 }
 0x4e0   : > { %v3279_v29 = vmul.f32 %v10276_v18, %v10247_v11  ;;  %v10290_v53 = vpop.xlane.xlu0 %2850  ;;  %v4113_v54 = vpop.xlane.xlu1 %4112  ;;  %v3272_v28 = vsel %vm10294_vm14, %v10233_v38, %v3268_v25  ;;  %vm3284_vm0 = vweird.f32 %v10276_v18 }
 0x4e1   : > { %6671 = vrcp.f32 %v10290_v53  ;;  %v4182_v22 = vsub.f32 %v12378_v48, %v4113_v54  ;;  %v4183_v0 = vsub.f32 %v12379_v14, %v4113_v54  ;;  %v12381_v48 = vld [vmem:[#allocation56_spill] sm:$0xff]  ;;  %v3277_v14 = vsel %vm3274_vm15, %v3276_v12, %v3272_v28  ;;  %vm10337_vm3 = vmor %vm3283_vm2, %vm3284_vm0 }
 0x4e2   : > { %v3280_v41 = vsub.f32 1.0, %v3279_v29  ;;  %v10301_v55 = vpop.xlane.xlu2 %4352  ;;  %v3595_v4 = vmul.f32 %v3277_v14, %v3070_v63  ;;  %v10319_v9 = vpop.f32.mrf.mxu0  ;;  %v3290_v3 = vor.u32 1.1754944e-38, %v3289_v30  ;;  %v3303_v30 = vand.u32 2147483648, %v10290_v53 }
 0x4e3   : > { %v10308_v16 = vpop.eup %6667  ;;  %v4296_v34 = vmul.f32 1.442695, %v4182_v22  ;;  %v4298_v29 = vmul.f32 1.442695, %v4183_v0  ;;  %v3287_v0 = vand.u32 2147483647, %v10247_v11  ;;  %vm3297_vm6 = vweird.f32 %v10290_v53 }
 0x4e4   : > { %v3281_v21 = vmul.f32 %v10276_v18, %v3280_v41  ;;  %4567 = vmatmul.f32.gmra.mxu2 %v12381_v48  ;;  %v10312_v54 = vpop.eup %6669  ;;  %v2891_v41 = vadd.f32 %v9796_v62, %v12383_v32  ;;  %v12386_v11 = vld [vmem:[#allocation71_spill] sm:$0xff]  ;;  %v12392_v62 = vld [vmem:[#allocation65_spill] sm:$0xff]  ;;  %v3304_v6 = vor.u32 1.1754944e-38, %v3303_v30 }
 0x4e5   : > { %12382 = vst [vmem:[#allocation14_spill] sm:$0xff] %v10312_v54  ;;  %4502 = vmatmul.f32.gmra.mxu0 %v10224_v44  ;;  %6673 = vpow2.f32 %v4296_v34  ;;  %v4396_v22 = vadd.f32 %v10312_v54, %v10308_v16  ;;  %6341 = vmatmul.msk.f32.gmra.mxu3 %vm5129_vm7, %v3595_v4  ;;  %v12387_v34 = vld [vmem:[#allocation59_spill] sm:$0xff]  ;;  %v12388_v4 = vld [vmem:[#allocation72_spill] sm:$0xff]  ;;  %vm3288_vm4 = vcmp.eq.f32.partialorder %v3287_v0, 8.507059e+37  ;;  %v12391_v0 = vld [vmem:[#allocation69_spill] sm:$0xff] }
 0x4e6   : > { %v3282_v38 = vadd.f32 %v10276_v18, %v3281_v21  ;;  %6675 = vpow2.f32 %v4298_v29  ;;  %v3073_v32 = vadd.f32 %v9838_v47, %v12388_v4 }
 0x4e7   : > { %v10317_v25 = vpop.eup %6671  ;;  %v10326_v44 = vpop.f32.mrf.mxu2  ;;  %2892 = vadd.xlane.f32.xlu0 %v2891_v41  ;;  %4397 = vadd.xlane.f32.xlu2 %v4396_v22 }
 0x4e8   : > { %v3293_v28 = vmul.f32 %v10317_v25, %v10290_v53  ;;  %v10333_v36 = vpop.xlane.xlu0 %2853  ;;  %v4116_v63 = vpop.xlane.xlu1 %4115  ;;  %v3286_v14 = vsel %vm10337_vm3, %v10276_v18, %v3282_v38  ;;  %vm3298_vm5 = vweird.f32 %v10317_v25 }
 0x4e9   : > { %6677 = vrcp.f32 %v10333_v36  ;;  %v4184_v21 = vsub.f32 %v12386_v11, %v4116_v63  ;;  %v4185_v29 = vsub.f32 %v12387_v34, %v4116_v63  ;;  %v12389_v11 = vld [vmem:[#allocation60_spill] sm:$0xff]  ;;  %v3291_v34 = vsel %vm3288_vm4, %v3290_v3, %v3286_v14  ;;  %vm10380_vm8 = vmor %vm3297_vm6, %vm3298_vm5 }
 0x4ea   : > { %v3294_v12 = vsub.f32 1.0, %v3293_v28  ;;  %v10344_v48 = vpop.xlane.xlu2 %4355  ;;  %v3596_v47 = vmul.f32 %v3291_v34, %v3073_v32  ;;  %v10376_v32 = vpop.f32.mrf.mxu0  ;;  %v3317_v30 = vand.u32 2147483648, %v10333_v36  ;;  %vm3311_vm11 = vweird.f32 %v10333_v36 }
 0x4eb   : > { %v10351_v45 = vpop.eup %6673  ;;  %v4300_v22 = vmul.f32 1.442695, %v4184_v21  ;;  %v4302_v28 = vmul.f32 1.442695, %v4185_v29 }
 0x4ec   : > { %v3295_v41 = vmul.f32 %v10317_v25, %v3294_v12  ;;  %4570 = vmatmul.f32.gmra.mxu2 %v12389_v11  ;;  %v10355_v63 = vpop.eup %6675  ;;  %v2894_v12 = vadd.f32 %v12392_v62, %v12391_v0  ;;  %v12396_v11 = vld [vmem:[#allocation22_spill] sm:$0xff]  ;;  %v12397_v62 = vld [vmem:[#allocation51_spill] sm:$0xff] }
 0x4ed   : > { %12390 = vst [vmem:[#allocation36_spill] sm:$0xff] %v10355_v63  ;;  %4505 = vmatmul.f32.gmra.mxu0 %v10265_v5  ;;  %6679 = vpow2.f32 %v4300_v22  ;;  %v4399_v21 = vadd.f32 %v10355_v63, %v10351_v45  ;;  %v3301_v5 = vand.u32 2147483647, %v10290_v53  ;;  %6342 = vmatmul.msk.f32.gmra.mxu3 %vm5129_vm7, %v3596_v47  ;;  %v12395_v22 = vld [vmem:[#allocation40_spill] sm:$0xff]  ;;  %v3076_v2 = vadd.f32 %v9864_v46, %v12397_v62 }
 0x4ee   : > { %v3296_v18 = vadd.f32 %v10317_v25, %v3295_v41  ;;  %6681 = vpow2.f32 %v4302_v28  ;;  %v12401_v41 = vld [vmem:[#allocation78_spill] sm:$0xff] }
 0x4ef   : > { %v10360_v38 = vpop.eup %6677  ;;  %v10367_v3 = vpop.f32.mrf.mxu2  ;;  %2895 = vadd.xlane.f32.xlu2 %v2894_v12  ;;  %4400 = vadd.xlane.f32.xlu1 %v4399_v21  ;;  %vm3302_vm9 = vcmp.eq.f32.partialorder %v3301_v5, 8.507059e+37  ;;  %v12400_v5 = vld [vmem:[#allocation52_spill] sm:$0xff] }
 0x4f0   : > { %v3307_v29 = vmul.f32 %v10360_v38, %v10333_v36  ;;  %v10374_v14 = vpop.xlane.xlu0 %2856  ;;  %v4119_v4 = vpop.xlane.xlu1 %4118  ;;  %v3300_v0 = vsel %vm10380_vm8, %v10317_v25, %v3296_v18  ;;  %vm3312_vm10 = vweird.f32 %v10360_v38 }
 0x4f1   : > { %6683 = vrcp.f32 %v10374_v14  ;;  %v4186_v28 = vsub.f32 %v12395_v22, %v4119_v4  ;;  %v4187_v34 = vsub.f32 %v12396_v11, %v4119_v4  ;;  %v12398_v22 = vld [vmem:[#allocation41_spill] sm:$0xff]  ;;  %v3305_v11 = vsel %vm3302_vm9, %v3304_v6, %v3300_v0  ;;  %vm10421_vm12 = vmor %vm3311_vm11, %vm3312_vm10 }
 0x4f2   : > { %v3308_v53 = vsub.f32 1.0, %v3307_v29  ;;  %v10387_v47 = vpop.xlane.xlu2 %4358  ;;  %v3597_v46 = vmul.f32 %v3305_v11, %v3076_v2  ;;  %v3329_v62 = vand.u32 2147483647, %v10374_v14  ;;  %vm3325_vm15 = vweird.f32 %v10374_v14 }
 0x4f3   : > { %v10394_v63 = vpop.eup %6679  ;;  %v4304_v21 = vmul.f32 1.442695, %v4186_v28  ;;  %v4306_v29 = vmul.f32 1.442695, %v4187_v34 }
 0x4f4   : > { %v3309_v12 = vmul.f32 %v10360_v38, %v3308_v53  ;;  %4573 = vmatmul.f32.gmra.mxu2 %v12398_v22  ;;  %v10398_v4 = vpop.eup %6681  ;;  %v2897_v53 = vadd.f32 %v12401_v41, %v12400_v5  ;;  %v12406_v5 = vld [vmem:[#allocation74_spill] sm:$0xff]  ;;  %vm3330_vm2 = vcmp.eq.f32.partialorder %v3329_v62, 8.507059e+37 }
 0x4f5   : > { %12399 = vst [vmem:[#allocation15_spill] sm:$0xff] %v10398_v4  ;;  %4508 = vmatmul.f32.gmra.mxu0 %v10308_v16  ;;  %6685 = vpow2.f32 %v4304_v21  ;;  %v4402_v28 = vadd.f32 %v10398_v4, %v10394_v63  ;;  %v3315_v16 = vand.u32 2147483647, %v10333_v36  ;;  %6343 = vmatmul.msk.f32.gmra.mxu3 %vm5129_vm7, %v3597_v46  ;;  %v12404_v36 = vld [vmem:[#allocation21_spill] sm:$0xff]  ;;  %v3079_v41 = vadd.f32 %v9900_v61, %v12406_v5  ;;  %v10435_v4 = vpop.f32.mrf.mxu0  ;;  %v12412_v5 = vld [vmem:[#allocation67_spill] sm:$0xff] }
 0x4f6   : > { %v3310_v25 = vadd.f32 %v10360_v38, %v3309_v12  ;;  %6687 = vpow2.f32 %v4306_v29  ;;  %v12405_v29 = vld [vmem:[#allocation66_spill] sm:$0xff] }
 0x4f7   : > { %v10403_v18 = vpop.eup %6683  ;;  %v10410_v6 = vpop.f32.mrf.mxu2  ;;  %2898 = vadd.xlane.f32.xlu1 %v2897_v53  ;;  %4403 = vadd.xlane.f32.xlu0 %v4402_v28  ;;  %v3318_v53 = vor.u32 1.1754944e-38, %v3317_v30  ;;  %vm3316_vm13 = vcmp.eq.f32.partialorder %v3315_v16, 8.507059e+37 }
 0x4f8   : > { %v3321_v2 = vmul.f32 %v10403_v18, %v10374_v14  ;;  %v10417_v34 = vpop.xlane.xlu0 %2859  ;;  %v4122_v0 = vpop.xlane.xlu1 %4121  ;;  %v3314_v46 = vsel %vm10421_vm12, %v10360_v38, %v3310_v25  ;;  %v12409_v38 = vld [vmem:[#allocation27_spill] sm:$0xff]  ;;  %vm3326_vm14 = vweird.f32 %v10403_v18 }
 0x4f9   : > { %6689 = vrcp.f32 %v10417_v34  ;;  %v4188_v21 = vsub.f32 %v12404_v36, %v4122_v0  ;;  %v4189_v22 = vsub.f32 %v12405_v29, %v4122_v0  ;;  %v12407_v0 = vld [vmem:[#allocation53_spill] sm:$0xff]  ;;  %v3319_v54 = vsel %vm3316_vm13, %v3318_v53, %v3314_v46  ;;  %vm10462_vm0 = vmor %vm3325_vm15, %vm3326_vm14 }
 0x4fa   : > { %v3322_v12 = vsub.f32 1.0, %v3321_v2  ;;  %v10428_v11 = vpop.xlane.xlu2 %4361  ;;  %v2900_v61 = vadd.f32 %v9878_v31, %v12409_v38  ;;  %v3598_v30 = vmul.f32 %v3319_v54, %v3079_v41  ;;  %vm3339_vm4 = vweird.f32 %v10417_v34 }
 0x4fb   : > { %v10437_v28 = vpop.eup %6685  ;;  %v4308_v36 = vmul.f32 1.442695, %v4188_v21  ;;  %v4310_v58 = vmul.f32 1.442695, %v4189_v22  ;;  %v3343_v62 = vand.u32 2147483647, %v10417_v34 }
 0x4fc   : > { %v3323_v2 = vmul.f32 %v10403_v18, %v3322_v12  ;;  %4576 = vmatmul.f32.gmra.mxu2 %v12407_v0  ;;  %v10441_v29 = vpop.eup %6687  ;;  %v3331_v12 = vand.u32 2147483648, %v10374_v14  ;;  %v12413_v14 = vld [vmem:[#allocation45_spill] sm:$0xff]  ;;  %v12414_v0 = vld [vmem:[#allocation28_spill] sm:$0xff] }
 0x4fd   : > { %12408 = vst [vmem:[#allocation37_spill] sm:$0xff] %v10441_v29  ;;  %4511 = vmatmul.f32.gmra.mxu0 %v10351_v45  ;;  %6691 = vpow2.f32 %v4308_v36  ;;  %v4405_v21 = vadd.f32 %v10441_v29, %v10437_v28  ;;  %6344 = vmatmul.msk.f32.gmra.mxu3 %vm5129_vm7, %v3598_v30  ;;  %v3082_v38 = vadd.f32 %v9938_v1, %v12414_v0  ;;  %v10483_v29 = vpop.f32.mrf.mxu0  ;;  %v3345_v1 = vand.u32 2147483648, %v10417_v34 }
 0x4fe   : > { %v3324_v25 = vadd.f32 %v10403_v18, %v3323_v2  ;;  %6693 = vpow2.f32 %v4310_v58  ;;  %v3332_v30 = vor.u32 1.1754944e-38, %v3331_v12  ;;  %vm3344_vm6 = vcmp.eq.f32.partialorder %v3343_v62, 8.507059e+37 }
 0x4ff   : > { %v10448_v16 = vpop.eup %6689  ;;  %v10454_v45 = vpop.f32.mrf.mxu2  ;;  %2901 = vadd.xlane.f32.xlu0 %v2900_v61  ;;  %4406 = vadd.xlane.f32.xlu2 %v4405_v21 }
 0x500   : > { %v3335_v31 = vmul.f32 %v10448_v16, %v10417_v34  ;;  %v10460_v54 = vpop.xlane.xlu0 %2862  ;;  %v4125_v22 = vpop.xlane.xlu1 %4124  ;;  %v3328_v36 = vsel %vm10462_vm0, %v10403_v18, %v3324_v25  ;;  %vm3340_vm3 = vweird.f32 %v10448_v16 }
 0x501   : > { %6695 = vrcp.f32 %v10460_v54  ;;  %v4190_v41 = vsub.f32 %v12412_v5, %v4125_v22  ;;  %v4191_v53 = vsub.f32 %v12413_v14, %v4125_v22  ;;  %v12415_v22 = vld [vmem:[#allocation62_spill] sm:$0xff]  ;;  %v3333_v18 = vsel %vm3330_vm2, %v3332_v30, %v3328_v36  ;;  %vm10492_vm5 = vmor %vm3339_vm4, %vm3340_vm3 }
 0x502   : > { %v3336_v58 = vsub.f32 1.0, %v3335_v31  ;;  %v10469_v2 = vpop.xlane.xlu2 %4364  ;;  %v3599_v12 = vmul.f32 %v3333_v18, %v3082_v38  ;;  %v12421_v18 = vld [vmem:[#allocation5_spill] sm:$0xff]  ;;  %vm3353_vm9 = vweird.f32 %v10460_v54 }
 0x503   : > { %v10476_v61 = vpop.eup %6691  ;;  %v4312_v31 = vmul.f32 1.442695, %v4190_v41  ;;  %v4314_v5 = vmul.f32 1.442695, %v4191_v53  ;;  %v12419_v41 = vld [vmem:[#allocation55_spill] sm:$0xff] }
 0x504   : > { %v3337_v21 = vmul.f32 %v10448_v16, %v3336_v58  ;;  %4579 = vmatmul.f32.gmra.mxu2 %v12415_v22  ;;  %v10481_v14 = vpop.eup %6693  ;;  %v2903_v53 = vadd.f32 %v9914_v50, %v12419_v41  ;;  %v6299_v50 = vld [vmem:[%s11730_s8 + $0x8] sm:$0xff] }
 0x505   : > { %12416 = vst [vmem:[#allocation16_spill] sm:$0xff] %v10481_v14  ;;  %4514 = vmatmul.f32.gmra.mxu0 %v10394_v63  ;;  %6697 = vpow2.f32 %v4312_v31  ;;  %v4408_v63 = vadd.f32 %v10481_v14, %v10476_v61  ;;  %6345 = vmatmul.msk.f32.gmra.mxu3 %vm5129_vm7, %v3599_v12  ;;  %v12422_v41 = vld [vmem:[#allocation58_spill] sm:$0xff] }
 0x506   : > { %v3338_v25 = vadd.f32 %v10448_v16, %v3337_v21  ;;  %6699 = vpow2.f32 %v4314_v5  ;;  %v3346_v21 = vor.u32 1.1754944e-38, %v3345_v1  ;;  %v12420_v5 = vld [vmem:[#allocation49_spill] sm:$0xff]  ;;  %5241 = vmatpush.msra.mxu1 %v6299_v50  ;;  %v3085_v58 = vadd.f32 %v9982_v19, %v12422_v41 }
 0x507   : > { %v6696_v46 = vpop.eup %6695  ;;  %v10500_v36 = vpop.f32.mrf.mxu2  ;;  %2904 = vadd.xlane.f32.xlu2 %v2903_v53  ;;  %4409 = vadd.xlane.f32.xlu1 %v4408_v63  ;;  %v3359_v1 = vand.u32 2147483648, %v10460_v54 }
 0x508   : > { %v3349_v34 = vmul.f32 %v6696_v46, %v10460_v54  ;;  %v10504_v0 = vpop.xlane.xlu0 %2865  ;;  %v4128_v38 = vpop.xlane.xlu1 %4127  ;;  %v3342_v30 = vsel %vm10492_vm5, %v10448_v16, %v3338_v25  ;;  %v3357_v16 = vand.u32 2147483647, %v10460_v54  ;;  %vm3354_vm8 = vweird.f32 %v6696_v46 }
 0x509   : > { %6701 = vrcp.f32 %v10504_v0  ;;  %v4192_v22 = vsub.f32 %v12420_v5, %v4128_v38  ;;  %v4193_v12 = vsub.f32 %v12421_v18, %v4128_v38  ;;  %v3347_v53 = vsel %vm3344_vm6, %v3346_v21, %v3342_v30  ;;  %v12424_v5 = vld [vmem:[#allocation54_spill] sm:$0xff]  ;;  %v10530_v18 = vpop.f32.mrf.mxu0  ;;  %vm3355_vm10 = vmor %vm3353_vm9, %vm3354_vm8 }
 0x50a   : > { %v3350_v31 = vsub.f32 1.0, %v3349_v34  ;;  %v10519_v25 = vpop.xlane.xlu2 %4367  ;;  %v3600_v50 = vmul.f32 %v3347_v53, %v3085_v58  ;;  %vm3358_vm11 = vcmp.eq.f32.partialorder %v3357_v16, 8.507059e+37  ;;  %v12428_v58 = vld [vmem:[#allocation38_spill] sm:$0xff]  ;;  %vm3367_vm13 = vweird.f32 %v10504_v0 }
 0x50b   : > { %12423 = vst [vmem:[#allocation23_spill] sm:$0xff] %v10519_v25  ;;  %v10521_v63 = vpop.eup %6697  ;;  %v4316_v62 = vmul.f32 1.442695, %v4192_v22  ;;  %v4318_v34 = vmul.f32 1.442695, %v4193_v12  ;;  %v12426_v22 = vld [vmem:[#allocation57_spill] sm:$0xff]  ;;  %v3088_v53 = vadd.f32 %v10027_v24, %v12428_v58 }
 0x50c   : > { %v3351_v14 = vmul.f32 %v6696_v46, %v3350_v31  ;;  %4582 = vmatmul.f32.gmra.mxu2 %v12424_v5  ;;  %v10524_v38 = vpop.eup %6699  ;;  %v3360_v31 = vor.u32 1.1754944e-38, %v3359_v1  ;;  %v2906_v12 = vadd.f32 %v9962_v51, %v12426_v22  ;;  %v12429_v5 = vld [vmem:[#allocation11_spill] sm:$0xff] }
 0x50d   : > { %12425 = vst [vmem:[#allocation18_spill] sm:$0xff] %v10524_v38  ;;  %4517 = vmatmul.f32.gmra.mxu0 %v10437_v28  ;;  %6703 = vpow2.f32 %v4316_v62  ;;  %v4411_v30 = vadd.f32 %v10524_v38, %v10521_v63  ;;  %6346 = vmatmul.msk.f32.gmra.mxu3 %vm5129_vm7, %v3600_v50 }
 0x50e   : > { %v3352_v19 = vadd.f32 %v6696_v46, %v3351_v14  ;;  %6705 = vpow2.f32 %v4318_v34  ;;  %v3373_v34 = vand.u32 2147483648, %v10504_v0 }
 0x50f   : > { %v6702_v21 = vpop.eup %6701  ;;  %v10534_v41 = vpop.f32.mrf.mxu2  ;;  %4412 = vadd.xlane.f32.xlu0 %v4411_v30  ;;  %2907 = vadd.xlane.f32.xlu1 %v2906_v12 }
 0x510   : > { %12427 = vst [vmem:[#allocation32_spill] sm:$0xff] %v10534_v41  ;;  %v3363_v28 = vmul.f32 %v6702_v21, %v10504_v0  ;;  %v3356_v54 = vsel %vm3355_vm10, %v6696_v46, %v3352_v19  ;;  %v4131_v1 = vpop.xlane.xlu1 %4130  ;;  %vm3368_vm12 = vweird.f32 %v6702_v21  ;;  %v3371_v46 = vand.u32 2147483647, %v10504_v0  ;;  %v12431_v19 = vld [vmem:[#allocation77_spill] sm:$0xff] }
 0x511   : > { %v3361_v14 = vsel %vm3358_vm11, %v3360_v31, %v3356_v54  ;;  %v4194_v51 = vsub.f32 %v9920_v40, %v4131_v1  ;;  %v4195_v22 = vsub.f32 %v12429_v5, %v4131_v1  ;;  %v12433_v40 = vld [vmem:[#allocation26_spill] sm:$0xff]  ;;  %vm3369_vm14 = vmor %vm3367_vm13, %vm3368_vm12  ;;  %v3374_v58 = vor.u32 1.1754944e-38, %v3373_v34 }
 0x512   : > { %v3364_v62 = vsub.f32 1.0, %v3363_v28  ;;  %v10543_v16 = vpop.xlane.xlu2 %4370  ;;  %v3601_v50 = vmul.f32 %v3361_v14, %v3088_v53  ;;  %v2909_v28 = vadd.f32 %v10005_v37, %v12433_v40  ;;  %vm3372_vm15 = vcmp.eq.f32.partialorder %v3371_v46, 8.507059e+37 }
 0x513   : > { %12430 = vst [vmem:[#allocation39_spill] sm:$0xff] %v10543_v16  ;;  %v6704_v38 = vpop.eup %6703  ;;  %v4320_v24 = vmul.f32 1.442695, %v4194_v51  ;;  %v4322_v31 = vmul.f32 1.442695, %v4195_v22  ;;  %v12437_v51 = vld [vmem:[#allocation25_spill] sm:$0xff] }
 0x514   : > { %v3365_v25 = vmul.f32 %v6702_v21, %v3364_v62  ;;  %4585 = vmatmul.f32.gmra.mxu2 %v12431_v19  ;;  %v10547_v30 = vpop.eup %6705  ;;  %v12438_v22 = vld [vmem:[#allocation6_spill] sm:$0xff] }
 0x515   : > { %12432 = vst [vmem:[#allocation42_spill] sm:$0xff] %v10547_v30  ;;  %4520 = vmatmul.f32.gmra.mxu0 %v10476_v61  ;;  %v4414_v54 = vadd.f32 %v10547_v30, %v6704_v38  ;;  %6707 = vpow2.f32 %v4320_v24  ;;  %6347 = vmatmul.msk.f32.gmra.mxu3 %vm5129_vm7, %v3601_v50  ;;  %v10557_v61 = vpop.f32.mrf.mxu0  ;;  %vm4651_vm8 = vweird.f32 %v12438_v22 }
 0x516   : > { %v3366_v12 = vadd.f32 %v6702_v21, %v3365_v25  ;;  %6709 = vpow2.f32 %v4322_v31  ;;  %v12435_v25 = vld [vmem:[#allocation44_spill] sm:$0xff] }
 0x517   : > { %v10554_v14 = vpop.f32.mrf.mxu2  ;;  %2910 = vadd.xlane.f32.xlu0 %v2909_v28  ;;  %4415 = vadd.xlane.f32.xlu2 %v4414_v54  ;;  %v3091_v37 = vadd.f32 %v10070_v52, %v12435_v25  ;;  %v12443_v28 = vld [vmem:[#allocation10_spill] sm:$0xff] }
 0x518   : > { %12434 = vst [vmem:[#allocation17_spill] sm:$0xff] %v10554_v14  ;;  %v3370_v53 = vsel %vm3369_vm14, %v6702_v21, %v3366_v12  ;;  %v12441_v12 = vld [vmem:[#allocation8_spill] sm:$0xff] }
 0x519   : > { %v3375_v0 = vsel %vm3372_vm15, %v3374_v58, %v3370_v53 }
 0x51a   : > { %v2869_v62 = vpop.xlane.xlu2 %2868  ;;  %v10561_v1 = vpop.xlane.xlu1 %4373  ;;  %v3602_v34 = vmul.f32 %v3375_v0, %v3091_v37 }
 0x51b   : > { %6711 = vrcp.f32 %v2869_v62  ;;  %12436 = vst [vmem:[#allocation19_spill] sm:$0xff] %v10561_v1  ;;  %v6708_v5 = vpop.eup %6707  ;;  %v3387_v53 = vand.u32 2147483648, %v2869_v62  ;;  %v3385_v25 = vand.u32 2147483647, %v2869_v62  ;;  %vm3381_vm2 = vweird.f32 %v2869_v62 }
 0x51c   : > { %4588 = vmatmul.f32.gmra.mxu2 %v12437_v51  ;;  %6713 = vrcp.f32 %v12438_v22  ;;  %v10566_v21 = vpop.eup %6709 }
 0x51d   : > { %4523 = vmatmul.f32.gmra.mxu0 %v10521_v63  ;;  %12439 = vst [vmem:[#allocation35_spill] sm:$0xff] %v10566_v21  ;;  %v4417_v46 = vadd.f32 %v10566_v21, %v6708_v5  ;;  %6348 = vmatmul.msk.f32.gmra.mxu3 %vm5129_vm7, %v3602_v34  ;;  %v10574_v24 = vpop.f32.mrf.mxu0  ;;  %6715 = vrcp.f32 %v12441_v12  ;;  %vm3386_vm4 = vcmp.eq.f32.partialorder %v3385_v25, 8.507059e+37 }
 0x51f   : > { %v10569_v50 = vpop.f32.mrf.mxu2  ;;  %4418 = vadd.xlane.f32.xlu1 %v4417_v46 }
 0x520   : > { %12440 = vst [vmem:[#allocation61_spill] sm:$0xff] %v10569_v50 }
 0x521   : > { %v6712_v52 = vpop.eup %6711 }
 0x522   : > { %v10572_v19 = vpop.eup %6713  ;;  %v3377_v31 = vmul.f32 %v6712_v52, %v2869_v62  ;;  %v10577_v40 = vpop.xlane.xlu0 %4376  ;;  %vm3382_vm0 = vweird.f32 %v6712_v52 }
 0x523   : > { %12442 = vst [vmem:[#allocation20_spill] sm:$0xff] %v10577_v40  ;;  %v10579_v63 = vpop.xlane.xlu1 %2871  ;;  %v4647_v58 = vmul.f32 %v10572_v19, %v12438_v22  ;;  %v10588_v51 = vpop.eup %6715  ;;  %vm3383_vm3 = vmor %vm3381_vm2, %vm3382_vm0  ;;  %vm4652_vm5 = vweird.f32 %v10572_v19  ;;  %vm4665_vm2 = vweird.f32 %v12441_v12 }
 0x524   : > { %4591 = vmatmul.f32.gmra.mxu2 %v12443_v28  ;;  %v3378_v54 = vsub.f32 1.0, %v3377_v31  ;;  %6717 = vrcp.f32 %v10579_v63  ;;  %v4661_v1 = vmul.f32 %v10588_v51, %v12441_v12  ;;  %vm3395_vm9 = vweird.f32 %v10579_v63  ;;  %vm10633_vm10 = vmor %vm4651_vm8, %vm4652_vm5 }
 0x525   : > { %4526 = vmatmul.f32.gmra.mxu0 %v6704_v38  ;;  %6719 = vrcp.f32 %v10000_v33  ;;  %v4648_v46 = vsub.f32 1.0, %v4647_v58  ;;  %v3388_v38 = vor.u32 1.1754944e-38, %v3387_v53  ;;  %vm4666_vm13 = vweird.f32 %v10588_v51 }
 0x526   : > { %v3379_v0 = vmul.f32 %v6712_v52, %v3378_v54  ;;  %v12446_v54 = vld [vmem:[#allocation7_spill] sm:$0xff] }
 0x527   : > { %v10585_v37 = vpop.f32.mrf.mxu2 }
 0x528   : > { %12444 = vst [vmem:[#allocation63_spill] sm:$0xff] %v10585_v37  ;;  %v3380_v34 = vadd.f32 %v6712_v52, %v3379_v0  ;;  %v12447_v0 = vld [vmem:[#allocation50_spill] sm:$0xff]  ;;  %v10599_v37 = vpop.f32.mrf.mxu0 }
 0x529   : > { %v3094_v62 = vadd.f32 %v10113_v8, %v12447_v0  ;;  %v4655_v8 = vand.u32 2147483647, %v12438_v22 }
 0x52a   : > { %v3384_v31 = vsel %vm3383_vm3, %v6712_v52, %v3380_v34  ;;  %v6718_v28 = vpop.eup %6717  ;;  %v10590_v21 = vpop.xlane.xlu0 %2874  ;;  %v4649_v52 = vmul.f32 %v10572_v19, %v4648_v46 }
 0x52b   : > { %v10592_v40 = vpop.xlane.xlu2 %4379  ;;  %v3389_v30 = vsel %vm3386_vm4, %v3388_v38, %v3384_v31  ;;  %v3391_v58 = vmul.f32 %v6718_v28, %v10579_v63  ;;  %6721 = vrcp.f32 %v10590_v21  ;;  %v10604_v53 = vpop.eup %6719  ;;  %v4657_v31 = vand.u32 2147483648, %v12438_v22  ;;  %vm10687_vm4 = vmor %vm4665_vm2, %vm4666_vm13 }
 0x52c   : > { %12445 = vst [vmem:[#allocation75_spill] sm:$0xff] %v10592_v40  ;;  %4594 = vmatmul.f32.gmra.mxu2 %v12446_v54  ;;  %v3603_v34 = vmul.f32 %v3389_v30, %v3094_v62  ;;  %v4662_v54 = vsub.f32 1.0, %v4661_v1  ;;  %v4675_v0 = vmul.f32 %v10604_v53, %v10000_v33  ;;  %v4650_v46 = vadd.f32 %v10572_v19, %v4649_v52 }
 0x52d   : > { %4529 = vmatmul.f32.gmra.mxu0 %v6708_v5  ;;  %v3392_v25 = vsub.f32 1.0, %v3391_v58  ;;  %v3401_v5 = vand.u32 2147483648, %v10579_v63  ;;  %6723 = vrcp.f32 %v10045_v17  ;;  %vm3396_vm6 = vweird.f32 %v6718_v28 }
 0x52e   : > { %6349 = vmatmul.msk.f32.gmra.mxu3 %vm5129_vm7, %v3603_v34  ;;  %v3399_v1 = vand.u32 2147483647, %v10579_v63  ;;  %v4658_v58 = vor.u32 1.1754944e-38, %v4657_v31  ;;  %v4663_v52 = vmul.f32 %v10588_v51, %v4662_v54  ;;  %vm10637_vm11 = vcmp.eq.f32.partialorder %v4655_v8, 8.507059e+37  ;;  %vm3397_vm12 = vmor %vm3395_vm9, %vm3396_vm6  ;;  %v12454_v54 = vld [vmem:[#allocation29_spill] sm:$0xff] }
 0x52f   : > { %v10606_v38 = vpop.f32.mrf.mxu2  ;;  %v3393_v40 = vmul.f32 %v6718_v28, %v3392_v25  ;;  %v3402_v31 = vor.u32 1.1754944e-38, %v3401_v5  ;;  %v4676_v63 = vsub.f32 1.0, %v4675_v0  ;;  %v3097_v16 = vadd.f32 %v10154_v57, %v12454_v54 }
 0x530   : > { %12448 = vst [vmem:[#allocation64_spill] sm:$0xff] %v10606_v38  ;;  %vm3400_vm14 = vcmp.eq.f32.partialorder %v3399_v1, 8.507059e+37  ;;  %v4664_v57 = vadd.f32 %v10588_v51, %v4663_v52  ;;  %vm3409_vm0 = vweird.f32 %v10590_v21 }
 0x531   : > { %v10616_v30 = vpop.eup %6721  ;;  %v3394_v62 = vadd.f32 %v6718_v28, %v3393_v40  ;;  %v4677_v22 = vmul.f32 %v10604_v53, %v4676_v63 }
 0x532   : > { %v3405_v25 = vmul.f32 %v10616_v30, %v10590_v21  ;;  %v10625_v38 = vpop.xlane.xlu1 %4382  ;;  %vm3410_vm15 = vweird.f32 %v10616_v30 }
 0x533   : > { %v10623_v34 = vpop.xlane.xlu2 %2877  ;;  %12449 = vst [vmem:[#allocation47_spill] sm:$0xff] %v10625_v38  ;;  %v3398_v50 = vsel %vm3397_vm12, %v6718_v28, %v3394_v62  ;;  %vm10666_vm3 = vmor %vm3409_vm0, %vm3410_vm15 }
 0x534   : > { %4597 = vmatmul.f32.gmra.mxu2 %v9970_v13  ;;  %6725 = vrcp.f32 %v10623_v34  ;;  %v3406_v38 = vsub.f32 1.0, %v3405_v25  ;;  %v4654_v13 = vsel %vm10633_vm10, %v10572_v19, %v4650_v46  ;;  %v3403_v41 = vsel %vm3400_vm14, %v3402_v31, %v3398_v50  ;;  %v10650_v25 = vpop.eup %6723 }
 0x535   : > { %v3415_v19 = vand.u32 2147483648, %v10590_v21  ;;  %v3604_v46 = vmul.f32 %v3403_v41, %v3097_v16  ;;  %v4659_v0 = vsel %vm10637_vm11, %v4658_v58, %v4654_v13  ;;  %6727 = vrcp.f32 %v10088_v43 }
 0x536   : > { %v3407_v8 = vmul.f32 %v10616_v30, %v3406_v38  ;;  %v3413_v38 = vand.u32 2147483647, %v10590_v21  ;;  %v4669_v16 = vand.u32 2147483647, %v12441_v12  ;;  %v4668_v31 = vsel %vm10687_vm4, %v10588_v51, %v4664_v57 }
 0x537   : > { %v4550_v14 = vpop.f32.mrf.mxu2  ;;  %6350 = vmatmul.msk.f32.gmra.mxu3 %vm5129_vm7, %v3604_v46  ;;  %v3416_v40 = vor.u32 1.1754944e-38, %v3415_v19  ;;  %v3429_v51 = vand.u32 2147483648, %v10623_v34  ;;  %vm3423_vm9 = vweird.f32 %v10623_v34  ;;  %vm4680_vm10 = vweird.f32 %v10604_v53 }
 0x538   : > { %v4551_v5 = vadd.f32 %v4550_v14, %v10319_v9  ;;  %v3408_v28 = vadd.f32 %v10616_v30, %v3407_v8  ;;  %v4671_v9 = vand.u32 2147483648, %v12441_v12  ;;  %v4689_v14 = vmul.f32 %v10650_v25, %v10045_v17 }
 0x539   : > { %vm3414_vm5 = vcmp.eq.f32.partialorder %v3413_v38, 8.507059e+37  ;;  %vm4670_vm6 = vcmp.eq.f32.partialorder %v4669_v16, 8.507059e+37  ;;  %vm4679_vm11 = vweird.f32 %v10000_v33  ;;  %v4683_v12 = vand.u32 2147483647, %v10000_v33 }
 0x53a   : > { %v5094_v62 = vmul.f32 %v4659_v0, %v4551_v5  ;;  %v10659_v50 = vpop.eup %6725  ;;  %v10676_v1 = vpop.xlane.xlu0 %4385  ;;  %v3412_v52 = vsel %vm10666_vm3, %v10616_v30, %v3408_v28  ;;  %v4672_v30 = vor.u32 1.1754944e-38, %v4671_v9  ;;  %v4690_v46 = vsub.f32 1.0, %v4689_v14  ;;  %vm10738_vm13 = vmor %vm4679_vm11, %vm4680_vm10 }
 0x53b   : > { %v3419_v21 = vmul.f32 %v10659_v50, %v10623_v34  ;;  %v10678_v58 = vpop.xlane.xlu1 %2880  ;;  %v3417_v8 = vsel %vm3414_vm5, %v3416_v40, %v3412_v52  ;;  %vm3424_vm8 = vweird.f32 %v10659_v50  ;;  %v10700_v19 = vpop.eup %6727  ;;  %v4678_v28 = vadd.f32 %v10604_v53, %v4677_v22 }
 0x53c   : > { %4600 = vmatmul.f32.gmra.mxu2 %v10015_v60  ;;  %6300 = vmatmul.msk.f32.vlgmr.msra.gmra.mxu1 %vm5129_vm7, %v5094_v62  ;;  %v12459_v60 = vld [vmem:[#allocation68_spill] sm:$0xff]  ;;  %6729 = vrcp.f32 %v10678_v58  ;;  %v4673_v57 = vsel %vm4670_vm6, %v4672_v30, %v4668_v31  ;;  %v3427_v62 = vand.u32 2147483647, %v10623_v34  ;;  %v4685_v9 = vand.u32 2147483648, %v10000_v33  ;;  %vm10711_vm12 = vmor %vm3423_vm9, %vm3424_vm8  ;;  %v12464_v31 = vld [vmem:[#allocation73_spill] sm:$0xff]  ;;  %v10748_v30 = vpop.f32.mrf.mxu0 }
 0x53d   : > { %v3100_v13 = vadd.f32 %v10197_v23, %v12459_v60  ;;  %v3420_v54 = vsub.f32 1.0, %v3419_v21  ;;  %v4703_v14 = vmul.f32 %v10700_v19, %v10088_v43  ;;  %6731 = vrcp.f32 %v10131_v7 }
 0x53e   : > { %v3430_v22 = vor.u32 1.1754944e-38, %v3429_v51  ;;  %v3103_v60 = vadd.f32 %v10240_v49, %v12464_v31  ;;  %vm3428_vm14 = vcmp.eq.f32.partialorder %v3427_v62, 8.507059e+37  ;;  %vm4684_vm15 = vcmp.eq.f32.partialorder %v4683_v12, 8.507059e+37 }
 0x53f   : > { %v4553_v5 = vpop.f32.mrf.mxu2  ;;  %v3421_v0 = vmul.f32 %v10659_v50, %v3420_v54  ;;  %v3605_v63 = vmul.f32 %v3417_v8, %v3100_v13  ;;  %v4682_v13 = vsel %vm10738_vm13, %v10604_v53, %v4678_v28  ;;  %v4686_v54 = vor.u32 1.1754944e-38, %v4685_v9 }
 0x540   : > { %v4554_v23 = vadd.f32 %v4553_v5, %v10376_v32  ;;  %v3443_v53 = vand.u32 2147483648, %v10678_v58  ;;  %vm4694_vm0 = vweird.f32 %v10650_v25  ;;  %v3441_v41 = vand.u32 2147483647, %v10678_v58 }
 0x541   : > { %v3422_v38 = vadd.f32 %v10659_v50, %v3421_v0  ;;  %6351 = vmatmul.msk.f32.gmra.mxu3 %vm5129_vm7, %v3605_v63  ;;  %v4699_v0 = vand.u32 2147483648, %v10045_v17  ;;  %v4704_v63 = vsub.f32 1.0, %v4703_v14  ;;  %vm4693_vm3 = vweird.f32 %v10045_v17 }
 0x542   : > { %v5095_v32 = vmul.f32 %v4673_v57, %v4554_v23  ;;  %v10716_v16 = vpop.eup %6729  ;;  %v10721_v34 = vpop.xlane.xlu0 %2883  ;;  %v4687_v23 = vsel %vm4684_vm15, %v4686_v54, %v4682_v13  ;;  %v4713_v14 = vand.u32 2147483648, %v10088_v43  ;;  %vm3437_vm4 = vweird.f32 %v10678_v58  ;;  %vm10783_vm5 = vmor %vm4693_vm3, %vm4694_vm0 }
 0x543   : > { %v10723_v21 = vpop.xlane.xlu2 %4388  ;;  %v3426_v52 = vsel %vm10711_vm12, %v10659_v50, %v3422_v38  ;;  %v3433_v40 = vmul.f32 %v10716_v16, %v10678_v58  ;;  %6733 = vrcp.f32 %v10721_v34  ;;  %v4691_v50 = vmul.f32 %v10650_v25, %v4690_v46  ;;  %v10754_v57 = vpop.eup %6731 }
 0x544   : > { %4603 = vmatmul.f32.gmra.mxu2 %v10056_v42  ;;  %6301 = vmatmul.msk.f32.gmra.mxu1 %vm5129_vm7, %v5095_v32  ;;  %v3431_v5 = vsel %vm3428_vm14, %v3430_v22, %v3426_v52  ;;  %6735 = vrcp.f32 %v10174_v15  ;;  %v4697_v38 = vand.u32 2147483647, %v10045_v17  ;;  %vm3438_vm2 = vweird.f32 %v10716_v16 }
 0x545   : > { %v3434_v8 = vsub.f32 1.0, %v3433_v40  ;;  %v3606_v51 = vmul.f32 %v3431_v5, %v3103_v60  ;;  %v4692_v28 = vadd.f32 %v10650_v25, %v4691_v50  ;;  %v4700_v32 = vor.u32 1.1754944e-38, %v4699_v0  ;;  %vm3439_vm6 = vmor %vm3437_vm4, %vm3438_vm2  ;;  %v12467_v60 = vld [vmem:[#allocation43_spill] sm:$0xff] }
 0x546   : > { %v4705_v40 = vmul.f32 %v10700_v19, %v4704_v63  ;;  %v4717_v42 = vmul.f32 %v10754_v57, %v10131_v7  ;;  %v3106_v13 = vadd.f32 %v10283_v35, %v12467_v60  ;;  %vm3442_vm8 = vcmp.eq.f32.partialorder %v3441_v41, 8.507059e+37 }
 0x547   : > { %v4556_v33 = vpop.f32.mrf.mxu2  ;;  %v3435_v49 = vmul.f32 %v10716_v16, %v3434_v8  ;;  %v4696_v58 = vsel %vm10783_vm5, %v10650_v25, %v4692_v28  ;;  %vm4698_vm9 = vcmp.eq.f32.partialorder %v4697_v38, 8.507059e+37  ;;  %v3457_v25 = vand.u32 2147483648, %v10721_v34 }
 0x548   : > { %v4557_v46 = vadd.f32 %v4556_v33, %v10435_v4  ;;  %v4718_v63 = vsub.f32 1.0, %v4717_v42  ;;  %vm3451_vm11 = vweird.f32 %v10721_v34  ;;  %v4706_v38 = vadd.f32 %v10700_v19, %v4705_v40 }
 0x549   : > { %v10760_v62 = vpop.eup %6733  ;;  %v3436_v9 = vadd.f32 %v10716_v16, %v3435_v49  ;;  %6352 = vmatmul.msk.f32.gmra.mxu3 %vm5129_vm7, %v3606_v51  ;;  %v10801_v51 = vpop.f32.mrf.mxu0  ;;  %vm4708_vm13 = vweird.f32 %v10700_v19  ;;  %vm4707_vm14 = vweird.f32 %v10088_v43  ;;  %v3458_v42 = vor.u32 1.1754944e-38, %v3457_v25 }
 0x54a   : > { %v5096_v4 = vmul.f32 %v4687_v23, %v4557_v46  ;;  %v3447_v52 = vmul.f32 %v10760_v62, %v10721_v34  ;;  %v10772_v22 = vpop.xlane.xlu1 %4391  ;;  %v10793_v31 = vpop.eup %6735  ;;  %vm3452_vm10 = vweird.f32 %v10760_v62  ;;  %v4701_v46 = vsel %vm4698_vm9, %v4700_v32, %v4696_v58  ;;  %vm10841_vm0 = vmor %vm4707_vm14, %vm4708_vm13 }
 0x54b   : > { %v10770_v12 = vpop.xlane.xlu2 %2886  ;;  %v3440_v54 = vsel %vm3439_vm6, %v10716_v16, %v3436_v9  ;;  %v3455_v16 = vand.u32 2147483647, %v10721_v34  ;;  %v4731_v28 = vmul.f32 %v10793_v31, %v10174_v15  ;;  %vm10811_vm12 = vmor %vm3451_vm11, %vm3452_vm10  ;;  %v4719_v40 = vmul.f32 %v10754_v57, %v4718_v63 }
 0x54c   : > { %4606 = vmatmul.f32.gmra.mxu2 %v10099_v59  ;;  %6737 = vrcp.f32 %v10770_v12  ;;  %6302 = vmatmul.msk.f32.gmra.mxu1 %vm5129_vm7, %v5096_v4  ;;  %v3444_v59 = vor.u32 1.1754944e-38, %v3443_v53  ;;  %v3448_v50 = vsub.f32 1.0, %v3447_v52  ;;  %v4714_v52 = vor.u32 1.1754944e-38, %v4713_v14 }
 0x54d   : > { %6739 = vrcp.f32 %v10215_v20  ;;  %v4711_v17 = vand.u32 2147483647, %v10088_v43  ;;  %vm3456_vm15 = vcmp.eq.f32.partialorder %v3455_v16, 8.507059e+37  ;;  %vm3465_vm4 = vweird.f32 %v10770_v12 }
 0x54e   : > { %v3449_v5 = vmul.f32 %v10760_v62, %v3448_v50  ;;  %v3445_v33 = vsel %vm3442_vm8, %v3444_v59, %v3440_v54  ;;  %v12470_v59 = vld [vmem:[#allocation70_spill] sm:$0xff]  ;;  %vm4722_vm6 = vweird.f32 %v10754_v57  ;;  %vm4721_vm8 = vweird.f32 %v10131_v7 }
 0x54f   : > { %v4559_v8 = vpop.f32.mrf.mxu2  ;;  %v3607_v49 = vmul.f32 %v3445_v33, %v3106_v13  ;;  %v3109_v50 = vadd.f32 %v10326_v44, %v12470_v59  ;;  %v4710_v44 = vsel %vm10841_vm0, %v10700_v19, %v4706_v38  ;;  %vm4712_vm3 = vcmp.eq.f32.partialorder %v4711_v17, 8.507059e+37  ;;  %vm10895_vm10 = vmor %vm4721_vm8, %vm4722_vm6 }
 0x550   : > { %v4560_v0 = vadd.f32 %v4559_v8, %v10483_v29  ;;  %v3450_v35 = vadd.f32 %v10760_v62, %v3449_v5  ;;  %v4727_v8 = vand.u32 2147483648, %v10131_v7  ;;  %v3471_v5 = vand.u32 2147483648, %v10770_v12 }
 0x551   : > { %6353 = vmatmul.msk.f32.gmra.mxu3 %vm5129_vm7, %v3607_v49  ;;  %v3469_v19 = vand.u32 2147483647, %v10770_v12  ;;  %v4715_v63 = vsel %vm4712_vm3, %v4714_v52, %v4710_v44  ;;  %v10859_v25 = vpop.f32.mrf.mxu0  ;;  %v4741_v59 = vand.u32 2147483648, %v10174_v15  ;;  %vm4735_vm14 = vweird.f32 %v10174_v15 }
 0x552   : > { %v5097_v23 = vmul.f32 %v4701_v46, %v4560_v0  ;;  %v10807_v53 = vpop.eup %6737  ;;  %v10823_v41 = vpop.xlane.xlu0 %4394  ;;  %v3454_v32 = vsel %vm10811_vm12, %v10760_v62, %v3450_v35  ;;  %v4732_v62 = vsub.f32 1.0, %v4731_v28  ;;  %v4720_v35 = vadd.f32 %v10754_v57, %v4719_v40 }
 0x553   : > { %v10818_v9 = vpop.eup %6739  ;;  %v3461_v34 = vmul.f32 %v10807_v53, %v10770_v12  ;;  %v10825_v4 = vpop.xlane.xlu1 %2889  ;;  %v3459_v14 = vsel %vm3456_vm15, %v3458_v42, %v3454_v32  ;;  %vm3466_vm2 = vweird.f32 %v10807_v53  ;;  %v3472_v32 = vor.u32 1.1754944e-38, %v3471_v5 }
 0x554   : > { %4609 = vmatmul.f32.gmra.mxu2 %v10142_v26  ;;  %6303 = vmatmul.msk.f32.gmra.mxu1 %vm5129_vm7, %v5097_v23  ;;  %6741 = vrcp.f32 %v10825_v4  ;;  %v4745_v13 = vmul.f32 %v10818_v9, %v10215_v20  ;;  %v3608_v43 = vmul.f32 %v3459_v14, %v3109_v50  ;;  %vm10861_vm5 = vmor %vm3465_vm4, %vm3466_vm2  ;;  %v4733_v12 = vmul.f32 %v10793_v31, %v4732_v62 }
 0x555   : > { %v3462_v58 = vsub.f32 1.0, %v3461_v34  ;;  %6743 = vrcp.f32 %v10258_v10  ;;  %v10882_v34 = vpop.f32.mrf.mxu3  ;;  %v4725_v40 = vand.u32 2147483647, %v10131_v7  ;;  %v4728_v42 = vor.u32 1.1754944e-38, %v4727_v8 }
 0x556   : > { %v4746_v16 = vsub.f32 1.0, %v4745_v13  ;;  %vm3470_vm9 = vcmp.eq.f32.partialorder %v3469_v19, 8.507059e+37  ;;  %v4724_v62 = vsel %vm10895_vm10, %v10754_v57, %v4720_v35  ;;  %v4734_v13 = vadd.f32 %v10793_v31, %v4733_v12 }
 0x557   : > { %v4562_v60 = vpop.f32.mrf.mxu2  ;;  %v3463_v54 = vmul.f32 %v10807_v53, %v3462_v58  ;;  %vm4726_vm11 = vcmp.eq.f32.partialorder %v4725_v40, 8.507059e+37  ;;  %vm4736_vm12 = vweird.f32 %v10793_v31  ;;  %v4739_v57 = vand.u32 2147483647, %v10174_v15 }
 0x558   : > { %v4563_v33 = vadd.f32 %v4562_v60, %v10530_v18  ;;  %vm3479_vm15 = vweird.f32 %v10825_v4  ;;  %vm10937_vm0 = vmor %vm4735_vm14, %vm4736_vm12  ;;  %vm4750_vm6 = vweird.f32 %v10818_v9 }
 0x559   : > { %v3464_v0 = vadd.f32 %v10807_v53, %v3463_v54  ;;  %6354 = vmatmul.msk.f32.gmra.mxu3 %vm5129_vm7, %v3608_v43  ;;  %v3485_v54 = vand.u32 2147483648, %v10825_v4  ;;  %v4729_v43 = vsel %vm4726_vm11, %v4728_v42, %v4724_v62  ;;  %vm4740_vm4 = vcmp.eq.f32.partialorder %v4739_v57, 8.507059e+37 }
 0x55a   : > { %v5098_v46 = vmul.f32 %v4715_v63, %v4563_v33  ;;  %v10868_v18 = vpop.eup %6741  ;;  %v10872_v23 = vpop.xlane.xlu0 %2892  ;;  %v3483_v33 = vand.u32 2147483647, %v10825_v4 }
 0x55b   : > { %v10874_v28 = vpop.xlane.xlu2 %4397  ;;  %v3468_v29 = vsel %vm10861_vm5, %v10807_v53, %v3464_v0  ;;  %v10880_v38 = vpop.eup %6743  ;;  %v3475_v52 = vmul.f32 %v10868_v18, %v10825_v4  ;;  %6745 = vrcp.f32 %v10872_v23  ;;  %vm3480_vm13 = vweird.f32 %v10868_v18 }
 0x55c   : > { %4612 = vmatmul.f32.gmra.mxu2 %v10185_v27  ;;  %6304 = vmatmul.msk.f32.gmra.mxu1 %vm5129_vm7, %v5098_v46  ;;  %v12475_v27 = vld [vmem:[#allocation9_spill] sm:$0xff]  ;;  %v3473_v58 = vsel %vm3470_vm9, %v3472_v32, %v3468_v29  ;;  %v10906_v14 = vmul.f32 %v10880_v38, %v10258_v10  ;;  %6747 = vrcp.f32 %v10301_v55  ;;  %v4742_v0 = vor.u32 1.1754944e-38, %v4741_v59  ;;  %vm3481_vm2 = vmor %vm3479_vm15, %vm3480_vm13 }
 0x55d   : > { %v3112_v17 = vadd.f32 %v10367_v3, %v12475_v27  ;;  %v3476_v50 = vsub.f32 1.0, %v3475_v52  ;;  %v4747_v3 = vmul.f32 %v10818_v9, %v4746_v16  ;;  %6749 = vrcp.f32 %v10344_v48  ;;  %v10943_v16 = vpop.f32.mrf.mxu0  ;;  %v12480_v52 = vld [vmem:[#allocation48_spill] sm:$0xff]  ;;  %v10953_v42 = vpop.f32.mrf.mxu3 }
 0x55e   : > { %v4755_v46 = vand.u32 2147483648, %v10215_v20  ;;  %v4760_v35 = vsub.f32 1.0, %v10906_v14  ;;  %v4738_v4 = vsel %vm10937_vm0, %v10793_v31, %v4734_v13  ;;  %v3115_v40 = vadd.f32 %v10410_v6, %v12480_v52 }
 0x55f   : > { %v4565_v26 = vpop.f32.mrf.mxu2  ;;  %v3609_v7 = vmul.f32 %v3473_v58, %v3112_v17  ;;  %v3477_v60 = vmul.f32 %v10868_v18, %v3476_v50  ;;  %v4748_v32 = vadd.f32 %v10818_v9, %v4747_v3  ;;  %vm3484_vm3 = vcmp.eq.f32.partialorder %v3483_v33, 8.507059e+37 }
 0x560   : > { %v4566_v44 = vadd.f32 %v4565_v26, %v10557_v61  ;;  %v3499_v31 = vand.u32 2147483648, %v10872_v23  ;;  %v4743_v26 = vsel %vm4740_vm4, %v4742_v0, %v4738_v4  ;;  %vm3493_vm8 = vweird.f32 %v10872_v23 }
 0x561   : > { %v10915_v8 = vpop.eup %6745  ;;  %v3478_v5 = vadd.f32 %v10868_v18, %v3477_v60  ;;  %6355 = vmatmul.msk.f32.gmra.mxu3 %vm5129_vm7, %v3609_v7  ;;  %vm4749_vm9 = vweird.f32 %v10215_v20  ;;  %v4756_v57 = vor.u32 1.1754944e-38, %v4755_v46  ;;  %vm4764_vm0 = vweird.f32 %v10880_v38 }
 0x562   : > { %v5099_v61 = vmul.f32 %v4729_v43, %v4566_v44  ;;  %v3489_v19 = vmul.f32 %v10915_v8, %v10872_v23  ;;  %v10927_v49 = vpop.xlane.xlu1 %4400  ;;  %v10941_v12 = vpop.eup %6747  ;;  %vm3494_vm5 = vweird.f32 %v10915_v8  ;;  %vm10990_vm11 = vmor %vm4749_vm9, %vm4750_vm6  ;;  %v4753_v43 = vand.u32 2147483647, %v10215_v20 }
 0x563   : > { %v10925_v63 = vpop.xlane.xlu2 %2895  ;;  %v3482_v27 = vsel %vm3481_vm2, %v10868_v18, %v3478_v5  ;;  %v10961_v6 = vpop.eup %6749  ;;  %v3497_v18 = vand.u32 2147483647, %v10872_v23  ;;  %vm10973_vm10 = vmor %vm3493_vm8, %vm3494_vm5  ;;  %v4761_v5 = vmul.f32 %v10880_v38, %v4760_v35  ;;  %v3500_v33 = vor.u32 1.1754944e-38, %v3499_v31 }
 0x564   : > { %4615 = vmatmul.f32.gmra.mxu2 %v10228_v39  ;;  %6751 = vrcp.f32 %v10925_v63  ;;  %6305 = vmatmul.msk.f32.gmra.mxu1 %vm5129_vm7, %v5099_v61  ;;  %v3486_v39 = vor.u32 1.1754944e-38, %v3485_v54  ;;  %v3490_v29 = vsub.f32 1.0, %v3489_v19  ;;  %v12485_v61 = vld [vmem:[#allocation30_spill] sm:$0xff]  ;;  %v4787_v20 = vmul.f32 %v10961_v6, %v10344_v48 }
 0x565   : > { %vm3498_vm12 = vcmp.eq.f32.partialorder %v3497_v18, 8.507059e+37  ;;  %v11006_v15 = vpop.f32.mrf.mxu0  ;;  %vm4754_vm14 = vcmp.eq.f32.partialorder %v4753_v43, 8.507059e+37  ;;  %v4762_v52 = vadd.f32 %v10880_v38, %v4761_v5  ;;  %vm3507_vm15 = vweird.f32 %v10925_v63 }
 0x566   : > { %v3491_v53 = vmul.f32 %v10915_v8, %v3490_v29  ;;  %v3487_v59 = vsel %vm3484_vm3, %v3486_v39, %v3482_v27  ;;  %v3513_v29 = vand.u32 2147483648, %v10925_v63  ;;  %v3511_v27 = vand.u32 2147483647, %v10925_v63 }
 0x567   : > { %v4568_v17 = vpop.f32.mrf.mxu2  ;;  %v3610_v58 = vmul.f32 %v3487_v59, %v3115_v40  ;;  %vm4763_vm2 = vweird.f32 %v10258_v10  ;;  %vm4778_vm8 = vweird.f32 %v10941_v12 }
 0x568   : > { %v4569_v50 = vadd.f32 %v4568_v17, %v10574_v24  ;;  %v3492_v62 = vadd.f32 %v10915_v8, %v3491_v53  ;;  %v4773_v24 = vmul.f32 %v10941_v12, %v10301_v55  ;;  %v4769_v53 = vand.u32 2147483648, %v10258_v10  ;;  %vm11048_vm4 = vmor %vm4763_vm2, %vm4764_vm0 }
 0x569   : > { %6356 = vmatmul.msk.f32.gmra.mxu3 %vm5129_vm7, %v3610_v58  ;;  %v12488_v58 = vld [vmem:[#allocation14_spill] sm:$0xff]  ;;  %vm3512_vm5 = vcmp.eq.f32.partialorder %v3511_v27, 8.507059e+37  ;;  %v4766_v54 = vsel %vm11048_vm4, %v10880_v38, %v4762_v52  ;;  %v12492_v27 = vld [vmem:[#allocation36_spill] sm:$0xff]  ;;  %v4781_v17 = vand.u32 2147483647, %v10301_v55  ;;  %vm4792_vm0 = vweird.f32 %v10961_v6 }
 0x56a   : > { %v5100_v3 = vmul.f32 %v4743_v26, %v4569_v50  ;;  %v10966_v14 = vpop.eup %6751  ;;  %v10980_v23 = vpop.xlane.xlu0 %4403  ;;  %v3496_v13 = vsel %vm10973_vm10, %v10915_v8, %v3492_v62  ;;  %v3118_v8 = vadd.f32 %v10454_v45, %v12485_v61  ;;  %v4774_v19 = vsub.f32 1.0, %v4773_v24 }
 0x56b   : > { %v3503_v60 = vmul.f32 %v10966_v14, %v10925_v63  ;;  %v10982_v44 = vpop.xlane.xlu1 %2898  ;;  %v3501_v46 = vsel %vm3498_vm12, %v3500_v33, %v3496_v13  ;;  %vm3508_vm13 = vweird.f32 %v10966_v14  ;;  %v11010_v45 = vpop.f32.mrf.mxu3  ;;  %v4788_v50 = vsub.f32 1.0, %v4787_v20 }
 0x56c   : > { %4618 = vmatmul.f32.gmra.mxu2 %v10269_v56  ;;  %6306 = vmatmul.msk.f32.gmra.mxu1 %vm5129_vm7, %v5100_v3  ;;  %v4752_v56 = vsel %vm10990_vm11, %v10818_v9, %v4748_v32  ;;  %6753 = vrcp.f32 %v10982_v44  ;;  %v3611_v9 = vmul.f32 %v3501_v46, %v3118_v8  ;;  %vm11020_vm3 = vmor %vm3507_vm15, %vm3508_vm13  ;;  %v4767_v62 = vand.u32 2147483647, %v10258_v10 }
 0x56d   : > { %v3504_v0 = vsub.f32 1.0, %v3503_v60  ;;  %6755 = vrcp.f32 %v10387_v47  ;;  %v4757_v32 = vsel %vm4754_vm14, %v4756_v57, %v4752_v56  ;;  %v3514_v3 = vor.u32 1.1754944e-38, %v3513_v29  ;;  %v12491_v60 = vld [vmem:[#allocation31_spill] sm:$0xff]  ;;  %v11067_v38 = vpop.f32.mrf.mxu0 }
 0x56e   : > { %6757 = vrcp.f32 %v10428_v11  ;;  %v3121_v13 = vadd.f32 %v10500_v36, %v12491_v60  ;;  %v4770_v33 = vor.u32 1.1754944e-38, %v4769_v53  ;;  %v4789_v10 = vmul.f32 %v10961_v6, %v4788_v50 }
 0x56f   : > { %v4571_v35 = vpop.f32.mrf.mxu2  ;;  %v3505_v39 = vmul.f32 %v10966_v14, %v3504_v0  ;;  %vm4768_vm6 = vcmp.eq.f32.partialorder %v4767_v62, 8.507059e+37  ;;  %v3527_v20 = vand.u32 2147483648, %v10982_v44  ;;  %vm4777_vm10 = vweird.f32 %v10301_v55 }
 0x570   : > { %v4572_v4 = vadd.f32 %v4571_v35, %v10599_v37  ;;  %v4771_v0 = vsel %vm4768_vm6, %v4770_v33, %v4766_v54  ;;  %v4783_v35 = vand.u32 2147483648, %v10301_v55  ;;  %vm3521_vm11 = vweird.f32 %v10982_v44  ;;  %vm11099_vm12 = vmor %vm4777_vm10, %vm4778_vm8 }
 0x571   : > { %v3506_v40 = vadd.f32 %v10966_v14, %v3505_v39  ;;  %6357 = vmatmul.msk.f32.gmra.mxu3 %vm5129_vm7, %v3611_v9  ;;  %v3528_v62 = vor.u32 1.1754944e-38, %v3527_v20  ;;  %v4790_v60 = vadd.f32 %v10961_v6, %v4789_v10  ;;  %vm4782_vm15 = vcmp.eq.f32.partialorder %v4781_v17, 8.507059e+37  ;;  %v12500_v17 = vld [vmem:[#allocation33_spill] sm:$0xff] }
 0x572   : > { %v5101_v37 = vmul.f32 %v4757_v32, %v4572_v4  ;;  %v11026_v59 = vpop.eup %6753  ;;  %v11029_v31 = vpop.xlane.xlu0 %2901 }
 0x573   : > { %v11031_v63 = vpop.xlane.xlu2 %4406  ;;  %v3510_v26 = vsel %vm11020_vm3, %v10966_v14, %v3506_v40  ;;  %v11038_v18 = vpop.eup %6755  ;;  %v3517_v24 = vmul.f32 %v11026_v59, %v10982_v44  ;;  %6759 = vrcp.f32 %v11029_v31  ;;  %v4775_v14 = vmul.f32 %v10941_v12, %v4774_v19 }
 0x574   : > { %4621 = vmatmul.f32.gmra.mxu2 %v12488_v58  ;;  %6307 = vmatmul.msk.f32.gmra.mxu1 %vm5129_vm7, %v5101_v37  ;;  %v3515_v57 = vsel %vm3512_vm5, %v3514_v3, %v3510_v26  ;;  %v11061_v61 = vmul.f32 %v11038_v18, %v10387_v47  ;;  %v11065_v19 = vpop.eup %6757  ;;  %v11075_v9 = vpop.f32.mrf.mxu3  ;;  %vm3522_vm9 = vweird.f32 %v11026_v59  ;;  %6761 = vrcp.f32 %v10469_v2  ;;  %v12495_v58 = vld [vmem:[#allocation12_spill] sm:$0xff] }
 0x575   : > { %v3518_v43 = vsub.f32 1.0, %v3517_v24  ;;  %v3612_v56 = vmul.f32 %v3515_v57, %v3121_v13  ;;  %v4776_v46 = vadd.f32 %v10941_v12, %v4775_v14  ;;  %v4815_v53 = vmul.f32 %v11065_v19, %v10428_v11  ;;  %v12496_v26 = vld [vmem:[#allocation32_spill] sm:$0xff]  ;;  %vm3523_vm13 = vmor %vm3521_vm11, %vm3522_vm9 }
 0x576   : > { %v4802_v37 = vsub.f32 1.0, %v11061_v61  ;;  %v3124_v55 = vadd.f32 %v12496_v26, %v12495_v58  ;;  %v4784_v14 = vor.u32 1.1754944e-38, %v4783_v35  ;;  %v3541_v57 = vand.u32 2147483648, %v11029_v31  ;;  %v12497_v35 = vld [vmem:[#allocation15_spill] sm:$0xff] }
 0x577   : > { %v4574_v5 = vpop.f32.mrf.mxu2  ;;  %v3519_v8 = vmul.f32 %v11026_v59, %v3518_v43  ;;  %v3539_v10 = vand.u32 2147483647, %v11029_v31  ;;  %vm4791_vm3 = vweird.f32 %v10344_v48  ;;  %vm3535_vm4 = vweird.f32 %v11029_v31 }
 0x578   : > { %v4575_v36 = vadd.f32 %v4574_v5, %v10748_v30  ;;  %v3525_v30 = vand.u32 2147483647, %v10982_v44  ;;  %v4780_v44 = vsel %vm11099_vm12, %v10941_v12, %v4776_v46  ;;  %vm11138_vm5 = vmor %vm4791_vm3, %vm4792_vm0  ;;  %vm4805_vm9 = vweird.f32 %v10387_v47 }
 0x579   : > { %v11073_v39 = vpop.eup %6759  ;;  %v3520_v29 = vadd.f32 %v11026_v59, %v3519_v8  ;;  %6358 = vmatmul.msk.f32.gmra.mxu3 %vm5129_vm7, %v3612_v56  ;;  %v4785_v33 = vsel %vm4782_vm15, %v4784_v14, %v4780_v44  ;;  %vm3540_vm8 = vcmp.eq.f32.partialorder %v3539_v10, 8.507059e+37  ;;  %vm4806_vm11 = vweird.f32 %v11038_v18  ;;  %v12503_v10 = vld [vmem:[#allocation37_spill] sm:$0xff] }
 0x57a   : > { %v5102_v4 = vmul.f32 %v4771_v0, %v4575_v36  ;;  %v3531_v32 = vmul.f32 %v11073_v39, %v11029_v31  ;;  %v11087_v40 = vpop.xlane.xlu1 %4409  ;;  %vm3526_vm14 = vcmp.eq.f32.partialorder %v3525_v30, 8.507059e+37  ;;  %v11116_v12 = vpop.eup %6761  ;;  %vm3536_vm2 = vweird.f32 %v11073_v39 }
 0x57b   : > { %v11085_v52 = vpop.xlane.xlu2 %2904  ;;  %v3524_v24 = vsel %vm3523_vm13, %v11026_v59, %v3520_v29  ;;  %v4797_v36 = vand.u32 2147483648, %v10344_v48  ;;  %v11128_v0 = vpop.f32.mrf.mxu0  ;;  %v4795_v30 = vand.u32 2147483647, %v10344_v48  ;;  %vm3537_vm6 = vmor %vm3535_vm4, %vm3536_vm2  ;;  %v3542_v31 = vor.u32 1.1754944e-38, %v3541_v57  ;;  %v12502_v57 = vld [vmem:[#allocation23_spill] sm:$0xff] }
 0x57c   : > { %4624 = vmatmul.f32.gmra.mxu2 %v12492_v27  ;;  %6763 = vrcp.f32 %v11085_v52  ;;  %6308 = vmatmul.msk.f32.gmra.mxu1 %vm5129_vm7, %v5102_v4  ;;  %v3532_v3 = vsub.f32 1.0, %v3531_v32  ;;  %v3529_v54 = vsel %vm3526_vm14, %v3528_v62, %v3524_v24  ;;  %v4803_v4 = vmul.f32 %v11038_v18, %v4802_v37  ;;  %v11144_v32 = vpop.f32.mrf.mxu3  ;;  %vm11181_vm13 = vmor %vm4805_vm9, %vm4806_vm11 }
 0x57d   : > { %v3613_v5 = vmul.f32 %v3529_v54, %v3124_v55  ;;  %v4794_v27 = vsel %vm11138_vm5, %v10961_v6, %v4790_v60  ;;  %v4798_v62 = vor.u32 1.1754944e-38, %v4797_v36  ;;  %vm4796_vm10 = vcmp.eq.f32.partialorder %v4795_v30, 8.507059e+37 }
 0x57e   : > { %v3533_v13 = vmul.f32 %v11073_v39, %v3532_v3  ;;  %v4829_v6 = vmul.f32 %v11116_v12, %v10469_v2  ;;  %v4804_v14 = vadd.f32 %v11038_v18, %v4803_v4  ;;  %v4811_v54 = vand.u32 2147483648, %v10387_v47  ;;  %v12506_v4 = vld [vmem:[#allocation13_spill] sm:$0xff] }
 0x57f   : > { %v4577_v7 = vpop.f32.mrf.mxu2  ;;  %vm3549_vm14 = vweird.f32 %v11085_v52  ;;  %vm4820_vm4 = vweird.f32 %v11065_v19 }
 0x580   : > { %v4578_v43 = vadd.f32 %v4577_v7, %v10801_v51  ;;  %v3534_v59 = vadd.f32 %v11073_v39, %v3533_v13  ;;  %v4816_v51 = vsub.f32 1.0, %v4815_v53  ;;  %v12501_v53 = vld [vmem:[#allocation17_spill] sm:$0xff]  ;;  %v4799_v7 = vsel %vm4796_vm10, %v4798_v62, %v4794_v27 }
 0x581   : > { %6359 = vmatmul.msk.f32.gmra.mxu3 %vm5129_vm7, %v3613_v5  ;;  %v3127_v50 = vadd.f32 %v12501_v53, %v12500_v17  ;;  %v4809_v13 = vand.u32 2147483647, %v10387_v47  ;;  %v3553_v5 = vand.u32 2147483647, %v11085_v52  ;;  %v4808_v36 = vsel %vm11181_vm13, %v11038_v18, %v4804_v14 }
 0x582   : > { %v5103_v56 = vmul.f32 %v4785_v33, %v4578_v43  ;;  %v11121_v61 = vpop.eup %6763  ;;  %v11125_v8 = vpop.xlane.xlu0 %4412  ;;  %v3538_v37 = vsel %vm3537_vm6, %v11073_v39, %v3534_v59  ;;  %v4817_v58 = vmul.f32 %v11065_v19, %v4816_v51  ;;  %v3555_v39 = vand.u32 2147483648, %v11085_v52 }
 0x583   : > { %v3545_v20 = vmul.f32 %v11121_v61, %v11085_v52  ;;  %v11133_v46 = vpop.xlane.xlu1 %2907  ;;  %v3543_v26 = vsel %vm3540_vm8, %v3542_v31, %v3538_v37  ;;  %vm3550_vm12 = vweird.f32 %v11121_v61  ;;  %v4830_v51 = vsub.f32 1.0, %v4829_v6  ;;  %v12507_v31 = vld [vmem:[#allocation61_spill] sm:$0xff] }
 0x584   : > { %4627 = vmatmul.f32.gmra.mxu2 %v12497_v35  ;;  %6765 = vrcp.f32 %v11133_v46  ;;  %6309 = vmatmul.msk.f32.gmra.mxu1 %vm5129_vm7, %v5103_v56  ;;  %v3614_v44 = vmul.f32 %v3543_v26, %v3127_v50  ;;  %v11191_v35 = vpop.f32.mrf.mxu0  ;;  %vm3551_vm15 = vmor %vm3549_vm14, %vm3550_vm12  ;;  %v3556_v29 = vor.u32 1.1754944e-38, %v3555_v39  ;;  %vm4810_vm0 = vcmp.eq.f32.partialorder %v4809_v13, 8.507059e+37  ;;  %v11195_v17 = vpop.f32.mrf.mxu3  ;;  %v12510_v39 = vld [vmem:[#allocation16_spill] sm:$0xff] }
 0x585   : > { %v3546_v48 = vsub.f32 1.0, %v3545_v20  ;;  %6767 = vrcp.f32 %v12502_v57  ;;  %v4818_v20 = vadd.f32 %v11065_v19, %v4817_v58  ;;  %v4812_v30 = vor.u32 1.1754944e-38, %v4811_v54  ;;  %v12511_v54 = vld [vmem:[#allocation39_spill] sm:$0xff] }
 0x586   : > { %v3130_v27 = vadd.f32 %v12507_v31, %v12506_v4  ;;  %vm3554_vm2 = vcmp.eq.f32.partialorder %v3553_v5, 8.507059e+37  ;;  %v3569_v52 = vand.u32 2147483648, %v11133_v46  ;;  %v3567_v26 = vand.u32 2147483647, %v11133_v46  ;;  %v12513_v5 = vld [vmem:[#allocation63_spill] sm:$0xff] }
 0x587   : > { %v4580_v55 = vpop.f32.mrf.mxu2  ;;  %v3547_v3 = vmul.f32 %v11121_v61, %v3546_v48  ;;  %v4813_v62 = vsel %vm4810_vm0, %v4812_v30, %v4808_v36  ;;  %vm3563_vm5 = vweird.f32 %v11133_v46  ;;  %vm4819_vm6 = vweird.f32 %v10428_v11 }
 0x588   : > { %v4581_v24 = vadd.f32 %v4580_v55, %v10859_v25  ;;  %v4831_v6 = vmul.f32 %v11116_v12, %v4830_v51  ;;  %v4823_v13 = vand.u32 2147483647, %v10428_v11  ;;  %vm3568_vm9 = vcmp.eq.f32.partialorder %v3567_v26, 8.507059e+37  ;;  %vm11229_vm10 = vmor %vm4819_vm6, %vm4820_vm4 }
 0x589   : > { %v3548_v25 = vadd.f32 %v11121_v61, %v3547_v3  ;;  %6360 = vmatmul.msk.f32.gmra.mxu3 %vm5129_vm7, %v3614_v44  ;;  %v4822_v36 = vsel %vm11229_vm10, %v11065_v19, %v4818_v20  ;;  %v4839_v26 = vand.u32 2147483648, %v10469_v2  ;;  %vm4847_vm6 = vweird.f32 %v12502_v57 }
 0x58a   : > { %v5104_v60 = vmul.f32 %v4799_v7, %v4581_v24  ;;  %v6766_v43 = vpop.eup %6765  ;;  %v11172_v33 = vpop.xlane.xlu0 %2910  ;;  %vm4824_vm12 = vcmp.eq.f32.partialorder %v4823_v13, 8.507059e+37 }
 0x58b   : > { %v3559_v59 = vmul.f32 %v6766_v43, %v11133_v46  ;;  %6769 = vrcp.f32 %v11172_v33  ;;  %v3552_v53 = vsel %vm3551_vm15, %v11121_v61, %v3548_v25  ;;  %vm3564_vm3 = vweird.f32 %v6766_v43  ;;  %v11200_v58 = vpop.eup %6767  ;;  %v12512_v25 = vld [vmem:[#allocation34_spill] sm:$0xff] }
 0x58c   : > { %4630 = vmatmul.f32.gmra.mxu2 %v12503_v10  ;;  %6310 = vmatmul.msk.f32.gmra.mxu1 %vm5129_vm7, %v5104_v60  ;;  %v3557_v48 = vsel %vm3554_vm2, %v3556_v29, %v3552_v53  ;;  %v4825_v61 = vand.u32 2147483648, %v10428_v11  ;;  %vm11209_vm8 = vmor %vm3563_vm5, %vm3564_vm3  ;;  %v4843_v14 = vmul.f32 %v11200_v58, %v12502_v57  ;;  %v3570_v46 = vor.u32 1.1754944e-38, %v3569_v52  ;;  %v11239_v52 = vpop.f32.mrf.mxu0  ;;  %v11241_v53 = vpop.f32.mrf.mxu3 }
 0x58d   : > { %v3560_v47 = vsub.f32 1.0, %v3559_v59  ;;  %v3615_v55 = vmul.f32 %v3557_v48, %v3130_v27  ;;  %6771 = vrcp.f32 %v12511_v54  ;;  %v3133_v59 = vadd.f32 %v12513_v5, %v12512_v25 }
 0x58e   : > { %v4826_v29 = vor.u32 1.1754944e-38, %v4825_v61  ;;  %v3581_v30 = vand.u32 2147483647, %v11172_v33  ;;  %v4844_v27 = vsub.f32 1.0, %v4843_v14  ;;  %vm3577_vm13 = vweird.f32 %v11172_v33  ;;  %v12519_v61 = vld [vmem:[#allocation64_spill] sm:$0xff] }
 0x58f   : > { %v4583_v18 = vpop.f32.mrf.mxu2  ;;  %v3561_v50 = vmul.f32 %v6766_v43, %v3560_v47  ;;  %v4832_v48 = vadd.f32 %v11116_v12, %v4831_v6  ;;  %vm4834_vm15 = vweird.f32 %v11116_v12  ;;  %vm4833_vm2 = vweird.f32 %v10469_v2 }
 0x590   : > { %v4584_v37 = vadd.f32 %v4583_v18, %v10943_v16  ;;  %vm3582_vm0 = vcmp.eq.f32.partialorder %v3581_v30, 8.507059e+37  ;;  %vm4835_vm3 = vmor %vm4833_vm2, %vm4834_vm15  ;;  %vm4848_vm5 = vweird.f32 %v11200_v58 }
 0x591   : > { %v6770_v3 = vpop.eup %6769  ;;  %v3562_v44 = vadd.f32 %v6766_v43, %v3561_v50  ;;  %6361 = vmatmul.msk.f32.gmra.mxu3 %vm5129_vm7, %v3615_v55  ;;  %v4827_v50 = vsel %vm4824_vm12, %v4826_v29, %v4822_v36  ;;  %v12516_v55 = vld [vmem:[#allocation18_spill] sm:$0xff] }
 0x592   : > { %v5105_v24 = vmul.f32 %v4813_v62, %v4584_v37  ;;  %v3573_v7 = vmul.f32 %v6770_v3, %v11172_v33  ;;  %vm3578_vm11 = vweird.f32 %v6770_v3  ;;  %v4837_v62 = vand.u32 2147483647, %v10469_v2 }
 0x593   : > { %v3566_v60 = vsel %vm11209_vm8, %v6766_v43, %v3562_v44  ;;  %v3583_v43 = vand.u32 2147483648, %v11172_v33  ;;  %vm3579_vm14 = vmor %vm3577_vm13, %vm3578_vm11  ;;  %v11246_v37 = vpop.eup %6771  ;;  %v12517_v44 = vld [vmem:[#allocation19_spill] sm:$0xff]  ;;  %vm4861_vm11 = vweird.f32 %v12511_v54 }
 0x594   : > { %4633 = vmatmul.f32.gmra.mxu2 %v12510_v39  ;;  %v3574_v10 = vsub.f32 1.0, %v3573_v7  ;;  %6311 = vmatmul.msk.f32.gmra.mxu1 %vm5129_vm7, %v5105_v24  ;;  %v3571_v51 = vsel %vm3568_vm9, %v3570_v46, %v3566_v60  ;;  %6773 = vrcp.f32 %v12517_v44  ;;  %v12518_v24 = vld [vmem:[#allocation76_spill] sm:$0xff]  ;;  %v4857_v16 = vmul.f32 %v11246_v37, %v12511_v54  ;;  %v11268_v56 = vpop.f32.mrf.mxu3  ;;  %vm4849_vm8 = vmor %vm4847_vm6, %vm4848_vm5 }
 0x595   : > { %v3616_v4 = vmul.f32 %v3571_v51, %v3133_v59  ;;  %v3584_v19 = vor.u32 1.1754944e-38, %v3583_v43  ;;  %v3136_v6 = vadd.f32 %v12519_v61, %v12518_v24  ;;  %v4836_v7 = vsel %vm4835_vm3, %v11116_v12, %v4832_v48  ;;  %v12521_v51 = vld [vmem:[#allocation20_spill] sm:$0xff] }
 0x596   : > { %v3575_v47 = vmul.f32 %v6770_v3, %v3574_v10  ;;  %v4840_v39 = vor.u32 1.1754944e-38, %v4839_v26  ;;  %vm4838_vm4 = vcmp.eq.f32.partialorder %v4837_v62, 8.507059e+37  ;;  %v4858_v13 = vsub.f32 1.0, %v4857_v16  ;;  %v11266_v10 = vpop.f32.mrf.mxu0 }
 0x597   : > { %v4586_v31 = vpop.f32.mrf.mxu2  ;;  %v4853_v12 = vand.u32 2147483648, %v12502_v57  ;;  %v4851_v43 = vand.u32 2147483647, %v12502_v57  ;;  %6775 = vrcp.f32 %v12521_v51  ;;  %vm4862_vm10 = vweird.f32 %v11246_v37 }
 0x598   : > { %v4587_v11 = vadd.f32 %v4586_v31, %v11006_v15  ;;  %v3576_v18 = vadd.f32 %v6770_v3, %v3575_v47  ;;  %v4841_v60 = vsel %vm4838_vm4, %v4840_v39, %v4836_v7  ;;  %v4859_v36 = vmul.f32 %v11246_v37, %v4858_v13  ;;  %vm4863_vm12 = vmor %vm4861_vm11, %vm4862_vm10 }
 0x599   : > { %6362 = vmatmul.msk.f32.gmra.mxu3 %vm5129_vm7, %v3616_v4  ;;  %v4854_v4 = vor.u32 1.1754944e-38, %v4853_v12  ;;  %vm4852_vm9 = vcmp.eq.f32.partialorder %v4851_v43, 8.507059e+37  ;;  %v4881_v7 = vand.u32 2147483648, %v12517_v44  ;;  %vm4875_vm15 = vweird.f32 %v12517_v44 }
 0x59a   : > { %v5106_v20 = vmul.f32 %v4827_v50, %v4587_v11  ;;  %v3580_v15 = vsel %vm3579_vm14, %v6770_v3, %v3576_v18  ;;  %v4845_v3 = vmul.f32 %v11200_v58, %v4844_v27  ;;  %v11264_v59 = vpop.eup %6773  ;;  %v4860_v18 = vadd.f32 %v11246_v37, %v4859_v36 }
 0x59b   : > { %v3585_v33 = vsel %vm3582_vm0, %v3584_v19, %v3580_v15  ;;  %v4871_v29 = vmul.f32 %v11264_v59, %v12517_v44  ;;  %v4867_v19 = vand.u32 2147483648, %v12511_v54  ;;  %vm4876_vm14 = vweird.f32 %v11264_v59 }
 0x59c   : > { %4636 = vmatmul.f32.gmra.mxu2 %v12516_v55  ;;  %6312 = vmatmul.msk.f32.gmra.mxu1 %vm5129_vm7, %v5106_v20  ;;  %v3617_v14 = vmul.f32 %v3585_v33, %v3136_v6  ;;  %v4846_v5 = vadd.f32 %v11200_v58, %v4845_v3  ;;  %v12522_v20 = vld [vmem:[#allocation75_spill] sm:$0xff]  ;;  %v4864_v55 = vsel %vm4863_vm12, %v11246_v37, %v4860_v18  ;;  %v4879_v37 = vand.u32 2147483647, %v12517_v44  ;;  %vm4877_vm0 = vmor %vm4875_vm15, %vm4876_vm14 }
 0x59d   : > { %v4872_v27 = vsub.f32 1.0, %v4871_v29  ;;  %v11284_v50 = vpop.eup %6775  ;;  %6777 = vrcp.f32 %v12522_v20  ;;  %v4868_v62 = vor.u32 1.1754944e-38, %v4867_v19  ;;  %v4882_v13 = vor.u32 1.1754944e-38, %v4881_v7 }
 0x59e   : > { %v4850_v47 = vsel %vm4849_vm8, %v11200_v58, %v4846_v5  ;;  %v12523_v58 = vld [vmem:[#allocation35_spill] sm:$0xff]  ;;  %v11291_v48 = vpop.f32.mrf.mxu0  ;;  %v4885_v26 = vmul.f32 %v11284_v50, %v12521_v51  ;;  %vm4880_vm2 = vcmp.eq.f32.partialorder %v4879_v37, 8.507059e+37  ;;  %vm4890_vm3 = vweird.f32 %v11284_v50 }
 0x59f   : > { %v4589_v46 = vpop.f32.mrf.mxu2  ;;  %v4855_v11 = vsel %vm4852_vm9, %v4854_v4, %v4850_v47  ;;  %v4873_v15 = vmul.f32 %v11264_v59, %v4872_v27  ;;  %v4895_v29 = vand.u32 2147483648, %v12521_v51  ;;  %vm4889_vm4 = vweird.f32 %v12521_v51 }
 0x5a0   : > { %v4590_v2 = vadd.f32 %v4589_v46, %v11067_v38  ;;  %v12520_v38 = vld [vmem:[#allocation42_spill] sm:$0xff]  ;;  %vm4891_vm5 = vmor %vm4889_vm4, %vm4890_vm3  ;;  %vm4903_vm9 = vweird.f32 %v12522_v20 }
 0x5a1   : > { %6363 = vmatmul.msk.f32.gmra.mxu3 %vm5129_vm7, %v3617_v14  ;;  %v4874_v16 = vadd.f32 %v11264_v59, %v4873_v15  ;;  %v12524_v14 = vld [vmem:[#allocation47_spill] sm:$0xff]  ;;  %v4896_v18 = vor.u32 1.1754944e-38, %v4895_v29 }
 0x5a2   : > { %v5107_v25 = vmul.f32 %v4841_v60, %v4590_v2  ;;  %6779 = vrcp.f32 %v12524_v14  ;;  %v6808_v29 = vld [vmem:[%s8166_s21 + $0x10] sm:$0xff] }
 0x5a3   : > { %v11299_v6 = vpop.eup %6777  ;;  %v4878_v39 = vsel %vm4877_vm0, %v11264_v59, %v4874_v16  ;;  %6781 = vrcp.f32 %v10676_v1 }
 0x5a4   : > { %4639 = vmatmul.f32.gmra.mxu2 %v12520_v38  ;;  %6313 = vmatmul.msk.f32.gmra.mxu1 %vm5129_vm7, %v5107_v25  ;;  %v11319_v25 = vld [vmem:[%s11731_s9] ss:$0 sm:$0xff]  ;;  %v4883_v12 = vsel %vm4880_vm2, %v4882_v13, %v4878_v39  ;;  %vm4904_vm8 = vweird.f32 %v11299_v6  ;;  %6783 = vrcp.f32 %v10723_v21  ;;  %vm4931_vm2 = vweird.f32 %v10676_v1 }
 0x5a5   : > { %vm4905_vm10 = vmor %vm4903_vm9, %vm4904_vm8  ;;  %6785 = vrcp.f32 %v10772_v22 }
 0x5a6   : > { %v11312_v2 = vpop.f32.mrf.mxu0  ;;  %6787 = vrcp.f32 %v10823_v41 }
 0x5a7   : > { %v4592_v30 = vpop.f32.mrf.mxu2  ;;  %6789 = vrcp.f32 %v10874_v28 }
 0x5a8   : > { %v4593_v31 = vadd.f32 %v4592_v30, %v11128_v0  ;;  %v4865_v0 = vand.u32 2147483647, %v12511_v54  ;;  %v4886_v54 = vsub.f32 1.0, %v4885_v26  ;;  %v4893_v30 = vand.u32 2147483647, %v12521_v51 }
 0x5a9   : > { %6791 = vrcp.f32 %v10927_v49 }
 0x5aa   : > { %v5108_v57 = vmul.f32 %v4855_v11, %v4593_v31  ;;  %vm4866_vm13 = vcmp.eq.f32.partialorder %v4865_v0, 8.507059e+37  ;;  %v4887_v46 = vmul.f32 %v11284_v50, %v4886_v54  ;;  %v6806_v31 = vld [vmem:[%s8166_s21] sm:$0xff]  ;;  %vm4894_vm6 = vcmp.eq.f32.partialorder %v4893_v30, 8.507059e+37 }
 0x5ab   : > { %v4869_v61 = vsel %vm4866_vm13, %v4868_v62, %v4864_v55  ;;  %v4909_v62 = vand.u32 2147483648, %v12522_v20  ;;  %vm4917_vm13 = vweird.f32 %v12524_v14  ;;  %6793 = vrcp.f32 %v10980_v23 }
 0x5ac   : > { %4642 = vmatmul.f32.gmra.mxu2 %v12523_v58  ;;  %6314 = vmatmul.msk.f32.gmra.mxu1 %vm5129_vm7, %v5108_v57  ;;  %v4888_v36 = vadd.f32 %v11284_v50, %v4887_v46  ;;  %6795 = vrcp.f32 %v11031_v63 }
 0x5ad   : > { %v4910_v37 = vor.u32 1.1754944e-38, %v4909_v62  ;;  %6797 = vrcp.f32 %v11087_v40 }
 0x5ae   : > { %v4892_v27 = vsel %vm4891_vm5, %v11284_v50, %v4888_v36  ;;  %v11344_v19 = vpop.f32.mrf.mxu0  ;;  %6799 = vrcp.f32 %v11125_v8 }
 0x5af   : > { %v4595_v33 = vpop.f32.mrf.mxu2  ;;  %v4897_v58 = vsel %vm4894_vm6, %v4896_v18, %v4892_v27  ;;  %vm4945_vm6 = vweird.f32 %v10723_v21 }
 0x5b0   : > { %v4596_v24 = vadd.f32 %v4595_v33, %v11191_v35  ;;  %v4899_v35 = vmul.f32 %v11299_v6, %v12522_v20 }
 0x5b2   : > { %v5109_v3 = vmul.f32 %v4869_v61, %v4596_v24  ;;  %v4900_v5 = vsub.f32 1.0, %v4899_v35 }
 0x5b4   : > { %6315 = vmatmul.msk.f32.gmra.mxu1 %vm5129_vm7, %v5109_v3  ;;  %v6807_v3 = vld [vmem:[%s8166_s21 + $0x8] sm:$0xff] }
 0x5b7   : > { %v4598_v60 = vpop.f32.mrf.mxu2 }
 0x5b8   : > { %v4599_v44 = vadd.f32 %v4598_v60, %v11239_v52  ;;  %v11326_v52 = vpop.eup %6779 }
 0x5b9   : > { %v5243_v38 = vpop.f32.mrf.mxu1  ;;  %v4913_v4 = vmul.f32 %v11326_v52, %v12524_v14  ;;  %v11348_v50 = vpop.eup %6781  ;;  %vm4918_vm12 = vweird.f32 %v11326_v52 }
 0x5ba   : > { %v5110_v43 = vmul.f32 %v4883_v12, %v4599_v44  ;;  %v5453_v59 = vadd.f32 %v10882_v34, %v5243_v38  ;;  %v4901_v34 = vmul.f32 %v11299_v6, %v4900_v5  ;;  %v4927_v54 = vmul.f32 %v11348_v50, %v10676_v1  ;;  %v11367_v44 = vpop.eup %6783  ;;  %vm4919_vm14 = vmor %vm4917_vm13, %vm4918_vm12 }
 0x5bb   : > { %v4914_v0 = vsub.f32 1.0, %v4913_v4  ;;  %v4921_v12 = vand.u32 2147483647, %v12524_v14  ;;  %vm4932_vm0 = vweird.f32 %v11348_v50  ;;  %v11390_v18 = vpop.eup %6785  ;;  %vm4946_vm5 = vweird.f32 %v11367_v44 }
 0x5bc   : > { %v5552_v47 = vadd.f32 %v11319_v25, %v5453_v59  ;;  %6316 = vmatmul.msk.f32.gmra.mxu1 %vm5129_vm7, %v5110_v43  ;;  %v4902_v55 = vadd.f32 %v11299_v6, %v4901_v34  ;;  %v4928_v46 = vsub.f32 1.0, %v4927_v54  ;;  %v4941_v59 = vmul.f32 %v11367_v44, %v10723_v21  ;;  %vm4933_vm3 = vmor %vm4931_vm2, %vm4932_vm0 }
 0x5bd   : > { %v4915_v61 = vmul.f32 %v11326_v52, %v4914_v0  ;;  %vm4922_vm15 = vcmp.eq.f32.partialorder %v4921_v12, 8.507059e+37  ;;  %vm4947_vm8 = vmor %vm4945_vm6, %vm4946_vm5 }
 0x5be   : > { %v5584_v11 = vadd.f32 %v6806_v31, %v5552_v47  ;;  %v4929_v43 = vmul.f32 %v11348_v50, %v4928_v46  ;;  %v4942_v31 = vsub.f32 1.0, %v4941_v59 }
 0x5bf   : > { %v4601_v57 = vpop.f32.mrf.mxu2  ;;  %v4916_v13 = vadd.f32 %v11326_v52, %v4915_v61 }
 0x5c0   : > { %5616 = vst.msk [vmem:[%s11339_s25] sm:$0xff] %vm710_vm1, %v5584_v11  ;;  %v4602_v51 = vadd.f32 %v4601_v57, %v11266_v10  ;;  %v4907_v10 = vand.u32 2147483647, %v12522_v20  ;;  %v4930_v57 = vadd.f32 %v11348_v50, %v4929_v43 }
 0x5c1   : > { %v5246_v26 = vpop.f32.mrf.mxu1  ;;  %v4920_v36 = vsel %vm4919_vm14, %v11326_v52, %v4916_v13 }
 0x5c2   : > { %v5111_v15 = vmul.f32 %v4897_v58, %v4602_v51  ;;  %v5456_v33 = vadd.f32 %v10953_v42, %v5246_v26  ;;  %v4906_v42 = vsel %vm4905_vm10, %v11299_v6, %v4902_v55  ;;  %vm4908_vm11 = vcmp.eq.f32.partialorder %v4907_v10, 8.507059e+37  ;;  %v11369_v6 = vpop.f32.mrf.mxu0  ;;  %v6809_v55 = vld [vmem:[%s8166_s21 + $0x18] sm:$0xff] }
 0x5c3   : > { %v4911_v35 = vsel %vm4908_vm11, %v4910_v37, %v4906_v42  ;;  %v4937_v51 = vand.u32 2147483648, %v10676_v1  ;;  %v4934_v26 = vsel %vm4933_vm3, %v11348_v50, %v4930_v57  ;;  %v11413_v50 = vpop.eup %6787  ;;  %v4951_v37 = vand.u32 2147483648, %v10723_v21 }
 0x5c4   : > { %v5553_v24 = vadd.f32 %v11319_v25, %v5456_v33  ;;  %6317 = vmatmul.msk.f32.gmra.mxu1 %vm5129_vm7, %v5111_v15  ;;  %v4943_v15 = vmul.f32 %v11367_v44, %v4942_v31  ;;  %v4969_v46 = vmul.f32 %v11413_v50, %v10823_v41  ;;  %vm4960_vm10 = vweird.f32 %v11390_v18  ;;  %v6811_v31 = vld [vmem:[%s8166_s21 + $0x28] sm:$0xff] }
 0x5c5   : > { %v4938_v62 = vor.u32 1.1754944e-38, %v4937_v51  ;;  %vm4959_vm11 = vweird.f32 %v10772_v22  ;;  %vm4974_vm14 = vweird.f32 %v11413_v50 }
 0x5c6   : > { %v5585_v16 = vadd.f32 %v6807_v3, %v5553_v24  ;;  %vm4961_vm12 = vmor %vm4959_vm11, %vm4960_vm10 }
 0x5c7   : > { %v4604_v7 = vpop.f32.mrf.mxu2 }
 0x5c8   : > { %v4605_v20 = vadd.f32 %v4604_v7, %v11291_v48  ;;  %5617 = vst.msk [vmem:[%s11339_s25 + $0x8] sm:$0xff] %vm710_vm1, %v5585_v16  ;;  %v4923_v48 = vand.u32 2147483648, %v12524_v14  ;;  %v4944_v16 = vadd.f32 %v11367_v44, %v4943_v15 }
 0x5c9   : > { %v5249_v60 = vpop.f32.mrf.mxu1 }
 0x5ca   : > { %v5112_v39 = vmul.f32 %v4911_v35, %v4605_v20  ;;  %v5459_v5 = vadd.f32 %v11010_v45, %v5249_v60  ;;  %v11381_v45 = vpop.f32.mrf.mxu3  ;;  %v4924_v14 = vor.u32 1.1754944e-38, %v4923_v48  ;;  %v11397_v58 = vpop.f32.mrf.mxu0  ;;  %v6810_v60 = vld [vmem:[%s8166_s21 + $0x20] sm:$0xff]  ;;  %v4952_v48 = vor.u32 1.1754944e-38, %v4951_v37 }
 0x5cc   : > { %v5554_v38 = vadd.f32 %v11319_v25, %v5459_v5  ;;  %6318 = vmatmul.msk.f32.gmra.mxu1 %vm5129_vm7, %v5112_v39  ;;  %v4925_v4 = vsel %vm4922_vm15, %v4924_v14, %v4920_v36  ;;  %vm4973_vm15 = vweird.f32 %v10823_v41 }
 0x5cd   : > { %vm4975_vm0 = vmor %vm4973_vm15, %vm4974_vm14 }
 0x5ce   : > { %v5586_v47 = vadd.f32 %v6808_v29, %v5554_v38  ;;  %v4970_v38 = vsub.f32 1.0, %v4969_v46 }
 0x5cf   : > { %v4607_v30 = vpop.f32.mrf.mxu2 }
 0x5d0   : > { %v4608_v34 = vadd.f32 %v4607_v30, %v11312_v2  ;;  %5618 = vst.msk [vmem:[%s11339_s25 + $0x10] sm:$0xff] %vm710_vm1, %v5586_v47  ;;  %v4935_v2 = vand.u32 2147483647, %v10676_v1  ;;  %v4963_v30 = vand.u32 2147483647, %v10772_v22 }
 0x5d1   : > { %v5252_v27 = vpop.f32.mrf.mxu1 }
 0x5d2   : > { %v5113_v11 = vmul.f32 %v4925_v4, %v4608_v34  ;;  %v5462_v52 = vadd.f32 %v11075_v9, %v5252_v27  ;;  %v4955_v9 = vmul.f32 %v11390_v18, %v10772_v22  ;;  %v11406_v10 = vpop.f32.mrf.mxu3  ;;  %vm4936_vm4 = vcmp.eq.f32.partialorder %v4935_v2, 8.507059e+37  ;;  %v4506_v39 = vpop.f32.mrf.mxu0 }
 0x5d3   : > { %v4939_v61 = vsel %vm4936_vm4, %v4938_v62, %v4934_v26  ;;  %v4971_v34 = vmul.f32 %v11413_v50, %v4970_v38  ;;  %vm4964_vm13 = vcmp.eq.f32.partialorder %v4963_v30, 8.507059e+37  ;;  %vm4987_vm4 = vweird.f32 %v10874_v28 }
 0x5d4   : > { %v5555_v0 = vadd.f32 %v11319_v25, %v5462_v52  ;;  %6319 = vmatmul.msk.f32.gmra.mxu1 %vm5129_vm7, %v5113_v11  ;;  %v4956_v54 = vsub.f32 1.0, %v4955_v9 }
 0x5d5   : > { %v4972_v9 = vadd.f32 %v11413_v50, %v4971_v34  ;;  %v5007_v34 = vand.u32 2147483648, %v10927_v49 }
 0x5d6   : > { %v5587_v33 = vadd.f32 %v6809_v55, %v5555_v0  ;;  %v4957_v35 = vmul.f32 %v11390_v18, %v4956_v54  ;;  %v4979_v55 = vand.u32 2147483648, %v10823_v41 }
 0x5d7   : > { %v4610_v1 = vpop.f32.mrf.mxu2 }
 0x5d8   : > { %v4611_v24 = vadd.f32 %v4610_v1, %v11344_v19  ;;  %5619 = vst.msk [vmem:[%s11339_s25 + $0x18] sm:$0xff] %vm710_vm1, %v5587_v33  ;;  %v4949_v19 = vand.u32 2147483647, %v10723_v21  ;;  %v4958_v29 = vadd.f32 %v11390_v18, %v4957_v35  ;;  %v4977_v33 = vand.u32 2147483647, %v10823_v41 }
 0x5d9   : > { %v5255_v3 = vpop.f32.mrf.mxu1 }
 0x5da   : > { %v5114_v42 = vmul.f32 %v4939_v61, %v4611_v24  ;;  %v5465_v7 = vadd.f32 %v11144_v32, %v5255_v3  ;;  %v4948_v32 = vsel %vm4947_vm8, %v11367_v44, %v4944_v16  ;;  %vm4950_vm9 = vcmp.eq.f32.partialorder %v4949_v19, 8.507059e+37  ;;  %v11430_v43 = vpop.f32.mrf.mxu3  ;;  %v11434_v44 = vpop.eup %6789  ;;  %v6812_v61 = vld [vmem:[%s8166_s21 + $0x30] sm:$0xff] }
 0x5db   : > { %v4953_v12 = vsel %vm4950_vm9, %v4952_v48, %v4948_v32  ;;  %v4983_v4 = vmul.f32 %v11434_v44, %v10874_v28  ;;  %v4509_v52 = vpop.f32.mrf.mxu0  ;;  %v4976_v24 = vsel %vm4975_vm0, %v11413_v50, %v4972_v9  ;;  %v4980_v3 = vor.u32 1.1754944e-38, %v4979_v55 }
 0x5dc   : > { %v5556_v20 = vadd.f32 %v11319_v25, %v5465_v7  ;;  %6320 = vmatmul.msk.f32.gmra.mxu1 %vm5129_vm7, %v5114_v42  ;;  %vm4978_vm2 = vcmp.eq.f32.partialorder %v4977_v33, 8.507059e+37  ;;  %vm4988_vm3 = vweird.f32 %v11434_v44  ;;  %v4993_v32 = vand.u32 2147483648, %v10874_v28 }
 0x5dd   : > { %v4984_v2 = vsub.f32 1.0, %v4983_v4  ;;  %v4981_v41 = vsel %vm4978_vm2, %v4980_v3, %v4976_v24  ;;  %vm4989_vm5 = vmor %vm4987_vm4, %vm4988_vm3  ;;  %vm5001_vm9 = vweird.f32 %v10927_v49  ;;  %v5005_v4 = vand.u32 2147483647, %v10927_v49 }
 0x5de   : > { %v5588_v13 = vadd.f32 %v6810_v60, %v5556_v20  ;;  %vm5029_vm2 = vweird.f32 %v11031_v63 }
 0x5df   : > { %v4613_v5 = vpop.f32.mrf.mxu2  ;;  %v4985_v62 = vmul.f32 %v11434_v44, %v4984_v2  ;;  %vm5006_vm11 = vcmp.eq.f32.partialorder %v5005_v4, 8.507059e+37 }
 0x5e0   : > { %v4614_v21 = vadd.f32 %v4613_v5, %v11369_v6  ;;  %5620 = vst.msk [vmem:[%s11339_s25 + $0x20] sm:$0xff] %vm710_vm1, %v5588_v13  ;;  %v4965_v6 = vand.u32 2147483648, %v10772_v22 }
 0x5e1   : > { %v5258_v36 = vpop.f32.mrf.mxu1  ;;  %v4986_v20 = vadd.f32 %v11434_v44, %v4985_v62  ;;  %v5019_v62 = vand.u32 2147483647, %v10980_v23 }
 0x5e2   : > { %v5115_v59 = vmul.f32 %v4953_v12, %v4614_v21  ;;  %v5468_v47 = vadd.f32 %v11195_v17, %v5258_v36  ;;  %v4962_v17 = vsel %vm4961_vm12, %v11390_v18, %v4958_v29  ;;  %v4966_v57 = vor.u32 1.1754944e-38, %v4965_v6  ;;  %v11453_v18 = vpop.eup %6791  ;;  %v6813_v21 = vld [vmem:[%s8166_s21 + $0x38] sm:$0xff] }
 0x5e3   : > { %v11473_v35 = vpop.eup %6793  ;;  %v4512_v50 = vpop.f32.mrf.mxu0  ;;  %v4990_v48 = vsel %vm4989_vm5, %v11434_v44, %v4986_v20  ;;  %vm5002_vm8 = vweird.f32 %v11453_v18  ;;  %vm5020_vm15 = vcmp.eq.f32.partialorder %v5019_v62, 8.507059e+37  ;;  %v5063_v62 = vand.u32 2147483648, %v11125_v8 }
 0x5e4   : > { %v5557_v14 = vadd.f32 %v11319_v25, %v5468_v47  ;;  %6321 = vmatmul.msk.f32.gmra.mxu1 %vm5129_vm7, %v5115_v59  ;;  %v4967_v51 = vsel %vm4964_vm13, %v4966_v57, %v4962_v17  ;;  %v5011_v5 = vmul.f32 %v11473_v35, %v10980_v23  ;;  %vm5003_vm10 = vmor %vm5001_vm9, %vm5002_vm8  ;;  %v6814_v57 = vld [vmem:[%s8166_s21 + $0x40] sm:$0xff]  ;;  %vm5016_vm12 = vweird.f32 %v11473_v35 }
 0x5e5   : > { %vm5015_vm13 = vweird.f32 %v10980_v23 }
 0x5e6   : > { %v5589_v11 = vadd.f32 %v6811_v31, %v5557_v14  ;;  %v5012_v29 = vsub.f32 1.0, %v5011_v5  ;;  %v11493_v14 = vpop.eup %6795  ;;  %vm5017_vm14 = vmor %vm5015_vm13, %vm5016_vm12 }
 0x5e7   : > { %v4616_v27 = vpop.f32.mrf.mxu2  ;;  %vm5030_vm0 = vweird.f32 %v11493_v14 }
 0x5e8   : > { %v4617_v22 = vadd.f32 %v4616_v27, %v11397_v58  ;;  %5621 = vst.msk [vmem:[%s11339_s25 + $0x28] sm:$0xff] %vm710_vm1, %v5589_v11  ;;  %v11458_v58 = vpop.f32.mrf.mxu3  ;;  %v5013_v11 = vmul.f32 %v11473_v35, %v5012_v29  ;;  %vm5031_vm3 = vmor %vm5029_vm2, %vm5030_vm0 }
 0x5e9   : > { %v5261_v15 = vpop.f32.mrf.mxu1 }
 0x5ea   : > { %v5116_v0 = vmul.f32 %v4967_v51, %v4617_v22  ;;  %v5471_v26 = vadd.f32 %v11241_v53, %v5261_v15  ;;  %v4997_v53 = vmul.f32 %v11453_v18, %v10927_v49  ;;  %v5008_v49 = vor.u32 1.1754944e-38, %v5007_v34 }
 0x5eb   : > { %v4515_v17 = vpop.f32.mrf.mxu0  ;;  %v5014_v55 = vadd.f32 %v11473_v35, %v5013_v11  ;;  %v5047_v11 = vand.u32 2147483647, %v11087_v40 }
 0x5ec   : > { %v5558_v1 = vadd.f32 %v11319_v25, %v5471_v26  ;;  %6322 = vmatmul.msk.f32.gmra.mxu1 %vm5129_vm7, %v5116_v0  ;;  %v4998_v7 = vsub.f32 1.0, %v4997_v53 }
 0x5ed   : > { %vm5048_vm9 = vcmp.eq.f32.partialorder %v5047_v11, 8.507059e+37 }
 0x5ee   : > { %v5590_v54 = vadd.f32 %v6812_v61, %v5558_v1  ;;  %v4999_v13 = vmul.f32 %v11453_v18, %v4998_v7  ;;  %v5021_v1 = vand.u32 2147483648, %v10980_v23  ;;  %v11527_v7 = vpop.xlane.xlu2 %4415 }
 0x5ef   : > { %v4619_v42 = vpop.f32.mrf.mxu2  ;;  %6801 = vrcp.f32 %v11527_v7 }
 0x5f0   : > { %v4620_v16 = vadd.f32 %v4619_v42, %v4506_v39  ;;  %5622 = vst.msk [vmem:[%s11339_s25 + $0x30] sm:$0xff] %vm710_vm1, %v5590_v54  ;;  %v4991_v39 = vand.u32 2147483647, %v10874_v28  ;;  %v4994_v28 = vor.u32 1.1754944e-38, %v4993_v32  ;;  %v5000_v30 = vadd.f32 %v11453_v18, %v4999_v13  ;;  %v6815_v42 = vld [vmem:[%s8166_s21 + $0x48] sm:$0xff] }
 0x5f1   : > { %v5264_v19 = vpop.f32.mrf.mxu1  ;;  %v5022_v23 = vor.u32 1.1754944e-38, %v5021_v1  ;;  %v5033_v13 = vand.u32 2147483647, %v11031_v63 }
 0x5f2   : > { %v5117_v37 = vmul.f32 %v4981_v41, %v4620_v16  ;;  %v5474_v46 = vadd.f32 %v11268_v56, %v5264_v19  ;;  %v11485_v56 = vpop.f32.mrf.mxu3  ;;  %vm4992_vm6 = vcmp.eq.f32.partialorder %v4991_v39, 8.507059e+37  ;;  %v5004_v27 = vsel %vm5003_vm10, %v11453_v18, %v5000_v30  ;;  %v11513_v18 = vpop.eup %6797 }
 0x5f3   : > { %v4995_v36 = vsel %vm4992_vm6, %v4994_v28, %v4990_v48  ;;  %v5009_v0 = vsel %vm5006_vm11, %v5008_v49, %v5004_v27  ;;  %v5039_v61 = vmul.f32 %v11513_v18, %v11087_v40  ;;  %v4518_v54 = vpop.f32.mrf.mxu0  ;;  %v11535_v32 = vpop.eup %6799  ;;  %vm5034_vm4 = vcmp.eq.f32.partialorder %v5033_v13, 8.507059e+37 }
 0x5f4   : > { %v5559_v60 = vadd.f32 %v11319_v25, %v5474_v46  ;;  %6323 = vmatmul.msk.f32.gmra.mxu1 %vm5129_vm7, %v5117_v37  ;;  %vm5044_vm5 = vweird.f32 %v11513_v18  ;;  %vm5043_vm6 = vweird.f32 %v11087_v40  ;;  %vm5058_vm10 = vweird.f32 %v11535_v32 }
 0x5f5   : > { %v5040_v19 = vsub.f32 1.0, %v5039_v61  ;;  %vm5045_vm8 = vmor %vm5043_vm6, %vm5044_vm5  ;;  %vm5057_vm11 = vweird.f32 %v11125_v8 }
 0x5f6   : > { %v5591_v12 = vadd.f32 %v6813_v21, %v5559_v60  ;;  %v5035_v60 = vand.u32 2147483648, %v11031_v63  ;;  %v5053_v21 = vmul.f32 %v11535_v32, %v11125_v8  ;;  %vm5059_vm12 = vmor %vm5057_vm11, %vm5058_vm10 }
 0x5f7   : > { %v4622_v38 = vpop.f32.mrf.mxu2  ;;  %v5041_v48 = vmul.f32 %v11513_v18, %v5040_v19 }
 0x5f8   : > { %v4623_v59 = vadd.f32 %v4622_v38, %v4509_v52  ;;  %5623 = vst.msk [vmem:[%s11339_s25 + $0x38] sm:$0xff] %vm710_vm1, %v5591_v12  ;;  %v6816_v12 = vld [vmem:[%s8166_s21 + $0x50] sm:$0xff] }
 0x5f9   : > { %v5267_v6 = vpop.f32.mrf.mxu1  ;;  %v5042_v34 = vadd.f32 %v11513_v18, %v5041_v48 }
 0x5fa   : > { %v5118_v47 = vmul.f32 %v4995_v36, %v4623_v59  ;;  %v5477_v44 = vadd.f32 %v11381_v45, %v5267_v6  ;;  %v5025_v45 = vmul.f32 %v11493_v14, %v11031_v63  ;;  %v11507_v51 = vpop.f32.mrf.mxu3  ;;  %v5036_v59 = vor.u32 1.1754944e-38, %v5035_v60  ;;  %v11551_v6 = vpop.xlane.xlu1 %4418 }
 0x5fb   : > { %v4521_v63 = vpop.f32.mrf.mxu0  ;;  %6803 = vrcp.f32 %v11551_v6 }
 0x5fc   : > { %v5560_v31 = vadd.f32 %v11319_v25, %v5477_v44  ;;  %6324 = vmatmul.msk.f32.gmra.mxu1 %vm5129_vm7, %v5118_v47  ;;  %v5026_v15 = vsub.f32 1.0, %v5025_v45  ;;  %v5054_v47 = vsub.f32 1.0, %v5053_v21 }
 0x5fe   : > { %v5592_v22 = vadd.f32 %v6814_v57, %v5560_v31  ;;  %v5027_v24 = vmul.f32 %v11493_v14, %v5026_v15  ;;  %v5055_v27 = vmul.f32 %v11535_v32, %v5054_v47  ;;  %v5046_v57 = vsel %vm5045_vm8, %v11513_v18, %v5042_v34 }
 0x5ff   : > { %v4625_v52 = vpop.f32.mrf.mxu2 }
 0x600   : > { %v4626_v2 = vadd.f32 %v4625_v52, %v4512_v50  ;;  %5624 = vst.msk [vmem:[%s11339_s25 + $0x40] sm:$0xff] %vm710_vm1, %v5592_v22  ;;  %v6817_v22 = vld [vmem:[%s8166_s21 + $0x58] sm:$0xff] }
 0x601   : > { %v5270_v26 = vpop.f32.mrf.mxu1 }
 0x602   : > { %v5119_v9 = vmul.f32 %v5009_v0, %v4626_v2  ;;  %v5480_v33 = vadd.f32 %v11406_v10, %v5270_v26  ;;  %v5018_v10 = vsel %vm5017_vm14, %v11473_v35, %v5014_v55  ;;  %v11531_v20 = vpop.f32.mrf.mxu3  ;;  %v5028_v35 = vadd.f32 %v11493_v14, %v5027_v24 }
 0x603   : > { %v5023_v37 = vsel %vm5020_vm15, %v5022_v23, %v5018_v10  ;;  %v5056_v55 = vadd.f32 %v11535_v32, %v5055_v27  ;;  %v4524_v18 = vpop.f32.mrf.mxu0  ;;  %v5064_v23 = vor.u32 1.1754944e-38, %v5063_v62  ;;  %vm5071_vm15 = vweird.f32 %v11527_v7  ;;  %v6823_v62 = vld [vmem:[%s8166_s21 + $0x88] sm:$0xff] }
 0x604   : > { %v5561_v53 = vadd.f32 %v11319_v25, %v5480_v33  ;;  %6325 = vmatmul.msk.f32.gmra.mxu1 %vm5129_vm7, %v5119_v9 }
 0x606   : > { %v5593_v3 = vadd.f32 %v6815_v42, %v5561_v53  ;;  %v5061_v53 = vand.u32 2147483647, %v11125_v8  ;;  %v6818_v42 = vld [vmem:[%s8166_s21 + $0x60] sm:$0xff] }
 0x607   : > { %v4628_v16 = vpop.f32.mrf.mxu2 }
 0x608   : > { %v4629_v41 = vadd.f32 %v4628_v16, %v4515_v17  ;;  %5625 = vst.msk [vmem:[%s11339_s25 + $0x48] sm:$0xff] %vm710_vm1, %v5593_v3  ;;  %v5049_v17 = vand.u32 2147483648, %v11087_v40  ;;  %vm5062_vm13 = vcmp.eq.f32.partialorder %v5061_v53, 8.507059e+37 }
 0x609   : > { %v5273_v46 = vpop.f32.mrf.mxu1 }
 0x60a   : > { %v5120_v50 = vmul.f32 %v5023_v37, %v4629_v41  ;;  %v5483_v39 = vadd.f32 %v11430_v43, %v5273_v46  ;;  %v5032_v43 = vsel %vm5031_vm3, %v11493_v14, %v5028_v35  ;;  %v11555_v14 = vpop.eup %6801  ;;  %v11560_v31 = vpop.f32.mrf.mxu3  ;;  %v5050_v2 = vor.u32 1.1754944e-38, %v5049_v17  ;;  %v6820_v17 = vld [vmem:[%s8166_s21 + $0x70] sm:$0xff] }
 0x60b   : > { %v5037_v29 = vsel %vm5034_vm4, %v5036_v59, %v5032_v43  ;;  %v11575_v33 = vpop.eup %6803  ;;  %vm5072_vm14 = vweird.f32 %v11555_v14  ;;  %v5077_v35 = vand.u32 2147483648, %v11527_v7  ;;  %v4527_v60 = vpop.f32.mrf.mxu0  ;;  %vm5085_vm4 = vweird.f32 %v11551_v6 }
 0x60c   : > { %v5562_v5 = vadd.f32 %v11319_v25, %v5483_v39  ;;  %6326 = vmatmul.msk.f32.gmra.mxu1 %vm5129_vm7, %v5120_v50  ;;  %v5051_v40 = vsel %vm5048_vm9, %v5050_v2, %v5046_v57  ;;  %v5081_v10 = vmul.f32 %v11575_v33, %v11551_v6  ;;  %v5075_v39 = vand.u32 2147483647, %v11527_v7  ;;  %vm5073_vm0 = vmor %vm5071_vm15, %vm5072_vm14 }
 0x60d   : > { %v5078_v43 = vor.u32 1.1754944e-38, %v5077_v35  ;;  %vm5086_vm3 = vweird.f32 %v11575_v33  ;;  %v6826_v35 = vld [vmem:[%s8166_s21 + $0xa0] sm:$0xff] }
 0x60e   : > { %v5594_v38 = vadd.f32 %v6816_v12, %v5562_v5  ;;  %v5082_v37 = vsub.f32 1.0, %v5081_v10  ;;  %v6819_v12 = vld [vmem:[%s8166_s21 + $0x68] sm:$0xff]  ;;  %vm5076_vm2 = vcmp.eq.f32.partialorder %v5075_v39, 8.507059e+37  ;;  %vm5087_vm5 = vmor %vm5085_vm4, %vm5086_vm3 }
 0x60f   : > { %v4631_v28 = vpop.f32.mrf.mxu2 }
 0x610   : > { %v4632_v36 = vadd.f32 %v4631_v28, %v4518_v54  ;;  %5626 = vst.msk [vmem:[%s11339_s25 + $0x50] sm:$0xff] %vm710_vm1, %v5594_v38  ;;  %v5083_v5 = vmul.f32 %v11575_v33, %v5082_v37 }
 0x611   : > { %v5276_v44 = vpop.f32.mrf.mxu1 }
 0x612   : > { %v5121_v30 = vmul.f32 %v5037_v29, %v4632_v36  ;;  %v5486_v4 = vadd.f32 %v11458_v58, %v5276_v44  ;;  %v5067_v58 = vmul.f32 %v11555_v14, %v11527_v7  ;;  %v11586_v54 = vpop.f32.mrf.mxu3  ;;  %v5091_v29 = vand.u32 2147483648, %v11551_v6 }
 0x614   : > { %v5563_v45 = vadd.f32 %v11319_v25, %v5486_v4  ;;  %6327 = vmatmul.msk.f32.gmra.mxu1 %vm5129_vm7, %v5121_v30  ;;  %v5068_v15 = vsub.f32 1.0, %v5067_v58  ;;  %v5089_v30 = vand.u32 2147483647, %v11551_v6  ;;  %v4530_v4 = vpop.f32.mrf.mxu0 }
 0x616   : > { %v5595_v52 = vadd.f32 %v6817_v22, %v5563_v45  ;;  %v5069_v61 = vmul.f32 %v11555_v14, %v5068_v15  ;;  %vm5090_vm6 = vcmp.eq.f32.partialorder %v5089_v30, 8.507059e+37 }
 0x617   : > { %v4634_v49 = vpop.f32.mrf.mxu2 }
 0x618   : > { %v4635_v0 = vadd.f32 %v4634_v49, %v4521_v63  ;;  %5627 = vst.msk [vmem:[%s11339_s25 + $0x58] sm:$0xff] %vm710_vm1, %v5595_v52  ;;  %v5070_v46 = vadd.f32 %v11555_v14, %v5069_v61  ;;  %v5084_v63 = vadd.f32 %v11575_v33, %v5083_v5  ;;  %v6821_v49 = vld [vmem:[%s8166_s21 + $0x78] sm:$0xff] }
 0x619   : > { %v5279_v26 = vpop.f32.mrf.mxu1 }
 0x61a   : > { %v5122_v9 = vmul.f32 %v5051_v40, %v4635_v0  ;;  %v5489_v1 = vadd.f32 %v11485_v56, %v5279_v26  ;;  %v5060_v56 = vsel %vm5059_vm12, %v11535_v32, %v5056_v55  ;;  %v5503_v48 = vpop.f32.mrf.mxu3  ;;  %v5074_v21 = vsel %vm5073_vm0, %v11555_v14, %v5070_v46  ;;  %v6822_v26 = vld [vmem:[%s8166_s21 + $0x80] sm:$0xff] }
 0x61b   : > { %v5065_v8 = vsel %vm5062_vm13, %v5064_v23, %v5060_v56  ;;  %v5079_v7 = vsel %vm5076_vm2, %v5078_v43, %v5074_v21  ;;  %v5088_v34 = vsel %vm5087_vm5, %v11575_v33, %v5084_v63  ;;  %v5092_v14 = vor.u32 1.1754944e-38, %v5091_v29  ;;  %v6824_v56 = vld [vmem:[%s8166_s21 + $0x90] sm:$0xff] }
 0x61c   : > { %v5564_v24 = vadd.f32 %v11319_v25, %v5489_v1  ;;  %6328 = vmatmul.msk.f32.gmra.mxu1 %vm5129_vm7, %v5122_v9 }
 0x61d   : > { %v5093_v6 = vsel %vm5090_vm6, %v5092_v14, %v5088_v34 }
 0x61e   : > { %v5596_v3 = vadd.f32 %v6818_v42, %v5564_v24 }
 0x61f   : > { %v4637_v16 = vpop.f32.mrf.mxu2 }
 0x620   : > { %v4638_v41 = vadd.f32 %v4637_v16, %v4524_v18  ;;  %5628 = vst.msk [vmem:[%s11339_s25 + $0x60] sm:$0xff] %vm710_vm1, %v5596_v3 }
 0x621   : > { %v5282_v50 = vpop.f32.mrf.mxu1 }
 0x622   : > { %v5123_v19 = vmul.f32 %v5065_v8, %v4638_v41  ;;  %v5492_v32 = vadd.f32 %v11507_v51, %v5282_v50  ;;  %v5506_v27 = vpop.f32.mrf.mxu3  ;;  %v6825_v41 = vld [vmem:[%s8166_s21 + $0x98] sm:$0xff] }
 0x624   : > { %v5565_v13 = vadd.f32 %v11319_v25, %v5492_v32  ;;  %6329 = vmatmul.msk.f32.gmra.mxu1 %vm5129_vm7, %v5123_v19 }
 0x626   : > { %v5597_v38 = vadd.f32 %v6819_v12, %v5565_v13 }
 0x627   : > { %v4640_v51 = vpop.f32.mrf.mxu2 }
 0x628   : > { %v4641_v28 = vadd.f32 %v4640_v51, %v4527_v60  ;;  %5629 = vst.msk [vmem:[%s11339_s25 + $0x68] sm:$0xff] %vm710_vm1, %v5597_v38 }
 0x629   : > { %v5285_v36 = vpop.f32.mrf.mxu1 }
 0x62a   : > { %v5124_v59 = vmul.f32 %v5079_v7, %v4641_v28  ;;  %v5495_v47 = vadd.f32 %v11531_v20, %v5285_v36  ;;  %v5509_v0 = vpop.f32.mrf.mxu3  ;;  %v6828_v28 = vld [vmem:[%s8166_s21 + $0xb0] sm:$0xff] }
 0x62c   : > { %v5566_v44 = vadd.f32 %v11319_v25, %v5495_v47  ;;  %6330 = vmatmul.msk.f32.gmra.mxu1 %vm5129_vm7, %v5124_v59  ;;  %v6829_v47 = vld [vmem:[%s8166_s21 + $0xb8] sm:$0xff] }
 0x62e   : > { %v5598_v11 = vadd.f32 %v6820_v17, %v5566_v44 }
 0x62f   : > { %v4643_v45 = vpop.f32.mrf.mxu2 }
 0x630   : > { %v4644_v20 = vadd.f32 %v4643_v45, %v4530_v4  ;;  %5630 = vst.msk [vmem:[%s11339_s25 + $0x70] sm:$0xff] %vm710_vm1, %v5598_v11  ;;  %v6830_v4 = vld [vmem:[%s8166_s21 + $0xc0] sm:$0xff] }
 0x631   : > { %v5288_v57 = vpop.f32.mrf.mxu1 }
 0x632   : > { %v5125_v58 = vmul.f32 %v5093_v6, %v4644_v20  ;;  %v5498_v22 = vadd.f32 %v11560_v31, %v5288_v57  ;;  %v5512_v18 = vpop.f32.mrf.mxu3  ;;  %v6831_v6 = vld [vmem:[%s8166_s21 + $0xc8] sm:$0xff] }
 0x634   : > { %v5567_v52 = vadd.f32 %v11319_v25, %v5498_v22  ;;  %6331 = vmatmul.msk.f32.gmra.mxu1 %vm5129_vm7, %v5125_v58 }
 0x636   : > { %v5599_v2 = vadd.f32 %v6821_v49, %v5567_v52 }
 0x638   : > { %5631 = vst.msk [vmem:[%s11339_s25 + $0x78] sm:$0xff] %vm710_vm1, %v5599_v2  ;;  %v6832_v2 = vld [vmem:[%s8166_s21 + $0xd0] sm:$0xff] }
 0x639   : > { %v5291_v40 = vpop.f32.mrf.mxu1 }
 0x63a   : > { %v5501_v15 = vadd.f32 %v11586_v54, %v5291_v40  ;;  %v5515_v54 = vpop.f32.mrf.mxu3 }
 0x63c   : > { %v5568_v9 = vadd.f32 %v11319_v25, %v5501_v15 }
 0x63e   : > { %v5600_v31 = vadd.f32 %v6822_v26, %v5568_v9 }
 0x640   : > { %5632 = vst.msk [vmem:[%s11339_s25 + $0x80] sm:$0xff] %vm710_vm1, %v5600_v31  ;;  %v6833_v31 = vld [vmem:[%s8166_s21 + $0xd8] sm:$0xff] }
 0x641   : > { %v5294_v55 = vpop.f32.mrf.mxu1 }
 0x642   : > { %v5504_v33 = vadd.f32 %v5503_v48, %v5294_v55  ;;  %v5518_v37 = vpop.f32.mrf.mxu3  ;;  %v6827_v48 = vld [vmem:[%s8166_s21 + $0xa8] sm:$0xff] }
 0x644   : > { %v5569_v1 = vadd.f32 %v11319_v25, %v5504_v33 }
 0x646   : > { %v5601_v53 = vadd.f32 %v6823_v62, %v5569_v1 }
 0x648   : > { %5633 = vst.msk [vmem:[%s11339_s25 + $0x88] sm:$0xff] %vm710_vm1, %v5601_v53  ;;  %v6834_v53 = vld [vmem:[%s8166_s21 + $0xe0] sm:$0xff] }
 0x649   : > { %v5297_v24 = vpop.f32.mrf.mxu1 }
 0x64a   : > { %v5507_v61 = vadd.f32 %v5506_v27, %v5297_v24  ;;  %v5521_v39 = vpop.f32.mrf.mxu3 }
 0x64c   : > { %v5570_v10 = vadd.f32 %v11319_v25, %v5507_v61 }
 0x64e   : > { %v5602_v42 = vadd.f32 %v6824_v56, %v5570_v10  ;;  %v6835_v56 = vld [vmem:[%s8166_s21 + $0xe8] sm:$0xff] }
 0x650   : > { %5634 = vst.msk [vmem:[%s11339_s25 + $0x90] sm:$0xff] %vm710_vm1, %v5602_v42 }
 0x651   : > { %v5300_v3 = vpop.f32.mrf.mxu1 }
 0x652   : > { %v5510_v16 = vadd.f32 %v5509_v0, %v5300_v3  ;;  %v5524_v38 = vpop.f32.mrf.mxu3 }
 0x654   : > { %v5571_v23 = vadd.f32 %v11319_v25, %v5510_v16 }
 0x656   : > { %v5603_v8 = vadd.f32 %v6825_v41, %v5571_v23 }
 0x658   : > { %5635 = vst.msk [vmem:[%s11339_s25 + $0x98] sm:$0xff] %vm710_vm1, %v5603_v8  ;;  %v6836_v8 = vld [vmem:[%s8166_s21 + $0xf0] sm:$0xff] }
 0x659   : > { %v5303_v19 = vpop.f32.mrf.mxu1 }
 0x65a   : > { %v5513_v50 = vadd.f32 %v5512_v18, %v5303_v19  ;;  %v5527_v29 = vpop.f32.mrf.mxu3 }
 0x65c   : > { %v5572_v46 = vadd.f32 %v11319_v25, %v5513_v50 }
 0x65e   : > { %v5604_v32 = vadd.f32 %v6826_v35, %v5572_v46 }
 0x660   : > { %5636 = vst.msk [vmem:[%s11339_s25 + $0xa0] sm:$0xff] %vm710_vm1, %v5604_v32  ;;  %v6837_v32 = vld [vmem:[%s8166_s21 + $0xf8] sm:$0xff] }
 0x661   : > { %v5306_v60 = vpop.f32.mrf.mxu1 }
 0x662   : > { %v5516_v13 = vadd.f32 %v5515_v54, %v5306_v60  ;;  %v5530_v11 = vpop.f32.mrf.mxu3 }
 0x664   : > { %v5573_v5 = vadd.f32 %v11319_v25, %v5516_v13 }
 0x666   : > { %v5605_v21 = vadd.f32 %v6827_v48, %v5573_v5 }
 0x668   : > { %5637 = vst.msk [vmem:[%s11339_s25 + $0xa8] sm:$0xff] %vm710_vm1, %v5605_v21 }
 0x669   : > { %v5309_v43 = vpop.f32.mrf.mxu1 }
 0x66a   : > { %v5519_v12 = vadd.f32 %v5518_v37, %v5309_v43  ;;  %v5533_v57 = vpop.f32.mrf.mxu3 }
 0x66c   : > { %v5574_v51 = vadd.f32 %v11319_v25, %v5519_v12 }
 0x66e   : > { %v5606_v7 = vadd.f32 %v6828_v28, %v5574_v51 }
 0x670   : > { %5638 = vst.msk [vmem:[%s11339_s25 + $0xb0] sm:$0xff] %vm710_vm1, %v5606_v7 }
 0x671   : > { %v5312_v59 = vpop.f32.mrf.mxu1 }
 0x672   : > { %v5522_v36 = vadd.f32 %v5521_v39, %v5312_v59  ;;  %v5536_v9 = vpop.f32.mrf.mxu3 }
 0x674   : > { %v5575_v63 = vadd.f32 %v11319_v25, %v5522_v36 }
 0x676   : > { %v5607_v30 = vadd.f32 %v6829_v47, %v5575_v63 }
 0x678   : > { %5639 = vst.msk [vmem:[%s11339_s25 + $0xb8] sm:$0xff] %vm710_vm1, %v5607_v30 }
 0x679   : > { %v5315_v44 = vpop.f32.mrf.mxu1 }
 0x67a   : > { %v5525_v34 = vadd.f32 %v5524_v38, %v5315_v44  ;;  %v5539_v62 = vpop.f32.mrf.mxu3 }
 0x67c   : > { %v5576_v14 = vadd.f32 %v11319_v25, %v5525_v34 }
 0x67e   : > { %v5608_v17 = vadd.f32 %v6830_v4, %v5576_v14 }
 0x680   : > { %5640 = vst.msk [vmem:[%s11339_s25 + $0xc0] sm:$0xff] %vm710_vm1, %v5608_v17 }
 0x681   : > { %v5318_v45 = vpop.f32.mrf.mxu1 }
 0x682   : > { %v5528_v27 = vadd.f32 %v5527_v29, %v5318_v45  ;;  %v5542_v3 = vpop.f32.mrf.mxu3 }
 0x684   : > { %v5577_v20 = vadd.f32 %v11319_v25, %v5528_v27 }
 0x686   : > { %v5609_v58 = vadd.f32 %v6831_v6, %v5577_v20 }
 0x688   : > { %5641 = vst.msk [vmem:[%s11339_s25 + $0xc8] sm:$0xff] %vm710_vm1, %v5609_v58 }
 0x689   : > { %v5321_v22 = vpop.f32.mrf.mxu1 }
 0x68a   : > { %v5531_v52 = vadd.f32 %v5530_v11, %v5321_v22  ;;  %v5545_v19 = vpop.f32.mrf.mxu3 }
 0x68c   : > { %v5578_v49 = vadd.f32 %v11319_v25, %v5531_v52 }
 0x68e   : > { %v5610_v0 = vadd.f32 %v6832_v2, %v5578_v49 }
 0x690   : > { %5642 = vst.msk [vmem:[%s11339_s25 + $0xd0] sm:$0xff] %vm710_vm1, %v5610_v0 }
 0x691   : > { %v5324_v40 = vpop.f32.mrf.mxu1 }
 0x692   : > { %v5534_v15 = vadd.f32 %v5533_v57, %v5324_v40 }
 0x694   : > { %v5579_v26 = vadd.f32 %v11319_v25, %v5534_v15 }
 0x696   : > { %v5611_v55 = vadd.f32 %v6833_v31, %v5579_v26 }
 0x698   : > { %5643 = vst.msk [vmem:[%s11339_s25 + $0xd8] sm:$0xff] %vm710_vm1, %v5611_v55 }
 0x699   : > { %v5327_v33 = vpop.f32.mrf.mxu1 }
 0x69a   : > { %v5537_v18 = vadd.f32 %v5536_v9, %v5327_v33 }
 0x69c   : > { %v5580_v1 = vadd.f32 %v11319_v25, %v5537_v18 }
 0x69e   : > { %v5612_v24 = vadd.f32 %v6834_v53, %v5580_v1 }
 0x6a0   : > { %5644 = vst.msk [vmem:[%s11339_s25 + $0xe0] sm:$0xff] %vm710_vm1, %v5612_v24 }
 0x6a1   : > { %v5330_v61 = vpop.f32.mrf.mxu1 }
 0x6a2   : > { %v5540_v10 = vadd.f32 %v5539_v62, %v5330_v61 }
 0x6a4   : > { %v5581_v54 = vadd.f32 %v11319_v25, %v5540_v10 }
 0x6a6   : > { %v5613_v42 = vadd.f32 %v6835_v56, %v5581_v54 }
 0x6a8   : > { %5645 = vst.msk [vmem:[%s11339_s25 + $0xe8] sm:$0xff] %vm710_vm1, %v5613_v42 }
 0x6a9   : > { %v5333_v16 = vpop.f32.mrf.mxu1 }
 0x6aa   : > { %v5543_v23 = vadd.f32 %v5542_v3, %v5333_v16 }
 0x6ac   : > { %v5582_v41 = vadd.f32 %v11319_v25, %v5543_v23 }
 0x6ae   : > { %v5614_v37 = vadd.f32 %v6836_v8, %v5582_v41 }
 0x6b0   : > { %5646 = vst.msk [vmem:[%s11339_s25 + $0xf0] sm:$0xff] %vm710_vm1, %v5614_v37 }
 0x6b1   : > { %v5336_v50 = vpop.f32.mrf.mxu1 }
 0x6b2   : > { %v5546_v46 = vadd.f32 %v5545_v19, %v5336_v50 }
 0x6b4   : > { %v5583_v35 = vadd.f32 %v11319_v25, %v5546_v46 }
 0x6b6   : > { %v5615_v39 = vadd.f32 %v6837_v32, %v5583_v35 }
 0x6b8   : > { %5647 = vst.msk [vmem:[%s11339_s25 + $0xf8] sm:$0xff] %vm710_vm1, %v5615_v39 }
 0x6b9   : > { %6865 = shalt.err (!%p6862_p3)
}
 0x6ba   : > { %s6902_s21 = smov 128   ;;  %s6903_s29 = smov 8  }
 0x6bb   : > { %6373 = dma.vmem_to_hbm [thread:$0]  (%p6997_p5), %s5662_s28, 4096, %s5664_s30, %s5649_s17, %s6902_s21, %s6902_s21, %s6903_s29  }
 0x6bc PF: > { %p6379_p4 = scmp.ge.s32.totalorder %s6900_s16, 2  ;;  %s5678_s25 = sand.u32 1, %s6888_s13  }
 0x6bd   : > { %s5679_s0 = scalar_lea.sflag [#allocation3], %s5678_s25 }
 0x6be   : > { %p6376_p7 = pnand %p6379_p4, %p7001_p6 }
 0x6c0   : > { %p6377_p8 = pneg %p6376_p7 }
 0x6c2   : > { %6883 = dma.done.wait (%p6377_p8), %s5679_s0, 4096  }
 0x6c3   : > { %6885 = vsyncadd (%p6377_p8), %s5679_s0, 4294963200  ;;  %p20_p9 = scmp.ge.s32.totalorder %s6984_s19, 4   ;;  %s12525_s13 = smov %s6892_s14 }
 0x6c4   : > { %s12526_s14 = smov %s6896_s15  ;;  %s12527_s15 = smov %s6995_s22 }
 0x6c5   : > { %s12528_s16 = smov %s6984_s19  ;;  %22 = sbr.rel (!%p20_p9) target bundleno = 5 (0x5), region = 113 }
 0x6ca   :  { %5685 = vsyncpa [#allocation3], 1 }
 0x6cb   :  { %5687 = vsyncpa [#allocation3 + $0x1], 1 }

</bundles_post_ra>
